<compile_context>
chip_gen: v7x
topology: tpu7x:2x2x1
jax: 0.10.0
libtpu: 0.0.40
codegen_flags: <defaults>
</compile_context>

<pallas_src>
import jax
import jax.numpy as jnp
import numpy as np
from jax import lax
from jax.experimental import pallas as pl
from jax.experimental.pallas import tpu as pltpu

NEG_SLOPE = 0.01   # nn.LeakyReLU default used in SingleConv
C = 48             # channel width of every conv in the Encoder


# ----------------------------------------------------------------------------
# In-kernel building blocks (operate on jnp values, all intermediates in VMEM)
# ----------------------------------------------------------------------------
def _leaky(a):
    return jnp.where(a > 0, a, NEG_SLOPE * a)


def _pad_hw(x):
    """(h, w, c) -> (h+2, w+2, c) zero halo ('same' padding for a 3x3 conv)."""
    h, w, c = x.shape
    zr = jnp.zeros((1, w, c), x.dtype)
    x = jnp.concatenate([zr, x, zr], axis=0)
    zc = jnp.zeros((h + 2, 1, c), x.dtype)
    return jnp.concatenate([zc, x, zc], axis=1)


def _conv3x3_im2col(x, w2d, b_row, relu):
    """3x3 'same' conv, Cin = Cout = 48, as a single K=432 MXU matmul.

    x:     (h, w, 48) float32
    w2d:   (432, 48)  bfloat16   flattened (ky, kx, cin) x cout (HWIO order)
    b_row: (1, 48)    float32
    """
    h, w, c = x.shape
    xp = _pad_hw(x.astype(jnp.bfloat16))           # (h+2, w+2, 48) bf16
    cols = []
    for ky in range(3):
        row = xp[ky:ky + h]                        # hoisted ky slice (cheap)
        for kx in range(3):
            cols.append(row[:, kx:kx + w, :])      # (h, w, 48)
    patches = jnp.concatenate(cols, axis=-1)       # (h, w, 432) bf16
    patches = patches.reshape(h * w, 9 * c)        # im2col matrix
    acc = jnp.dot(patches, w2d, preferred_element_type=jnp.float32)
    acc = acc + b_row                              # f32 epilogue on the VPU
    if relu:
        acc = _leaky(acc)
    return acc.reshape(h, w, c)


def _conv1_vpu(x, w1, b_row):
    """3x3 'same' conv with Cin = 1 -> 48 as 9 VPU broadcast FMAs (no MXU).

    x: (h, w, 1) f32, w1: (9, 48) f32, b_row: (1, 48) f32.
    """
    h, w, _ = x.shape
    xp = _pad_hw(x)                                # (h+2, w+2, 1)
    acc = jnp.zeros((h * w, C), jnp.float32)
    for ky in range(3):
        for kx in range(3):
            t = ky * 3 + kx
            col = xp[ky:ky + h, kx:kx + w, :].reshape(h * w, 1)
            acc = acc + col * w1[t:t + 1, :]       # (h*w,1)*(1,48) FMA
    acc = _leaky(acc + b_row)
    return acc.reshape(h, w, C)


def _maxpool2x2(x):
    """(h, w, c) -> (h//2, w//2, c) 2x2/stride-2 max pool (no strided refs)."""
    h, w, c = x.shape
    x = x.reshape(h // 2, 2, w, c)
    x = jnp.maximum(x[:, 0], x[:, 1])              # pool along H
    x = x.reshape((h // 2) * (w // 2), 2, c)
    x = jnp.max(x, axis=1)                         # pool along W
    return x.reshape(h // 2, w // 2, c)


# ----------------------------------------------------------------------------
# Fused encoder kernel: one grid step = one batch element, everything in VMEM
# ----------------------------------------------------------------------------
def _encoder_kernel(x_ref, w1_ref, wst_ref, b_ref, o5_ref, s1_ref, s2_ref):
    # x_ref:   (1, H, W, 1)      f32   input image
    # w1_ref:  (9, 48)           f32   conv1 weights
    # wst_ref: (4, 432, 48)      bf16  conv2..conv5 weights (im2col layout)
    # b_ref:   (5, 48)           f32   biases conv1..conv5
    # o5_ref:  (1, H/8, W/8, 48) f32   conv5 output (pre-flatten)
    # s1_ref:  (1, H/2, W/2, 48) f32   skip after conv2 + pool
    # s2_ref:  (1, H/4, W/4, 48) f32   skip after conv3 + pool
    x = x_ref[0]
    b = b_ref[...]

    a = _conv1_vpu(x, w1_ref[...], b[0:1, :])                   # conv1
    a = _conv3x3_im2col(a, wst_ref[0], b[1:2, :], relu=True)    # conv2
    a = _maxpool2x2(a)
    s1_ref[0] = a

    a = _conv3x3_im2col(a, wst_ref[1], b[2:3, :], relu=True)    # conv3
    a = _maxpool2x2(a)
    s2_ref[0] = a

    a = _conv3x3_im2col(a, wst_ref[2], b[3:4, :], relu=True)    # conv4
    a = _maxpool2x2(a)
    a = _conv3x3_im2col(a, wst_ref[3], b[4:5, :], relu=False)   # conv5 (no relu)
    o5_ref[0] = a


# ----------------------------------------------------------------------------
# Public forward (matches PyTorch Encoder.forward semantics, NCHW in/out)
# ----------------------------------------------------------------------------
@jax.jit
def encoder_forward(x_nchw, params):
    """x_nchw: (N, 1, H, W) f32. Returns (flat, skips) with PyTorch NCHW skips."""
    N, Cin, H, W = x_nchw.shape
    assert Cin == 1 and H % 8 == 0 and W % 8 == 0
    x = jnp.transpose(x_nchw, (0, 2, 3, 1))                      # -> NHWC

    w1 = params["w1"].reshape(9, C).astype(jnp.float32)          # (9, 48)
    wst = jnp.stack(
        [params[f"w{i}"].reshape(9 * C, C) for i in (2, 3, 4, 5)]
    ).astype(jnp.bfloat16)                                       # (4, 432, 48)
    bst = jnp.stack(
        [params[f"b{i}"].reshape(C) for i in (1, 2, 3, 4, 5)]
    ).astype(jnp.float32)                                        # (5, 48)

    H1, W1 = H // 2, W // 2
    H2, W2 = H // 4, W // 4
    H3, W3 = H // 8, W // 8

    out5, skip1, skip2 = pl.pallas_call(
        _encoder_kernel,
        out_shape=(
            jax.ShapeDtypeStruct((N, H3, W3, C), jnp.float32),
            jax.ShapeDtypeStruct((N, H1, W1, C), jnp.float32),
            jax.ShapeDtypeStruct((N, H2, W2, C), jnp.float32),
        ),
        grid=(N,),
        in_specs=[
            pl.BlockSpec((1, H, W, Cin), lambda n: (n, 0, 0, 0)),
            pl.BlockSpec((9, C), lambda n: (0, 0)),
            pl.BlockSpec((4, 9 * C, C), lambda n: (0, 0, 0)),
            pl.BlockSpec((5, C), lambda n: (0, 0)),
        ],
        out_specs=(
            pl.BlockSpec((1, H3, W3, C), lambda n: (n, 0, 0, 0)),
            pl.BlockSpec((1, H1, W1, C), lambda n: (n, 0, 0, 0)),
            pl.BlockSpec((1, H2, W2, C), lambda n: (n, 0, 0, 0)),
        ),
        compiler_params=pltpu.CompilerParams(
            dimension_semantics=("parallel",)),
    )(x, w1, wst, bst)

    skips = [x_nchw,
             jnp.transpose(skip1, (0, 3, 1, 2)),
             jnp.transpose(skip2, (0, 3, 1, 2))]
    # torch.flatten(NCHW, 1) ordering: (c, h, w)
    flat = jnp.transpose(out5, (0, 3, 1, 2)).reshape(N, -1)
    return flat, skips


# ----------------------------------------------------------------------------
# Deterministic parameter init (PyTorch Conv2d-style uniform bounds, HWIO)
# ----------------------------------------------------------------------------
def init_params(key):
    params = {}
    chans = [(1, C), (C, C), (C, C), (C, C), (C, C)]
    for i, (cin, cout) in enumerate(chans, start=1):
        key, kw, kb = jax.random.split(key, 3)
        bound = 1.0 / np.sqrt(cin * 9)
        params[f"w{i}"] = jax.random.uniform(
            kw, (3, 3, cin, cout), jnp.float32, -bound, bound)
        params[f"b{i}"] = jax.random.uniform(
            kb, (cout,), jnp.float32, -bound, bound)
    return params


# ----------------------------------------------------------------------------
# Pure-JAX reference (for correctness check)
# ----------------------------------------------------------------------------
def reference_forward(x_nchw, params):
    def conv(x, w, b, relu):
        y = lax.conv_general_dilated(
            x, w, (1, 1), "SAME",
            dimension_numbers=("NHWC", "HWIO", "NHWC"))
        y = y + b.reshape(1, 1, 1, -1)
        return jnp.where(y > 0, y, NEG_SLOPE * y) if relu else y

    def pool(x):
        return lax.reduce_window(x, -jnp.inf, lax.max,
                                 (1, 2, 2, 1), (1, 2, 2, 1), "VALID")

    x = jnp.transpose(x_nchw, (0, 2, 3, 1))
    x = conv(x, params["w1"], params["b1"], True)
    x = conv(x, params["w2"], params["b2"], True)
    x = pool(x); s1 = x
    x = conv(x, params["w3"], params["b3"], True)
    x = pool(x); s2 = x
    x = conv(x, params["w4"], params["b4"], True)
    x = pool(x)
    x = conv(x, params["w5"], params["b5"], False)
    x = jnp.transpose(x, (0, 3, 1, 2))
    return (x.reshape(x.shape[0], -1),
            [jnp.transpose(s1, (0, 3, 1, 2)), jnp.transpose(s2, (0, 3, 1, 2))])


if __name__ == "__main__":
    key = jax.random.PRNGKey(0)
    kx, kp = jax.random.split(key)
    # Small synthetic input: batch=2, n_channels=1, 16x16 spatial (NCHW).
    x = jax.random.normal(kx, (2, 1, 16, 16), jnp.float32)
    params = init_params(kp)

    flat, skips = encoder_forward(x, params)
    jax.block_until_ready(flat)

    # sanity: (2, 48 * 2 * 2) after three 2x2 pools on 16x16
    assert flat.shape == (2, C * 2 * 2), flat.shape
    assert skips[0].shape == (2, 1, 16, 16)
    assert skips[1].shape == (2, C, 8, 8)
    assert skips[2].shape == (2, C, 4, 4)

    ref_flat, ref_skips = reference_forward(x, params)
    # conv2..conv5 use bf16 MXU operands (f32 accumulation) -> loosened tol.
    np.testing.assert_allclose(np.asarray(flat), np.asarray(ref_flat),
                               rtol=2e-2, atol=2e-2)
    np.testing.assert_allclose(np.asarray(skips[1]), np.asarray(ref_skips[0]),
                               rtol=2e-2, atol=2e-2)
    np.testing.assert_allclose(np.asarray(skips[2]), np.asarray(ref_skips[1]),
                               rtol=2e-2, atol=2e-2)

    print("KERNEL_OK")
</pallas_src>

<mosaic_0001>
module attributes {stable_mosaic.version = 11 : i64} {
  func.func @_encoder_kernel(%arg0: i32, %arg1: memref<1x16x16x1xf32, #tpu.memory_space<vmem>>, %arg2: memref<9x48xf32, #tpu.memory_space<vmem>>, %arg3: memref<4x432x48xbf16, #tpu.memory_space<vmem>>, %arg4: memref<5x48xf32, #tpu.memory_space<vmem>>, %arg5: memref<1x2x2x48xf32, #tpu.memory_space<vmem>>, %arg6: memref<1x8x8x48xf32, #tpu.memory_space<vmem>>, %arg7: memref<1x4x4x48xf32, #tpu.memory_space<vmem>>) attributes {dimension_semantics = [#tpu.dimension_semantics<parallel>], iteration_bounds = array<i64: 2>, scalar_prefetch = 0 : i64, scratch_operands = 0 : i64, tpu.core_type = #tpu.core_type<tc>, window_params = [{transform_indices = @transform_0, window_bounds = array<i64: 1, 16, 16, 1>}, {pipeline_mode = #tpu.pipeline_mode<synchronous>, transform_indices = @transform_1, window_bounds = array<i64: 9, 48>}, {pipeline_mode = #tpu.pipeline_mode<synchronous>, transform_indices = @transform_2, window_bounds = array<i64: 4, 432, 48>}, {pipeline_mode = #tpu.pipeline_mode<synchronous>, transform_indices = @transform_3, window_bounds = array<i64: 5, 48>}, {transform_indices = @transform_4, window_bounds = array<i64: 1, 2, 2, 48>}, {transform_indices = @transform_5, window_bounds = array<i64: 1, 8, 8, 48>}, {transform_indices = @transform_6, window_bounds = array<i64: 1, 4, 4, 48>}]} {
    %c0 = arith.constant 0 : index
    %c0_0 = arith.constant 0 : index
    %c0_1 = arith.constant 0 : index
    %c0_2 = arith.constant 0 : index
    %0 = vector.load %arg1[%c0, %c0_0, %c0_1, %c0_2] : memref<1x16x16x1xf32, #tpu.memory_space<vmem>>, vector<1x16x16x1xf32>
    %1 = vector.shape_cast %0 : vector<1x16x16x1xf32> to vector<16x16x1xf32>
    %c0_3 = arith.constant 0 : index
    %c0_4 = arith.constant 0 : index
    %2 = vector.load %arg4[%c0_3, %c0_4] : memref<5x48xf32, #tpu.memory_space<vmem>>, vector<5x48xf32>
    %c0_5 = arith.constant 0 : index
    %c0_6 = arith.constant 0 : index
    %3 = vector.load %arg2[%c0_5, %c0_6] : memref<9x48xf32, #tpu.memory_space<vmem>>, vector<9x48xf32>
    %4 = vector.extract_strided_slice %2 {offsets = [0, 0], sizes = [1, 48], strides = [1, 1]} : vector<5x48xf32> to vector<1x48xf32>
    %cst = arith.constant 0.000000e+00 : f32
    %5 = vector.broadcast %cst : f32 to vector<1x16x1xf32>
    %6 = tpu.concatenate %5, %1, %5 in 0 : vector<1x16x1xf32>, vector<16x16x1xf32>, vector<1x16x1xf32> -> vector<18x16x1xf32>
    %cst_7 = arith.constant 0.000000e+00 : f32
    %7 = vector.broadcast %cst_7 : f32 to vector<18x1x1xf32>
    %8 = tpu.concatenate %7, %6, %7 in 1 : vector<18x1x1xf32>, vector<18x16x1xf32>, vector<18x1x1xf32> -> vector<18x18x1xf32>
    %cst_8 = arith.constant 0.000000e+00 : f32
    %9 = vector.broadcast %cst_8 : f32 to vector<256x48xf32>
    %10 = vector.extract_strided_slice %8 {offsets = [0, 0, 0], sizes = [16, 16, 1], strides = [1, 1, 1]} : vector<18x18x1xf32> to vector<16x16x1xf32>
    %11 = vector.shape_cast %10 : vector<16x16x1xf32> to vector<256x1xf32>
    %12 = vector.extract_strided_slice %3 {offsets = [0, 0], sizes = [1, 48], strides = [1, 1]} : vector<9x48xf32> to vector<1x48xf32>
    %13 = vector.broadcast %11 : vector<256x1xf32> to vector<256x48xf32>
    %14 = vector.broadcast %12 : vector<1x48xf32> to vector<256x48xf32>
    %15 = arith.mulf %13, %14 : vector<256x48xf32>
    %16 = arith.addf %9, %15 : vector<256x48xf32>
    %17 = vector.extract_strided_slice %8 {offsets = [0, 1, 0], sizes = [16, 16, 1], strides = [1, 1, 1]} : vector<18x18x1xf32> to vector<16x16x1xf32>
    %18 = vector.shape_cast %17 : vector<16x16x1xf32> to vector<256x1xf32>
    %19 = vector.extract_strided_slice %3 {offsets = [1, 0], sizes = [1, 48], strides = [1, 1]} : vector<9x48xf32> to vector<1x48xf32>
    %20 = vector.broadcast %18 : vector<256x1xf32> to vector<256x48xf32>
    %21 = vector.broadcast %19 : vector<1x48xf32> to vector<256x48xf32>
    %22 = arith.mulf %20, %21 : vector<256x48xf32>
    %23 = arith.addf %16, %22 : vector<256x48xf32>
    %24 = vector.extract_strided_slice %8 {offsets = [0, 2, 0], sizes = [16, 16, 1], strides = [1, 1, 1]} : vector<18x18x1xf32> to vector<16x16x1xf32>
    %25 = vector.shape_cast %24 : vector<16x16x1xf32> to vector<256x1xf32>
    %26 = vector.extract_strided_slice %3 {offsets = [2, 0], sizes = [1, 48], strides = [1, 1]} : vector<9x48xf32> to vector<1x48xf32>
    %27 = vector.broadcast %25 : vector<256x1xf32> to vector<256x48xf32>
    %28 = vector.broadcast %26 : vector<1x48xf32> to vector<256x48xf32>
    %29 = arith.mulf %27, %28 : vector<256x48xf32>
    %30 = arith.addf %23, %29 : vector<256x48xf32>
    %31 = vector.extract_strided_slice %8 {offsets = [1, 0, 0], sizes = [16, 16, 1], strides = [1, 1, 1]} : vector<18x18x1xf32> to vector<16x16x1xf32>
    %32 = vector.shape_cast %31 : vector<16x16x1xf32> to vector<256x1xf32>
    %33 = vector.extract_strided_slice %3 {offsets = [3, 0], sizes = [1, 48], strides = [1, 1]} : vector<9x48xf32> to vector<1x48xf32>
    %34 = vector.broadcast %32 : vector<256x1xf32> to vector<256x48xf32>
    %35 = vector.broadcast %33 : vector<1x48xf32> to vector<256x48xf32>
    %36 = arith.mulf %34, %35 : vector<256x48xf32>
    %37 = arith.addf %30, %36 : vector<256x48xf32>
    %38 = vector.extract_strided_slice %8 {offsets = [1, 1, 0], sizes = [16, 16, 1], strides = [1, 1, 1]} : vector<18x18x1xf32> to vector<16x16x1xf32>
    %39 = vector.shape_cast %38 : vector<16x16x1xf32> to vector<256x1xf32>
    %40 = vector.extract_strided_slice %3 {offsets = [4, 0], sizes = [1, 48], strides = [1, 1]} : vector<9x48xf32> to vector<1x48xf32>
    %41 = vector.broadcast %39 : vector<256x1xf32> to vector<256x48xf32>
    %42 = vector.broadcast %40 : vector<1x48xf32> to vector<256x48xf32>
    %43 = arith.mulf %41, %42 : vector<256x48xf32>
    %44 = arith.addf %37, %43 : vector<256x48xf32>
    %45 = vector.extract_strided_slice %8 {offsets = [1, 2, 0], sizes = [16, 16, 1], strides = [1, 1, 1]} : vector<18x18x1xf32> to vector<16x16x1xf32>
    %46 = vector.shape_cast %45 : vector<16x16x1xf32> to vector<256x1xf32>
    %47 = vector.extract_strided_slice %3 {offsets = [5, 0], sizes = [1, 48], strides = [1, 1]} : vector<9x48xf32> to vector<1x48xf32>
    %48 = vector.broadcast %46 : vector<256x1xf32> to vector<256x48xf32>
    %49 = vector.broadcast %47 : vector<1x48xf32> to vector<256x48xf32>
    %50 = arith.mulf %48, %49 : vector<256x48xf32>
    %51 = arith.addf %44, %50 : vector<256x48xf32>
    %52 = vector.extract_strided_slice %8 {offsets = [2, 0, 0], sizes = [16, 16, 1], strides = [1, 1, 1]} : vector<18x18x1xf32> to vector<16x16x1xf32>
    %53 = vector.shape_cast %52 : vector<16x16x1xf32> to vector<256x1xf32>
    %54 = vector.extract_strided_slice %3 {offsets = [6, 0], sizes = [1, 48], strides = [1, 1]} : vector<9x48xf32> to vector<1x48xf32>
    %55 = vector.broadcast %53 : vector<256x1xf32> to vector<256x48xf32>
    %56 = vector.broadcast %54 : vector<1x48xf32> to vector<256x48xf32>
    %57 = arith.mulf %55, %56 : vector<256x48xf32>
    %58 = arith.addf %51, %57 : vector<256x48xf32>
    %59 = vector.extract_strided_slice %8 {offsets = [2, 1, 0], sizes = [16, 16, 1], strides = [1, 1, 1]} : vector<18x18x1xf32> to vector<16x16x1xf32>
    %60 = vector.shape_cast %59 : vector<16x16x1xf32> to vector<256x1xf32>
    %61 = vector.extract_strided_slice %3 {offsets = [7, 0], sizes = [1, 48], strides = [1, 1]} : vector<9x48xf32> to vector<1x48xf32>
    %62 = vector.broadcast %60 : vector<256x1xf32> to vector<256x48xf32>
    %63 = vector.broadcast %61 : vector<1x48xf32> to vector<256x48xf32>
    %64 = arith.mulf %62, %63 : vector<256x48xf32>
    %65 = arith.addf %58, %64 : vector<256x48xf32>
    %66 = vector.extract_strided_slice %8 {offsets = [2, 2, 0], sizes = [16, 16, 1], strides = [1, 1, 1]} : vector<18x18x1xf32> to vector<16x16x1xf32>
    %67 = vector.shape_cast %66 : vector<16x16x1xf32> to vector<256x1xf32>
    %68 = vector.extract_strided_slice %3 {offsets = [8, 0], sizes = [1, 48], strides = [1, 1]} : vector<9x48xf32> to vector<1x48xf32>
    %69 = vector.broadcast %67 : vector<256x1xf32> to vector<256x48xf32>
    %70 = vector.broadcast %68 : vector<1x48xf32> to vector<256x48xf32>
    %71 = arith.mulf %69, %70 : vector<256x48xf32>
    %72 = arith.addf %65, %71 : vector<256x48xf32>
    %73 = vector.broadcast %4 : vector<1x48xf32> to vector<256x48xf32>
    %74 = arith.addf %72, %73 : vector<256x48xf32>
    %cst_9 = arith.constant 0.000000e+00 : f32
    %75 = vector.broadcast %cst_9 : f32 to vector<256x48xf32>
    %76 = arith.cmpf ogt, %74, %75 : vector<256x48xf32>
    %cst_10 = arith.constant 0.00999999977 : f32
    %77 = vector.broadcast %cst_10 : f32 to vector<256x48xf32>
    %78 = arith.mulf %77, %74 : vector<256x48xf32>
    %79 = arith.select %76, %74, %78 : vector<256x48xi1>, vector<256x48xf32>
    %80 = vector.shape_cast %79 : vector<256x48xf32> to vector<16x16x48xf32>
    %c0_11 = arith.constant 0 : index
    %c0_12 = arith.constant 0 : index
    %c0_13 = arith.constant 0 : index
    %81 = vector.load %arg3[%c0_11, %c0_12, %c0_13] : memref<4x432x48xbf16, #tpu.memory_space<vmem>>, vector<1x432x48xbf16>
    %82 = vector.shape_cast %81 : vector<1x432x48xbf16> to vector<432x48xbf16>
    %83 = vector.extract_strided_slice %2 {offsets = [1, 0], sizes = [1, 48], strides = [1, 1]} : vector<5x48xf32> to vector<1x48xf32>
    %84 = arith.truncf %80 : vector<16x16x48xf32> to vector<16x16x48xbf16>
    %cst_14 = arith.constant 0.000000e+00 : bf16
    %85 = vector.broadcast %cst_14 : bf16 to vector<1x16x48xbf16>
    %86 = tpu.concatenate %85, %84, %85 in 0 : vector<1x16x48xbf16>, vector<16x16x48xbf16>, vector<1x16x48xbf16> -> vector<18x16x48xbf16>
    %cst_15 = arith.constant 0.000000e+00 : bf16
    %87 = vector.broadcast %cst_15 : bf16 to vector<18x1x48xbf16>
    %88 = tpu.concatenate %87, %86, %87 in 1 : vector<18x1x48xbf16>, vector<18x16x48xbf16>, vector<18x1x48xbf16> -> vector<18x18x48xbf16>
    %89 = vector.extract_strided_slice %88 {offsets = [0, 0, 0], sizes = [16, 18, 48], strides = [1, 1, 1]} : vector<18x18x48xbf16> to vector<16x18x48xbf16>
    %90 = vector.extract_strided_slice %89 {offsets = [0, 0, 0], sizes = [16, 16, 48], strides = [1, 1, 1]} : vector<16x18x48xbf16> to vector<16x16x48xbf16>
    %91 = vector.extract_strided_slice %89 {offsets = [0, 1, 0], sizes = [16, 16, 48], strides = [1, 1, 1]} : vector<16x18x48xbf16> to vector<16x16x48xbf16>
    %92 = vector.extract_strided_slice %89 {offsets = [0, 2, 0], sizes = [16, 16, 48], strides = [1, 1, 1]} : vector<16x18x48xbf16> to vector<16x16x48xbf16>
    %93 = vector.extract_strided_slice %88 {offsets = [1, 0, 0], sizes = [16, 18, 48], strides = [1, 1, 1]} : vector<18x18x48xbf16> to vector<16x18x48xbf16>
    %94 = vector.extract_strided_slice %93 {offsets = [0, 0, 0], sizes = [16, 16, 48], strides = [1, 1, 1]} : vector<16x18x48xbf16> to vector<16x16x48xbf16>
    %95 = vector.extract_strided_slice %93 {offsets = [0, 1, 0], sizes = [16, 16, 48], strides = [1, 1, 1]} : vector<16x18x48xbf16> to vector<16x16x48xbf16>
    %96 = vector.extract_strided_slice %93 {offsets = [0, 2, 0], sizes = [16, 16, 48], strides = [1, 1, 1]} : vector<16x18x48xbf16> to vector<16x16x48xbf16>
    %97 = vector.extract_strided_slice %88 {offsets = [2, 0, 0], sizes = [16, 18, 48], strides = [1, 1, 1]} : vector<18x18x48xbf16> to vector<16x18x48xbf16>
    %98 = vector.extract_strided_slice %97 {offsets = [0, 0, 0], sizes = [16, 16, 48], strides = [1, 1, 1]} : vector<16x18x48xbf16> to vector<16x16x48xbf16>
    %99 = vector.extract_strided_slice %97 {offsets = [0, 1, 0], sizes = [16, 16, 48], strides = [1, 1, 1]} : vector<16x18x48xbf16> to vector<16x16x48xbf16>
    %100 = vector.extract_strided_slice %97 {offsets = [0, 2, 0], sizes = [16, 16, 48], strides = [1, 1, 1]} : vector<16x18x48xbf16> to vector<16x16x48xbf16>
    %101 = tpu.concatenate %90, %91, %92, %94, %95, %96, %98, %99, %100 in 2 : vector<16x16x48xbf16>, vector<16x16x48xbf16>, vector<16x16x48xbf16>, vector<16x16x48xbf16>, vector<16x16x48xbf16>, vector<16x16x48xbf16>, vector<16x16x48xbf16>, vector<16x16x48xbf16>, vector<16x16x48xbf16> -> vector<16x16x432xbf16>
    %102 = vector.shape_cast %101 : vector<16x16x432xbf16> to vector<256x432xbf16>
    %cst_16 = arith.constant dense<0.000000e+00> : vector<256x48xf32>
    %103 = tpu.matmul %102, %82, %cst_16 {dimension_numbers = #tpu.dot_dimension_numbers<[1], [0], [0], [1], [0, 0, 1, 1], [], []>} : vector<256x432xbf16>, vector<432x48xbf16>, vector<256x48xf32> -> vector<256x48xf32>
    %104 = vector.broadcast %83 : vector<1x48xf32> to vector<256x48xf32>
    %105 = arith.addf %103, %104 : vector<256x48xf32>
    %cst_17 = arith.constant 0.000000e+00 : f32
    %106 = vector.broadcast %cst_17 : f32 to vector<256x48xf32>
    %107 = arith.cmpf ogt, %105, %106 : vector<256x48xf32>
    %cst_18 = arith.constant 0.00999999977 : f32
    %108 = vector.broadcast %cst_18 : f32 to vector<256x48xf32>
    %109 = arith.mulf %108, %105 : vector<256x48xf32>
    %110 = arith.select %107, %105, %109 : vector<256x48xi1>, vector<256x48xf32>
    %111 = vector.shape_cast %110 : vector<256x48xf32> to vector<16x16x48xf32>
    %112 = vector.shape_cast %111 : vector<16x16x48xf32> to vector<8x2x16x48xf32>
    %113 = vector.extract_strided_slice %112 {offsets = [0, 0, 0, 0], sizes = [8, 1, 16, 48], strides = [1, 1, 1, 1]} : vector<8x2x16x48xf32> to vector<8x1x16x48xf32>
    %114 = vector.shape_cast %113 : vector<8x1x16x48xf32> to vector<8x16x48xf32>
    %115 = vector.extract_strided_slice %112 {offsets = [0, 1, 0, 0], sizes = [8, 1, 16, 48], strides = [1, 1, 1, 1]} : vector<8x2x16x48xf32> to vector<8x1x16x48xf32>
    %116 = vector.shape_cast %115 : vector<8x1x16x48xf32> to vector<8x16x48xf32>
    %117 = arith.maximumf %114, %116 : vector<8x16x48xf32>
    %118 = vector.shape_cast %117 : vector<8x16x48xf32> to vector<64x2x48xf32>
    %cst_19 = arith.constant dense<0xFF800000> : vector<64x48xf32>
    %119 = vector.multi_reduction <maximumf>, %118, %cst_19 [1] : vector<64x2x48xf32> to vector<64x48xf32>
    %120 = vector.shape_cast %119 : vector<64x48xf32> to vector<8x8x48xf32>
    %c0_20 = arith.constant 0 : index
    %c0_21 = arith.constant 0 : index
    %c0_22 = arith.constant 0 : index
    %c0_23 = arith.constant 0 : index
    %121 = vector.load %arg6[%c0_20, %c0_21, %c0_22, %c0_23] : memref<1x8x8x48xf32, #tpu.memory_space<vmem>>, vector<1x8x8x48xf32>
    %122 = vector.shape_cast %121 : vector<1x8x8x48xf32> to vector<8x8x48xf32>
    %123 = vector.shape_cast %120 : vector<8x8x48xf32> to vector<1x8x8x48xf32>
    tpu.vector_store %arg6[%c0_20, %c0_21, %c0_22, %c0_23], %123 {strides = array<i32>} : memref<1x8x8x48xf32, #tpu.memory_space<vmem>>, vector<1x8x8x48xf32>,
    %c1 = arith.constant 1 : index
    %c0_24 = arith.constant 0 : index
    %c0_25 = arith.constant 0 : index
    %124 = vector.load %arg3[%c1, %c0_24, %c0_25] : memref<4x432x48xbf16, #tpu.memory_space<vmem>>, vector<1x432x48xbf16>
    %125 = vector.shape_cast %124 : vector<1x432x48xbf16> to vector<432x48xbf16>
    %126 = vector.extract_strided_slice %2 {offsets = [2, 0], sizes = [1, 48], strides = [1, 1]} : vector<5x48xf32> to vector<1x48xf32>
    %127 = arith.truncf %120 : vector<8x8x48xf32> to vector<8x8x48xbf16>
    %cst_26 = arith.constant 0.000000e+00 : bf16
    %128 = vector.broadcast %cst_26 : bf16 to vector<1x8x48xbf16>
    %129 = tpu.concatenate %128, %127, %128 in 0 : vector<1x8x48xbf16>, vector<8x8x48xbf16>, vector<1x8x48xbf16> -> vector<10x8x48xbf16>
    %cst_27 = arith.constant 0.000000e+00 : bf16
    %130 = vector.broadcast %cst_27 : bf16 to vector<10x1x48xbf16>
    %131 = tpu.concatenate %130, %129, %130 in 1 : vector<10x1x48xbf16>, vector<10x8x48xbf16>, vector<10x1x48xbf16> -> vector<10x10x48xbf16>
    %132 = vector.extract_strided_slice %131 {offsets = [0, 0, 0], sizes = [8, 10, 48], strides = [1, 1, 1]} : vector<10x10x48xbf16> to vector<8x10x48xbf16>
    %133 = vector.extract_strided_slice %132 {offsets = [0, 0, 0], sizes = [8, 8, 48], strides = [1, 1, 1]} : vector<8x10x48xbf16> to vector<8x8x48xbf16>
    %134 = vector.extract_strided_slice %132 {offsets = [0, 1, 0], sizes = [8, 8, 48], strides = [1, 1, 1]} : vector<8x10x48xbf16> to vector<8x8x48xbf16>
    %135 = vector.extract_strided_slice %132 {offsets = [0, 2, 0], sizes = [8, 8, 48], strides = [1, 1, 1]} : vector<8x10x48xbf16> to vector<8x8x48xbf16>
    %136 = vector.extract_strided_slice %131 {offsets = [1, 0, 0], sizes = [8, 10, 48], strides = [1, 1, 1]} : vector<10x10x48xbf16> to vector<8x10x48xbf16>
    %137 = vector.extract_strided_slice %136 {offsets = [0, 0, 0], sizes = [8, 8, 48], strides = [1, 1, 1]} : vector<8x10x48xbf16> to vector<8x8x48xbf16>
    %138 = vector.extract_strided_slice %136 {offsets = [0, 1, 0], sizes = [8, 8, 48], strides = [1, 1, 1]} : vector<8x10x48xbf16> to vector<8x8x48xbf16>
    %139 = vector.extract_strided_slice %136 {offsets = [0, 2, 0], sizes = [8, 8, 48], strides = [1, 1, 1]} : vector<8x10x48xbf16> to vector<8x8x48xbf16>
    %140 = vector.extract_strided_slice %131 {offsets = [2, 0, 0], sizes = [8, 10, 48], strides = [1, 1, 1]} : vector<10x10x48xbf16> to vector<8x10x48xbf16>
    %141 = vector.extract_strided_slice %140 {offsets = [0, 0, 0], sizes = [8, 8, 48], strides = [1, 1, 1]} : vector<8x10x48xbf16> to vector<8x8x48xbf16>
    %142 = vector.extract_strided_slice %140 {offsets = [0, 1, 0], sizes = [8, 8, 48], strides = [1, 1, 1]} : vector<8x10x48xbf16> to vector<8x8x48xbf16>
    %143 = vector.extract_strided_slice %140 {offsets = [0, 2, 0], sizes = [8, 8, 48], strides = [1, 1, 1]} : vector<8x10x48xbf16> to vector<8x8x48xbf16>
    %144 = tpu.concatenate %133, %134, %135, %137, %138, %139, %141, %142, %143 in 2 : vector<8x8x48xbf16>, vector<8x8x48xbf16>, vector<8x8x48xbf16>, vector<8x8x48xbf16>, vector<8x8x48xbf16>, vector<8x8x48xbf16>, vector<8x8x48xbf16>, vector<8x8x48xbf16>, vector<8x8x48xbf16> -> vector<8x8x432xbf16>
    %145 = vector.shape_cast %144 : vector<8x8x432xbf16> to vector<64x432xbf16>
    %cst_28 = arith.constant dense<0.000000e+00> : vector<64x48xf32>
    %146 = tpu.matmul %145, %125, %cst_28 {dimension_numbers = #tpu.dot_dimension_numbers<[1], [0], [0], [1], [0, 0, 1, 1], [], []>} : vector<64x432xbf16>, vector<432x48xbf16>, vector<64x48xf32> -> vector<64x48xf32>
    %147 = vector.broadcast %126 : vector<1x48xf32> to vector<64x48xf32>
    %148 = arith.addf %146, %147 : vector<64x48xf32>
    %cst_29 = arith.constant 0.000000e+00 : f32
    %149 = vector.broadcast %cst_29 : f32 to vector<64x48xf32>
    %150 = arith.cmpf ogt, %148, %149 : vector<64x48xf32>
    %cst_30 = arith.constant 0.00999999977 : f32
    %151 = vector.broadcast %cst_30 : f32 to vector<64x48xf32>
    %152 = arith.mulf %151, %148 : vector<64x48xf32>
    %153 = arith.select %150, %148, %152 : vector<64x48xi1>, vector<64x48xf32>
    %154 = vector.shape_cast %153 : vector<64x48xf32> to vector<8x8x48xf32>
    %155 = vector.shape_cast %154 : vector<8x8x48xf32> to vector<4x2x8x48xf32>
    %156 = vector.extract_strided_slice %155 {offsets = [0, 0, 0, 0], sizes = [4, 1, 8, 48], strides = [1, 1, 1, 1]} : vector<4x2x8x48xf32> to vector<4x1x8x48xf32>
    %157 = vector.shape_cast %156 : vector<4x1x8x48xf32> to vector<4x8x48xf32>
    %158 = vector.extract_strided_slice %155 {offsets = [0, 1, 0, 0], sizes = [4, 1, 8, 48], strides = [1, 1, 1, 1]} : vector<4x2x8x48xf32> to vector<4x1x8x48xf32>
    %159 = vector.shape_cast %158 : vector<4x1x8x48xf32> to vector<4x8x48xf32>
    %160 = arith.maximumf %157, %159 : vector<4x8x48xf32>
    %161 = vector.shape_cast %160 : vector<4x8x48xf32> to vector<16x2x48xf32>
    %cst_31 = arith.constant dense<0xFF800000> : vector<16x48xf32>
    %162 = vector.multi_reduction <maximumf>, %161, %cst_31 [1] : vector<16x2x48xf32> to vector<16x48xf32>
    %163 = vector.shape_cast %162 : vector<16x48xf32> to vector<4x4x48xf32>
    %c0_32 = arith.constant 0 : index
    %c0_33 = arith.constant 0 : index
    %c0_34 = arith.constant 0 : index
    %c0_35 = arith.constant 0 : index
    %164 = vector.load %arg7[%c0_32, %c0_33, %c0_34, %c0_35] : memref<1x4x4x48xf32, #tpu.memory_space<vmem>>, vector<1x4x4x48xf32>
    %165 = vector.shape_cast %164 : vector<1x4x4x48xf32> to vector<4x4x48xf32>
    %166 = vector.shape_cast %163 : vector<4x4x48xf32> to vector<1x4x4x48xf32>
    tpu.vector_store %arg7[%c0_32, %c0_33, %c0_34, %c0_35], %166 {strides = array<i32>} : memref<1x4x4x48xf32, #tpu.memory_space<vmem>>, vector<1x4x4x48xf32>,
    %c2 = arith.constant 2 : index
    %c0_36 = arith.constant 0 : index
    %c0_37 = arith.constant 0 : index
    %167 = vector.load %arg3[%c2, %c0_36, %c0_37] : memref<4x432x48xbf16, #tpu.memory_space<vmem>>, vector<1x432x48xbf16>
    %168 = vector.shape_cast %167 : vector<1x432x48xbf16> to vector<432x48xbf16>
    %169 = vector.extract_strided_slice %2 {offsets = [3, 0], sizes = [1, 48], strides = [1, 1]} : vector<5x48xf32> to vector<1x48xf32>
    %170 = arith.truncf %163 : vector<4x4x48xf32> to vector<4x4x48xbf16>
    %cst_38 = arith.constant 0.000000e+00 : bf16
    %171 = vector.broadcast %cst_38 : bf16 to vector<1x4x48xbf16>
    %172 = tpu.concatenate %171, %170, %171 in 0 : vector<1x4x48xbf16>, vector<4x4x48xbf16>, vector<1x4x48xbf16> -> vector<6x4x48xbf16>
    %cst_39 = arith.constant 0.000000e+00 : bf16
    %173 = vector.broadcast %cst_39 : bf16 to vector<6x1x48xbf16>
    %174 = tpu.concatenate %173, %172, %173 in 1 : vector<6x1x48xbf16>, vector<6x4x48xbf16>, vector<6x1x48xbf16> -> vector<6x6x48xbf16>
    %175 = vector.extract_strided_slice %174 {offsets = [0, 0, 0], sizes = [4, 6, 48], strides = [1, 1, 1]} : vector<6x6x48xbf16> to vector<4x6x48xbf16>
    %176 = vector.extract_strided_slice %175 {offsets = [0, 0, 0], sizes = [4, 4, 48], strides = [1, 1, 1]} : vector<4x6x48xbf16> to vector<4x4x48xbf16>
    %177 = vector.extract_strided_slice %175 {offsets = [0, 1, 0], sizes = [4, 4, 48], strides = [1, 1, 1]} : vector<4x6x48xbf16> to vector<4x4x48xbf16>
    %178 = vector.extract_strided_slice %175 {offsets = [0, 2, 0], sizes = [4, 4, 48], strides = [1, 1, 1]} : vector<4x6x48xbf16> to vector<4x4x48xbf16>
    %179 = vector.extract_strided_slice %174 {offsets = [1, 0, 0], sizes = [4, 6, 48], strides = [1, 1, 1]} : vector<6x6x48xbf16> to vector<4x6x48xbf16>
    %180 = vector.extract_strided_slice %179 {offsets = [0, 0, 0], sizes = [4, 4, 48], strides = [1, 1, 1]} : vector<4x6x48xbf16> to vector<4x4x48xbf16>
    %181 = vector.extract_strided_slice %179 {offsets = [0, 1, 0], sizes = [4, 4, 48], strides = [1, 1, 1]} : vector<4x6x48xbf16> to vector<4x4x48xbf16>
    %182 = vector.extract_strided_slice %179 {offsets = [0, 2, 0], sizes = [4, 4, 48], strides = [1, 1, 1]} : vector<4x6x48xbf16> to vector<4x4x48xbf16>
    %183 = vector.extract_strided_slice %174 {offsets = [2, 0, 0], sizes = [4, 6, 48], strides = [1, 1, 1]} : vector<6x6x48xbf16> to vector<4x6x48xbf16>
    %184 = vector.extract_strided_slice %183 {offsets = [0, 0, 0], sizes = [4, 4, 48], strides = [1, 1, 1]} : vector<4x6x48xbf16> to vector<4x4x48xbf16>
    %185 = vector.extract_strided_slice %183 {offsets = [0, 1, 0], sizes = [4, 4, 48], strides = [1, 1, 1]} : vector<4x6x48xbf16> to vector<4x4x48xbf16>
    %186 = vector.extract_strided_slice %183 {offsets = [0, 2, 0], sizes = [4, 4, 48], strides = [1, 1, 1]} : vector<4x6x48xbf16> to vector<4x4x48xbf16>
    %187 = tpu.concatenate %176, %177, %178, %180, %181, %182, %184, %185, %186 in 2 : vector<4x4x48xbf16>, vector<4x4x48xbf16>, vector<4x4x48xbf16>, vector<4x4x48xbf16>, vector<4x4x48xbf16>, vector<4x4x48xbf16>, vector<4x4x48xbf16>, vector<4x4x48xbf16>, vector<4x4x48xbf16> -> vector<4x4x432xbf16>
    %188 = vector.shape_cast %187 : vector<4x4x432xbf16> to vector<16x432xbf16>
    %cst_40 = arith.constant dense<0.000000e+00> : vector<16x48xf32>
    %189 = tpu.matmul %188, %168, %cst_40 {dimension_numbers = #tpu.dot_dimension_numbers<[1], [0], [0], [1], [0, 0, 1, 1], [], []>} : vector<16x432xbf16>, vector<432x48xbf16>, vector<16x48xf32> -> vector<16x48xf32>
    %190 = vector.broadcast %169 : vector<1x48xf32> to vector<16x48xf32>
    %191 = arith.addf %189, %190 : vector<16x48xf32>
    %cst_41 = arith.constant 0.000000e+00 : f32
    %192 = vector.broadcast %cst_41 : f32 to vector<16x48xf32>
    %193 = arith.cmpf ogt, %191, %192 : vector<16x48xf32>
    %cst_42 = arith.constant 0.00999999977 : f32
    %194 = vector.broadcast %cst_42 : f32 to vector<16x48xf32>
    %195 = arith.mulf %194, %191 : vector<16x48xf32>
    %196 = arith.select %193, %191, %195 : vector<16x48xi1>, vector<16x48xf32>
    %197 = vector.shape_cast %196 : vector<16x48xf32> to vector<4x4x48xf32>
    %198 = vector.shape_cast %197 : vector<4x4x48xf32> to vector<2x2x4x48xf32>
    %199 = vector.extract_strided_slice %198 {offsets = [0, 0, 0, 0], sizes = [2, 1, 4, 48], strides = [1, 1, 1, 1]} : vector<2x2x4x48xf32> to vector<2x1x4x48xf32>
    %200 = vector.shape_cast %199 : vector<2x1x4x48xf32> to vector<2x4x48xf32>
    %201 = vector.extract_strided_slice %198 {offsets = [0, 1, 0, 0], sizes = [2, 1, 4, 48], strides = [1, 1, 1, 1]} : vector<2x2x4x48xf32> to vector<2x1x4x48xf32>
    %202 = vector.shape_cast %201 : vector<2x1x4x48xf32> to vector<2x4x48xf32>
    %203 = arith.maximumf %200, %202 : vector<2x4x48xf32>
    %204 = vector.shape_cast %203 : vector<2x4x48xf32> to vector<4x2x48xf32>
    %cst_43 = arith.constant dense<0xFF800000> : vector<4x48xf32>
    %205 = vector.multi_reduction <maximumf>, %204, %cst_43 [1] : vector<4x2x48xf32> to vector<4x48xf32>
    %206 = vector.shape_cast %205 : vector<4x48xf32> to vector<2x2x48xf32>
    %c3 = arith.constant 3 : index
    %c0_44 = arith.constant 0 : index
    %c0_45 = arith.constant 0 : index
    %207 = vector.load %arg3[%c3, %c0_44, %c0_45] : memref<4x432x48xbf16, #tpu.memory_space<vmem>>, vector<1x432x48xbf16>
    %208 = vector.shape_cast %207 : vector<1x432x48xbf16> to vector<432x48xbf16>
    %209 = vector.extract_strided_slice %2 {offsets = [4, 0], sizes = [1, 48], strides = [1, 1]} : vector<5x48xf32> to vector<1x48xf32>
    %210 = arith.truncf %206 : vector<2x2x48xf32> to vector<2x2x48xbf16>
    %cst_46 = arith.constant 0.000000e+00 : bf16
    %211 = vector.broadcast %cst_46 : bf16 to vector<1x2x48xbf16>
    %212 = tpu.concatenate %211, %210, %211 in 0 : vector<1x2x48xbf16>, vector<2x2x48xbf16>, vector<1x2x48xbf16> -> vector<4x2x48xbf16>
    %cst_47 = arith.constant 0.000000e+00 : bf16
    %213 = vector.broadcast %cst_47 : bf16 to vector<4x1x48xbf16>
    %214 = tpu.concatenate %213, %212, %213 in 1 : vector<4x1x48xbf16>, vector<4x2x48xbf16>, vector<4x1x48xbf16> -> vector<4x4x48xbf16>
    %215 = vector.extract_strided_slice %214 {offsets = [0, 0, 0], sizes = [2, 4, 48], strides = [1, 1, 1]} : vector<4x4x48xbf16> to vector<2x4x48xbf16>
    %216 = vector.extract_strided_slice %215 {offsets = [0, 0, 0], sizes = [2, 2, 48], strides = [1, 1, 1]} : vector<2x4x48xbf16> to vector<2x2x48xbf16>
    %217 = vector.extract_strided_slice %215 {offsets = [0, 1, 0], sizes = [2, 2, 48], strides = [1, 1, 1]} : vector<2x4x48xbf16> to vector<2x2x48xbf16>
    %218 = vector.extract_strided_slice %215 {offsets = [0, 2, 0], sizes = [2, 2, 48], strides = [1, 1, 1]} : vector<2x4x48xbf16> to vector<2x2x48xbf16>
    %219 = vector.extract_strided_slice %214 {offsets = [1, 0, 0], sizes = [2, 4, 48], strides = [1, 1, 1]} : vector<4x4x48xbf16> to vector<2x4x48xbf16>
    %220 = vector.extract_strided_slice %219 {offsets = [0, 0, 0], sizes = [2, 2, 48], strides = [1, 1, 1]} : vector<2x4x48xbf16> to vector<2x2x48xbf16>
    %221 = vector.extract_strided_slice %219 {offsets = [0, 1, 0], sizes = [2, 2, 48], strides = [1, 1, 1]} : vector<2x4x48xbf16> to vector<2x2x48xbf16>
    %222 = vector.extract_strided_slice %219 {offsets = [0, 2, 0], sizes = [2, 2, 48], strides = [1, 1, 1]} : vector<2x4x48xbf16> to vector<2x2x48xbf16>
    %223 = vector.extract_strided_slice %214 {offsets = [2, 0, 0], sizes = [2, 4, 48], strides = [1, 1, 1]} : vector<4x4x48xbf16> to vector<2x4x48xbf16>
    %224 = vector.extract_strided_slice %223 {offsets = [0, 0, 0], sizes = [2, 2, 48], strides = [1, 1, 1]} : vector<2x4x48xbf16> to vector<2x2x48xbf16>
    %225 = vector.extract_strided_slice %223 {offsets = [0, 1, 0], sizes = [2, 2, 48], strides = [1, 1, 1]} : vector<2x4x48xbf16> to vector<2x2x48xbf16>
    %226 = vector.extract_strided_slice %223 {offsets = [0, 2, 0], sizes = [2, 2, 48], strides = [1, 1, 1]} : vector<2x4x48xbf16> to vector<2x2x48xbf16>
    %227 = tpu.concatenate %216, %217, %218, %220, %221, %222, %224, %225, %226 in 2 : vector<2x2x48xbf16>, vector<2x2x48xbf16>, vector<2x2x48xbf16>, vector<2x2x48xbf16>, vector<2x2x48xbf16>, vector<2x2x48xbf16>, vector<2x2x48xbf16>, vector<2x2x48xbf16>, vector<2x2x48xbf16> -> vector<2x2x432xbf16>
    %228 = vector.shape_cast %227 : vector<2x2x432xbf16> to vector<4x432xbf16>
    %cst_48 = arith.constant dense<0.000000e+00> : vector<4x48xf32>
    %229 = tpu.matmul %228, %208, %cst_48 {dimension_numbers = #tpu.dot_dimension_numbers<[1], [0], [0], [1], [0, 0, 1, 1], [], []>} : vector<4x432xbf16>, vector<432x48xbf16>, vector<4x48xf32> -> vector<4x48xf32>
    %230 = vector.broadcast %209 : vector<1x48xf32> to vector<4x48xf32>
    %231 = arith.addf %229, %230 : vector<4x48xf32>
    %232 = vector.shape_cast %231 : vector<4x48xf32> to vector<2x2x48xf32>
    %c0_49 = arith.constant 0 : index
    %c0_50 = arith.constant 0 : index
    %c0_51 = arith.constant 0 : index
    %c0_52 = arith.constant 0 : index
    %233 = vector.load %arg5[%c0_49, %c0_50, %c0_51, %c0_52] : memref<1x2x2x48xf32, #tpu.memory_space<vmem>>, vector<1x2x2x48xf32>
    %234 = vector.shape_cast %233 : vector<1x2x2x48xf32> to vector<2x2x48xf32>
    %235 = vector.shape_cast %232 : vector<2x2x48xf32> to vector<1x2x2x48xf32>
    tpu.vector_store %arg5[%c0_49, %c0_50, %c0_51, %c0_52], %235 {strides = array<i32>} : memref<1x2x2x48xf32, #tpu.memory_space<vmem>>, vector<1x2x2x48xf32>,
    return
  }
  func.func @transform_0(%arg0: i32) -> (i32, i32, i32, i32) {
    %c0_i32 = arith.constant 0 : i32
    %c0_i32_0 = arith.constant 0 : i32
    %c0_i32_1 = arith.constant 0 : i32
    %c0_i32_2 = arith.constant 0 : i32
    return %arg0, %c0_i32, %c0_i32_0, %c0_i32_1 : i32, i32, i32, i32
  }
  func.func @transform_1(%arg0: i32) -> (i32, i32) {
    %c0_i32 = arith.constant 0 : i32
    %c0_i32_0 = arith.constant 0 : i32
    %c0_i32_1 = arith.constant 0 : i32
    return %c0_i32, %c0_i32_0 : i32, i32
  }
  func.func @transform_2(%arg0: i32) -> (i32, i32, i32) {
    %c0_i32 = arith.constant 0 : i32
    %c0_i32_0 = arith.constant 0 : i32
    %c0_i32_1 = arith.constant 0 : i32
    %c0_i32_2 = arith.constant 0 : i32
    return %c0_i32, %c0_i32_0, %c0_i32_1 : i32, i32, i32
  }
  func.func @transform_3(%arg0: i32) -> (i32, i32) {
    %c0_i32 = arith.constant 0 : i32
    %c0_i32_0 = arith.constant 0 : i32
    %c0_i32_1 = arith.constant 0 : i32
    return %c0_i32, %c0_i32_0 : i32, i32
  }
  func.func @transform_4(%arg0: i32) -> (i32, i32, i32, i32) {
    %c0_i32 = arith.constant 0 : i32
    %c0_i32_0 = arith.constant 0 : i32
    %c0_i32_1 = arith.constant 0 : i32
    %c0_i32_2 = arith.constant 0 : i32
    return %arg0, %c0_i32, %c0_i32_0, %c0_i32_1 : i32, i32, i32, i32
  }
  func.func @transform_5(%arg0: i32) -> (i32, i32, i32, i32) {
    %c0_i32 = arith.constant 0 : i32
    %c0_i32_0 = arith.constant 0 : i32
    %c0_i32_1 = arith.constant 0 : i32
    %c0_i32_2 = arith.constant 0 : i32
    return %arg0, %c0_i32, %c0_i32_0, %c0_i32_1 : i32, i32, i32, i32
  }
  func.func @transform_6(%arg0: i32) -> (i32, i32, i32, i32) {
    %c0_i32 = arith.constant 0 : i32
    %c0_i32_0 = arith.constant 0 : i32
    %c0_i32_1 = arith.constant 0 : i32
    %c0_i32_2 = arith.constant 0 : i32
    return %arg0, %c0_i32, %c0_i32_0, %c0_i32_1 : i32, i32, i32, i32
  }
}

</mosaic_0001>

<bundles_post_ra>
// kernel: encoder_forward.1
= control target key start
LH: loop header
LB: loop body
LE: loop exit
PB: predicated region body
PF: predicated region fallthrough
CT: control target
= control target key end

     0   :  { %s11747_s0 = inlined_call_operand.vmem [shape: f32[2,16,16,1], index: 0, kind: input, shape index: {}]   ;;  %s11748_s1 = inlined_call_operand.vmem [shape: f32[9,48], index: 1, kind: input, shape index: {}]   ;;  %s11749_s2 = inlined_call_operand.vmem [shape: bf16[4,432,48], index: 2, kind: input, shape index: {}]   ;;  %s11750_s3 = inlined_call_operand.vmem [shape: f32[5,48], index: 3, kind: input, shape index: {}]   ;;  %s11751_s4 = inlined_call_operand.vmem [shape: f32[2,2,2,48], index: 4, kind: output, shape index: {0}]   ;;  %s11752_s5 = inlined_call_operand.hbm [shape: f32[2,8,8,48], index: 5, kind: output, shape index: {1}]   ;;  %s11753_s6 = inlined_call_operand.hbm [shape: f32[2,4,4,48], index: 6, kind: output, shape index: {2}]  }
   0x1   :  { %11811 = sst [smem:[#allocation23_spill]] %s11747_s0 }
   0x2   :  { %11812 = sst [smem:[#allocation24_spill]] %s11748_s1 }
   0x3   :  { %12 = vsyncpa [#allocation3], 0 }
   0x4   :  { %14 = vsyncpa [#allocation3 + $0x1], 0 }
   0x5   :  { %15 = vsyncpa [#allocation5], 0 }
   0x6   :  { %17 = vsyncpa [#allocation5 + $0x1], 0  ;;  %s8125_s21 = smov 0   ;;  %s8127_s22 = smov 0  }
   0x7   :  { %s8129_s23 = smov 0   ;;  %s8131_s24 = smov 0  }
   0x8 LB: > { %11813 = sst [smem:[#allocation8_spill]] %s8068_s23  ;;  %s8146_s25 = sadd.s32 4294967295, %s8072_s24   ;;  %s8072_s24 = sphi %s8131_s24, %s11978_s24   ;;  %s8068_s23 = sphi %s8129_s23, %s11975_s23   ;;  %s8064_s22 = sphi %s8127_s22, %s11977_s22   ;;  %s8060_s21 = sphi %s8125_s21, %s11976_s21  }
   0x9   : > { %s7259_s26 = sadd.s32 4294967294, %s8072_s24   ;;  %s8150_s27 = sadd.s32 1, %s8072_s24  }
   0xa   : > { %s145_s28 = sadd.s32 1, %s8068_s23  ;;  %s142_s29 = ssub.s32 %s8072_s24, %s8150_s27 }
   0xb   : > { %p155_p0 = scmp.ne.s32.totalorder %s8068_s23, %s8064_s22  ;;  %p143_p1 = scmp.eq.s32.totalorder %s142_s29, 0 }
   0xc   : > { %p156_p2 = scmp.eq.s32.totalorder %s8146_s25, 1  ;;  %p161_p3 = scmp.ne.s32.totalorder %s8064_s22, %s8060_s21 }
   0xd   : > { %p162_p4 = scmp.eq.s32.totalorder %s7259_s26, 1  ;;  %p7262_p7 = scmp.ge.s32.totalorder %s8072_s24, 1 }
   0xe   : > { %s8161_s30 = scalar_select %p143_p1, %s8068_s23, %s145_s28  }
   0xf   : > { %p8163_p5 = por %p156_p2, %p155_p0  ;;  %p8167_p6 = por %p162_p4, %p161_p3 }
  0x10   : > { %11814 = sst [smem:[#allocation9_spill]] %s8161_s30  ;;  %p223_p8 = scmp.lt.s32.totalorder %s8072_s24, 3 }
  0x12   : > { %p224_p9 = pnand %p7262_p7, %p223_p8 }
  0x14   : > { %227 = sbr.rel (%p224_p9) target bundleno = 2069 (0x815), region = 36 }
  0x1b   : > { %vm342_vm0 = vcmask 1040384   ;;  %p263_p10 = scmp.lt.s32.totalorder %s8146_s25, 1  ;;  %v11764_v0 = vmov 0   ;;  %v8075_v1 = vmov 0.0   ;;  %vm965_vm1 = vcmask 1045504   ;;  %s11817_s0 = sld [smem:[#allocation23_spill]] }
  0x1c   : > { %7848 = vset.pattern.permute.xlu0 %v11764_v0  ;;  %v343_v2 = vrot.slane %v8075_v1, 7  ;;  %7859 = vset.pattern.permute.xlu1 %v11764_v0  ;;  %vm688_vm2 = vcmask 1046528   ;;  %s11820_s1 = sld [smem:[#allocation24_spill]]  ;;  %vm2042_vm3 = vsmask.f32 256  ;;  %s11794_s20 = smov 96  }
  0x1d   : > { %s8177_s9 = scalar_select %p263_p10, %s8146_s25, 1  ;;  %3247 = vmatprep.subr.bf16.mxu1 %v11764_v0  ;;  %vm8416_vm4 = vmand %vm342_vm0, %vm2042_vm3  ;;  %vm2078_vm7 = vsmask.f32 7424  ;;  %vm2593_vm10 = vcmask 392192  }
  0x1e   : > { %v426_v3 = vsel %vm342_vm0, 0.0, %v343_v2  ;;  %v443_v4 = vsel %vm342_vm0, %v343_v2, 0.0  ;;  %v967_v5 = vrot.slane %v343_v2, 2  ;;  %v690_v6 = vrot.slane %v343_v2, 1  ;;  %s11806_s17 = smov 16   ;;  %s11804_s11 = smov 112  }
  0x1f   : > { %v7849_v7 = vpack.i.bf16 %v343_v2, %v426_v3  ;;  %v689_v8 = vrot.slane %v426_v3, 1  ;;  %v966_v9 = vrot.slane %v426_v3, 2  ;;  %v692_v10 = vrot.slane %v443_v4, 1  ;;  %s7590_s10 = sshll.u32 %s8177_s9, 8  ;;  %s11802_s19 = smov 48  }
  0x20   : > { %v969_v11 = vrot.slane %v443_v4, 2  ;;  %s11792_s29 = smov 64   ;;  %s11808_s26 = smov 32  }
  0x21   : > { %s8186_s13 = scalar_lea.vmem %s11817_s0, %s7590_s10  ;;  %7850 = vperm.xlu0 %7848, %v7849_v7   ;;  %v968_v12 = vsel %vm965_vm1, %v966_v9, %v967_v5  ;;  %v691_v13 = vsel %vm688_vm2, %v689_v8, %v690_v6  ;;  %v693_v14 = vsel %vm688_vm2, %v690_v6, %v692_v10  ;;  %s11790_s28 = smov 80  }
  0x22   : > { %v274_v15 = vld [vmem:[%s8186_s13] sm:$0xff]  ;;  %v275_v16 = vld [vmem:[%s8186_s13 + $0x8] sm:$0xff]  ;;  %v970_v17 = vsel %vm965_vm1, %v967_v5, %v969_v11  ;;  %v7854_v18 = vpack.i.bf16 %v693_v14, %v691_v13  ;;  %v276_v28 = vld [vmem:[%s8186_s13 + $0x10] sm:$0xff]  ;;  %s10255_s16 = sand.u32 1, %s8064_s22   ;;  %s11931_s12 = smov 112  }
  0x23   : > { %v345_v19 = vrot.slane %v274_v15, 7  ;;  %v346_v20 = vrot.slane %v275_v16, 7  ;;  %v7860_v21 = vpack.i.bf16 %v970_v17, %v968_v12  ;;  %v277_v29 = vld [vmem:[%s8186_s13 + $0x18] sm:$0xff]  ;;  %v348_v31 = vrot.slane %v276_v28, 7  ;;  %v278_v43 = vld [vmem:[%s8186_s13 + $0x20] sm:$0xff]  ;;  %v279_v46 = vld [vmem:[%s8186_s13 + $0x28] sm:$0xff] }
  0x24   : > { %v349_v36 = vrot.slane %v277_v29, 7  ;;  %v351_v48 = vrot.slane %v278_v43, 7  ;;  %v352_v53 = vrot.slane %v279_v46, 7  ;;  %v280_v62 = vld [vmem:[%s8186_s13 + $0x30] sm:$0xff]  ;;  %v281_v63 = vld [vmem:[%s8186_s13 + $0x38] sm:$0xff]  ;;  %v282_v16 = vld [vmem:[%s8186_s13 + $0x40] sm:$0xff] }
  0x25   : > { %v427_v22 = vsel %vm342_vm0, 0.0, %v345_v19  ;;  %v347_v23 = vsel %vm342_vm0, %v345_v19, %v346_v20  ;;  %v444_v24 = vsel %vm342_vm0, %v346_v20, 0.0  ;;  %7861 = vperm.xlu1 %7859, %v7860_v21   ;;  %7855 = vperm.xlu0 %7848, %v7854_v18   ;;  %v428_v39 = vsel %vm342_vm0, 0.0, %v348_v31  ;;  %v283_v17 = vld [vmem:[%s8186_s13 + $0x48] sm:$0xff]  ;;  %s7263_s18 = sshll.u32 %s10255_s16, 6  ;;  %s7264_s14 = sshll.u32 %s10255_s16, 4 }
  0x26   : > { %v694_v25 = vrot.slane %v427_v22, 1  ;;  %v695_v26 = vrot.slane %v347_v23, 1  ;;  %v697_v27 = vrot.slane %v444_v24, 1  ;;  %v971_v30 = vrot.slane %v427_v22, 2  ;;  %s10271_s10 = scalar_lea.vmem [#allocation2], %s7263_s18  ;;  %s11876_s18 = smov 80  }
  0x27   : > { %v972_v32 = vrot.slane %v347_v23, 2  ;;  %v974_v35 = vrot.slane %v444_v24, 2  ;;  %v350_v40 = vsel %vm342_vm0, %v348_v31, %v349_v36  ;;  %v445_v41 = vsel %vm342_vm0, %v349_v36, 0.0  ;;  %v285_v31 = vld [vmem:[%s8186_s13 + $0x58] sm:$0xff]  ;;  %s11182_s15 = scalar_lea.vmem [#allocation4], %s7264_s14  ;;  %s11933_s0 = smov 32  }
  0x28   : > { %v696_v33 = vsel %vm688_vm2, %v694_v25, %v695_v26  ;;  %v698_v34 = vsel %vm688_vm2, %v695_v26, %v697_v27  ;;  %v699_v42 = vrot.slane %v428_v39, 1  ;;  %v700_v44 = vrot.slane %v350_v40, 1  ;;  %v284_v27 = vld [vmem:[%s8186_s13 + $0x50] sm:$0xff]  ;;  %s7592_s30 = sshll.u32 %s8146_s25, 10 }
  0x29   : > { %471 = vperm.xlu1 %7859, %v427_v22   ;;  %475 = vperm.xlu0 %7848, %v347_v23   ;;  %v973_v37 = vsel %vm965_vm1, %v971_v30, %v972_v32  ;;  %v975_v38 = vsel %vm965_vm1, %v972_v32, %v974_v35  ;;  %v702_v45 = vrot.slane %v445_v41, 1  ;;  %v976_v47 = vrot.slane %v428_v39, 2 }
  0x2a   : > { %v977_v49 = vrot.slane %v350_v40, 2  ;;  %v701_v50 = vsel %vm688_vm2, %v699_v42, %v700_v44  ;;  %v979_v52 = vrot.slane %v445_v41, 2  ;;  %v429_v56 = vsel %vm342_vm0, 0.0, %v351_v48 }
  0x2b   : > { %v703_v51 = vsel %vm688_vm2, %v700_v44, %v702_v45  ;;  %v353_v57 = vsel %vm342_vm0, %v351_v48, %v352_v53  ;;  %v446_v58 = vsel %vm342_vm0, %v352_v53, 0.0  ;;  %v704_v59 = vrot.slane %v429_v56, 1 }
  0x2c   : > { %v978_v54 = vsel %vm965_vm1, %v976_v47, %v977_v49  ;;  %v980_v55 = vsel %vm965_vm1, %v977_v49, %v979_v52  ;;  %v705_v60 = vrot.slane %v353_v57, 1  ;;  %v707_v61 = vrot.slane %v446_v58, 1 }
  0x2d   : > { %778 = vperm.xlu1 %7859, %v696_v33   ;;  %782 = vperm.xlu0 %7848, %v698_v34   ;;  %v981_v1 = vrot.slane %v429_v56, 2  ;;  %v982_v2 = vrot.slane %v353_v57, 2  ;;  %v984_v5 = vrot.slane %v446_v58, 2  ;;  %v354_v6 = vrot.slane %v280_v62, 7  ;;  %v286_v33 = vld [vmem:[%s8186_s13 + $0x60] sm:$0xff] }
  0x2e   : > { %v706_v3 = vsel %vm688_vm2, %v704_v59, %v705_v60  ;;  %v708_v4 = vsel %vm688_vm2, %v705_v60, %v707_v61  ;;  %v355_v7 = vrot.slane %v281_v63, 7  ;;  %v357_v23 = vrot.slane %v282_v16, 7 }
  0x2f   : > { %v983_v8 = vsel %vm965_vm1, %v981_v1, %v982_v2  ;;  %v985_v9 = vsel %vm965_vm1, %v982_v2, %v984_v5  ;;  %v430_v10 = vsel %vm342_vm0, 0.0, %v354_v6  ;;  %v358_v24 = vrot.slane %v283_v17, 7 }
  0x30   : > { %v356_v11 = vsel %vm342_vm0, %v354_v6, %v355_v7  ;;  %v447_v12 = vsel %vm342_vm0, %v355_v7, 0.0  ;;  %v709_v13 = vrot.slane %v430_v10, 1  ;;  %v986_v18 = vrot.slane %v430_v10, 2 }
  0x31   : > { %1055 = vperm.xlu1 %7859, %v973_v37   ;;  %1059 = vperm.xlu0 %7848, %v975_v38   ;;  %v710_v14 = vrot.slane %v356_v11, 1  ;;  %v712_v15 = vrot.slane %v447_v12, 1  ;;  %v987_v19 = vrot.slane %v356_v11, 2  ;;  %v989_v22 = vrot.slane %v447_v12, 2  ;;  %v291_v12 = vld [vmem:[%s8186_s13 + $0x88] sm:$0xff] }
  0x32   : > { %v431_v28 = vsel %vm342_vm0, 0.0, %v357_v23  ;;  %v359_v29 = vsel %vm342_vm0, %v357_v23, %v358_v24  ;;  %v448_v30 = vsel %vm342_vm0, %v358_v24, 0.0  ;;  %v360_v32 = vrot.slane %v284_v27, 7 }
  0x33   : > { %v711_v20 = vsel %vm688_vm2, %v709_v13, %v710_v14  ;;  %v713_v21 = vsel %vm688_vm2, %v710_v14, %v712_v15  ;;  %v988_v25 = vsel %vm965_vm1, %v986_v18, %v987_v19  ;;  %v990_v26 = vsel %vm965_vm1, %v987_v19, %v989_v22  ;;  %v292_v13 = vld [vmem:[%s8186_s13 + $0x90] sm:$0xff] }
  0x34   : > { %v714_v34 = vrot.slane %v431_v28, 1  ;;  %v715_v35 = vrot.slane %v359_v29, 1  ;;  %v717_v36 = vrot.slane %v448_v30, 1  ;;  %v361_v37 = vrot.slane %v285_v31, 7 }
  0x35   : > { %480 = vperm.xlu1 %7859, %v428_v39   ;;  %484 = vperm.xlu0 %7848, %v350_v40   ;;  %v991_v38 = vrot.slane %v431_v28, 2  ;;  %v363_v39 = vrot.slane %v286_v33, 7  ;;  %v287_v40 = vld [vmem:[%s8186_s13 + $0x68] sm:$0xff]  ;;  %v992_v41 = vrot.slane %v359_v29, 2  ;;  %v432_v42 = vsel %vm342_vm0, 0.0, %v360_v32 }
  0x36   : > { %v716_v43 = vsel %vm688_vm2, %v714_v34, %v715_v35  ;;  %v718_v44 = vsel %vm688_vm2, %v715_v35, %v717_v36  ;;  %v994_v45 = vrot.slane %v448_v30, 2  ;;  %v362_v46 = vsel %vm342_vm0, %v360_v32, %v361_v37  ;;  %v293_v36 = vld [vmem:[%s8186_s13 + $0x98] sm:$0xff] }
  0x37   : > { %v449_v47 = vsel %vm342_vm0, %v361_v37, 0.0  ;;  %v719_v48 = vrot.slane %v432_v42, 1  ;;  %v996_v49 = vrot.slane %v432_v42, 2  ;;  %v993_v52 = vsel %vm965_vm1, %v991_v38, %v992_v41 }
  0x38   : > { %v995_v53 = vsel %vm965_vm1, %v992_v41, %v994_v45  ;;  %v999_v58 = vrot.slane %v449_v47, 2  ;;  %v370_v19 = vrot.slane %v291_v12, 7 }
  0x39   : > { %786 = vperm.xlu1 %7859, %v701_v50   ;;  %790 = vperm.xlu0 %7848, %v703_v51   ;;  %v433_v50 = vsel %vm342_vm0, 0.0, %v363_v39  ;;  %v364_v51 = vrot.slane %v287_v40, 7 }
  0x3a   : > { %v724_v59 = vrot.slane %v433_v50, 1  ;;  %v1001_v60 = vrot.slane %v433_v50, 2  ;;  %v452_v38 = vsel %vm342_vm0, %v370_v19, 0.0 }
  0x3b   : > { %v365_v61 = vsel %vm342_vm0, %v363_v39, %v364_v51  ;;  %v450_v62 = vsel %vm342_vm0, %v364_v51, 0.0  ;;  %v1014_v45 = vrot.slane %v452_v38, 2 }
  0x3c   : > { %v725_v63 = vrot.slane %v365_v61, 1  ;;  %v1002_v7 = vrot.slane %v365_v61, 2  ;;  %v1004_v16 = vrot.slane %v450_v62, 2 }
  0x3d   : > { %1063 = vperm.xlu1 %7859, %v978_v54   ;;  %1067 = vperm.xlu0 %7848, %v980_v55   ;;  %v720_v54 = vrot.slane %v362_v46, 1  ;;  %v997_v55 = vrot.slane %v362_v46, 2 }
  0x3e   : > { %v726_v14 = vsel %vm688_vm2, %v724_v59, %v725_v63  ;;  %v1003_v23 = vsel %vm965_vm1, %v1001_v60, %v1002_v7  ;;  %v1005_v24 = vsel %vm965_vm1, %v1002_v7, %v1004_v16  ;;  %v8298_v16 = vld [vmem:[%s11820_s1] sm:$0xff] }
  0x3f   : > { %v721_v2 = vsel %vm688_vm2, %v719_v48, %v720_v54  ;;  %v998_v5 = vsel %vm965_vm1, %v996_v49, %v997_v55  ;;  %v1000_v6 = vsel %vm965_vm1, %v997_v55, %v999_v58  ;;  %v294_v55 = vld [vmem:[%s8186_s13 + $0xa0] sm:$0xff] }
  0x41   : > { %489 = vperm.xlu1 %7859, %v429_v56   ;;  %493 = vperm.xlu0 %7848, %v353_v57   ;;  %v722_v56 = vrot.slane %v449_v47, 1  ;;  %v288_v57 = vld [vmem:[%s8186_s13 + $0x70] sm:$0xff] }
  0x42   : > { %v366_v1 = vrot.slane %v288_v57, 7 }
  0x45   : > { %794 = vperm.xlu1 %7859, %v706_v3   ;;  %798 = vperm.xlu0 %7848, %v708_v4   ;;  %v723_v3 = vsel %vm688_vm2, %v720_v54, %v722_v56  ;;  %v289_v4 = vld [vmem:[%s8186_s13 + $0x78] sm:$0xff]  ;;  %v295_v56 = vld [vmem:[%s8186_s13 + $0xa8] sm:$0xff] }
  0x49   : > { %1071 = vperm.xlu1 %7859, %v983_v8   ;;  %1075 = vperm.xlu0 %7848, %v985_v9   ;;  %v727_v8 = vrot.slane %v450_v62, 1  ;;  %v290_v9 = vld [vmem:[%s8186_s13 + $0x80] sm:$0xff]  ;;  %v375_v62 = vrot.slane %v294_v55, 7 }
  0x4a   : > { %v369_v17 = vrot.slane %v290_v9, 7 }
  0x4b   : > { %v728_v15 = vsel %vm688_vm2, %v725_v63, %v727_v8  ;;  %v376_v63 = vrot.slane %v295_v56, 7  ;;  %v299_v56 = vld [vmem:[%s8186_s13 + $0xc8] sm:$0xff] }
  0x4c   : > { %v371_v33 = vsel %vm342_vm0, %v369_v17, %v370_v19 }
  0x4d   : > { %498 = vperm.xlu1 %7859, %v430_v10   ;;  %502 = vperm.xlu0 %7848, %v356_v11   ;;  %v434_v10 = vsel %vm342_vm0, 0.0, %v366_v1  ;;  %v367_v11 = vrot.slane %v289_v4, 7  ;;  %v735_v37 = vrot.slane %v371_v33, 1  ;;  %v1012_v41 = vrot.slane %v371_v33, 2 }
  0x4e   : > { %v437_v4 = vsel %vm342_vm0, 0.0, %v375_v62 }
  0x4f   : > { %v368_v18 = vsel %vm342_vm0, %v366_v1, %v367_v11  ;;  %v451_v22 = vsel %vm342_vm0, %v367_v11, 0.0  ;;  %v604_v1 = vlaneseq  ;;  %v744_v8 = vrot.slane %v437_v4, 1  ;;  %v296_v11 = vld [vmem:[%s8186_s13 + $0xb0] sm:$0xff] }
  0x50   : > { %v732_v27 = vrot.slane %v451_v22, 1  ;;  %v1009_v30 = vrot.slane %v451_v22, 2  ;;  %v378_v22 = vrot.slane %v296_v11, 7 }
  0x51   : > { %802 = vperm.xlu1 %7859, %v711_v20   ;;  %806 = vperm.xlu0 %7848, %v713_v21   ;;  %v372_v20 = vrot.slane %v292_v13, 7  ;;  %v729_v21 = vrot.slane %v434_v10, 1  ;;  %v8287_v7 = vshrl.u32 %v604_v1, 7 }
  0x53   : > { %11818 = vst [vmem:[#allocation10_spill] sm:$0xff] %v8287_v7  ;;  %v606_v12 = vsub.s32 0, %v8287_v7 }
  0x55   : > { %1079 = vperm.xlu1 %7859, %v988_v25   ;;  %1083 = vperm.xlu0 %7848, %v990_v26   ;;  %v1006_v25 = vrot.slane %v434_v10, 2  ;;  %v730_v26 = vrot.slane %v368_v18, 1 }
  0x57   : > { %v731_v34 = vsel %vm688_vm2, %v729_v21, %v730_v26  ;;  %v733_v35 = vsel %vm688_vm2, %v730_v26, %v732_v27  ;;  %v8307_v26 = vrot.slane %v8298_v16, %v606_v12 }
  0x59   : > { %507 = vperm.xlu1 %7859, %v431_v28   ;;  %511 = vperm.xlu0 %7848, %v359_v29   ;;  %v435_v28 = vsel %vm342_vm0, 0.0, %v369_v17  ;;  %v1007_v29 = vrot.slane %v368_v18, 2  ;;  %v1021_v17 = vrot.slane %v437_v4, 2 }
  0x5a   : > { %v734_v31 = vrot.slane %v435_v28, 1  ;;  %v1011_v32 = vrot.slane %v435_v28, 2 }
  0x5b   : > { %v1008_v39 = vsel %vm965_vm1, %v1006_v25, %v1007_v29  ;;  %v1010_v40 = vsel %vm965_vm1, %v1007_v29, %v1009_v30 }
  0x5c   : > { %v736_v47 = vsel %vm688_vm2, %v734_v31, %v735_v37  ;;  %v1013_v49 = vsel %vm965_vm1, %v1011_v32, %v1012_v41 }
  0x5d   : > { %810 = vperm.xlu1 %7859, %v716_v43   ;;  %814 = vperm.xlu0 %7848, %v718_v44   ;;  %v737_v43 = vrot.slane %v452_v38, 1  ;;  %v436_v44 = vsel %vm342_vm0, 0.0, %v372_v20 }
  0x5e   : > { %v1016_v57 = vrot.slane %v436_v44, 2 }
  0x5f   : > { %v738_v48 = vsel %vm688_vm2, %v735_v37, %v737_v43  ;;  %v11755_v37 = vsub.s32 3, %v8287_v7 }
  0x61   : > { %1087 = vperm.xlu1 %7859, %v993_v52   ;;  %1091 = vperm.xlu0 %7848, %v995_v53   ;;  %v739_v52 = vrot.slane %v436_v44, 1 }
  0x65   : > { %516 = vperm.xlu1 %7859, %v432_v42   ;;  %520 = vperm.xlu0 %7848, %v362_v46   ;;  %v373_v42 = vrot.slane %v293_v36, 7 }
  0x67   : > { %v453_v46 = vsel %vm342_vm0, %v373_v42, 0.0  ;;  %v374_v51 = vsel %vm342_vm0, %v372_v20, %v373_v42 }
  0x68   : > { %v740_v53 = vrot.slane %v374_v51, 1  ;;  %v742_v54 = vrot.slane %v453_v46, 1  ;;  %v1017_v58 = vrot.slane %v374_v51, 2 }
  0x69   : > { %818 = vperm.xlu1 %7859, %v721_v2   ;;  %822 = vperm.xlu0 %7848, %v723_v3  }
  0x6a   : > { %v741_v59 = vsel %vm688_vm2, %v739_v52, %v740_v53  ;;  %v743_v60 = vsel %vm688_vm2, %v740_v53, %v742_v54  ;;  %v1018_v2 = vsel %vm965_vm1, %v1016_v57, %v1017_v58  ;;  %v298_v52 = vld [vmem:[%s8186_s13 + $0xc0] sm:$0xff]  ;;  %v8358_v54 = vrot.slane %v8298_v16, %v11755_v37 }
  0x6b   : > { %v381_v1 = vrot.slane %v298_v52, 7 }
  0x6d   : > { %1095 = vperm.xlu1 %7859, %v998_v5   ;;  %1099 = vperm.xlu0 %7848, %v1000_v6   ;;  %v377_v5 = vsel %vm342_vm0, %v375_v62, %v376_v63  ;;  %v454_v6 = vsel %vm342_vm0, %v376_v63, 0.0 }
  0x6e   : > { %v745_v9 = vrot.slane %v377_v5, 1  ;;  %v1022_v19 = vrot.slane %v377_v5, 2 }
  0x70   : > { %v746_v20 = vsel %vm688_vm2, %v744_v8, %v745_v9 }
  0x71   : > { %525 = vperm.xlu1 %7859, %v433_v50   ;;  %529 = vperm.xlu0 %7848, %v365_v61   ;;  %v1015_v50 = vsel %vm965_vm1, %v1012_v41, %v1014_v45  ;;  %v1019_v61 = vrot.slane %v453_v46, 2  ;;  %v11754_v46 = vsub.s32 4, %v8287_v7 }
  0x73   : > { %v1020_v3 = vsel %vm965_vm1, %v1017_v58, %v1019_v61  ;;  %v8369_v62 = vrot.slane %v8298_v16, %v11754_v46 }
  0x75   : > { %826 = vperm.xlu1 %7859, %v726_v14   ;;  %830 = vperm.xlu0 %7848, %v728_v15   ;;  %v11757_v14 = vsub.s32 1, %v8287_v7  ;;  %v297_v15 = vld [vmem:[%s8186_s13 + $0xb8] sm:$0xff] }
  0x77   : > { %v8316_v29 = vrot.slane %v8298_v16, %v11757_v14 }
  0x79   : > { %1103 = vperm.xlu1 %7859, %v1003_v23   ;;  %1107 = vperm.xlu0 %7848, %v1005_v24   ;;  %v1024_v23 = vrot.slane %v454_v6, 2  ;;  %v379_v24 = vrot.slane %v297_v15, 7 }
  0x7b   : > { %v1025_v38 = vsel %vm965_vm1, %v1022_v19, %v1024_v23  ;;  %v455_v45 = vsel %vm342_vm0, %v379_v24, 0.0 }
  0x7c   : > { %v752_v55 = vrot.slane %v455_v45, 1 }
  0x7d   : > { %534 = vperm.xlu1 %7859, %v434_v10   ;;  %538 = vperm.xlu0 %7848, %v368_v18   ;;  %v747_v10 = vrot.slane %v454_v6, 1  ;;  %v11756_v18 = vsub.s32 2, %v8287_v7  ;;  %v1484_v6 = vsub.s32 6, %v8287_v7 }
  0x7f   : > { %v748_v21 = vsel %vm688_vm2, %v745_v9, %v747_v10  ;;  %v1029_v10 = vrot.slane %v455_v45, 2 }
  0x81   : > { %834 = vperm.xlu1 %7859, %v731_v34   ;;  %838 = vperm.xlu0 %7848, %v733_v35   ;;  %v1023_v34 = vsel %vm965_vm1, %v1021_v17, %v1022_v19  ;;  %v438_v35 = vsel %vm342_vm0, 0.0, %v378_v22 }
  0x82   : > { %v1026_v63 = vrot.slane %v438_v35, 2 }
  0x85   : > { %1111 = vperm.xlu1 %7859, %v1008_v39   ;;  %1115 = vperm.xlu0 %7848, %v1010_v40   ;;  %v380_v39 = vsel %vm342_vm0, %v378_v22, %v379_v24  ;;  %v439_v24 = vsel %vm342_vm0, 0.0, %v381_v1 }
  0x89   : > { %543 = vperm.xlu1 %7859, %v435_v28   ;;  %547 = vperm.xlu0 %7848, %v371_v33   ;;  %v8324_v33 = vrot.slane %v8298_v16, %v11756_v18 }
  0x8d   : > { %842 = vperm.xlu1 %7859, %v736_v47   ;;  %846 = vperm.xlu0 %7848, %v738_v48   ;;  %v749_v47 = vrot.slane %v438_v35, 1 }
  0x91   : > { %1119 = vperm.xlu1 %7859, %v1013_v49   ;;  %1123 = vperm.xlu0 %7848, %v1015_v50  }
  0x95   : > { %552 = vperm.xlu1 %7859, %v436_v44   ;;  %556 = vperm.xlu0 %7848, %v374_v51   ;;  %v750_v51 = vrot.slane %v380_v39, 1 }
  0x97   : > { %v753_v9 = vsel %vm688_vm2, %v750_v51, %v752_v55  ;;  %v1891_v55 = vrot.slane %v11764_v0, 7 }
  0x99   : > { %850 = vperm.xlu1 %7859, %v741_v59   ;;  %854 = vperm.xlu0 %7848, %v743_v60   ;;  %v1416_v60 = vsub.s32 5, %v8287_v7 }
  0x9d   : > { %1127 = vperm.xlu1 %7859, %v1018_v2   ;;  %1131 = vperm.xlu0 %7848, %v1020_v3   ;;  %v1027_v3 = vrot.slane %v380_v39, 2 }
  0x9f   : > { %v1028_v23 = vsel %vm965_vm1, %v1026_v63, %v1027_v3 }
  0xa0   : > { %v8291_v13 = vpop.permute.xlu0 %7850 }
  0xa1   : > { %11819 = vst [vmem:[#allocation11_spill] sm:$0xff] %v8291_v13  ;;  %561 = vperm.xlu1 %7859, %v437_v4   ;;  %565 = vperm.xlu0 %7848, %v377_v5   ;;  %v11763_v25 = vunpack.i.l.bf16 %v8291_v13  ;;  %v11762_v32 = vunpack.i.h.bf16 %v8291_v13  ;;  %v751_v4 = vsel %vm688_vm2, %v749_v47, %v750_v51  ;;  %v382_v5 = vrot.slane %v299_v56, 7 }
  0xa2   : > { %v754_v51 = vrot.slane %v439_v24, 1 }
  0xa3   : > { %v608_v40 = vmul.f32 %v11763_v25, %v8307_v26  ;;  %v609_v48 = vmul.f32 %v11762_v32, %v8307_v26  ;;  %v456_v47 = vsel %vm342_vm0, %v382_v5, 0.0 }
  0xa4   : > { %v8309_v27 = vpop.permute.xlu1 %7861  ;;  %v8311_v28 = vpop.permute.xlu0 %7855 }
  0xa5   : > { %11821 = vst [vmem:[#allocation12_spill] sm:$0xff] %v8309_v27  ;;  %11822 = vst [vmem:[#allocation13_spill] sm:$0xff] %v8311_v28  ;;  %v11759_v30 = vunpack.i.h.bf16 %v8311_v28  ;;  %v11760_v31 = vunpack.i.l.bf16 %v8311_v28  ;;  %858 = vperm.xlu1 %7859, %v746_v20   ;;  %862 = vperm.xlu0 %7848, %v748_v21   ;;  %v11761_v36 = vunpack.i.l.bf16 %v8309_v27  ;;  %v11758_v49 = vunpack.i.h.bf16 %v8309_v27 }
  0xa6   : > { %v8386_v21 = vrot.slane %v8298_v16, %v1416_v60  ;;  %v757_v60 = vrot.slane %v456_v47, 1 }
  0xa7   : > { %v901_v41 = vmul.f32 %v11760_v31, %v8316_v29  ;;  %v902_v42 = vmul.f32 %v11759_v30, %v8316_v29  ;;  %v1178_v53 = vmul.f32 %v11761_v36, %v8324_v33  ;;  %v1179_v2 = vmul.f32 %v11758_v49, %v8324_v33 }
  0xa8   : > { %v8341_v43 = vpop.permute.xlu1 %471  ;;  %v8343_v44 = vpop.permute.xlu0 %475 }
  0xa9   : > { %1135 = vperm.xlu1 %7859, %v1023_v34   ;;  %v933_v50 = vadd.f32 %v901_v41, %v608_v40  ;;  %1139 = vperm.xlu0 %7848, %v1025_v38   ;;  %v934_v57 = vadd.f32 %v902_v42, %v609_v48  ;;  %v1255_v8 = vmul.f32 %v8358_v54, %v8341_v43  ;;  %v1552_v38 = vsub.s32 7, %v8287_v7 }
  0xaa   : > { %v1256_v22 = vmul.f32 %v8358_v54, %v8343_v44  ;;  %v383_v34 = vsel %vm342_vm0, %v381_v1, %v382_v5 }
  0xab   : > { %v1210_v61 = vadd.f32 %v1178_v53, %v933_v50  ;;  %v1211_v11 = vadd.f32 %v1179_v2, %v934_v57  ;;  %v755_v52 = vrot.slane %v383_v34, 1  ;;  %v8411_v56 = vrot.slane %v8298_v16, %v1552_v38 }
  0xac   : > { %v8361_v58 = vpop.permute.xlu1 %778  ;;  %v8363_v59 = vpop.permute.xlu0 %782 }
  0xad   : > { %570 = vperm.xlu1 %7859, %v438_v35   ;;  %574 = vperm.xlu0 %7848, %v380_v39   ;;  %v1287_v19 = vadd.f32 %v1255_v8, %v1210_v61  ;;  %v1337_v20 = vmul.f32 %v8369_v62, %v8361_v58  ;;  %v8394_v35 = vrot.slane %v8298_v16, %v1484_v6  ;;  %v1031_v16 = vrot.slane %v439_v24, 2  ;;  %v306_v8 = vld [vmem:[%s11750_s3] sm:$0x1f]  ;;  %v7954_v61 = vld [vmem:[%s11749_s2 + $0x328] sm:$0xff]  }
  0xae   : > { %v1030_v39 = vsel %vm965_vm1, %v1027_v3, %v1029_v10  ;;  %v1288_v40 = vadd.f32 %v1256_v22, %v1211_v11  ;;  %v1338_v41 = vmul.f32 %v8369_v62, %v8363_v59  ;;  %v1032_v6 = vrot.slane %v383_v34, 2  ;;  %v300_v10 = vld [vmem:[%s8186_s13 + $0xd0] sm:$0xff]  ;;  %v8434_v11 = vld [vmem:[%s8186_s13 + $0xd8] sm:$0xff] }
  0xaf   : > { %v1369_v48 = vadd.f32 %v1337_v20, %v1287_v19  ;;  %v8440_v22 = vsel %vm8416_vm4, 0, %v1891_v55  ;;  %v758_v38 = vsel %vm688_vm2, %v755_v52, %v757_v60 }
  0xb0   : > { %v8379_v15 = vpop.permute.xlu1 %1055  ;;  %v8381_v17 = vpop.permute.xlu0 %1059  ;;  %v1370_v63 = vadd.f32 %v1338_v41, %v1288_v40  ;;  %11825 = vst [vmem:[#allocation14_spill] sm:$0xff] %v8440_v22  ;;  %v8450_v40 = vld [vmem:[%s11820_s1 + $0x8] ss:$0 sm:$0xff] }
  0xb1   : > { %866 = vperm.xlu1 %7859, %v751_v4   ;;  %870 = vperm.xlu0 %7848, %v753_v9   ;;  %v1418_v50 = vmul.f32 %v8386_v21, %v8379_v15  ;;  %v1419_v53 = vmul.f32 %v8386_v21, %v8381_v17  ;;  %v756_v9 = vsel %vm688_vm2, %v754_v51, %v755_v52  ;;  %v384_v51 = vrot.slane %v300_v10, 7 }
  0xb2   : > { %v2336_v52 = vrot.slane %v8440_v22, 1 }
  0xb3   : > { %v1450_v4 = vadd.f32 %v1418_v50, %v1369_v48  ;;  %v1451_v19 = vadd.f32 %v1419_v53, %v1370_v63  ;;  %v385_v53 = vrot.slane %v8434_v11, 7  ;;  %v1033_v63 = vsel %vm965_vm1, %v1031_v16, %v1032_v6 }
  0xb4   : > { %v8400_v42 = vpop.permute.xlu1 %480  ;;  %v8402_v45 = vpop.permute.xlu0 %484  ;;  %v8482_v16 = vsel %vm342_vm0, 0.0, %v384_v51 }
  0xb5   : > { %1143 = vperm.xlu1 %7859, %v1028_v23   ;;  %1147 = vperm.xlu0 %7848, %v1030_v39   ;;  %v1486_v57 = vmul.f32 %v8394_v35, %v8400_v42  ;;  %v1487_v1 = vmul.f32 %v8394_v35, %v8402_v45  ;;  %v8444_v23 = vsel %vm8416_vm4, %v1891_v55, 0  ;;  %v1034_v39 = vrot.slane %v456_v47, 2 }
  0xb6   : > { %v2087_v14 = vshll.u32 %v8444_v23, 16  ;;  %v11831_v13 = vrot.slane %v8482_v16, 1 }
  0xb7   : > { %v1519_v41 = vadd.f32 %v1487_v1, %v1451_v19 }
  0xb8   : > { %v8422_v2 = vpop.permute.xlu1 %786  ;;  %v8424_v3 = vpop.permute.xlu0 %790 }
  0xb9   : > { %v1554_v5 = vmul.f32 %v8411_v56, %v8422_v2  ;;  %579 = vperm.xlu1 %7859, %v439_v24   ;;  %v1555_v20 = vmul.f32 %v8411_v56, %v8424_v3  ;;  %583 = vperm.xlu0 %7848, %v383_v34   ;;  %v1518_v24 = vadd.f32 %v1486_v57, %v1450_v4  ;;  %v2337_v57 = vrot.slane %v8444_v23, 1 }
  0xba   : > { %v8454_v34 = vrot.slane %v306_v8, %v606_v12  ;;  %v1035_v4 = vsel %vm965_vm1, %v1032_v6, %v1034_v39  ;;  %v903_v6 = vmul.f32 %v8316_v29, %v8361_v58  ;;  %v1180_v58 = vmul.f32 %v8324_v33, %v8379_v15 }
  0xbb   : > { %v1586_v55 = vadd.f32 %v1554_v5, %v1518_v24  ;;  %v1587_v60 = vadd.f32 %v1555_v20, %v1519_v41  ;;  %v8478_v19 = vsel %vm688_vm2, %v2336_v52, %v2337_v57  ;;  %v904_v41 = vmul.f32 %v8316_v29, %v8363_v59 }
  0xbc   : > { %v8456_v48 = vpop.permute.xlu1 %1063  ;;  %v8458_v50 = vpop.permute.xlu0 %1067  ;;  %11826 = vst [vmem:[#allocation15_spill] sm:$0xff] %v8478_v19  ;;  %v611_v59 = vmul.f32 %v8307_v26, %v8343_v44  ;;  %v2080_v15 = vshrl.u32 %v8440_v22, 16  ;;  %v303_v44 = vld [vmem:[%s8186_s13 + $0xe8] sm:$0xff]  ;;  %v1339_v30 = vmul.f32 %v8369_v62, %v8422_v2 }
  0xbd   : > { %v1622_v47 = vmul.f32 %v8450_v40, %v8456_v48  ;;  %874 = vperm.xlu1 %7859, %v756_v9   ;;  %v1623_v12 = vmul.f32 %v8450_v40, %v8458_v50  ;;  %878 = vperm.xlu0 %7848, %v758_v38   ;;  %v8474_v9 = vsel %vm342_vm0, %v384_v51, %v385_v53  ;;  %v388_v23 = vrot.slane %v303_v44, 7 }
  0xbe   : > { %v610_v51 = vmul.f32 %v8307_v26, %v8341_v43  ;;  %v936_v37 = vadd.f32 %v904_v41, %v611_v59  ;;  %v8526_v41 = vsel %vm342_vm0, %v385_v53, 0.0  ;;  %v2089_v59 = vrot.slane %v2087_v14, 1 }
  0xbf   : > { %v1654_v1 = vadd.f32 %v1622_v47, %v1586_v55  ;;  %v1655_v8 = vadd.f32 %v1623_v12, %v1587_v60  ;;  %v2082_v47 = vshll.u32 %v8440_v22, 16  ;;  %v1181_v12 = vmul.f32 %v8324_v33, %v8381_v17 }
  0xc0   : > { %v8469_v5 = vpop.permute.xlu1 %489  ;;  %v8471_v10 = vpop.permute.xlu0 %493  ;;  %v1258_v17 = vmul.f32 %v8358_v54, %v8402_v45 }
  0xc1   : > { %v1690_v11 = vadd.f32 %v8454_v34, %v1654_v1  ;;  %1151 = vperm.xlu1 %7859, %v1033_v63   ;;  %v1691_v24 = vadd.f32 %v8454_v34, %v1655_v8  ;;  %1155 = vperm.xlu0 %7848, %v1035_v4   ;;  %v302_v63 = vld [vmem:[%s8186_s13 + $0xe0] sm:$0xff]  ;;  %v935_v1 = vadd.f32 %v903_v6, %v610_v51  ;;  %v2084_v18 = vrot.slane %v2082_v47, 1 }
  0xc2   : > { %v1257_v4 = vmul.f32 %v8358_v54, %v8400_v42  ;;  %v387_v36 = vrot.slane %v302_v63, 7  ;;  %v1420_v47 = vmul.f32 %v8386_v21, %v8456_v48  ;;  %v1488_v63 = vmul.f32 %v8394_v35, %v8469_v5 }
  0xc3   : > { %vm1722_vm5 = vcmp.gt.f32.partialorder %v1690_v11, 0.0  ;;  %v1754_v55 = vmul.f32 0.01, %v1690_v11  ;;  %vm1723_vm6 = vcmp.gt.f32.partialorder %v1691_v24, 0.0  ;;  %v1755_v52 = vmul.f32 0.01, %v1691_v24 }
  0xc4   : > { %v8496_v57 = vpop.permute.xlu1 %794  ;;  %v8498_v60 = vpop.permute.xlu0 %798  ;;  %v1212_v49 = vadd.f32 %v1180_v58, %v935_v1  ;;  %v1489_v44 = vmul.f32 %v8394_v35, %v8471_v10  ;;  %v8545_v14 = vsel %vm342_vm0, %v387_v36, %v388_v23 }
  0xc5   : > { %2384 = vrot.lane.b32.xlu1 %v8478_v19, %s11794_s20  ;;  %v1786_v8 = vsel %vm1722_vm5, %v1690_v11, %v1754_v55  ;;  %v1787_v46 = vsel %vm1723_vm6, %v1691_v24, %v1755_v52  ;;  %v1213_v11 = vadd.f32 %v1181_v12, %v936_v37  ;;  %v1340_v24 = vmul.f32 %v8369_v62, %v8424_v3 }
  0xc6   : > { %v1872_v51 = vpack.c.bf16 %v1787_v46, %v1786_v8  ;;  %v1289_v55 = vadd.f32 %v1257_v4, %v1212_v49  ;;  %v1421_v46 = vmul.f32 %v8386_v21, %v8458_v50  ;;  %v2085_v37 = vor.u32 %v2084_v18, %v2080_v15 }
  0xc7   : > { %v1290_v52 = vadd.f32 %v1258_v17, %v1213_v11  ;;  %v762_v49 = vrot.slane %v8526_v41, 1  ;;  %v8540_v4 = vsel %vm342_vm0, 0.0, %v387_v36  ;;  %v1039_v15 = vrot.slane %v8526_v41, 2 }
  0xc8   : > { %v8518_v31 = vpop.permute.xlu1 %1071  ;;  %v8520_v6 = vpop.permute.xlu0 %1075  ;;  %v1896_v58 = vshrl.u32 %v1872_v51, 16  ;;  %v1371_v12 = vadd.f32 %v1339_v30, %v1289_v55  ;;  %v764_v17 = vrot.slane %v8540_v4, 1  ;;  %v8550_v11 = vsel %vm342_vm0, %v388_v23, 0.0  ;;  %v7866_v55 = vld [vmem:[%s11749_s2] sm:$0xff]  }
  0xc9   : > { %592 = vperm.xlu1 %7859, %v8474_v9   ;;  %v1372_v8 = vadd.f32 %v1340_v24, %v1290_v52  ;;  %v7865_v24 = vld [vmem:[%s11749_s2 + $0x40] sm:$0xff]   ;;  %v1556_v36 = vmul.f32 %v8411_v56, %v8496_v57  ;;  %v1557_v41 = vmul.f32 %v8411_v56, %v8498_v60  ;;  %v304_v52 = vld [vmem:[%s8186_s13 + $0xf0] sm:$0xff]  ;;  %v1041_v25 = vrot.slane %v8540_v4, 2 }
  0xca   : > { %v1898_v18 = vrot.slane %v1896_v58, 7  ;;  %v1452_v30 = vadd.f32 %v1420_v47, %v1371_v12  ;;  %v1899_v47 = vshll.u32 %v1872_v51, 16  ;;  %v765_v43 = vrot.slane %v8545_v14, 1  ;;  %7594 = vmatprep.subr.bf16.mxu0 %v7865_v24  ;;  %v7867_v24 = vld [vmem:[%s11749_s2 + $0x80] sm:$0xff]  }
  0xcb   : > { %v1453_v58 = vadd.f32 %v1421_v46, %v1372_v8  ;;  %v1042_v38 = vrot.slane %v8545_v14, 2  ;;  %v305_v46 = vld [vmem:[%s8186_s13 + $0xf8] sm:$0xff]  ;;  %v1624_v0 = vmul.f32 %v8450_v40, %v8518_v31  ;;  %v1625_v51 = vmul.f32 %v8450_v40, %v8520_v6  ;;  %7595 = vmatpush3.bf16.msra.mxu0 %v7866_v55  ;;  %3248 = vmatpush1.bf16.msra.mxu1 %v7867_v24  ;;  %s11874_s13 = smov 96  }
  0xcc   : > { %v8534_v1 = vpop.permute.xlu1 %498  ;;  %v8536_v53 = vpop.permute.xlu0 %502  ;;  %v1520_v12 = vadd.f32 %v1488_v63, %v1452_v30  ;;  %v1901_v63 = vor.u32 %v1899_v47, %v1898_v18  ;;  %v8577_v30 = vsel %vm8416_vm4, %v1898_v18, 0  ;;  %v767_v39 = vrot.slane %v8550_v11, 1 }
  0xcd   : > { %v1521_v8 = vadd.f32 %v1489_v44, %v1453_v58  ;;  %v390_v20 = vrot.slane %v304_v52, 7  ;;  %v7868_v44 = vld [vmem:[%s11749_s2 + $0x48] sm:$0xff]   ;;  %v391_v19 = vrot.slane %v305_v46, 7  ;;  %v8601_v27 = vsel %vm2078_vm7, %v2085_v37, %v2089_v59 }
  0xce   : > { %v7869_v58 = vld [vmem:[%s11749_s2 + $0x8] sm:$0xff]   ;;  %v1588_v55 = vadd.f32 %v1556_v36, %v1520_v12  ;;  %v8591_v18 = vsel %vm8416_vm4, 0, %v1901_v63  ;;  %11828 = vst [vmem:[#allocation17_spill] sm:$0xff] %v8601_v27  ;;  %v11829_v36 = vrot.slane %v8474_v9, 1  ;;  %7596 = vmatprep.subr.bf16.mxu0 %v7868_v44  ;;  %v11832_v37 = vmov 0  }
  0xcf   : > { %v1589_v47 = vadd.f32 %v1557_v41, %v1521_v8  ;;  %11827 = vst [vmem:[#allocation16_spill] sm:$0xff] %v8591_v18  ;;  %2417 = vrot.lane.b32.xlu0 %v8591_v18, %s11806_s17  ;;  %v2339_v52 = vrot.slane %v8591_v18, 1  ;;  %v2340_v8 = vrot.slane %v8577_v30, 1  ;;  %3249 = vmatprep.subr.bf16.mxu1 %v11832_v37  ;;  %v11833_v59 = vrot.slane %v8474_v9, 2  ;;  %v7870_v44 = vld [vmem:[%s11749_s2 + $0x88] sm:$0xff]  }
  0xd0   : > { %v8563_v23 = vpop.permute.xlu1 %802  ;;  %v8565_v32 = vpop.permute.xlu0 %806  ;;  %v8606_v41 = vsel %vm688_vm2, %v11829_v36, %v762_v49  ;;  %v1656_v12 = vadd.f32 %v1624_v0, %v1588_v55  ;;  %v11830_v63 = vmov %v11829_v36  ;;  %v8630_v55 = vsel %vm688_vm2, %v764_v17, %v765_v43  ;;  %7597 = vmatpush3.bf16.msra.mxu0 %v7869_v58  ;;  %v7871_v17 = vld [vmem:[%s11749_s2 + $0x50] sm:$0xff]   ;;  %3250 = vmatpush1.bf16.msra.mxu1 %v7870_v44 }
  0xd1   : > { %v1657_v46 = vadd.f32 %v1625_v51, %v1589_v47  ;;  %v8614_v22 = vsel %vm688_vm2, %v11831_v13, %v11830_v63  ;;  %v8620_v49 = vsel %vm965_vm1, %v11833_v59, %v1039_v15  ;;  %v11834_v0 = vmov %v11833_v59  ;;  %7598 = vmatprep.subr.bf16.mxu0 %v7871_v17 }
  0xd2   : > { %v11835_v51 = vrot.slane %v8482_v16, 2  ;;  %v1044_v13 = vrot.slane %v8550_v11, 2  ;;  %v8637_v15 = vsel %vm688_vm2, %v2339_v52, %v2340_v8  ;;  %v8640_v9 = vsel %vm965_vm1, %v1041_v25, %v1042_v38  ;;  %v7872_v11 = vld [vmem:[%s11749_s2 + $0x10] sm:$0xff]   ;;  %3251 = vmatprep.subr.bf16.mxu1 %v11832_v37 }
  0xd3   : > { %11836 = vst [vmem:[#allocation18_spill] sm:$0xff] %v8640_v9  ;;  %v8643_v47 = vsel %vm688_vm2, %v765_v43, %v767_v39  ;;  %v8646_v36 = vsel %vm342_vm0, %v390_v20, %v391_v19  ;;  %v905_v58 = vmul.f32 %v8316_v29, %v8422_v2  ;;  %2497 = vrot.lane.b32.xlu1 %v8637_v15, %s11804_s11  ;;  %v2094_v25 = vshll.u32 %v8591_v18, 16 }
  0xd4   : > { %v8596_v7 = vpop.permute.xlu1 %1079  ;;  %v8598_v28 = vpop.permute.xlu0 %1083  ;;  %v8627_v24 = vsel %vm965_vm1, %v11835_v51, %v11834_v0  ;;  %588 = vperm.xlu0 %7848, %v8482_v16   ;;  %v8665_v52 = vsel %vm342_vm0, 0.0, %v390_v20  ;;  %v8668_v8 = vsel %vm342_vm0, %v391_v19, 0.0  ;;  %v906_v2 = vmul.f32 %v8316_v29, %v8424_v3  ;;  %7599 = vmatpush3.bf16.msra.mxu0 %v7872_v11  ;;  %v7873_v3 = vld [vmem:[%s11749_s2 + $0x90] sm:$0xff]  }
  0xd5   : > { %v1692_v63 = vadd.f32 %v8454_v34, %v1656_v12  ;;  %v1693_v59 = vadd.f32 %v8454_v34, %v1657_v46  ;;  %v2099_v16 = vshll.u32 %v8577_v30, 16  ;;  %v2092_v0 = vshrl.u32 %v8591_v18, 16  ;;  %v7874_v30 = vld [vmem:[%s11749_s2 + $0x58] sm:$0xff]   ;;  %3252 = vmatpush1.bf16.msra.mxu1 %v7873_v3 }
  0xd6   : > { %v2096_v51 = vrot.slane %v2094_v25, 1  ;;  %v8677_v20 = vsel %vm965_vm1, %v1042_v38, %v1044_v13  ;;  %v7875_v12 = vld [vmem:[%s11749_s2 + $0x18] sm:$0xff]   ;;  %v612_v38 = vmul.f32 %v8307_v26, %v8400_v42  ;;  %v613_v46 = vmul.f32 %v8307_v26, %v8402_v45  ;;  %7600 = vmatprep.subr.bf16.mxu0 %v7874_v30  ;;  %3253 = vmatprep.subr.bf16.mxu1 %v11832_v37 }
  0xd7   : > { %11837 = vst [vmem:[#allocation19_spill] sm:$0xff] %v8677_v20  ;;  %v1182_v13 = vmul.f32 %v8324_v33, %v8456_v48  ;;  %v1323_v44 = vrot.slane %v8668_v8, 1  ;;  %v1183_v17 = vmul.f32 %v8324_v33, %v8458_v50  ;;  %v2101_v25 = vrot.slane %v2099_v16, 1 }
  0xd8   : > { %v8660_v39 = vpop.permute.xlu1 %507  ;;  %v8662_v43 = vpop.permute.xlu0 %511  ;;  %v2097_v11 = vor.u32 %v2096_v51, %v2092_v0  ;;  %2271 = vrot.lane.b32.xlu0 %v8601_v27, %s11802_s19  ;;  %v1320_v45 = vrot.slane %v8665_v52, 1  ;;  %v937_v18 = vadd.f32 %v905_v58, %v612_v38  ;;  %v938_v48 = vadd.f32 %v906_v2, %v613_v46  ;;  %7601 = vmatpush3.bf16.msra.mxu0 %v7875_v12  ;;  %v7876_v0 = vld [vmem:[%s11749_s2 + $0x98] sm:$0xff]  }
  0xd9   : > { %v1756_v20 = vmul.f32 0.01, %v1692_v63  ;;  %v1757_v9 = vmul.f32 0.01, %v1693_v59  ;;  %v1259_v50 = vmul.f32 %v8358_v54, %v8469_v5  ;;  %vm1724_vm8 = vcmp.gt.f32.partialorder %v1692_v63, 0.0  ;;  %3254 = vmatpush1.bf16.msra.mxu1 %v7876_v0 }
  0xda   : > { %vm1725_vm9 = vcmp.gt.f32.partialorder %v1693_v59, 0.0  ;;  %v8709_v16 = vsel %vm2078_vm7, %v2097_v11, %v2101_v25  ;;  %v1214_v51 = vadd.f32 %v1182_v13, %v937_v18  ;;  %v1260_v58 = vmul.f32 %v8358_v54, %v8471_v10  ;;  %3255 = vmatprep.subr.bf16.mxu1 %v11832_v37 }
  0xdb   : > { %v907_v2 = vmul.f32 %v8316_v29, %v8496_v57  ;;  %2461 = vrot.lane.b32.xlu1 %v8709_v16, %s11792_s29  ;;  %v11838_v3 = vrot.slane %v8646_v36, 1  ;;  %v1215_v12 = vadd.f32 %v1183_v17, %v938_v48  ;;  %v614_v38 = vmul.f32 %v8307_v26, %v8469_v5 }
  0xdc   : > { %v8701_v19 = vpop.permute.xlu1 %810  ;;  %v8703_v42 = vpop.permute.xlu0 %814  ;;  %v1341_v18 = vmul.f32 %v8369_v62, %v8496_v57  ;;  %v908_v46 = vmul.f32 %v8316_v29, %v8498_v60  ;;  %882 = vperm.xlu0 %7848, %v8614_v22   ;;  %v1342_v17 = vmul.f32 %v8369_v62, %v8498_v60  ;;  %v1184_v5 = vmul.f32 %v8324_v33, %v8518_v31  ;;  %v7878_v22 = vld [vmem:[%s11749_s2 + $0x20] sm:$0xff]  }
  0xdd   : > { %v8723_v30 = vsel %vm688_vm2, %v11838_v3, %v1323_v44  ;;  %v7877_v44 = vld [vmem:[%s11749_s2 + $0x60] sm:$0xff]   ;;  %v1788_v57 = vsel %vm1724_vm8, %v1692_v63, %v1756_v20  ;;  %v1789_v25 = vsel %vm1725_vm9, %v1693_v59, %v1757_v9  ;;  %v1291_v48 = vadd.f32 %v1259_v50, %v1214_v51  ;;  %v7880_v63 = vld [vmem:[%s11749_s2 + $0x68] sm:$0xff]  }
  0xde   : > { %v615_v3 = vmul.f32 %v8307_v26, %v8471_v10  ;;  %v1422_v60 = vmul.f32 %v8386_v21, %v8518_v31  ;;  %v1873_v27 = vpack.c.bf16 %v1789_v25, %v1788_v57  ;;  %v1292_v9 = vadd.f32 %v1260_v58, %v1215_v12  ;;  %7602 = vmatprep.subr.bf16.mxu0 %v7877_v44  ;;  %v7881_v57 = vld [vmem:[%s11749_s2 + $0x28] sm:$0xff]  }
  0xdf   : > { %v939_v59 = vadd.f32 %v907_v2, %v614_v38  ;;  %v1185_v20 = vmul.f32 %v8324_v33, %v8520_v6  ;;  %v1423_v50 = vmul.f32 %v8386_v21, %v8520_v6  ;;  %886 = vperm.xlu1 %7859, %v8606_v41   ;;  %v1373_v10 = vadd.f32 %v1341_v18, %v1291_v48  ;;  %v7879_v6 = vld [vmem:[%s11749_s2 + $0xa0] sm:$0xff]  }
  0xe0   : > { %v8732_v13 = vpop.permute.xlu1 %1087  ;;  %v8734_v11 = vpop.permute.xlu0 %1091  ;;  %v1490_v31 = vmul.f32 %v8394_v35, %v8534_v1  ;;  %v1903_v0 = vshrl.u32 %v1873_v27, 16  ;;  %1159 = vperm.xlu0 %7848, %v8627_v24   ;;  %v11839_v2 = vrot.slane %v8646_v36, 1  ;;  %v940_v41 = vadd.f32 %v908_v46, %v615_v3  ;;  %7603 = vmatpush3.bf16.msra.mxu0 %v7878_v22  ;;  %v7883_v46 = vld [vmem:[%s11749_s2 + $0x70] sm:$0xff]  }
  0xe1   : > { %v1374_v38 = vadd.f32 %v1342_v17, %v1292_v9  ;;  %v1216_v18 = vadd.f32 %v1184_v5, %v939_v59  ;;  %v1491_v24 = vmul.f32 %v8394_v35, %v8536_v53  ;;  %v1454_v25 = vadd.f32 %v1422_v60, %v1373_v10  ;;  %7604 = vmatprep.subr.bf16.mxu0 %v7880_v63 }
  0xe2   : > { %v8771_v12 = vsel %vm688_vm2, %v1320_v45, %v11839_v2  ;;  %v1558_v45 = vmul.f32 %v8411_v56, %v8563_v23  ;;  %v1905_v44 = vrot.slane %v1903_v0, 7  ;;  %v1906_v48 = vshll.u32 %v1873_v27, 16  ;;  %3256 = vmatpush1.bf16.msra.mxu1 %v7879_v6  ;;  %v7884_v2 = vld [vmem:[%s11749_s2 + $0x30] sm:$0xff]  }
  0xe3   : > { %11840 = vst [vmem:[#allocation20_spill] sm:$0xff] %v8771_v12  ;;  %v1217_v17 = vadd.f32 %v1185_v20, %v940_v41  ;;  %v1455_v5 = vadd.f32 %v1423_v50, %v1374_v38  ;;  %v1261_v22 = vmul.f32 %v8358_v54, %v8534_v1  ;;  %v1559_v3 = vmul.f32 %v8411_v56, %v8565_v32  ;;  %v7882_v50 = vld [vmem:[%s11749_s2 + $0xa8] sm:$0xff]  }
  0xe4   : > { %v8764_v51 = vpop.permute.xlu1 %516  ;;  %v8766_v58 = vpop.permute.xlu0 %520  ;;  %1163 = vperm.xlu1 %7859, %v8620_v49   ;;  %v1522_v60 = vadd.f32 %v1490_v31, %v1454_v25  ;;  %v1626_v27 = vmul.f32 %v8450_v40, %v8596_v7  ;;  %v1908_v9 = vor.u32 %v1906_v48, %v1905_v44  ;;  %v2063_v63 = vsel %vm8416_vm4, %v1905_v44, 0  ;;  %7605 = vmatpush3.bf16.msra.mxu0 %v7881_v57 }
  0xe5   : > { %v616_v49 = vmul.f32 %v8307_v26, %v8534_v1  ;;  %v1523_v10 = vadd.f32 %v1491_v24, %v1455_v5  ;;  %v1627_v31 = vmul.f32 %v8450_v40, %v8598_v28  ;;  %3257 = vmatprep.subr.bf16.mxu1 %v11832_v37  ;;  %v617_v6 = vmul.f32 %v8307_v26, %v8536_v53 }
  0xe6   : > { %v1262_v41 = vmul.f32 %v8358_v54, %v8536_v53  ;;  %v1590_v1 = vadd.f32 %v1558_v45, %v1522_v60  ;;  %v8818_v38 = vsel %vm8416_vm4, 0, %v1908_v9  ;;  %7606 = vmatprep.subr.bf16.mxu0 %v7883_v46  ;;  %v909_v24 = vmul.f32 %v8316_v29, %v8563_v23  ;;  %3258 = vmatpush1.bf16.msra.mxu1 %v7882_v50 }
  0xe7   : > { %11841 = vst [vmem:[#allocation21_spill] sm:$0xff] %v8818_v38  ;;  %v1591_v57 = vadd.f32 %v1559_v3, %v1523_v10  ;;  %v2342_v25 = vrot.slane %v8818_v38, 1  ;;  %v2343_v44 = vrot.slane %v2063_v63, 1  ;;  %2529 = vrot.lane.b32.xlu0 %v8818_v38, %s11808_s26  ;;  %v1293_v53 = vadd.f32 %v1261_v22, %v1216_v18  ;;  %v7885_v3 = vld [vmem:[%s11749_s2 + $0xb0] sm:$0xff]   ;;  %3259 = vmatprep.subr.bf16.mxu1 %v11832_v37 }
  0xe8   : > { %v8796_v59 = vpop.permute.xlu1 %818  ;;  %v8798_v20 = vpop.permute.xlu0 %822  ;;  %2386 = vrot.lane.b32.xlu1 %v8637_v15, %s11794_s20  ;;  %v1658_v45 = vadd.f32 %v1626_v27, %v1590_v1  ;;  %v2106_v48 = vshll.u32 %v8818_v38, 16  ;;  %v2111_v5 = vshll.u32 %v2063_v63, 16  ;;  %v1343_v15 = vmul.f32 %v8369_v62, %v8563_v23  ;;  %7607 = vmatpush3.bf16.msra.mxu0 %v7884_v2  ;;  %v7886_v27 = vld [vmem:[%s11749_s2 + $0x78] sm:$0xff]  }
  0xe9   : > { %v910_v9 = vmul.f32 %v8316_v29, %v8565_v32  ;;  %v1659_v18 = vadd.f32 %v1627_v31, %v1591_v57  ;;  %v8840_v22 = vsel %vm688_vm2, %v2342_v25, %v2343_v44  ;;  %v1344_v63 = vmul.f32 %v8369_v62, %v8565_v32  ;;  %v7887_v31 = vld [vmem:[%s11749_s2 + $0x38] sm:$0xff]   ;;  %7608 = vmatprep.subr.bf16.mxu0 %v7886_v27 }
  0xea   : > { %v1186_v50 = vmul.f32 %v8324_v33, %v8596_v7  ;;  %7297 = vmatprep.mubr.msk.bf16.mxu1 %vm2593_vm10, %v8840_v22  ;;  %v2104_v23 = vshrl.u32 %v8818_v38, 16  ;;  %v2108_v10 = vrot.slane %v2106_v48, 1  ;;  %v1294_v2 = vadd.f32 %v1262_v41, %v1217_v17  ;;  %3260 = vmatpush1.bf16.msra.mxu1 %v7885_v3 }
  0xeb   : > { %v941_v1 = vadd.f32 %v909_v24, %v616_v49  ;;  %v1424_v32 = vmul.f32 %v8386_v21, %v8596_v7  ;;  %v1187_v57 = vmul.f32 %v8324_v33, %v8598_v28  ;;  %2419 = vrot.lane.b32.xlu0 %v8818_v38, %s11806_s17  ;;  %v1694_v25 = vadd.f32 %v8454_v34, %v1658_v45  ;;  %v7888_v45 = vld [vmem:[%s11749_s2 + $0xb8] sm:$0xff]  }
  0xec   : > { %v8828_v46 = vpop.permute.xlu1 %1095  ;;  %v8830_v60 = vpop.permute.xlu0 %1099  ;;  %v1425_v44 = vmul.f32 %v8386_v21, %v8598_v28  ;;  %v2109_v48 = vor.u32 %v2108_v10, %v2104_v23  ;;  %v2113_v0 = vrot.slane %v2111_v5, 1  ;;  %v1375_v49 = vadd.f32 %v1343_v15, %v1293_v53  ;;  %7609 = vmatpush3.bf16.msra.mxu0 %v7887_v31  ;;  %3261 = vmatprep.subr.bf16.mxu1 %v11832_v37 }
  0xed   : > { %v942_v7 = vadd.f32 %v910_v9, %v617_v6  ;;  %v1695_v41 = vadd.f32 %v8454_v34, %v1659_v18  ;;  %v1492_v24 = vmul.f32 %v8394_v35, %v8660_v39  ;;  %v1376_v28 = vadd.f32 %v1344_v63, %v1294_v2 }
  0xee   : > { %v1218_v23 = vadd.f32 %v1186_v50, %v941_v1  ;;  %v1493_v5 = vmul.f32 %v8394_v35, %v8662_v43  ;;  %v8878_v10 = vsel %vm2078_vm7, %v2109_v48, %v2113_v0  ;;  %v1456_v6 = vadd.f32 %v1424_v32, %v1375_v49  ;;  %3262 = vmatpush1.bf16.msra.mxu1 %v7888_v45  ;;  %v7889_v1 = vld [vmem:[%s11749_s2 + $0xc0] sm:$0xff]  }
  0xef   : > { %v1219_v53 = vadd.f32 %v1187_v57, %v942_v7  ;;  %v1263_v3 = vmul.f32 %v8358_v54, %v8660_v39  ;;  %2561 = vrot.lane.b32.xlu1 %v8878_v10, %s11790_s28  ;;  %2463 = vrot.lane.b32.xlu0 %v8878_v10, %s11792_s29  ;;  %v1401_v15 = vrot.slane %v8665_v52, 2  ;;  %vm1726_vm11 = vcmp.gt.f32.partialorder %v1694_v25, 0.0 }
  0xf0   : > { %v8865_v12 = vpop.permute.xlu1 %525  ;;  %v8867_v17 = vpop.permute.xlu0 %529  ;;  %v1457_v9 = vadd.f32 %v1425_v44, %v1376_v28  ;;  %v1560_v0 = vmul.f32 %v8411_v56, %v8701_v19  ;;  %v1561_v18 = vmul.f32 %v8411_v56, %v8703_v42  ;;  %v1758_v50 = vmul.f32 0.01, %v1694_v25  ;;  %3263 = vmatprep.subr.bf16.mxu1 %v11832_v37 }
  0xf1   : > { %vm1727_vm12 = vcmp.gt.f32.partialorder %v1695_v41, 0.0  ;;  %v1759_v31 = vmul.f32 0.01, %v1695_v41  ;;  %v1524_v2 = vadd.f32 %v1492_v24, %v1456_v6  ;;  %v1264_v32 = vmul.f32 %v8358_v54, %v8662_v43 }
  0xf2   : > { %v1525_v57 = vadd.f32 %v1493_v5, %v1457_v9  ;;  %v1628_v44 = vmul.f32 %v8450_v40, %v8732_v13  ;;  %v1629_v48 = vmul.f32 %v8450_v40, %v8734_v11  ;;  %v618_v49 = vmul.f32 %v8307_v26, %v8660_v39  ;;  %3264 = vmatpush1.bf16.msra.mxu1 %v7889_v1 }
  0xf3   : > { %v1295_v7 = vadd.f32 %v1263_v3, %v1218_v23  ;;  %v619_v24 = vmul.f32 %v8307_v26, %v8662_v43  ;;  %597 = vperm.xlu1 %7859, %v8540_v4   ;;  %601 = vperm.xlu0 %7848, %v8545_v14   ;;  %v1404_v45 = vrot.slane %v8668_v8, 2  ;;  %v911_v28 = vmul.f32 %v8316_v29, %v8701_v19 }
  0xf4   : > { %v8891_v27 = vpop.permute.xlu1 %826  ;;  %v8893_v63 = vpop.permute.xlu0 %830  ;;  %v1345_v5 = vmul.f32 %v8369_v62, %v8701_v19  ;;  %v1592_v6 = vadd.f32 %v1560_v0, %v1524_v2  ;;  %v1593_v9 = vadd.f32 %v1561_v18, %v1525_v57  ;;  %v1790_v43 = vsel %vm1726_vm11, %v1694_v25, %v1758_v50  ;;  %v7890_v19 = vld [vmem:[%s11749_s2 + $0xc8] sm:$0xff]   ;;  %3265 = vmatprep.subr.bf16.mxu1 %v11832_v37 }
  0xf5   : > { %v1791_v4 = vsel %vm1727_vm12, %v1695_v41, %v1759_v31  ;;  %v912_v14 = vmul.f32 %v8316_v29, %v8703_v42  ;;  %v1346_v8 = vmul.f32 %v8369_v62, %v8703_v42  ;;  %v1296_v23 = vadd.f32 %v1264_v32, %v1219_v53 }
  0xf6   : > { %v1188_v3 = vmul.f32 %v8324_v33, %v8732_v13  ;;  %v1660_v0 = vadd.f32 %v1628_v44, %v1592_v6  ;;  %v1661_v18 = vadd.f32 %v1629_v48, %v1593_v9  ;;  %v1426_v25 = vmul.f32 %v8386_v21, %v8732_v13  ;;  %3266 = vmatpush1.bf16.msra.mxu1 %v7890_v19 }
  0xf7   : > { %v1189_v41 = vmul.f32 %v8324_v33, %v8734_v11  ;;  %v1427_v42 = vmul.f32 %v8386_v21, %v8734_v11  ;;  %2273 = vrot.lane.b32.xlu1 %v8709_v16, %s11802_s19  ;;  %2499 = vrot.lane.b32.xlu0 %v8840_v22, %s11804_s11  ;;  %v943_v53 = vadd.f32 %v911_v28, %v618_v49  ;;  %v11842_v13 = vrot.slane %v8646_v36, 2  ;;  %v7891_v49 = vld [vmem:[%s11749_s2 + $0xd0] sm:$0xff]  }
  0xf8   : > { %v8917_v38 = vpop.permute.xlu1 %1103  ;;  %v8919_v39 = vpop.permute.xlu0 %1107  ;;  %v1377_v50 = vadd.f32 %v1345_v5, %v1295_v7  ;;  %v944_v16 = vadd.f32 %v912_v14, %v619_v24  ;;  %v1378_v57 = vadd.f32 %v1346_v8, %v1296_v23  ;;  %v1265_v44 = vmul.f32 %v8358_v54, %v8764_v51  ;;  %3267 = vmatprep.subr.bf16.mxu1 %v11832_v37 }
  0xf9   : > { %v8950_v1 = vsel %vm965_vm1, %v11842_v13, %v1404_v45  ;;  %v11843_v32 = vmov %v11842_v13  ;;  %v1874_v48 = vpack.c.bf16 %v1791_v4, %v1790_v43  ;;  %v1220_v7 = vadd.f32 %v1188_v3, %v943_v53 }
  0xfa   : > { %v8955_v11 = vsel %vm965_vm1, %v1401_v15, %v11843_v32  ;;  %v1696_v45 = vadd.f32 %v8454_v34, %v1660_v0  ;;  %v1697_v28 = vadd.f32 %v8454_v34, %v1661_v18  ;;  %v1494_v15 = vmul.f32 %v8394_v35, %v8764_v51  ;;  %3268 = vmatpush1.bf16.msra.mxu1 %v7891_v49 }
  0xfb   : > { %v1458_v24 = vadd.f32 %v1426_v25, %v1377_v50  ;;  %v1221_v5 = vadd.f32 %v1189_v41, %v944_v16  ;;  %v1459_v6 = vadd.f32 %v1427_v42, %v1378_v57  ;;  %890 = vperm.xlu1 %7859, %v8630_v55   ;;  %894 = vperm.xlu0 %7848, %v8643_v47   ;;  %v1910_v9 = vshrl.u32 %v1874_v48, 16  ;;  %v11844_v42 = vld [vmem:[#allocation18_spill] sm:$0xff]  ;;  %v11845_v50 = vld [vmem:[#allocation19_spill] sm:$0xff] }
  0xfc   : > { %v8943_v31 = vpop.permute.xlu1 %534  ;;  %v8945_v2 = vpop.permute.xlu0 %538  ;;  %v620_v43 = vmul.f32 %v8307_v26, %v8764_v51  ;;  %v621_v4 = vmul.f32 %v8307_v26, %v8766_v58  ;;  %v1266_v14 = vmul.f32 %v8358_v54, %v8766_v58  ;;  %v1495_v8 = vmul.f32 %v8394_v35, %v8766_v58  ;;  %5491 = vmatprep.subr.bf16.mxu1 %v11832_v37 }
  0xfd   : > { %v1297_v55 = vadd.f32 %v1265_v44, %v1220_v7  ;;  %v1562_v47 = vmul.f32 %v8411_v56, %v8796_v59  ;;  %v1912_v3 = vrot.slane %v1910_v9, 7  ;;  %v1913_v0 = vshll.u32 %v1874_v48, 16 }
  0xfe   : > { %vm1728_vm13 = vcmp.gt.f32.partialorder %v1696_v45, 0.0  ;;  %v1760_v51 = vmul.f32 0.01, %v1696_v45  ;;  %v1761_v18 = vmul.f32 0.01, %v1697_v28  ;;  %v1526_v25 = vadd.f32 %v1494_v15, %v1458_v24 }
  0xff   : > { %vm1729_vm14 = vcmp.gt.f32.partialorder %v1697_v28, 0.0  ;;  %v1563_v58 = vmul.f32 %v8411_v56, %v8798_v20  ;;  %v1630_v41 = vmul.f32 %v8450_v40, %v8828_v46  ;;  %1167 = vperm.xlu1 %7859, %v11844_v42   ;;  %v1915_v53 = vor.u32 %v1913_v0, %v1912_v3  ;;  %1171 = vperm.xlu0 %7848, %v11845_v50  }
 0x100   : > { %v8977_v19 = vpop.permute.xlu1 %834  ;;  %v8979_v23 = vpop.permute.xlu0 %838  ;;  %v1298_v13 = vadd.f32 %v1266_v14, %v1221_v5  ;;  %v1527_v32 = vadd.f32 %v1495_v8, %v1459_v6  ;;  %v913_v16 = vmul.f32 %v8316_v29, %v8796_v59  ;;  %v1347_v57 = vmul.f32 %v8369_v62, %v8796_v59 }
 0x101   : > { %v1594_v49 = vadd.f32 %v1562_v47, %v1526_v25  ;;  %v914_v7 = vmul.f32 %v8316_v29, %v8798_v20  ;;  %v1631_v15 = vmul.f32 %v8450_v40, %v8830_v60  ;;  %v9004_v24 = vsel %vm8416_vm4, 0, %v1915_v53 }
 0x102   : > { %11846 = vst [vmem:[#allocation18_spill] sm:$0xff] %v9004_v24  ;;  %v9007_v5 = vsel %vm1728_vm13, %v1696_v45, %v1760_v51  ;;  %v9010_v59 = vsel %vm1729_vm14, %v1697_v28, %v1761_v18  ;;  %v1348_v6 = vmul.f32 %v8369_v62, %v8798_v20  ;;  %v1190_v9 = vmul.f32 %v8324_v33, %v8828_v46 }
 0x103   : > { %v1595_v14 = vadd.f32 %v1563_v58, %v1527_v32  ;;  %v1428_v8 = vmul.f32 %v8386_v21, %v8828_v46  ;;  %v1662_v47 = vadd.f32 %v1630_v41, %v1594_v49  ;;  %2531 = vrot.lane.b32.xlu1 %v9004_v24, %s11808_s26  ;;  %2388 = vrot.lane.b32.xlu0 %v8840_v22, %s11794_s20  ;;  %v9024_v45 = vsel %vm8416_vm4, %v1912_v3, 0 }
 0x104   : > { %v8994_v44 = vpop.permute.xlu1 %1111  ;;  %v8996_v48 = vpop.permute.xlu0 %1115  ;;  %v945_v28 = vadd.f32 %v913_v16, %v620_v43  ;;  %v1191_v20 = vmul.f32 %v8324_v33, %v8830_v60  ;;  %v2118_v0 = vshll.u32 %v9004_v24, 16  ;;  %v2123_v51 = vshll.u32 %v9024_v45, 16 }
 0x105   : > { %v1379_v25 = vadd.f32 %v1347_v57, %v1297_v55  ;;  %v946_v58 = vadd.f32 %v914_v7, %v621_v4  ;;  %v1429_v22 = vmul.f32 %v8386_v21, %v8830_v60  ;;  %v1663_v41 = vadd.f32 %v1631_v15, %v1595_v14 }
 0x106   : > { %v1380_v3 = vadd.f32 %v1348_v6, %v1298_v13  ;;  %v1222_v42 = vadd.f32 %v1190_v9, %v945_v28  ;;  %v2116_v43 = vshrl.u32 %v9004_v24, 16  ;;  %v2120_v53 = vrot.slane %v2118_v0, 1 }
 0x107   : > { %v1460_v50 = vadd.f32 %v1428_v8, %v1379_v25  ;;  %v1698_v32 = vadd.f32 %v8454_v34, %v1662_v47  ;;  %v1267_v16 = vmul.f32 %v8358_v54, %v8865_v12  ;;  %v1496_v49 = vmul.f32 %v8394_v35, %v8865_v12  ;;  %2421 = vrot.lane.b32.xlu1 %v9004_v24, %s11806_s17 }
 0x108   : > { %v9030_v46 = vpop.permute.xlu1 %543  ;;  %v9032_v18 = vpop.permute.xlu0 %547  ;;  %v1223_v4 = vadd.f32 %v1191_v20, %v946_v58  ;;  %v1497_v60 = vmul.f32 %v8394_v35, %v8867_v17  ;;  %v2121_v55 = vor.u32 %v2120_v53, %v2116_v43  ;;  %v2125_v13 = vrot.slane %v2123_v51, 1 }
 0x109   : > { %v1461_v15 = vadd.f32 %v1429_v22, %v1380_v3  ;;  %v1699_v6 = vadd.f32 %v8454_v34, %v1663_v41  ;;  %v622_v9 = vmul.f32 %v8307_v26, %v8865_v12  ;;  %v1268_v14 = vmul.f32 %v8358_v54, %v8867_v17 }
 0x10a   : > { %v623_v8 = vmul.f32 %v8307_v26, %v8867_v17  ;;  %v1564_v47 = vmul.f32 %v8411_v56, %v8891_v27  ;;  %v1565_v28 = vmul.f32 %v8411_v56, %v8893_v63  ;;  %v9062_v20 = vsel %vm2078_vm7, %v2121_v55, %v2125_v13 }
 0x10b   : > { %vm1730_vm15 = vcmp.gt.f32.partialorder %v1698_v32, 0.0  ;;  %v1299_v0 = vadd.f32 %v1267_v16, %v1222_v42  ;;  %v1528_v51 = vadd.f32 %v1496_v49, %v1460_v50  ;;  %v915_v12 = vmul.f32 %v8316_v29, %v8891_v27  ;;  %2465 = vrot.lane.b32.xlu1 %v9062_v20, %s11792_s29  ;;  %2563 = vrot.lane.b32.xlu0 %v9062_v20, %s11790_s28 }
 0x10c   : > { %v9046_v57 = vpop.permute.xlu1 %842  ;;  %v9048_v7 = vpop.permute.xlu0 %846  ;;  %v1762_v17 = vmul.f32 0.01, %v1698_v32  ;;  %v1529_v25 = vadd.f32 %v1497_v60, %v1461_v15  ;;  %v1632_v58 = vmul.f32 %v8450_v40, %v8917_v38  ;;  %v1633_v22 = vmul.f32 %v8450_v40, %v8919_v39 }
 0x10d   : > { %vm1731_vm0 = vcmp.gt.f32.partialorder %v1699_v6, 0.0  ;;  %v1763_v42 = vmul.f32 0.01, %v1699_v6  ;;  %v1300_v43 = vadd.f32 %v1268_v14, %v1223_v4  ;;  %v1349_v53 = vmul.f32 %v8369_v62, %v8891_v27 }
 0x10e   : > { %v1596_v50 = vadd.f32 %v1564_v47, %v1528_v51  ;;  %v916_v16 = vmul.f32 %v8316_v29, %v8893_v63  ;;  %v1597_v49 = vadd.f32 %v1565_v28, %v1529_v25  ;;  %v2345_v60 = vrot.slane %v9004_v24, 1 }
 0x10f   : > { %v947_v55 = vadd.f32 %v915_v12, %v622_v9  ;;  %v1350_v40 = vmul.f32 %v8369_v62, %v8893_v63  ;;  %v1192_v13 = vmul.f32 %v8324_v33, %v8917_v38  ;;  %1248 = vperm.xlu1 %7859, %v8646_v36   ;;  %1244 = vperm.xlu0 %7848, %v8665_v52   ;;  %v2346_v14 = vrot.slane %v9024_v45, 1 }
 0x110   : > { %v9074_v41 = vpop.permute.xlu1 %1119  ;;  %v9076_v3 = vpop.permute.xlu0 %1123  ;;  %v1430_v27 = vmul.f32 %v8386_v21, %v8917_v38  ;;  %v1664_v4 = vadd.f32 %v1632_v58, %v1596_v50  ;;  %v1665_v15 = vadd.f32 %v1633_v22, %v1597_v49  ;;  %v9097_v63 = vsel %vm1730_vm15, %v1698_v32, %v1762_v17 }
 0x111   : > { %v9100_v28 = vsel %vm1731_vm0, %v1699_v6, %v1763_v42  ;;  %v1193_v36 = vmul.f32 %v8324_v33, %v8919_v39  ;;  %v1431_v52 = vmul.f32 %v8386_v21, %v8919_v39  ;;  %v1381_v38 = vadd.f32 %v1349_v53, %v1299_v0 }
 0x112   : > { %v948_v51 = vadd.f32 %v916_v16, %v623_v8  ;;  %v1269_v45 = vmul.f32 %v8358_v54, %v8943_v31  ;;  %v9109_v12 = vsel %vm688_vm2, %v2345_v60, %v2346_v14  ;;  %v1382_v25 = vadd.f32 %v1350_v40, %v1300_v43  ;;  %v9140_v40 = vld [vmem:[%s11820_s1 + $0x8] ss:$0 sm:$0xff] }
 0x113   : > { %v1224_v32 = vadd.f32 %v1192_v13, %v947_v55  ;;  %v1498_v6 = vmul.f32 %v8394_v35, %v8943_v31  ;;  %2501 = vrot.lane.b32.xlu1 %v9109_v12, %s11804_s11  ;;  %2275 = vrot.lane.b32.xlu0 %v8878_v10, %s11802_s19  ;;  %v1462_v39 = vadd.f32 %v1430_v27, %v1381_v38  ;;  %v11847_v27 = vld [vmem:[#allocation20_spill] sm:$0xff]  ;;  %vm11801_vm13 = vcmask 130048  }
 0x114   : > { %v9092_v47 = vpop.permute.xlu1 %552  ;;  %v9094_v9 = vpop.permute.xlu0 %556  ;;  %v1700_v8 = vadd.f32 %v8454_v34, %v1664_v4  ;;  %v1701_v0 = vadd.f32 %v8454_v34, %v1665_v15  ;;  %v624_v17 = vmul.f32 %v8307_v26, %v8943_v31  ;;  %v1225_v42 = vadd.f32 %v1193_v36, %v948_v51 }
 0x115   : > { %v1463_v43 = vadd.f32 %v1431_v52, %v1382_v25  ;;  %v1499_v53 = vmul.f32 %v8394_v35, %v8945_v2  ;;  %v1566_v10 = vmul.f32 %v8411_v56, %v8977_v19  ;;  %v1301_v50 = vadd.f32 %v1269_v45, %v1224_v32 }
 0x116   : > { %v625_v16 = vmul.f32 %v8307_v26, %v8945_v2  ;;  %v1270_v49 = vmul.f32 %v8358_v54, %v8945_v2  ;;  %v1875_v31 = vpack.c.bf16 %v9010_v59, %v9007_v5  ;;  %v1530_v60 = vadd.f32 %v1498_v6, %v1462_v39 }
 0x117   : > { %v1567_v55 = vmul.f32 %v8411_v56, %v8979_v23  ;;  %v1634_v13 = vmul.f32 %v9140_v40, %v8994_v44  ;;  %1330 = vperm.xlu1 %7859, %v8723_v30   ;;  %1326 = vperm.xlu0 %7848, %v11847_v27   ;;  %vm1732_vm1 = vcmp.gt.f32.partialorder %v1700_v8, 0.0  ;;  %v1764_v2 = vmul.f32 0.01, %v1700_v8 }
 0x118   : > { %v9121_v58 = vpop.permute.xlu1 %850  ;;  %v9123_v22 = vpop.permute.xlu0 %854  ;;  %vm1733_vm3 = vcmp.gt.f32.partialorder %v1701_v0, 0.0  ;;  %v1765_v5 = vmul.f32 0.01, %v1701_v0  ;;  %v1531_v15 = vadd.f32 %v1499_v53, %v1463_v43  ;;  %v1598_v14 = vadd.f32 %v1566_v10, %v1530_v60 }
 0x119   : > { %v1635_v36 = vmul.f32 %v9140_v40, %v8996_v48  ;;  %v1917_v52 = vshrl.u32 %v1875_v31, 16  ;;  %v917_v38 = vmul.f32 %v8316_v29, %v8977_v19  ;;  %v1351_v30 = vmul.f32 %v8369_v62, %v8977_v19 }
 0x11a   : > { %v918_v51 = vmul.f32 %v8316_v29, %v8979_v23  ;;  %v1352_v45 = vmul.f32 %v8369_v62, %v8979_v23  ;;  %v1599_v25 = vadd.f32 %v1567_v55, %v1531_v15  ;;  %v1666_v32 = vadd.f32 %v1634_v13, %v1598_v14 }
 0x11b   : > { %1411 = vperm.xlu1 %7859, %v8950_v1   ;;  %1407 = vperm.xlu0 %7848, %v8955_v11   ;;  %v1919_v6 = vrot.slane %v1917_v52, 7  ;;  %v1920_v39 = vshll.u32 %v1875_v31, 16  ;;  %v9163_v43 = vsel %vm1732_vm1, %v1700_v8, %v1764_v2  ;;  %v1302_v53 = vadd.f32 %v1270_v49, %v1225_v42 }
 0x11c   : > { %v9146_v59 = vpop.permute.xlu1 %1127  ;;  %v9148_v4 = vpop.permute.xlu0 %1131  ;;  %v1194_v19 = vmul.f32 %v8324_v33, %v8994_v44  ;;  %v1432_v10 = vmul.f32 %v8386_v21, %v8994_v44  ;;  %v1195_v1 = vmul.f32 %v8324_v33, %v8996_v48  ;;  %v1667_v11 = vadd.f32 %v1635_v36, %v1599_v25 }
 0x11d   : > { %v1922_v55 = vor.u32 %v1920_v39, %v1919_v6  ;;  %v9177_v8 = vsel %vm8416_vm4, %v1919_v6, 0  ;;  %v9180_v42 = vsel %vm1733_vm3, %v1701_v0, %v1765_v5  ;;  %v949_v49 = vadd.f32 %v917_v38, %v624_v17 }
 0x11e   : > { %v1383_v31 = vadd.f32 %v1351_v30, %v1301_v50  ;;  %v1433_v44 = vmul.f32 %v8386_v21, %v8996_v48  ;;  %v950_v13 = vadd.f32 %v918_v51, %v625_v16  ;;  %v1384_v27 = vadd.f32 %v1352_v45, %v1302_v53 }
 0x11f   : > { %v1702_v2 = vadd.f32 %v8454_v34, %v1666_v32  ;;  %2390 = vrot.lane.b32.xlu1 %v9109_v12, %s11794_s20  ;;  %v9189_v15 = vsel %vm8416_vm4, 0, %v1922_v55  ;;  %v1226_v14 = vadd.f32 %v1194_v19, %v949_v49  ;;  %v2135_v48 = vshll.u32 %v9177_v8, 16 }
 0x120   : > { %v9169_v60 = vpop.permute.xlu1 %561  ;;  %v9171_v23 = vpop.permute.xlu0 %565  ;;  %11848 = vst [vmem:[#allocation19_spill] sm:$0xff] %v9189_v15  ;;  %v1464_v36 = vadd.f32 %v1432_v10, %v1383_v31  ;;  %2533 = vrot.lane.b32.xlu0 %v9189_v15, %s11808_s26  ;;  %v2130_v0 = vshll.u32 %v9189_v15, 16  ;;  %v1227_v16 = vadd.f32 %v1195_v1, %v950_v13  ;;  %v1703_v5 = vadd.f32 %v8454_v34, %v1667_v11 }
 0x121   : > { %v1271_v52 = vmul.f32 %v8358_v54, %v9030_v46  ;;  %v1500_v38 = vmul.f32 %v8394_v35, %v9030_v46  ;;  %v1465_v30 = vadd.f32 %v1433_v44, %v1384_v27  ;;  %v626_v51 = vmul.f32 %v8307_v26, %v9030_v46 }
 0x122   : > { %v2128_v45 = vshrl.u32 %v9189_v15, 16  ;;  %v2132_v25 = vrot.slane %v2130_v0, 1  ;;  %vm1734_vm5 = vcmp.gt.f32.partialorder %v1702_v2, 0.0  ;;  %v627_v32 = vmul.f32 %v8307_v26, %v9032_v18 }
 0x123   : > { %v1272_v6 = vmul.f32 %v8358_v54, %v9032_v18  ;;  %v1501_v39 = vmul.f32 %v8394_v35, %v9032_v18  ;;  %v1766_v53 = vmul.f32 0.01, %v1702_v2  ;;  %v1568_v19 = vmul.f32 %v8411_v56, %v9046_v57 }
 0x124   : > { %v9195_v17 = vpop.permute.xlu1 %858  ;;  %v9197_v50 = vpop.permute.xlu0 %862  ;;  %v2133_v10 = vor.u32 %v2132_v25, %v2128_v45  ;;  %v2137_v1 = vrot.slane %v2135_v48, 1  ;;  %2423 = vrot.lane.b32.xlu0 %v9189_v15, %s11806_s17  ;;  %vm1735_vm6 = vcmp.gt.f32.partialorder %v1703_v5, 0.0  ;;  %v1303_v11 = vadd.f32 %v1271_v52, %v1226_v14 }
 0x125   : > { %v1532_v55 = vadd.f32 %v1500_v38, %v1464_v36  ;;  %v1569_v49 = vmul.f32 %v8411_v56, %v9048_v7  ;;  %v1767_v18 = vmul.f32 0.01, %v1703_v5  ;;  %v1636_v44 = vmul.f32 %v9140_v40, %v9074_v41 }
 0x126   : > { %v9226_v13 = vsel %vm2078_vm7, %v2133_v10, %v2137_v1  ;;  %v1876_v27 = vpack.c.bf16 %v9100_v28, %v9097_v63  ;;  %v1304_v0 = vadd.f32 %v1272_v6, %v1227_v16  ;;  %v1533_v48 = vadd.f32 %v1501_v39, %v1465_v30 }
 0x127   : > { %v1637_v14 = vmul.f32 %v9140_v40, %v9076_v3  ;;  %2565 = vrot.lane.b32.xlu1 %v9226_v13, %s11790_s28  ;;  %v2348_v36 = vrot.slane %v9189_v15, 1  ;;  %v919_v52 = vmul.f32 %v8316_v29, %v9046_v57  ;;  %v1353_v38 = vmul.f32 %v8369_v62, %v9046_v57 }
 0x128   : > { %v9217_v46 = vpop.permute.xlu1 %1135  ;;  %v9221_v31 = vpop.permute.xlu0 %1139  ;;  %v1600_v45 = vadd.f32 %v1568_v19, %v1532_v55  ;;  %2467 = vrot.lane.b32.xlu0 %v9226_v13, %s11792_s29  ;;  %v1924_v63 = vshrl.u32 %v1876_v27, 16  ;;  %v920_v16 = vmul.f32 %v8316_v29, %v9048_v7  ;;  %v1354_v30 = vmul.f32 %v8369_v62, %v9048_v7 }
 0x129   : > { %v1601_v25 = vadd.f32 %v1569_v49, %v1533_v48  ;;  %v2349_v6 = vrot.slane %v9177_v8, 1  ;;  %v1196_v39 = vmul.f32 %v8324_v33, %v9074_v41  ;;  %v1927_v10 = vshll.u32 %v1876_v27, 16 }
 0x12a   : > { %v1668_v57 = vadd.f32 %v1636_v44, %v1600_v45  ;;  %v1926_v19 = vrot.slane %v1924_v63, 7  ;;  %v9253_v55 = vsel %vm1734_vm5, %v1702_v2, %v1766_v53  ;;  %v1434_v37 = vmul.f32 %v8386_v21, %v9074_v41 }
 0x12b   : > { %v1669_v15 = vadd.f32 %v1637_v14, %v1601_v25  ;;  %2277 = vrot.lane.b32.xlu1 %v9062_v20, %s11802_s19  ;;  %v9260_v7 = vsel %vm688_vm2, %v2348_v36, %v2349_v6  ;;  %v951_v8 = vadd.f32 %v919_v52, %v626_v51  ;;  %v1197_v49 = vmul.f32 %v8324_v33, %v9076_v3 }
 0x12c   : > { %v9241_v28 = vpop.permute.xlu1 %570  ;;  %v9250_v1 = vpop.permute.xlu0 %574  ;;  %v1435_v44 = vmul.f32 %v8386_v21, %v9076_v3  ;;  %v1929_v27 = vor.u32 %v1927_v10, %v1926_v19  ;;  %2503 = vrot.lane.b32.xlu0 %v9260_v7, %s11804_s11  ;;  %v9271_v41 = vsel %vm1735_vm6, %v1703_v5, %v1767_v18  ;;  %v1385_v20 = vadd.f32 %v1353_v38, %v1303_v11 }
 0x12d   : > { %v952_v53 = vadd.f32 %v920_v16, %v627_v32  ;;  %v1386_v48 = vadd.f32 %v1354_v30, %v1304_v0  ;;  %v1228_v14 = vadd.f32 %v1196_v39, %v951_v8  ;;  %v1704_v51 = vadd.f32 %v8454_v34, %v1668_v57 }
 0x12e   : > { %v9276_v36 = vsel %vm8416_vm4, 0, %v1929_v27  ;;  %v2066_v3 = vsel %vm8416_vm4, %v1926_v19, 0  ;;  %v1466_v52 = vadd.f32 %v1434_v37, %v1385_v20  ;;  %v1705_v45 = vadd.f32 %v8454_v34, %v1669_v15 }
 0x12f   : > { %11849 = vst [vmem:[#allocation20_spill] sm:$0xff] %v9276_v36  ;;  %v1273_v5 = vmul.f32 %v8358_v54, %v9092_v47  ;;  %v1502_v32 = vmul.f32 %v8394_v35, %v9092_v47  ;;  %2535 = vrot.lane.b32.xlu1 %v9276_v36, %s11808_s26  ;;  %v1229_v11 = vadd.f32 %v1197_v49, %v952_v53  ;;  %v2142_v0 = vshll.u32 %v9276_v36, 16 }
 0x130   : > { %v9268_v2 = vpop.permute.xlu1 %866  ;;  %v1467_v18 = vadd.f32 %v1435_v44, %v1386_v48  ;;  %2392 = vrot.lane.b32.xlu0 %v9260_v7, %s11794_s20  ;;  %v2147_v38 = vshll.u32 %v2066_v3, 16  ;;  %v9290_v37 = vpop.permute.xlu0 %870  ;;  %v628_v63 = vmul.f32 %v8307_v26, %v9092_v47  ;;  %v629_v16 = vmul.f32 %v8307_v26, %v9094_v9 }
 0x131   : > { %v1274_v30 = vmul.f32 %v8358_v54, %v9094_v9  ;;  %v1503_v25 = vmul.f32 %v8394_v35, %v9094_v9  ;;  %vm1736_vm8 = vcmp.gt.f32.partialorder %v1704_v51, 0.0  ;;  %v1570_v6 = vmul.f32 %v8411_v56, %v9121_v58 }
 0x132   : > { %v2140_v39 = vshrl.u32 %v9276_v36, 16  ;;  %v2144_v57 = vrot.slane %v2142_v0, 1  ;;  %v1768_v19 = vmul.f32 0.01, %v1704_v51  ;;  %vm1737_vm9 = vcmp.gt.f32.partialorder %v1705_v45, 0.0 }
 0x133   : > { %v1305_v10 = vadd.f32 %v1273_v5, %v1228_v14  ;;  %v1534_v47 = vadd.f32 %v1502_v32, %v1466_v52  ;;  %2425 = vrot.lane.b32.xlu1 %v9276_v36, %s11806_s17  ;;  %v1571_v8 = vmul.f32 %v8411_v56, %v9123_v22  ;;  %v1638_v9 = vmul.f32 %v9140_v40, %v9146_v59 }
 0x134   : > { %v9292_v15 = vpop.permute.xlu1 %1143  ;;  %v2145_v49 = vor.u32 %v2144_v57, %v2140_v39  ;;  %v2149_v44 = vrot.slane %v2147_v38, 1  ;;  %v1306_v20 = vadd.f32 %v1274_v30, %v1229_v11  ;;  %v1535_v53 = vadd.f32 %v1503_v25, %v1467_v18  ;;  %v9323_v38 = vpop.permute.xlu0 %1147 }
 0x135   : > { %v921_v48 = vmul.f32 %v8316_v29, %v9121_v58  ;;  %v1355_v14 = vmul.f32 %v8369_v62, %v9121_v58  ;;  %v1602_v52 = vadd.f32 %v1570_v6, %v1534_v47  ;;  %v1639_v5 = vmul.f32 %v9140_v40, %v9148_v4 }
 0x136   : > { %v9320_v32 = vsel %vm2078_vm7, %v2145_v49, %v2149_v44  ;;  %v2351_v0 = vrot.slane %v9276_v36, 1  ;;  %v1769_v39 = vmul.f32 0.01, %v1705_v45  ;;  %v922_v11 = vmul.f32 %v8316_v29, %v9123_v22 }
 0x137   : > { %v1356_v18 = vmul.f32 %v8369_v62, %v9123_v22  ;;  %v1198_v58 = vmul.f32 %v8324_v33, %v9146_v59  ;;  %2469 = vrot.lane.b32.xlu1 %v9320_v32, %s11792_s29  ;;  %2567 = vrot.lane.b32.xlu0 %v9320_v32, %s11790_s28  ;;  %v1603_v30 = vadd.f32 %v1571_v8, %v1535_v53  ;;  %v2352_v57 = vrot.slane %v2066_v3, 1 }
 0x138   : > { %v9311_v27 = vpop.permute.xlu1 %579  ;;  %v1436_v25 = vmul.f32 %v8386_v21, %v9146_v59  ;;  %v1670_v6 = vadd.f32 %v1638_v9, %v1602_v52  ;;  %v9340_v49 = vsel %vm1736_vm8, %v1704_v51, %v1768_v19  ;;  %v953_v22 = vadd.f32 %v921_v48, %v628_v63  ;;  %v9361_v9 = vpop.permute.xlu0 %583 }
 0x139   : > { %v1199_v44 = vmul.f32 %v8324_v33, %v9148_v4  ;;  %v1877_v36 = vpack.c.bf16 %v9180_v42, %v9163_v43  ;;  %v1387_v24 = vadd.f32 %v1355_v14, %v1305_v10  ;;  %v1437_v8 = vmul.f32 %v8386_v21, %v9148_v4 }
 0x13a   : > { %v1671_v53 = vadd.f32 %v1639_v5, %v1603_v30  ;;  %v9349_v59 = vsel %vm688_vm2, %v2351_v0, %v2352_v57  ;;  %v9352_v3 = vsel %vm1737_vm9, %v1705_v45, %v1769_v39  ;;  %v954_v51 = vadd.f32 %v922_v11, %v629_v16 }
 0x13b   : > { %11850 = vst [vmem:[#allocation22_spill] sm:$0xff] %v9349_v59  ;;  %v1388_v19 = vadd.f32 %v1356_v18, %v1306_v20  ;;  %2505 = vrot.lane.b32.xlu1 %v9349_v59, %s11804_s11  ;;  %2279 = vrot.lane.b32.xlu0 %v9226_v13, %s11802_s19  ;;  %v1931_v43 = vshrl.u32 %v1877_v36, 16  ;;  %v1230_v42 = vadd.f32 %v1198_v58, %v953_v22  ;;  %v1934_v14 = vshll.u32 %v1877_v36, 16 }
 0x13c   : > { %v9337_v47 = vpop.permute.xlu1 %874  ;;  %v1468_v63 = vadd.f32 %v1436_v25, %v1387_v24  ;;  %v1706_v4 = vadd.f32 %v8454_v34, %v1670_v6  ;;  %v1504_v10 = vmul.f32 %v8394_v35, %v9169_v60  ;;  %v1231_v16 = vadd.f32 %v1199_v44, %v954_v51  ;;  %v9398_v51 = vpop.permute.xlu0 %878 }
 0x13d   : > { %v1505_v20 = vmul.f32 %v8394_v35, %v9171_v23  ;;  %v1933_v48 = vrot.slane %v1931_v43, 7  ;;  %v1469_v52 = vadd.f32 %v1437_v8, %v1388_v19  ;;  %v1707_v13 = vadd.f32 %v8454_v34, %v1671_v53 }
 0x13e   : > { %v630_v24 = vmul.f32 %v8307_v26, %v9169_v60  ;;  %v1572_v5 = vmul.f32 %v8411_v56, %v9195_v17  ;;  %v1275_v0 = vmul.f32 %v8358_v54, %v9169_v60  ;;  %v1276_v39 = vmul.f32 %v8358_v54, %v9171_v23 }
 0x13f   : > { %v1573_v11 = vmul.f32 %v8411_v56, %v9197_v50  ;;  %2394 = vrot.lane.b32.xlu1 %v9349_v59, %s11794_s20  ;;  %v1936_v36 = vor.u32 %v1934_v14, %v1933_v48  ;;  %vm1738_vm11 = vcmp.gt.f32.partialorder %v1706_v4, 0.0  ;;  %v1536_v18 = vadd.f32 %v1504_v10, %v1468_v63 }
 0x140   : > { %v9363_v45 = vpop.permute.xlu1 %1151  ;;  %v1640_v58 = vmul.f32 %v9140_v40, %v9217_v46  ;;  %v9384_v30 = vsel %vm8416_vm4, %v1933_v48, 0  ;;  %v1770_v25 = vmul.f32 0.01, %v1706_v4  ;;  %v1537_v6 = vadd.f32 %v1505_v20, %v1469_v52 }
 0x141   : > { %v1641_v57 = vmul.f32 %v9140_v40, %v9221_v31  ;;  %v9392_v22 = vsel %vm8416_vm4, 0, %v1936_v36  ;;  %vm1739_vm12 = vcmp.gt.f32.partialorder %v1707_v13, 0.0  ;;  %v1771_v44 = vmul.f32 0.01, %v1707_v13 }
 0x142   : > { %v923_v8 = vmul.f32 %v8316_v29, %v9195_v17  ;;  %v1604_v53 = vadd.f32 %v1572_v5, %v1536_v18  ;;  %2537 = vrot.lane.b32.xlu0 %v9392_v22, %s11808_s26  ;;  %v1357_v19 = vmul.f32 %v8369_v62, %v9195_v17  ;;  %v1605_v43 = vadd.f32 %v1573_v11, %v1537_v6 }
 0x143   : > { %v2154_v63 = vshll.u32 %v9392_v22, 16  ;;  %v2159_v10 = vshll.u32 %v9384_v30, 16  ;;  %v1307_v20 = vadd.f32 %v1275_v0, %v1230_v42  ;;  %v631_v48 = vmul.f32 %v8307_v26, %v9171_v23 }
 0x144   : > { %v9386_v60 = vpop.permute.xlu1 %2384  ;;  %v1308_v14 = vadd.f32 %v1276_v39, %v1231_v16  ;;  %v1672_v52 = vadd.f32 %v1640_v58, %v1604_v53  ;;  %v924_v36 = vmul.f32 %v8316_v29, %v9197_v50  ;;  %v1673_v18 = vadd.f32 %v1641_v57, %v1605_v43  ;;  %v9428_v57 = vpop.permute.xlu0 %1155 }
 0x145   : > { %v2152_v59 = vshrl.u32 %v9392_v22, 16  ;;  %v2156_v17 = vrot.slane %v2154_v63, 1  ;;  %v9412_v11 = vsel %vm1738_vm11, %v1706_v4, %v1770_v25  ;;  %v9415_v6 = vsel %vm1739_vm12, %v1707_v13, %v1771_v44 }
 0x146   : > { %v1358_v23 = vmul.f32 %v8369_v62, %v9197_v50  ;;  %2427 = vrot.lane.b32.xlu0 %v9392_v22, %s11806_s17  ;;  %v1878_v42 = vpack.c.bf16 %v9271_v41, %v9253_v55  ;;  %v955_v16 = vadd.f32 %v923_v8, %v630_v24  ;;  %v1389_v0 = vadd.f32 %v1357_v19, %v1307_v20 }
 0x147   : > { %v2157_v39 = vor.u32 %v2156_v17, %v2152_v59  ;;  %v2161_v58 = vrot.slane %v2159_v10, 1  ;;  %vm11789_vm14 = vcmask 523264   ;;  %v1200_v4 = vmul.f32 %v8324_v33, %v9217_v46 }
 0x148   : > { %v9406_v5 = vpop.permute.xlu1 %592  ;;  %v1438_v13 = vmul.f32 %v8386_v21, %v9217_v46  ;;  %v1708_v50 = vadd.f32 %v8454_v34, %v1672_v52  ;;  %v1938_v25 = vshrl.u32 %v1878_v42, 16  ;;  %vm11787_vm15 = vcmask 916480  }
 0x149   : > { %v956_v44 = vadd.f32 %v924_v36, %v631_v48  ;;  %v1709_v55 = vadd.f32 %v8454_v34, %v1673_v18  ;;  %v9432_v41 = vsel %vm2078_vm7, %v2157_v39, %v2161_v58  ;;  %v2354_v59 = vrot.slane %v9392_v22, 1 }
 0x14a   : > { %v1201_v8 = vmul.f32 %v8324_v33, %v9221_v31  ;;  %v1439_v46 = vmul.f32 %v8386_v21, %v9221_v31  ;;  %2569 = vrot.lane.b32.xlu1 %v9432_v41, %s11790_s28  ;;  %2471 = vrot.lane.b32.xlu0 %v9432_v41, %s11792_s29  ;;  %v1940_v53 = vrot.slane %v1938_v25, 7  ;;  %v1941_v19 = vshll.u32 %v1878_v42, 16 }
 0x14b   : > { %v1390_v43 = vadd.f32 %v1358_v23, %v1308_v14  ;;  %v1277_v63 = vmul.f32 %v8358_v54, %v9241_v28  ;;  %v1506_v10 = vmul.f32 %v8394_v35, %v9241_v28  ;;  %v2355_v20 = vrot.slane %v9384_v30, 1 }
 0x14c   : > { %v9435_v24 = vpop.permute.xlu1 %2497  ;;  %v1232_v48 = vadd.f32 %v1200_v4, %v955_v16  ;;  %v1470_v52 = vadd.f32 %v1438_v13, %v1389_v0  ;;  %v1772_v31 = vmul.f32 0.01, %v1708_v50  ;;  %v1943_v36 = vor.u32 %v1941_v19, %v1940_v53  ;;  %v2418_v16 = vpop.permute.xlu0 %2417 }
 0x14d   : > { %vm1740_vm0 = vcmp.gt.f32.partialorder %v1708_v50, 0.0  ;;  %v1773_v18 = vmul.f32 0.01, %v1709_v55  ;;  %v9451_v17 = vsel %vm688_vm2, %v2354_v59, %v2355_v20  ;;  %v9455_v14 = vsel %vm8416_vm4, %v1940_v53, 0 }
 0x14e   : > { %v1233_v23 = vadd.f32 %v1201_v8, %v956_v44  ;;  %v1471_v42 = vadd.f32 %v1439_v46, %v1390_v43  ;;  %vm1741_vm1 = vcmp.gt.f32.partialorder %v1709_v55, 0.0  ;;  %2281 = vrot.lane.b32.xlu1 %v9320_v32, %s11802_s19  ;;  %v9461_v30 = vsel %vm8416_vm4, 0, %v1943_v36  ;;  %2507 = vrot.lane.b32.xlu0 %v9451_v17, %s11804_s11 }
 0x14f   : > { %vm11788_vm3 = vcmask 785408   ;;  %v632_v0 = vmul.f32 %v8307_v26, %v9241_v28  ;;  %v1309_v39 = vadd.f32 %v1277_v63, %v1232_v48  ;;  %v1538_v58 = vadd.f32 %v1506_v10, %v1470_v52 }
 0x150   : > { %v633_v4 = vmul.f32 %v8307_v26, %v9250_v1  ;;  %v2462_v13 = vpop.permute.xlu1 %2461  ;;  %v9470_v32 = vsel %vm1740_vm0, %v1708_v50, %v1772_v31  ;;  %v1278_v25 = vmul.f32 %v8358_v54, %v9250_v1  ;;  %v2166_v44 = vshll.u32 %v9461_v30, 16 }
 0x151   : > { %v2171_v59 = vshll.u32 %v9455_v14, 16  ;;  %v9476_v8 = vsel %vm1741_vm1, %v1709_v55, %v1773_v18  ;;  %v1507_v28 = vmul.f32 %v8394_v35, %v9250_v1  ;;  %v1574_v46 = vmul.f32 %v8411_v56, %v9268_v2 }
 0x152   : > { %v2677_v53 = vsel %vm11801_vm13, %v9386_v60, %v2418_v16  ;;  %2539 = vrot.lane.b32.xlu1 %v9461_v30, %s11808_s26  ;;  %2396 = vrot.lane.b32.xlu0 %v9451_v17, %s11794_s20  ;;  %v2164_v50 = vshrl.u32 %v9461_v30, 16  ;;  %v2168_v19 = vrot.slane %v2166_v44, 1  ;;  %v1879_v55 = vpack.c.bf16 %v9352_v3, %v9340_v49 }
 0x153   : > { %v2710_v1 = vsel %vm11789_vm14, %v2677_v53, %v2462_v13  ;;  %v925_v43 = vmul.f32 %v8316_v29, %v9268_v2  ;;  %v1359_v63 = vmul.f32 %v8369_v62, %v9268_v2  ;;  %v9496_v10 = vpop.permute.xlu0 %588  ;;  %v1880_v48 = vpack.c.bf16 %v9415_v6, %v9412_v11 }
 0x154   : > { %v2743_v20 = vsel %vm11787_vm15, %v2710_v1, %v9435_v24  ;;  %v1642_v52 = vmul.f32 %v9140_v40, %v9292_v15  ;;  %v2169_v49 = vor.u32 %v2168_v19, %v2164_v50  ;;  %v2173_v3 = vrot.slane %v2171_v59, 1  ;;  %v11851_v19 = vld [vmem:[#allocation14_spill] sm:$0xff] }
 0x155   : > { %v1945_v31 = vshrl.u32 %v1879_v55, 16  ;;  %3118 = vmatprep.mubr.bf16.mxu0 %v2743_v20  ;;  %v1310_v36 = vadd.f32 %v1278_v25, %v1233_v23  ;;  %v926_v18 = vmul.f32 %v8316_v29, %v9290_v37  ;;  %v1360_v2 = vmul.f32 %v8369_v62, %v9290_v37 }
 0x156   : > { %v1575_v16 = vmul.f32 %v8411_v56, %v9290_v37  ;;  %v1606_v13 = vadd.f32 %v1574_v46, %v1538_v58  ;;  %2429 = vrot.lane.b32.xlu1 %v9461_v30, %s11806_s17  ;;  %v9513_v11 = vsel %vm2078_vm7, %v2169_v49, %v2173_v3  ;;  %v1948_v44 = vshll.u32 %v1879_v55, 16 }
 0x157   : > { %v1947_v6 = vrot.slane %v1945_v31, 7  ;;  %v1539_v59 = vadd.f32 %v1507_v28, %v1471_v42  ;;  %v957_v23 = vadd.f32 %v925_v43, %v632_v0  ;;  %v1643_v25 = vmul.f32 %v9140_v40, %v9323_v38  ;;  %2571 = vrot.lane.b32.xlu0 %v9513_v11, %s11790_s28  ;;  %v2272_v53 = vpop.permute.xlu0 %2271 }
 0x158   : > { %v1952_v50 = vshrl.u32 %v1880_v48, 16  ;;  %v1391_v37 = vadd.f32 %v1359_v63, %v1309_v39  ;;  %v1674_v58 = vadd.f32 %v1642_v52, %v1606_v13  ;;  %v2595_v1 = vsel %vm2593_vm10, %v11851_v19, %v2272_v53 }
 0x159   : > { %v1950_v46 = vor.u32 %v1948_v44, %v1947_v6  ;;  %v1607_v20 = vadd.f32 %v1575_v16, %v1539_v59  ;;  %v1202_v55 = vmul.f32 %v8324_v33, %v9292_v15  ;;  %v2357_v42 = vrot.slane %v9461_v30, 1 }
 0x15a   : > { %v2628_v0 = vsel %vm11788_vm3, %v2595_v1, %v9386_v60  ;;  %v958_v28 = vadd.f32 %v926_v18, %v633_v4  ;;  %v1392_v43 = vadd.f32 %v1360_v2, %v1310_v36  ;;  %v1440_v49 = vmul.f32 %v8386_v21, %v9292_v15  ;;  %2473 = vrot.lane.b32.xlu1 %v9513_v11, %s11792_s29 }
 0x15b   : > { %v9532_v39 = vsel %vm8416_vm4, 0, %v1950_v46  ;;  %3119 = vmatmul.mubr.bf16.vlgmr.msra.gmra.mrb[0].mxu0 %v2628_v0  ;;  %v1675_v63 = vadd.f32 %v1643_v25, %v1607_v20  ;;  %v2358_v52 = vrot.slane %v9455_v14, 1  ;;  %2283 = vrot.lane.b32.xlu0 %v9432_v41, %s11802_s19  ;;  %v9538_v4 = vpop.permute.xlu0 %882  ;;  %v9540_v3 = vrot.slane %v1952_v50, 7 }
 0x15c   : > { %v2178_v60 = vshll.u32 %v9532_v39, 16  ;;  %v1710_v15 = vadd.f32 %v8454_v34, %v1674_v58  ;;  %v1203_v31 = vmul.f32 %v8324_v33, %v9323_v38  ;;  %v1441_v36 = vmul.f32 %v8386_v21, %v9323_v38 }
 0x15d   : > { %v9549_v14 = vsel %vm8416_vm4, %v1947_v6, 0  ;;  %v1279_v41 = vmul.f32 %v8358_v54, %v9311_v27  ;;  %v9554_v18 = vsel %vm688_vm2, %v2357_v42, %v2358_v52  ;;  %v1955_v16 = vshll.u32 %v1880_v48, 16 }
 0x15e   : > { %v2180_v2 = vrot.slane %v2178_v60, 1  ;;  %v1234_v13 = vadd.f32 %v1202_v55, %v957_v23  ;;  %v1472_v44 = vadd.f32 %v1440_v49, %v1391_v37  ;;  %v9558_v59 = vmul.f32 %v8307_v26, %v9311_v27  ;;  %2509 = vrot.lane.b32.xlu1 %v9554_v18, %s11804_s11  ;;  %v9564_v6 = vpop.permute.xlu1 %886 }
 0x15f   : > { %v1508_v38 = vmul.f32 %v8394_v35, %v9311_v27  ;;  %v1711_v25 = vadd.f32 %v8454_v34, %v1675_v63  ;;  %2541 = vrot.lane.b32.xlu0 %v9532_v39, %s11808_s26  ;;  %v2176_v48 = vshrl.u32 %v9532_v39, 16  ;;  %v2183_v23 = vshll.u32 %v9549_v14, 16  ;;  %v9572_v50 = vpop.permute.xlu0 %1159 }
 0x160   : > { %v1957_v53 = vor.u32 %v1955_v16, %v9540_v3  ;;  %vm11786_vm5 = vcmask 261120   ;;  %v1774_v27 = vmul.f32 0.01, %v1710_v15  ;;  %v1235_v37 = vadd.f32 %v1203_v31, %v958_v28 }
 0x161   : > { %v1473_v58 = vadd.f32 %v1441_v36, %v1392_v43  ;;  %v1280_v46 = vmul.f32 %v8358_v54, %v9361_v9  ;;  %vm1742_vm6 = vcmp.gt.f32.partialorder %v1710_v15, 0.0  ;;  %v1311_v1 = vadd.f32 %v1279_v41, %v1234_v13 }
 0x162   : > { %v1509_v20 = vmul.f32 %v8394_v35, %v9361_v9  ;;  %v2181_v55 = vor.u32 %v2180_v2, %v2176_v48  ;;  %v1540_v42 = vadd.f32 %v1508_v38, %v1472_v44  ;;  %v9580_v0 = vmul.f32 %v8307_v26, %v9361_v9  ;;  %2398 = vrot.lane.b32.xlu1 %v9554_v18, %s11794_s20 }
 0x163   : > { %v1576_v49 = vmul.f32 %v8411_v56, %v9337_v47  ;;  %v9586_v28 = vpop.permute.xlu1 %1163  ;;  %v1881_v43 = vpack.c.bf16 %v9476_v8, %v9470_v32  ;;  %v1775_v63 = vmul.f32 0.01, %v1711_v25  ;;  %v1577_v52 = vmul.f32 %v8411_v56, %v9398_v51  ;;  %2431 = vrot.lane.b32.xlu0 %v9532_v39, %s11806_s17  ;;  %v2530_v31 = vpop.permute.xlu0 %2529 }
 0x164   : > { %v2185_v60 = vrot.slane %v2183_v23, 1  ;;  %v9596_v9 = vsel %vm8416_vm4, 0, %v1957_v53  ;;  %v1806_v36 = vsel %vm1742_vm6, %v1710_v15, %v1774_v27  ;;  %vm1743_vm8 = vcmp.gt.f32.partialorder %v1711_v25, 0.0 }
 0x165   : > { %v1312_v41 = vadd.f32 %v1280_v46, %v1235_v37  ;;  %v1644_v32 = vmul.f32 %v9140_v40, %v9363_v45  ;;  %v1541_v8 = vadd.f32 %v1509_v20, %v1473_v58  ;;  %v1361_v2 = vmul.f32 %v8369_v62, %v9337_v47 }
 0x166   : > { %v1645_v16 = vmul.f32 %v9140_v40, %v9428_v57  ;;  %v9606_v13 = vsel %vm2078_vm7, %v2181_v55, %v2185_v60  ;;  %v1608_v44 = vadd.f32 %v1576_v49, %v1540_v42  ;;  %v2360_v15 = vrot.slane %v9532_v39, 1 }
 0x167   : > { %2573 = vrot.lane.b32.xlu1 %v9606_v13, %s11790_s28  ;;  %v9611_v38 = vpop.permute.xlu1 %2386  ;;  %v2190_v48 = vshll.u32 %v9596_v9, 16  ;;  %v1959_v23 = vshrl.u32 %v1881_v43, 16  ;;  %v1807_v53 = vsel %vm1743_vm8, %v1711_v25, %v1775_v63  ;;  %v927_v27 = vmul.f32 %v8316_v29, %v9337_v47  ;;  %2475 = vrot.lane.b32.xlu0 %v9606_v13, %s11792_s29  ;;  %v9620_v46 = vpop.permute.xlu0 %2419 }
 0x168   : > { %v1362_v37 = vmul.f32 %v8369_v62, %v9398_v51  ;;  %v1609_v58 = vadd.f32 %v1577_v52, %v1541_v8  ;;  %v928_v20 = vmul.f32 %v8316_v29, %v9398_v51  ;;  %v1676_v55 = vadd.f32 %v1644_v32, %v1608_v44 }
 0x169   : > { %v2361_v42 = vrot.slane %v9549_v14, 1  ;;  %vm11785_vm9 = vcmask 654336   ;;  %v1393_v25 = vadd.f32 %v1361_v2, %v1311_v1  ;;  %v1442_v47 = vmul.f32 %v8386_v21, %v9363_v45 }
 0x16a   : > { %v1677_v49 = vadd.f32 %v1645_v16, %v1609_v58  ;;  %v9630_v63 = vsel %vm8416_vm4, %v9540_v3, 0  ;;  %v2792_v51 = vsel %vm11786_vm5, %v9435_v24, %v2530_v31  ;;  %v2192_v14 = vrot.slane %v2190_v48, 1 }
 0x16b   : > { %2285 = vrot.lane.b32.xlu1 %v9513_v11, %s11802_s19  ;;  %v9635_v52 = vsel %vm688_vm2, %v2360_v15, %v2361_v42  ;;  %v2562_v1 = vpop.permute.xlu1 %2561  ;;  %v9639_v60 = vrot.slane %v1959_v23, 7  ;;  %v1394_v32 = vadd.f32 %v1362_v37, %v1312_v41  ;;  %v1443_v8 = vmul.f32 %v8386_v21, %v9428_v57  ;;  %v2464_v16 = vpop.permute.xlu0 %2463 }
 0x16c   : > { %v1510_v3 = vmul.f32 %v8394_v35, %v9496_v10  ;;  %2511 = vrot.lane.b32.xlu0 %v9635_v52, %s11804_s11  ;;  %v2825_v11 = vsel %vm11785_vm9, %v2792_v51, %v2562_v1  ;;  %v1712_v2 = vadd.f32 %v8454_v34, %v1676_v55  ;;  %v2188_v24 = vshrl.u32 %v9596_v9, 16 }
 0x16d   : > { %v2195_v31 = vshll.u32 %v9630_v63, 16  ;;  %3280 = vmatmul.mubr.bf16.vlgmr.msra.gmra.mrb[0].mxu1 %v2825_v11  ;;  %v1962_v41 = vshll.u32 %v1881_v43, 16  ;;  %v1474_v44 = vadd.f32 %v1442_v47, %v1393_v25  ;;  %v1713_v15 = vadd.f32 %v8454_v34, %v1677_v49  ;;  %v11852_v11 = vld [vmem:[#allocation11_spill] sm:$0xff] }
 0x16e   : > { %v1511_v48 = vmul.f32 %v8394_v35, %v9406_v5  ;;  %v1578_v23 = vmul.f32 %v8411_v56, %v9538_v4  ;;  %7298 = vmatprep.mubr.msk.bf16.mxu1 %vm2593_vm10, %v9109_v12  ;;  %v959_v37 = vadd.f32 %v927_v27, %v9558_v59  ;;  %v2193_v58 = vor.u32 %v2192_v14, %v2188_v24 }
 0x16f   : > { %2543 = vrot.lane.b32.xlu1 %v9596_v9, %s11808_s26  ;;  %v1964_v43 = vor.u32 %v1962_v41, %v9639_v60  ;;  %v9662_v55 = vpack.c.bf16 %v1807_v53, %v1806_v36  ;;  %v1204_v42 = vmul.f32 %v8324_v33, %v9363_v45  ;;  %v1475_v25 = vadd.f32 %v1443_v8, %v1394_v32 }
 0x170   : > { %v1542_v47 = vadd.f32 %v1510_v3, %v1474_v44  ;;  %v1646_v49 = vmul.f32 %v9140_v40, %v9572_v50  ;;  %2400 = vrot.lane.b32.xlu0 %v9635_v52, %s11794_s20  ;;  %vm1744_vm11 = vcmp.gt.f32.partialorder %v1712_v2, 0.0  ;;  %v1776_v12 = vmul.f32 0.01, %v1712_v2 }
 0x171   : > { %v1579_v59 = vmul.f32 %v8411_v56, %v9564_v6  ;;  %v2197_v27 = vrot.slane %v2195_v31, 1  ;;  %vm1745_vm12 = vcmp.gt.f32.partialorder %v1713_v15, 0.0  ;;  %v1777_v36 = vmul.f32 0.01, %v1713_v15 }
 0x172   : > { %v1543_v53 = vadd.f32 %v1511_v48, %v1475_v25  ;;  %v1610_v51 = vadd.f32 %v1578_v23, %v1542_v47  ;;  %v1647_v45 = vmul.f32 %v9140_v40, %v9586_v28  ;;  %v9679_v1 = vpop.permute.xlu1 %597  ;;  %v9683_v32 = vsel %vm8416_vm4, 0, %v1964_v43  ;;  %v9685_v8 = vpop.permute.xlu0 %601 }
 0x173   : > { %2433 = vrot.lane.b32.xlu1 %v9596_v9, %s11806_s17  ;;  %v9677_v14 = vsel %vm2078_vm7, %v2193_v58, %v2197_v27  ;;  %v1966_v3 = vshrl.u32 %v9662_v55, 16  ;;  %v11853_v24 = vunpack.i.l.bf16 %v11852_v11  ;;  %v960_v31 = vadd.f32 %v928_v20, %v9580_v0 }
 0x174   : > { %v1205_v41 = vmul.f32 %v8324_v33, %v9428_v57  ;;  %v1678_v44 = vadd.f32 %v1646_v49, %v1610_v51  ;;  %2575 = vrot.lane.b32.xlu0 %v9677_v14, %s11790_s28  ;;  %v1236_v48 = vadd.f32 %v1204_v42, %v959_v37  ;;  %v1808_v23 = vsel %vm1744_vm11, %v1712_v2, %v1776_v12 }
 0x175   : > { %v9691_v40 = vmul.f32 %v11853_v24, %v8394_v35  ;;  %v1282_v58 = vmul.f32 %v8358_v54, %v9406_v5  ;;  %v1611_v43 = vadd.f32 %v1579_v59, %v1543_v53  ;;  %v1809_v25 = vsel %vm1745_vm12, %v1713_v15, %v1777_v36  ;;  %v11854_v59 = vld [vmem:[#allocation16_spill] sm:$0xff] }
 0x176   : > { %v2679_v0 = vsel %vm11801_vm13, %v9611_v38, %v9620_v46  ;;  %v2363_v20 = vrot.slane %v9596_v9, 1  ;;  %v2202_v57 = vshll.u32 %v9683_v32, 16  ;;  %v1281_v47 = vmul.f32 %v8358_v54, %v9496_v10  ;;  %v2274_v42 = vpop.permute.xlu1 %2273  ;;  %v9712_v49 = vpop.permute.xlu0 %2499 }
 0x177   : > { %v1679_v37 = vadd.f32 %v1647_v45, %v1611_v43  ;;  %2477 = vrot.lane.b32.xlu1 %v9677_v14, %s11792_s29  ;;  %v2712_v2 = vsel %vm11789_vm14, %v2679_v0, %v2464_v16  ;;  %v1968_v15 = vrot.slane %v1966_v3, 7  ;;  %v1714_v12 = vadd.f32 %v8454_v34, %v1678_v44 }
 0x178   : > { %v2364_v46 = vrot.slane %v9630_v63, 1  ;;  %2287 = vrot.lane.b32.xlu0 %v9606_v13, %s11802_s19  ;;  %v2597_v27 = vsel %vm2593_vm10, %v11854_v59, %v2274_v42  ;;  %v2746_v36 = vsel %vm11787_vm15, %v2712_v2, %v9712_v49  ;;  %v9725_v16 = vsel %vm8416_vm4, %v9639_v60, 0 }
 0x179   : > { %3126 = vmatprep.mubr.bf16.mxu0 %v2746_v36  ;;  %v2631_v53 = vsel %vm11788_vm3, %v2597_v27, %v9611_v38  ;;  %v1969_v63 = vshll.u32 %v9662_v55, 16  ;;  %v1883_v51 = vpack.c.bf16 %v1809_v25, %v1808_v23  ;;  %v929_v13 = vmul.f32 %v8316_v29, %v9538_v4 }
 0x17a   : > { %v1363_v45 = vmul.f32 %v8369_v62, %v9538_v4  ;;  %v9735_v3 = vsel %vm688_vm2, %v2363_v20, %v2364_v46  ;;  %v2204_v24 = vrot.slane %v2202_v57, 1  ;;  %3127 = vmatmul.mubr.bf16.gmra.mrb[4].mxu0 %v2631_v53  ;;  %v1237_v60 = vadd.f32 %v1205_v41, %v960_v31  ;;  %v9742_v55 = vpop.permute.xlu1 %890  ;;  %v9744_v23 = vpop.permute.xlu0 %894 }
 0x17b   : > { %v637_v44 = vmul.f32 %v8307_v26, %v9406_v5  ;;  %v1715_v38 = vadd.f32 %v8454_v34, %v1679_v37  ;;  %2513 = vrot.lane.b32.xlu1 %v9735_v3, %s11804_s11  ;;  %v1971_v43 = vor.u32 %v1969_v63, %v1968_v15  ;;  %v636_v4 = vmul.f32 %v8307_v26, %v9496_v10 }
 0x17c   : > { %v1313_v25 = vadd.f32 %v1281_v47, %v1236_v48  ;;  %2545 = vrot.lane.b32.xlu0 %v9683_v32, %s11808_s26  ;;  %v2200_v31 = vshrl.u32 %v9683_v32, 16  ;;  %v2207_v5 = vshll.u32 %v9725_v16, 16  ;;  %v1314_v41 = vadd.f32 %v1282_v58, %v1237_v60 }
 0x17d   : > { %v1364_v0 = vmul.f32 %v8369_v62, %v9564_v6  ;;  %v1778_v20 = vmul.f32 0.01, %v1714_v12  ;;  %v1973_v57 = vshrl.u32 %v1883_v51, 16  ;;  %v961_v37 = vadd.f32 %v929_v13, %v636_v4 }
 0x17e   : > { %v1395_v2 = vadd.f32 %v1363_v45, %v1313_v25  ;;  %vm1746_vm0 = vcmp.gt.f32.partialorder %v1714_v12, 0.0  ;;  %v2205_v42 = vor.u32 %v2204_v24, %v2200_v31  ;;  %v930_v10 = vmul.f32 %v8316_v29, %v9564_v6  ;;  %v9760_v58 = vpop.permute.xlu1 %1167  ;;  %v9766_v59 = vpop.permute.xlu0 %1171 }
 0x17f   : > { %v1779_v48 = vmul.f32 0.01, %v1715_v38  ;;  %v1206_v47 = vmul.f32 %v8324_v33, %v9572_v50  ;;  %2402 = vrot.lane.b32.xlu1 %v9735_v3, %s11794_s20  ;;  %v9764_v46 = vsel %vm8416_vm4, 0, %v1971_v43  ;;  %v1445_v27 = vmul.f32 %v8386_v21, %v9586_v28 }
 0x180   : > { %vm1747_vm1 = vcmp.gt.f32.partialorder %v1715_v38, 0.0  ;;  %v1444_v6 = vmul.f32 %v8386_v21, %v9572_v50  ;;  %v2209_v36 = vrot.slane %v2207_v5, 1  ;;  %2435 = vrot.lane.b32.xlu0 %v9683_v32, %s11806_s17  ;;  %v1396_v53 = vadd.f32 %v1364_v0, %v1314_v41 }
 0x181   : > { %v1810_v63 = vsel %vm1746_vm0, %v1714_v12, %v1778_v20  ;;  %v2366_v13 = vrot.slane %v9683_v32, 1  ;;  %v1975_v45 = vrot.slane %v1973_v57, 7  ;;  %v1512_v24 = vmul.f32 %v8394_v35, %v9679_v1 }
 0x182   : > { %v9778_v60 = vsel %vm2078_vm7, %v2205_v42, %v2209_v36  ;;  %v2367_v43 = vrot.slane %v9725_v16, 1  ;;  %v2214_v4 = vshll.u32 %v9764_v46, 16  ;;  %v1811_v50 = vsel %vm1747_vm1, %v1715_v38, %v1779_v48  ;;  %v2532_v12 = vpop.permute.xlu1 %2531  ;;  %v9786_v31 = vpop.permute.xlu0 %2388 }
 0x183   : > { %v1513_v25 = vmul.f32 %v8394_v35, %v9685_v8  ;;  %2577 = vrot.lane.b32.xlu1 %v9778_v60, %s11790_s28  ;;  %v2072_v5 = vsel %vm8416_vm4, %v1968_v15, 0  ;;  %v1976_v41 = vshll.u32 %v1883_v51, 16  ;;  %v962_v0 = vadd.f32 %v930_v10, %v637_v44 }
 0x184   : > { %v1207_v16 = vmul.f32 %v8324_v33, %v9586_v28  ;;  %v1477_v20 = vadd.f32 %v1445_v27, %v1396_v53  ;;  %v1476_v57 = vadd.f32 %v1444_v6, %v1395_v2  ;;  %2479 = vrot.lane.b32.xlu0 %v9778_v60, %s11792_s29  ;;  %v1580_v38 = vmul.f32 %v8411_v56, %v9742_v55  ;;  %v9808_v2 = vld [vmem:[%s11820_s1 + $0x8] ss:$0 sm:$0xff]  ;;  %s11934_s1 = smov 16  }
 0x185   : > { %v1581_v42 = vmul.f32 %v8411_v56, %v9744_v23  ;;  %v9799_v48 = vsel %vm688_vm2, %v2366_v13, %v2367_v43  ;;  %v1978_v15 = vor.u32 %v1976_v41, %v1975_v45  ;;  %v2216_v44 = vrot.slane %v2214_v4, 1 }
 0x186   : > { %v1544_v51 = vadd.f32 %v1512_v24, %v1476_v57  ;;  %v2219_v10 = vshll.u32 %v2072_v5, 16  ;;  %v9801_v36 = vpack.c.bf16 %v1811_v50, %v1810_v63  ;;  %v1545_v28 = vadd.f32 %v1513_v25, %v1477_v20  ;;  %v2422_v63 = vpop.permute.xlu1 %2421  ;;  %v2564_v13 = vpop.permute.xlu0 %2563 }
 0x187   : > { %2289 = vrot.lane.b32.xlu1 %v9677_v14, %s11802_s19  ;;  %v1648_v27 = vmul.f32 %v9808_v2, %v9760_v58  ;;  %v2794_v6 = vsel %vm11786_vm5, %v9712_v49, %v2532_v12  ;;  %v1649_v53 = vmul.f32 %v9808_v2, %v9766_v59  ;;  %v1239_v24 = vadd.f32 %v1207_v16, %v962_v0 }
 0x188   : > { %v1238_v43 = vadd.f32 %v1206_v47, %v961_v37  ;;  %2515 = vrot.lane.b32.xlu0 %v9799_v48, %s11804_s11  ;;  %v2369_v14 = vrot.slane %v9764_v46, 1  ;;  %v2828_v4 = vsel %vm11785_vm9, %v2794_v6, %v2564_v13  ;;  %v1612_v50 = vadd.f32 %v1580_v38, %v1544_v51 }
 0x189   : > { %v1613_v25 = vadd.f32 %v1581_v42, %v1545_v28  ;;  %v2212_v41 = vshrl.u32 %v9764_v46, 16  ;;  %3288 = vmatmul.mubr.bf16.gmra.mrb[4].mxu1 %v2828_v4  ;;  %v9823_v49 = vsel %vm8416_vm4, 0, %v1978_v15  ;;  %v1283_v12 = vmul.f32 %v8358_v54, %v9679_v1 }
 0x18a   : > { %v2221_v37 = vrot.slane %v2219_v10, 1  ;;  %v2370_v47 = vrot.slane %v2072_v5, 1  ;;  %7299 = vmatprep.mubr.msk.bf16.mxu1 %vm2593_vm10, %v9260_v7  ;;  %v1980_v0 = vshrl.u32 %v9801_v36, 16  ;;  %v1284_v16 = vmul.f32 %v8358_v54, %v9685_v8  ;;  %v2466_v42 = vpop.permute.xlu1 %2465 }
 0x18b   : > { %v1680_v20 = vadd.f32 %v1648_v27, %v1612_v50  ;;  %2547 = vrot.lane.b32.xlu1 %v9764_v46, %s11808_s26  ;;  %v1681_v57 = vadd.f32 %v1649_v53, %v1613_v25  ;;  %v2217_v38 = vor.u32 %v2216_v44, %v2212_v41  ;;  %v931_v15 = vmul.f32 %v8316_v29, %v9742_v55 }
 0x18c   : > { %2404 = vrot.lane.b32.xlu0 %v9799_v48, %s11794_s20  ;;  %v9839_v7 = vsel %vm688_vm2, %v2369_v14, %v2370_v47  ;;  %v2226_v5 = vshll.u32 %v9823_v49, 16  ;;  %v1983_v51 = vshll.u32 %v9801_v36, 16  ;;  %v1365_v10 = vmul.f32 %v8369_v62, %v9742_v55 }
 0x18d   : > { %v932_v44 = vmul.f32 %v8316_v29, %v9744_v23  ;;  %v1366_v28 = vmul.f32 %v8369_v62, %v9744_v23  ;;  %v9851_v27 = vsel %vm8416_vm4, %v1975_v45, 0  ;;  %v638_v6 = vmul.f32 %v8307_v26, %v9679_v1 }
 0x18e   : > { %v1315_v53 = vadd.f32 %v1283_v12, %v1238_v43  ;;  %v639_v36 = vmul.f32 %v8307_v26, %v9685_v8  ;;  %v9857_v13 = vrot.slane %v1980_v0, 7  ;;  %v1316_v55 = vadd.f32 %v1284_v16, %v1239_v24  ;;  %v1249_v45 = vpop.permute.xlu1 %1248  ;;  %v1245_v4 = vpop.permute.xlu0 %1244 }
 0x18f   : > { %v1716_v14 = vadd.f32 %v8454_v34, %v1680_v20  ;;  %v1717_v29 = vadd.f32 %v8454_v34, %v1681_v57  ;;  %2437 = vrot.lane.b32.xlu1 %v9764_v46, %s11806_s17  ;;  %v9864_v23 = vsel %vm2078_vm7, %v2217_v38, %v2221_v37  ;;  %v963_v1 = vadd.f32 %v931_v15, %v638_v6 }
 0x190   : > { %2579 = vrot.lane.b32.xlu0 %v9864_v23, %s11790_s28  ;;  %v2224_v26 = vshrl.u32 %v9823_v49, 16  ;;  %v2228_v8 = vrot.slane %v2226_v5, 1  ;;  %v2231_v24 = vshll.u32 %v9851_v27, 16  ;;  %v1397_v43 = vadd.f32 %v1365_v10, %v1315_v53 }
 0x191   : > { %v1208_v50 = vmul.f32 %v8324_v33, %v9760_v58  ;;  %v964_v25 = vadd.f32 %v932_v44, %v639_v36  ;;  %v1398_v41 = vadd.f32 %v1366_v28, %v1316_v55  ;;  %v1446_v12 = vmul.f32 %v8386_v21, %v9760_v58 }
 0x192   : > { %v1209_v37 = vmul.f32 %v8324_v33, %v9766_v59  ;;  %v1447_v47 = vmul.f32 %v8386_v21, %v9766_v59  ;;  %v2681_v0 = vsel %vm11801_vm13, %v9786_v31, %v2422_v63  ;;  %vm1748_vm6 = vcmp.gt.f32.partialorder %v1716_v14, 0.0  ;;  %v9883_v38 = vpop.permute.xlu1 %2501  ;;  %v2276_v58 = vpop.permute.xlu0 %2275  ;;  %v11855_v59 = vld [vmem:[#allocation21_spill] sm:$0xff] }
 0x193   : > { %v1780_v16 = vmul.f32 0.01, %v1716_v14  ;;  %v1781_v20 = vmul.f32 0.01, %v1717_v29  ;;  %2481 = vrot.lane.b32.xlu1 %v9864_v23, %s11792_s29  ;;  %v2714_v57 = vsel %vm11789_vm14, %v2681_v0, %v2466_v42  ;;  %vm1749_vm8 = vcmp.gt.f32.partialorder %v1717_v29, 0.0 }
 0x194   : > { %2291 = vrot.lane.b32.xlu0 %v9778_v60, %s11802_s19  ;;  %v1286_v33 = vmul.f32 %v8358_v54, %v1249_v45  ;;  %v2599_v63 = vsel %vm2593_vm10, %v11855_v59, %v2276_v58  ;;  %v2749_v15 = vsel %vm11787_vm15, %v2714_v57, %v9883_v38  ;;  %v1515_v5 = vmul.f32 %v8394_v35, %v1249_v45  ;;  %v11857_v59 = vld [vmem:[#allocation12_spill] sm:$0xff] }
 0x195   : > { %v1285_v10 = vmul.f32 %v8358_v54, %v1245_v4  ;;  %v1514_v42 = vmul.f32 %v8394_v35, %v1245_v4  ;;  %3134 = vmatprep.mubr.bf16.mxu0 %v2749_v15  ;;  %v2634_v44 = vsel %vm11788_vm3, %v2599_v63, %v9786_v31  ;;  %v1241_v28 = vadd.f32 %v1209_v37, %v964_v25 }
 0x196   : > { %v1240_v60 = vadd.f32 %v1208_v50, %v963_v1  ;;  %v2229_v6 = vor.u32 %v2228_v8, %v2224_v26  ;;  %3135 = vmatmul.mubr.bf16.gmra.mrb[8].mxu0 %v2634_v44  ;;  %v1985_v53 = vor.u32 %v1983_v51, %v9857_v13  ;;  %v1812_v36 = vsel %vm1748_vm6, %v1716_v14, %v1780_v16  ;;  %v1331_v4 = vpop.permute.xlu1 %1330  ;;  %v1327_v0 = vpop.permute.xlu0 %1326 }
 0x197   : > { %v1813_v55 = vsel %vm1749_vm8, %v1717_v29, %v1781_v20  ;;  %2517 = vrot.lane.b32.xlu1 %v9839_v7, %s11804_s11  ;;  %v1479_v54 = vadd.f32 %v1447_v47, %v1398_v41  ;;  %v1478_v45 = vadd.f32 %v1446_v12, %v1397_v43  ;;  %v1368_v31 = vmul.f32 %v8369_v62, %v1331_v4 }
 0x198   : > { %2549 = vrot.lane.b32.xlu0 %v9823_v49, %s11808_s26  ;;  %v1583_v1 = vmul.f32 %v8411_v56, %v1331_v4  ;;  %v1367_v51 = vmul.f32 %v8369_v62, %v1327_v0  ;;  %v1582_v14 = vmul.f32 %v8411_v56, %v1327_v0  ;;  %v1318_v26 = vadd.f32 %v1286_v33, %v1241_v28 }
 0x199   : > { %v1547_v29 = vadd.f32 %v1515_v5, %v1479_v54  ;;  %v1317_v8 = vadd.f32 %v1285_v10, %v1240_v60  ;;  %v1546_v50 = vadd.f32 %v1514_v42, %v1478_v45  ;;  %v11856_v43 = vunpack.i.h.bf16 %v11852_v11  ;;  %v11859_v5 = vld [vmem:[#allocation13_spill] sm:$0xff] }
 0x19a   : > { %v2233_v41 = vrot.slane %v2231_v24, 1  ;;  %v9913_v12 = vsel %vm8416_vm4, 0, %v1985_v53  ;;  %v9915_v37 = vpack.c.bf16 %v1813_v55, %v1812_v36  ;;  %v1400_v62 = vadd.f32 %v1368_v31, %v1318_v26  ;;  %v1412_v57 = vpop.permute.xlu1 %1411  ;;  %v1408_v58 = vpop.permute.xlu0 %1407 }
 0x19b   : > { %v1517_v25 = vmul.f32 %v11856_v43, %v8394_v35  ;;  %2406 = vrot.lane.b32.xlu1 %v9839_v7, %s11794_s20  ;;  %v1615_v47 = vadd.f32 %v1583_v1, %v1547_v29  ;;  %v1399_v16 = vadd.f32 %v1367_v51, %v1317_v8  ;;  %v1614_v20 = vadd.f32 %v1582_v14, %v1546_v50 }
 0x19c   : > { %2439 = vrot.lane.b32.xlu0 %v9823_v49, %s11806_s17  ;;  %v1449_v35 = vmul.f32 %v8386_v21, %v1412_v57  ;;  %v1651_v11 = vmul.f32 %v9808_v2, %v1412_v57  ;;  %v1448_v24 = vmul.f32 %v8386_v21, %v1408_v58  ;;  %v1650_v33 = vmul.f32 %v9808_v2, %v1408_v58 }
 0x19d   : > { %v11858_v63 = vunpack.i.l.bf16 %v11857_v59  ;;  %v11860_v10 = vunpack.i.l.bf16 %v11859_v5  ;;  %v9932_v44 = vsel %vm2078_vm7, %v2229_v6, %v2233_v41  ;;  %v2372_v28 = vrot.slane %v9823_v49, 1 }
 0x19e   : > { %v1481_v60 = vadd.f32 %v1449_v35, %v1400_v62  ;;  %v1683_v53 = vadd.f32 %v1651_v11, %v1615_v47  ;;  %v1480_v36 = vadd.f32 %v1448_v24, %v1399_v16  ;;  %v1682_v55 = vadd.f32 %v1650_v33, %v1614_v20  ;;  %v9941_v4 = vpop.permute.xlu1 %2390  ;;  %v2534_v0 = vpop.permute.xlu0 %2533 }
 0x19f   : > { %v1652_v15 = vmul.f32 %v9808_v2, %v11858_v63  ;;  %v1584_v42 = vmul.f32 %v11860_v10, %v8411_v56  ;;  %v11861_v21 = vunpack.i.h.bf16 %v11859_v5  ;;  %2581 = vrot.lane.b32.xlu1 %v9932_v44, %s11790_s28  ;;  %v2373_v45 = vrot.slane %v9851_v27, 1 }
 0x1a0   : > { %v2238_v6 = vshll.u32 %v9913_v12, 16  ;;  %v1987_v31 = vshrl.u32 %v9915_v37, 16  ;;  %2483 = vrot.lane.b32.xlu0 %v9932_v44, %s11792_s29  ;;  %v1549_v1 = vadd.f32 %v1517_v25, %v1481_v60  ;;  %v1719_v51 = vadd.f32 %v8454_v34, %v1683_v53  ;;  %v11864_v60 = vld [vmem:[#allocation18_spill] sm:$0xff] }
 0x1a1   : > { %v1585_v54 = vmul.f32 %v11861_v21, %v8411_v56  ;;  %v1548_v56 = vadd.f32 %v9691_v40, %v1480_v36  ;;  %v1718_v14 = vadd.f32 %v8454_v34, %v1682_v55  ;;  %v11862_v26 = vunpack.i.h.bf16 %v11857_v59 }
 0x1a2   : > { %v9954_v29 = vsel %vm688_vm2, %v2372_v28, %v2373_v45  ;;  %v9959_v8 = vsel %vm8416_vm4, %v9857_v13, 0  ;;  %v2236_v50 = vshrl.u32 %v9913_v12, 16  ;;  %vm1751_vm11 = vcmp.gt.f32.partialorder %v1719_v51, 0.0  ;;  %v2424_v62 = vpop.permute.xlu0 %2423 }
 0x1a3   : > { %v1653_v27 = vmul.f32 %v9808_v2, %v11862_v26  ;;  %v1617_v43 = vadd.f32 %v1585_v54, %v1549_v1  ;;  %v1783_v25 = vmul.f32 0.01, %v1719_v51  ;;  %v1616_v40 = vadd.f32 %v1584_v42, %v1548_v56  ;;  %2293 = vrot.lane.b32.xlu1 %v9864_v23, %s11802_s19  ;;  %v2566_v2 = vpop.permute.xlu1 %2565 }
 0x1a4   : > { %vm1750_vm12 = vcmp.gt.f32.partialorder %v1718_v14, 0.0  ;;  %v1782_v41 = vmul.f32 0.01, %v1718_v14  ;;  %v2240_v47 = vrot.slane %v2238_v6, 1  ;;  %v1989_v16 = vrot.slane %v1987_v31, 7  ;;  %2519 = vrot.lane.b32.xlu0 %v9954_v29, %s11804_s11 }
 0x1a5   : > { %v1685_v20 = vadd.f32 %v1653_v27, %v1617_v43  ;;  %v1684_v57 = vadd.f32 %v1652_v15, %v1616_v40  ;;  %v2796_v13 = vsel %vm11786_vm5, %v9883_v38, %v2534_v0  ;;  %v2243_v58 = vshll.u32 %v9959_v8, 16  ;;  %v11863_v15 = vld [vmem:[#allocation22_spill] sm:$0xff] }
 0x1a6   : > { %v1815_v35 = vsel %vm1751_vm11, %v1719_v51, %v1783_v25  ;;  %v1814_v11 = vsel %vm1750_vm12, %v1718_v14, %v1782_v41  ;;  %v2831_v23 = vsel %vm11785_vm9, %v2796_v13, %v2566_v2  ;;  %v1990_v24 = vshll.u32 %v9915_v37, 16  ;;  %v2468_v5 = vpop.permute.xlu0 %2467 }
 0x1a7   : > { %v1721_v33 = vadd.f32 %v8454_v34, %v1685_v20  ;;  %v1720_v59 = vadd.f32 %v8454_v34, %v1684_v57  ;;  %3296 = vmatmul.mubr.bf16.gmra.mrb[8].mxu1 %v2831_v23  ;;  %2551 = vrot.lane.b32.xlu1 %v9913_v12, %s11808_s26  ;;  %v2241_v63 = vor.u32 %v2240_v47, %v2236_v50  ;;  %v2278_v38 = vpop.permute.xlu1 %2277  ;;  %v2245_v37 = vrot.slane %v2243_v58, 1 }
 0x1a8   : > { %7300 = vmatprep.mubr.msk.bf16.mxu1 %vm2593_vm10, %v11863_v15  ;;  %v1992_v10 = vor.u32 %v1990_v24, %v1989_v16  ;;  %v1886_v42 = vpack.c.bf16 %v1815_v35, %v1814_v11  ;;  %2408 = vrot.lane.b32.xlu0 %v9954_v29, %s11794_s20  ;;  %v2683_v34 = vsel %vm11801_vm13, %v9941_v4, %v2424_v62  ;;  %v2375_v14 = vrot.slane %v9913_v12, 1 }
 0x1a9   : > { %vm1752_vm0 = vcmp.gt.f32.partialorder %v1720_v59, 0.0  ;;  %v1784_v28 = vmul.f32 0.01, %v1720_v59  ;;  %v2601_v53 = vsel %vm2593_vm10, %v11864_v60, %v2278_v38  ;;  %vm1753_vm1 = vcmp.gt.f32.partialorder %v1721_v33, 0.0 }
 0x1aa   : > { %v1785_v36 = vmul.f32 0.01, %v1721_v33  ;;  %v2246_v55 = vsel %vm2078_vm7, %v2241_v63, %v2245_v37  ;;  %v2716_v21 = vsel %vm11789_vm14, %v2683_v34, %v2468_v5  ;;  %v2504_v45 = vpop.permute.xlu0 %2503  ;;  %v9989_v0 = vsel %vm8416_vm4, 0, %v1992_v10 }
 0x1ab   : > { %2441 = vrot.lane.b32.xlu1 %v9913_v12, %s11806_s17  ;;  %v2536_v54 = vpop.permute.xlu1 %2535  ;;  %v1816_v6 = vsel %vm1752_vm0, %v1720_v59, %v1784_v28  ;;  %v2752_v31 = vsel %vm11787_vm15, %v2716_v21, %v2504_v45  ;;  %v1994_v1 = vshrl.u32 %v1886_v42, 16  ;;  %v2637_v51 = vsel %vm11788_vm3, %v2601_v53, %v9941_v4  ;;  %v11865_v59 = vld [vmem:[#allocation19_spill] sm:$0xff] }
 0x1ac   : > { %2583 = vrot.lane.b32.xlu0 %v2246_v55, %s11790_s28  ;;  %3142 = vmatprep.mubr.bf16.mxu0 %v2752_v31  ;;  %v1817_v56 = vsel %vm1753_vm1, %v1721_v33, %v1785_v36  ;;  %v2250_v26 = vshll.u32 %v9989_v0, 16  ;;  %v2376_v25 = vrot.slane %v9959_v8, 1  ;;  %v2075_v4 = vsel %vm8416_vm4, %v1989_v16, 0 }
 0x1ad   : > { %3143 = vmatmul.mubr.bf16.gmra.mrb[12].mxu0 %v2637_v51  ;;  %v9997_v27 = vpack.c.bf16 %v1817_v56, %v1816_v6  ;;  %v1996_v40 = vrot.slane %v1994_v1, 7  ;;  %v1997_v62 = vshll.u32 %v1886_v42, 16  ;;  %v2798_v47 = vsel %vm11786_vm5, %v2504_v45, %v2536_v54 }
 0x1ae   : > { %v2393_v43 = vpop.permute.xlu0 %2392  ;;  %v10006_v41 = vsel %vm688_vm2, %v2375_v14, %v2376_v25  ;;  %v2252_v2 = vrot.slane %v2250_v26, 1  ;;  %v2255_v8 = vshll.u32 %v2075_v4, 16  ;;  %v2378_v10 = vrot.slane %v9989_v0, 1 }
 0x1af   : > { %2485 = vrot.lane.b32.xlu1 %v2246_v55, %s11792_s29  ;;  %v2426_v50 = vpop.permute.xlu1 %2425  ;;  %v1999_v13 = vor.u32 %v1997_v62, %v1996_v40  ;;  %v2001_v34 = vshrl.u32 %v9997_v27, 16  ;;  %v2379_v60 = vrot.slane %v2075_v4, 1  ;;  %v2076_v53 = vsel %vm8416_vm4, %v1996_v40, 0  ;;  %v11866_v4 = vld [vmem:[#allocation20_spill] sm:$0xff] }
 0x1b0   : > { %2295 = vrot.lane.b32.xlu0 %v9932_v44, %s11802_s19  ;;  %v2248_v44 = vshrl.u32 %v9989_v0, 16  ;;  %v2685_v58 = vsel %vm11801_vm13, %v2393_v43, %v2426_v50  ;;  %v2257_v33 = vrot.slane %v2255_v8, 1  ;;  %v2267_v56 = vshll.u32 %v2076_v53, 16 }
 0x1b1   : > { %v10027_v15 = vsel %vm8416_vm4, 0, %v1999_v13  ;;  %v10041_v36 = vsel %vm688_vm2, %v2378_v10, %v2379_v60  ;;  %v2003_v31 = vrot.slane %v2001_v34, 7  ;;  %vm3872_vm1 = vcmask 386048  }
 0x1b2   : > { %v2568_v57 = vpop.permute.xlu0 %2567  ;;  %v2253_v35 = vor.u32 %v2252_v2, %v2248_v44  ;;  %v2262_v28 = vshll.u32 %v10027_v15, 16  ;;  %v2260_v51 = vshrl.u32 %v10027_v15, 16  ;;  %v2269_v25 = vrot.slane %v2267_v56, 1 }
 0x1b3   : > { %2521 = vrot.lane.b32.xlu1 %v10006_v41, %s11804_s11  ;;  %v2470_v20 = vpop.permute.xlu1 %2469  ;;  %v2834_v16 = vsel %vm11785_vm9, %v2798_v47, %v2568_v57  ;;  %v2381_v8 = vrot.slane %v10027_v15, 1 }
 0x1b4   : > { %2553 = vrot.lane.b32.xlu0 %v9989_v0, %s11808_s26  ;;  %3304 = vmatmul.mubr.bf16.gmra.mrb[12].mxu1 %v2834_v16  ;;  %v2718_v11 = vsel %vm11789_vm14, %v2685_v58, %v2470_v20  ;;  %v2258_v5 = vsel %vm2078_vm7, %v2253_v35, %v2257_v33  ;;  %v2264_v6 = vrot.slane %v2262_v28, 1  ;;  %v2382_v35 = vrot.slane %v2076_v53, 1 }
 0x1b5   : > { %7301 = vmatprep.mubr.msk.bf16.mxu1 %vm2593_vm10, %v9451_v17 }
 0x1b6   : > { %v2280_v24 = vpop.permute.xlu0 %2279  ;;  %v2265_v14 = vor.u32 %v2264_v6, %v2260_v51 }
 0x1b7   : > { %2410 = vrot.lane.b32.xlu1 %v10006_v41, %s11794_s20  ;;  %v2506_v23 = vpop.permute.xlu1 %2505  ;;  %v2603_v63 = vsel %vm2593_vm10, %v11865_v59, %v2280_v24 }
 0x1b8   : > { %2443 = vrot.lane.b32.xlu0 %v9989_v0, %s11806_s17  ;;  %v2755_v17 = vsel %vm11787_vm15, %v2718_v11, %v2506_v23  ;;  %v2640_v38 = vsel %vm11788_vm3, %v2603_v63, %v2393_v43  ;;  %v2077_v11 = vsel %vm8416_vm4, %v2003_v31, 0 }
 0x1b9   : > { %3150 = vmatprep.mubr.bf16.mxu0 %v2755_v17 }
 0x1ba   : > { %3151 = vmatmul.mubr.bf16.gmra.mrb[16].mxu0 %v2640_v38  ;;  %v2538_v37 = vpop.permute.xlu0 %2537  ;;  %v2457_v38 = vshll.u32 %v2077_v11, 16 }
 0x1bb   : > { %2585 = vrot.lane.b32.xlu1 %v2258_v5, %s11790_s28  ;;  %v2395_v42 = vpop.permute.xlu1 %2394  ;;  %v2800_v21 = vsel %vm11786_vm5, %v2506_v23, %v2538_v37  ;;  %v10073_v23 = vsel %vm688_vm2, %v2381_v8, %v2382_v35 }
 0x1bc   : > { %2487 = vrot.lane.b32.xlu0 %v2258_v5, %s11792_s29  ;;  %v2459_v60 = vrot.slane %v2457_v38, 1 }
 0x1be   : > { %v2428_v45 = vpop.permute.xlu0 %2427 }
 0x1bf   : > { %2297 = vrot.lane.b32.xlu1 %v2246_v55, %s11802_s19  ;;  %v2570_v54 = vpop.permute.xlu1 %2569  ;;  %v2004_v55 = vshll.u32 %v9997_v27, 16  ;;  %v2687_v40 = vsel %vm11801_vm13, %v2395_v42, %v2428_v45 }
 0x1c0   : > { %2523 = vrot.lane.b32.xlu0 %v10041_v36, %s11804_s11  ;;  %v2837_v1 = vsel %vm11785_vm9, %v2800_v21, %v2570_v54 }
 0x1c1   : > { %3312 = vmatmul.mubr.bf16.gmra.mrb[16].mxu1 %v2837_v1  ;;  %v2006_v43 = vor.u32 %v2004_v55, %v2003_v31  ;;  %v2495_v1 = vrot.slane %v2077_v11, 1 }
 0x1c2   : > { %7302 = vmatprep.mubr.msk.bf16.mxu1 %vm2593_vm10, %v9554_v18  ;;  %v2472_v50 = vpop.permute.xlu0 %2471  ;;  %v2270_v18 = vsel %vm2078_vm7, %v2265_v14, %v2269_v25 }
 0x1c3   : > { %2555 = vrot.lane.b32.xlu1 %v10027_v15, %s11808_s26  ;;  %v2282_v26 = vpop.permute.xlu1 %2281  ;;  %v2720_v27 = vsel %vm11789_vm14, %v2687_v40, %v2472_v50  ;;  %v2060_v20 = vsel %vm8416_vm4, 0, %v2006_v43  ;;  %v11867_v43 = vld [vmem:[#allocation17_spill] sm:$0xff] }
 0x1c4   : > { %2412 = vrot.lane.b32.xlu0 %v10041_v36, %s11794_s20  ;;  %v2605_v2 = vsel %vm2593_vm10, %v11866_v4, %v2282_v26  ;;  %v2452_v16 = vshll.u32 %v2060_v20, 16  ;;  %v2450_v17 = vshrl.u32 %v2060_v20, 16  ;;  %v2494_v45 = vrot.slane %v2060_v20, 1 }
 0x1c5   : > { %v2643_v44 = vsel %vm11788_vm3, %v2605_v2, %v2395_v42 }
 0x1c6   : > { %v2508_v47 = vpop.permute.xlu0 %2507  ;;  %v2454_v24 = vrot.slane %v2452_v16, 1 }
 0x1c7   : > { %2445 = vrot.lane.b32.xlu1 %v10027_v15, %s11806_s17  ;;  %v2540_v62 = vpop.permute.xlu1 %2539  ;;  %v2758_v57 = vsel %vm11787_vm15, %v2720_v27, %v2508_v47 }
 0x1c8   : > { %2587 = vrot.lane.b32.xlu0 %v2270_v18, %s11790_s28  ;;  %3158 = vmatprep.mubr.bf16.mxu0 %v2758_v57  ;;  %v2802_v33 = vsel %vm11786_vm5, %v2508_v47, %v2540_v62  ;;  %v2455_v42 = vor.u32 %v2454_v24, %v2450_v17 }
 0x1c9   : > { %3159 = vmatmul.mubr.bf16.gmra.mrb[20].mxu0 %v2643_v44 }
 0x1ca   : > { %v2397_v58 = vpop.permute.xlu0 %2396 }
 0x1cb   : > { %2489 = vrot.lane.b32.xlu1 %v2270_v18, %s11792_s29  ;;  %v2430_v13 = vpop.permute.xlu1 %2429 }
 0x1cc   : > { %2299 = vrot.lane.b32.xlu0 %v2258_v5, %s11802_s19  ;;  %v2689_v10 = vsel %vm11801_vm13, %v2397_v58, %v2430_v13 }
 0x1ce   : > { %v2572_v63 = vpop.permute.xlu0 %2571 }
 0x1cf   : > { %2525 = vrot.lane.b32.xlu1 %v10073_v23, %s11804_s11  ;;  %v2474_v59 = vpop.permute.xlu1 %2473  ;;  %v2840_v5 = vsel %vm11785_vm9, %v2802_v33, %v2572_v63 }
 0x1d0   : > { %2557 = vrot.lane.b32.xlu0 %v2060_v20, %s11808_s26  ;;  %3320 = vmatmul.mubr.bf16.gmra.mrb[20].mxu1 %v2840_v5  ;;  %v2722_v37 = vsel %vm11789_vm14, %v2689_v10, %v2474_v59 }
 0x1d1   : > { %7303 = vmatprep.mubr.msk.bf16.mxu1 %vm2593_vm10, %v9635_v52  ;;  %v2460_v52 = vsel %vm2078_vm7, %v2455_v42, %v2459_v60  ;;  %vm4848_vm7 = vsmask.f32 4352 }
 0x1d2   : > { %v2284_v34 = vpop.permute.xlu0 %2283 }
 0x1d3   : > { %2414 = vrot.lane.b32.xlu1 %v10073_v23, %s11794_s20  ;;  %v2510_v28 = vpop.permute.xlu1 %2509  ;;  %v2607_v53 = vsel %vm2593_vm10, %v9392_v22, %v2284_v34  ;;  %v10096_v22 = vsel %vm688_vm2, %v2494_v45, %v2495_v1  ;;  %vm4847_vm2 = vcmask 1044480  }
 0x1d4   : > { %2447 = vrot.lane.b32.xlu0 %v2060_v20, %s11806_s17  ;;  %v2761_v21 = vsel %vm11787_vm15, %v2722_v37, %v2510_v28  ;;  %v2646_v54 = vsel %vm11788_vm3, %v2607_v53, %v2397_v58  ;;  %vm10134_vm6 = vmand %vm4847_vm2, %vm4848_vm7  ;;  %vm4385_vm2 = vcmask 1041409   ;;  %vm4387_vm7 = vcmask 1042434  }
 0x1d5   : > { %3166 = vmatprep.mubr.bf16.mxu0 %v2761_v21 }
 0x1d6   : > { %3167 = vmatmul.mubr.bf16.gmra.mrb[24].mxu0 %v2646_v54  ;;  %v2542_v31 = vpop.permute.xlu0 %2541 }
 0x1d7   : > { %2589 = vrot.lane.b32.xlu1 %v2460_v52, %s11790_s28  ;;  %v2399_v6 = vpop.permute.xlu1 %2398  ;;  %v2804_v51 = vsel %vm11786_vm5, %v2510_v28, %v2542_v31 }
 0x1d8   : > { %2491 = vrot.lane.b32.xlu0 %v2460_v52, %s11792_s29 }
 0x1da   : > { %v2432_v55 = vpop.permute.xlu0 %2431 }
 0x1db   : > { %2301 = vrot.lane.b32.xlu1 %v2270_v18, %s11802_s19  ;;  %v2574_v56 = vpop.permute.xlu1 %2573  ;;  %v2691_v25 = vsel %vm11801_vm13, %v2399_v6, %v2432_v55 }
 0x1dc   : > { %2527 = vrot.lane.b32.xlu0 %v10096_v22, %s11804_s11  ;;  %v2843_v14 = vsel %vm11785_vm9, %v2804_v51, %v2574_v56 }
 0x1dd   : > { %3328 = vmatmul.mubr.bf16.gmra.mrb[24].mxu1 %v2843_v14 }
 0x1de   : > { %7304 = vmatprep.mubr.msk.bf16.mxu1 %vm2593_vm10, %v9735_v3  ;;  %v2476_v50 = vpop.permute.xlu0 %2475 }
 0x1df   : > { %v2286_v26 = vpop.permute.xlu1 %2285  ;;  %2559 = vrot.lane.b32.xlu1 %v11851_v19, %s11808_s26  ;;  %v2724_v4 = vsel %vm11789_vm14, %v2691_v25, %v2476_v50 }
 0x1e0   : > { %2591 = vrot.lane.b32.xlu0 %v11867_v43, %s11790_s28  ;;  %v2609_v40 = vsel %vm2593_vm10, %v9461_v30, %v2286_v26 }
 0x1e1   : > { %v2649_v3 = vsel %vm11788_vm3, %v2609_v40, %v2399_v6  ;;  %v10142_v6 = vsel %vm10134_vm6, %v11851_v19, 0 }
 0x1e2   : > { %v2512_v18 = vpop.permute.xlu0 %2511  ;;  %v11796_v1 = vrot.slane %v10142_v6, 1 }
 0x1e3   : > { %v2544_v2 = vpop.permute.xlu1 %2543  ;;  %v2764_v27 = vsel %vm11787_vm15, %v2724_v4, %v2512_v18 }
 0x1e4   : > { %3174 = vmatprep.mubr.bf16.mxu0 %v2764_v27  ;;  %v2806_v20 = vsel %vm11786_vm5, %v2512_v18, %v2544_v2  ;;  %4947 = vrot.lane.b32.xlu1 %v11796_v1, %s11794_s20 }
 0x1e5   : > { %3175 = vmatmul.mubr.bf16.gmra.mrb[28].mxu0 %v2649_v3 }
 0x1e6   : > { %v2401_v47 = vpop.permute.xlu0 %2400 }
 0x1e7   : > { %v2434_v62 = vpop.permute.xlu1 %2433 }
 0x1e8   : > { %v2693_v30 = vsel %vm11801_vm13, %v2401_v47, %v2434_v62 }
 0x1ea   : > { %v2576_v44 = vpop.permute.xlu0 %2575 }
 0x1eb   : > { %v2478_v57 = vpop.permute.xlu1 %2477  ;;  %v2846_v8 = vsel %vm11785_vm9, %v2806_v20, %v2576_v44 }
 0x1ec   : > { %3336 = vmatmul.mubr.bf16.gmra.mrb[28].mxu1 %v2846_v8  ;;  %v2726_v16 = vsel %vm11789_vm14, %v2693_v30, %v2478_v57 }
 0x1ed   : > { %7305 = vmatprep.mubr.msk.bf16.mxu1 %vm2593_vm10, %v9799_v48 }
 0x1ee   : > { %v2288_v58 = vpop.permute.xlu0 %2287 }
 0x1ef   : > { %v2514_v13 = vpop.permute.xlu1 %2513  ;;  %v2611_v35 = vsel %vm2593_vm10, %v9532_v39, %v2288_v58 }
 0x1f0   : > { %v2767_v11 = vsel %vm11787_vm15, %v2726_v16, %v2514_v13  ;;  %v2652_v24 = vsel %vm11788_vm3, %v2611_v35, %v2401_v47 }
 0x1f1   : > { %3182 = vmatprep.mubr.bf16.mxu0 %v2767_v11  ;;  %v4860_v11 = vshrl.u32 %v10142_v6, 16 }
 0x1f2   : > { %3183 = vmatmul.mubr.bf16.gmra.mrb[32].mxu0 %v2652_v24  ;;  %v2546_v59 = vpop.permute.xlu0 %2545  ;;  %v4862_v24 = vshll.u32 %v10142_v6, 16 }
 0x1f3   : > { %v2403_v33 = vpop.permute.xlu1 %2402  ;;  %v2808_v63 = vsel %vm11786_vm5, %v2514_v13, %v2546_v59 }
 0x1f6   : > { %v2436_v38 = vpop.permute.xlu0 %2435 }
 0x1f7   : > { %v2578_v17 = vpop.permute.xlu1 %2577  ;;  %v2695_v10 = vsel %vm11801_vm13, %v2403_v33, %v2436_v38 }
 0x1f8   : > { %v2849_v48 = vsel %vm11785_vm9, %v2808_v63, %v2578_v17 }
 0x1f9   : > { %3344 = vmatmul.mubr.bf16.gmra.mrb[32].mxu1 %v2849_v48  ;;  %v4864_v48 = vrot.slane %v4862_v24, 1 }
 0x1fa   : > { %7306 = vmatprep.mubr.msk.bf16.mxu1 %vm2593_vm10, %v9839_v7  ;;  %v2480_v39 = vpop.permute.xlu0 %2479 }
 0x1fb   : > { %v2290_v5 = vpop.permute.xlu1 %2289  ;;  %v2728_v37 = vsel %vm11789_vm14, %v2695_v10, %v2480_v39  ;;  %v10179_v39 = vor.u32 %v4864_v48, %v4860_v11  ;;  %v11872_v48 = vld [vmem:[#allocation15_spill] sm:$0xff] }
 0x1fc   : > { %v2613_v42 = vsel %vm2593_vm10, %v9596_v9, %v2290_v5 }
 0x1fd   : > { %v2655_v53 = vsel %vm11788_vm3, %v2613_v42, %v2403_v33  ;;  %4915 = vrot.lane.b32.xlu1 %v10179_v39, %s11802_s19 }
 0x1fe   : > { %v2516_v34 = vpop.permute.xlu0 %2515 }
 0x1ff   : > { %v2548_v28 = vpop.permute.xlu1 %2547  ;;  %v2770_v60 = vsel %vm11787_vm15, %v2728_v37, %v2516_v34 }
 0x200   : > { %3190 = vmatprep.mubr.bf16.mxu0 %v2770_v60  ;;  %v2810_v9 = vsel %vm11786_vm5, %v2516_v34, %v2548_v28 }
 0x201   : > { %3191 = vmatmul.mubr.bf16.gmra.mrb[36].mxu0 %v2655_v53 }
 0x202   : > { %v2405_v54 = vpop.permute.xlu0 %2404 }
 0x203   : > { %v2438_v21 = vpop.permute.xlu1 %2437 }
 0x204   : > { %v2697_v51 = vsel %vm11801_vm13, %v2405_v54, %v2438_v21 }
 0x206   : > { %v2580_v45 = vpop.permute.xlu0 %2579 }
 0x207   : > { %v2482_v52 = vpop.permute.xlu1 %2481  ;;  %v2852_v31 = vsel %vm11785_vm9, %v2810_v9, %v2580_v45 }
 0x208   : > { %3352 = vmatmul.mubr.bf16.gmra.mrb[36].mxu1 %v2852_v31  ;;  %v2730_v56 = vsel %vm11789_vm14, %v2697_v51, %v2482_v52 }
 0x209   : > { %7307 = vmatprep.mubr.msk.bf16.mxu1 %vm2593_vm10, %v9954_v29 }
 0x20a   : > { %v2292_v14 = vpop.permute.xlu0 %2291 }
 0x20b   : > { %v2518_v55 = vpop.permute.xlu1 %2517  ;;  %v2615_v26 = vsel %vm2593_vm10, %v9683_v32, %v2292_v14 }
 0x20c   : > { %v2773_v50 = vsel %vm11787_vm15, %v2730_v56, %v2518_v55  ;;  %v2658_v43 = vsel %vm11788_vm3, %v2615_v26, %v2405_v54 }
 0x20d   : > { %3198 = vmatprep.mubr.bf16.mxu0 %v2773_v50 }
 0x20e   : > { %3199 = vmatmul.mubr.bf16.gmra.mrb[40].mxu0 %v2658_v43  ;;  %v2550_v40 = vpop.permute.xlu0 %2549 }
 0x20f   : > { %v2407_v25 = vpop.permute.xlu1 %2406  ;;  %v2812_v29 = vsel %vm11786_vm5, %v2518_v55, %v2550_v40  ;;  %v11870_v40 = vld [vmem:[#allocation10_spill] sm:$0xff] }
 0x212   : > { %v2440_v2 = vpop.permute.xlu0 %2439 }
 0x213   : > { %v2582_v4 = vpop.permute.xlu1 %2581  ;;  %v2699_v3 = vsel %vm11801_vm13, %v2407_v25, %v2440_v2 }
 0x214   : > { %v2855_v18 = vsel %vm11785_vm9, %v2812_v29, %v2582_v4  ;;  %v11871_v29 = vsub.s32 1, %v11870_v40 }
 0x215   : > { %3360 = vmatmul.mubr.bf16.gmra.mrb[40].mxu1 %v2855_v18 }
 0x216   : > { %7308 = vmatprep.mubr.msk.bf16.mxu1 %vm2593_vm10, %v10006_v41  ;;  %v2484_v32 = vpop.permute.xlu0 %2483 }
 0x217   : > { %v2294_v27 = vpop.permute.xlu1 %2293  ;;  %v2732_v47 = vsel %vm11789_vm14, %v2699_v3, %v2484_v32 }
 0x218   : > { %v2617_v62 = vsel %vm2593_vm10, %v9764_v46, %v2294_v27 }
 0x219   : > { %v2661_v8 = vsel %vm11788_vm3, %v2617_v62, %v2407_v25  ;;  %v7975_v25 = vld [vmem:[%s11750_s3] sm:$0x1f] }
 0x21a   : > { %v2520_v57 = vpop.permute.xlu0 %2519  ;;  %v10198_v4 = vrot.slane %v7975_v25, %v11871_v29 }
 0x21b   : > { %v2552_v20 = vpop.permute.xlu1 %2551  ;;  %v2776_v44 = vsel %vm11787_vm15, %v2732_v47, %v2520_v57 }
 0x21c   : > { %3206 = vmatprep.mubr.bf16.mxu0 %v2776_v44  ;;  %v2814_v41 = vsel %vm11786_vm5, %v2520_v57, %v2552_v20 }
 0x21d   : > { %3207 = vmatmul.mubr.bf16.gmra.mrb[44].mxu0 %v2661_v8 }
 0x21e   : > { %v2409_v16 = vpop.permute.xlu0 %2408 }
 0x21f   : > { %v2442_v30 = vpop.permute.xlu1 %2441 }
 0x220   : > { %v2701_v46 = vsel %vm11801_vm13, %v2409_v16, %v2442_v30 }
 0x222   : > { %v2584_v58 = vpop.permute.xlu0 %2583 }
 0x223   : > { %v2486_v13 = vpop.permute.xlu1 %2485  ;;  %v2858_v35 = vsel %vm11785_vm9, %v2814_v41, %v2584_v58 }
 0x224   : > { %3368 = vmatmul.mubr.bf16.gmra.mrb[44].mxu1 %v2858_v35  ;;  %v2734_v33 = vsel %vm11789_vm14, %v2701_v46, %v2486_v13 }
 0x225   : > { %7309 = vmatprep.mubr.msk.bf16.mxu1 %vm2593_vm10, %v10041_v36 }
 0x226   : > { %v2296_v63 = vpop.permute.xlu0 %2295 }
 0x227   : > { %v2522_v59 = vpop.permute.xlu1 %2521  ;;  %v2619_v17 = vsel %vm2593_vm10, %v9823_v49, %v2296_v63 }
 0x228   : > { %v2779_v38 = vsel %vm11787_vm15, %v2734_v33, %v2522_v59  ;;  %v2664_v5 = vsel %vm11788_vm3, %v2619_v17, %v2409_v16 }
 0x229   : > { %3214 = vmatprep.mubr.bf16.mxu0 %v2779_v38 }
 0x22a   : > { %3215 = vmatmul.mubr.bf16.gmra.mrb[48].mxu0 %v2664_v5  ;;  %v2554_v10 = vpop.permute.xlu0 %2553 }
 0x22b   : > { %v2411_v36 = vpop.permute.xlu1 %2410  ;;  %v2816_v37 = vsel %vm11786_vm5, %v2522_v59, %v2554_v10 }
 0x22e   : > { %v7610_v42 = vpop.f32.mrb[0].mxu0  ;;  %v2444_v34 = vpop.permute.xlu0 %2443 }
 0x22f   : > { %v2586_v28 = vpop.permute.xlu1 %2585  ;;  %v7611_v60 = vpop.f32.mrb[1].mxu0  ;;  %v2703_v31 = vsel %vm11801_vm13, %v2411_v36, %v2444_v34 }
 0x230   : > { %v2861_v49 = vsel %vm11785_vm9, %v2816_v37, %v2586_v28  ;;  %v7612_v53 = vadd.f32 %v7611_v60, %v7610_v42  ;;  %v7613_v21 = vpop.f32.mrb[2].mxu0 }
 0x231   : > { %3376 = vmatmul.mubr.bf16.gmra.mrb[48].mxu1 %v2861_v49  ;;  %v7614_v54 = vpop.f32.mrb[3].mxu0 }
 0x232   : > { %7310 = vmatprep.mubr.msk.bf16.mxu1 %vm2593_vm10, %v10073_v23  ;;  %v2488_v52 = vpop.permute.xlu0 %2487  ;;  %v7615_v45 = vadd.f32 %v7614_v54, %v7613_v21  ;;  %v3121_v27 = vadd.f32 %v7612_v53, %v10198_v4 }
 0x233   : > { %v2298_v9 = vpop.permute.xlu1 %2297  ;;  %v2736_v56 = vsel %vm11789_vm14, %v2703_v31, %v2488_v52 }
 0x234   : > { %v2621_v51 = vsel %vm2593_vm10, %v9913_v12, %v2298_v9  ;;  %v3124_v20 = vadd.f32 %v7615_v45, %v10198_v4  ;;  %v8083_v45 = vmov 1983009808  }
 0x235   : > { %v2667_v50 = vsel %vm11788_vm3, %v2621_v51, %v2411_v36  ;;  %v3538_v31 = vunpack.c.l.s4 %v8083_v45 }
 0x236   : > { %v2524_v14 = vpop.permute.xlu0 %2523 }
 0x237   : > { %v2556_v55 = vpop.permute.xlu1 %2555  ;;  %v2782_v26 = vsel %vm11787_vm15, %v2736_v56, %v2524_v14  ;;  %v3539_v56 = vunpack.c.0.s8 %v3538_v31 }
 0x238   : > { %3222 = vmatprep.mubr.bf16.mxu0 %v2782_v26  ;;  %v2818_v12 = vsel %vm11786_vm5, %v2524_v14, %v2556_v55 }
 0x239   : > { %3223 = vmatmul.mubr.bf16.gmra.mrb[52].mxu0 %v2667_v50 }
 0x23a   : > { %v2413_v43 = vpop.permute.xlu0 %2412 }
 0x23b   : > { %v2446_v23 = vpop.permute.xlu1 %2445 }
 0x23c   : > { %v2705_v57 = vsel %vm11801_vm13, %v2413_v43, %v2446_v23 }
 0x23e   : > { %v2588_v18 = vpop.permute.xlu0 %2587 }
 0x23f   : > { %v2490_v2 = vpop.permute.xlu1 %2489  ;;  %v2864_v32 = vsel %vm11785_vm9, %v2818_v12, %v2588_v18  ;;  %v10231_v18 = vsub.s32 %v3539_v56, %v11870_v40 }
 0x240   : > { %v3281_v3 = vpop.f32.mrb[0].mxu1  ;;  %3384 = vmatmul.mubr.bf16.gmra.mrb[52].mxu1 %v2864_v32  ;;  %v2738_v8 = vsel %vm11789_vm14, %v2705_v57, %v2490_v2 }
 0x241   : > { %v10203_v62 = vadd.f32 %v3281_v3, %v3121_v27  ;;  %v3283_v47 = vpop.f32.mrb[1].mxu1  ;;  %7311 = vmatprep.mubr.msk.bf16.mxu1 %vm2593_vm10, %v10096_v22 }
 0x242   : > { %v3284_v44 = vpop.f32.mrb[2].mxu1  ;;  %v2300_v16 = vpop.permute.xlu0 %2299 }
 0x243   : > { %v2526_v30 = vpop.permute.xlu1 %2525  ;;  %v3285_v41 = vadd.f32 %v3284_v44, %v3124_v20  ;;  %v2623_v13 = vsel %vm2593_vm10, %v9989_v0, %v2300_v16  ;;  %v3286_v35 = vpop.f32.mrb[3].mxu1  ;;  %v3440_v14 = vmul.f32 0.01, %v10203_v62  ;;  %vm3408_vm8 = vcmp.gt.f32.partialorder %v10203_v62, 0.0 }
 0x244   : > { %v2785_v58 = vsel %vm11787_vm15, %v2738_v8, %v2526_v30  ;;  %v2670_v46 = vsel %vm11788_vm3, %v2623_v13, %v2413_v43 }
 0x245   : > { %3230 = vmatprep.mubr.bf16.mxu0 %v2785_v58  ;;  %v3441_v25 = vmul.f32 0.01, %v3285_v41  ;;  %vm3409_vm12 = vcmp.gt.f32.partialorder %v3285_v41, 0.0  ;;  %v3472_v27 = vsel %vm3408_vm8, %v10203_v62, %v3440_v14  ;;  %vm4389_vm8 = vcmask 1043459  }
 0x246   : > { %3231 = vmatmul.mubr.bf16.gmra.mrb[56].mxu0 %v2670_v46  ;;  %v2558_v24 = vpop.permute.xlu0 %2557 }
 0x247   : > { %v2415_v11 = vpop.permute.xlu1 %2414  ;;  %v2820_v22 = vsel %vm11786_vm5, %v2526_v30, %v2558_v24  ;;  %v3473_v20 = vsel %vm3409_vm12, %v3285_v41, %v3441_v25  ;;  %vm4393_vm12 = vcmask 1045509  }
 0x24a   : > { %v2448_v59 = vpop.permute.xlu0 %2447 }
 0x24b   : > { %v2590_v33 = vpop.permute.xlu1 %2589  ;;  %v2707_v37 = vsel %vm11801_vm13, %v2415_v11, %v2448_v59 }
 0x24c   : > { %v2867_v63 = vsel %vm11785_vm9, %v2820_v22, %v2590_v33 }
 0x24d   : > { %3392 = vmatmul.mubr.bf16.gmra.mrb[56].mxu1 %v2867_v63  ;;  %v7616_v17 = vpop.f32.mrb[4].mxu0 }
 0x24e   : > { %v7617_v38 = vpop.f32.mrb[5].mxu0  ;;  %7312 = vmatprep.mubr.msk.bf16.mxu1 %vm2593_vm10, %v11872_v48  ;;  %v2492_v5 = vpop.permute.xlu0 %2491 }
 0x24f   : > { %v2302_v0 = vpop.permute.xlu1 %2301  ;;  %v7618_v36 = vadd.f32 %v7617_v38, %v7616_v17  ;;  %v7619_v10 = vpop.f32.mrb[6].mxu0  ;;  %v2740_v49 = vsel %vm11789_vm14, %v2707_v37, %v2492_v5 }
 0x250   : > { %v7620_v42 = vpop.f32.mrb[7].mxu0  ;;  %v2625_v28 = vsel %vm2593_vm10, %v10027_v15, %v2302_v0 }
 0x251   : > { %v7621_v34 = vadd.f32 %v7620_v42, %v7619_v10  ;;  %v2673_v54 = vsel %vm11788_vm3, %v2625_v28, %v2415_v11  ;;  %v3129_v15 = vadd.f32 %v7618_v36, %v10198_v4 }
 0x252   : > { %v2528_v60 = vpop.permute.xlu0 %2527 }
 0x253   : > { %v2560_v53 = vpop.permute.xlu1 %2559  ;;  %v2788_v21 = vsel %vm11787_vm15, %v2740_v49, %v2528_v60  ;;  %v3132_v23 = vadd.f32 %v7621_v34, %v10198_v4 }
 0x254   : > { %3238 = vmatprep.mubr.bf16.mxu0 %v2788_v21  ;;  %v2822_v9 = vsel %vm11786_vm5, %v2528_v60, %v2560_v53 }
 0x255   : > { %3239 = vmatmul.mubr.bf16.gmra.mrb[60].mxu0 %v2673_v54 }
 0x256   : > { %v2592_v52 = vpop.permute.xlu0 %2591 }
 0x257   : > { %v2870_v51 = vsel %vm11785_vm9, %v2822_v9, %v2592_v52  ;;  %vm4397_vm9 = vcmask 1047559  }
 0x258   : > { %3400 = vmatmul.mubr.bf16.gmra.mrb[60].mxu1 %v2870_v51 }
 0x25c   : > { %v3289_v55 = vpop.f32.mrb[4].mxu1 }
 0x25d   : > { %v3290_v26 = vadd.f32 %v3289_v55, %v3129_v15  ;;  %v3291_v50 = vpop.f32.mrb[5].mxu1 }
 0x25e   : > { %v3292_v43 = vpop.f32.mrb[6].mxu1 }
 0x25f   : > { %vm3410_vm11 = vcmp.gt.f32.partialorder %v3290_v26, 0.0  ;;  %v3442_v29 = vmul.f32 0.01, %v3290_v26  ;;  %v3293_v12 = vadd.f32 %v3292_v43, %v3132_v23  ;;  %v3294_v2 = vpop.f32.mrb[7].mxu1 }
 0x261   : > { %v3474_v32 = vsel %vm3410_vm11, %v3290_v26, %v3442_v29  ;;  %vm3411_vm0 = vcmp.gt.f32.partialorder %v3293_v12, 0.0  ;;  %v3443_v3 = vmul.f32 0.01, %v3293_v12  ;;  %vm4391_vm11 = vcmask 1044484  }
 0x262   : > { %v3504_v47 = vmax.f32 %v3472_v27, %v3474_v32 }
 0x263   : > { %v3475_v57 = vsel %vm3411_vm0, %v3293_v12, %v3443_v3  ;;  %vm4395_vm0 = vcmask 1046534  }
 0x264   : > { %v3536_v44 = vcombine.high %v3504_v47, %v3504_v47  ;;  %v3543_v8 = vrot.slane %v3504_v47, %v10231_v18  ;;  %v3505_v30 = vmax.f32 %v3473_v20, %v3475_v57 }
 0x266   : > { %v3550_v16 = vrot.slane %v3536_v44, %v10231_v18  ;;  %v3551_v13 = vcombine.high %v3543_v8, %v3543_v8  ;;  %v3873_v58 = vsel %vm3872_vm1, %v3543_v8, -inf  ;;  %v3553_v35 = vcombine.high %v3505_v30, %v3505_v30 }
 0x267   : > { %v3874_v46 = vrot.slane %v3873_v58, 4  ;;  %v3560_v62 = vrot.slane %v3505_v30, %v10231_v18 }
 0x268   : > { %v3552_v11 = vcombine.high %v3550_v16, %v3550_v16  ;;  %v3880_v24 = vsel %vm3872_vm1, %v3551_v13, -inf  ;;  %v3887_v41 = vsel %vm3872_vm1, %v3550_v16, -inf  ;;  %v3567_v22 = vrot.slane %v3553_v35, %v10231_v18 }
 0x269   : > { %v3875_v33 = vmax.f32 %v3873_v58, %v3874_v46  ;;  %v3881_v59 = vrot.slane %v3880_v24, 4  ;;  %v3888_v63 = vrot.slane %v3887_v41, 4  ;;  %v3568_v17 = vcombine.high %v3560_v62, %v3560_v62  ;;  %v10241_v38 = vpop.f32.mrb[8].mxu0 }
 0x26a   : > { %v3894_v48 = vsel %vm3872_vm1, %v3552_v11, -inf  ;;  %v3569_v0 = vcombine.high %v3567_v22, %v3567_v22  ;;  %v3901_v5 = vsel %vm3872_vm1, %v3560_v62, -inf  ;;  %v3915_v36 = vsel %vm3872_vm1, %v3567_v22, -inf  ;;  %v10246_v10 = vpop.f32.mrb[9].mxu0 }
 0x26b   : > { %v3876_v42 = vrot.slane %v3875_v33, 2  ;;  %v3882_v37 = vmax.f32 %v3880_v24, %v3881_v59  ;;  %v3889_v28 = vmax.f32 %v3887_v41, %v3888_v63  ;;  %v3895_v34 = vrot.slane %v3894_v48, 4  ;;  %v10248_v49 = vpop.f32.mrb[10].mxu0 }
 0x26c   : > { %v3902_v60 = vrot.slane %v3901_v5, 4  ;;  %v3908_v53 = vsel %vm3872_vm1, %v3568_v17, -inf  ;;  %v3916_v21 = vrot.slane %v3915_v36, 4  ;;  %v3922_v54 = vsel %vm3872_vm1, %v3569_v0, -inf  ;;  %v10252_v9 = vpop.f32.mrb[11].mxu0 }
 0x26d   : > { %v3877_v52 = vmax.f32 %v3875_v33, %v3876_v42  ;;  %v3883_v45 = vrot.slane %v3882_v37, 2  ;;  %v3890_v31 = vrot.slane %v3889_v28, 2  ;;  %v3896_v51 = vmax.f32 %v3894_v48, %v3895_v34 }
 0x26e   : > { %v3903_v15 = vmax.f32 %v3901_v5, %v3902_v60  ;;  %v3909_v56 = vrot.slane %v3908_v53, 4  ;;  %v3917_v55 = vmax.f32 %v3915_v36, %v3916_v21  ;;  %v3923_v14 = vrot.slane %v3922_v54, 4 }
 0x26f   : > { %v3878_v26 = vrot.slane %v3877_v52, 1  ;;  %v3884_v50 = vmax.f32 %v3882_v37, %v3883_v45  ;;  %v3891_v23 = vmax.f32 %v3889_v28, %v3890_v31  ;;  %v3897_v43 = vrot.slane %v3896_v51, 2 }
 0x270   : > { %v3904_v25 = vrot.slane %v3903_v15, 2  ;;  %v3910_v29 = vmax.f32 %v3908_v53, %v3909_v56  ;;  %v3918_v12 = vrot.slane %v3917_v55, 2  ;;  %v3924_v2 = vmax.f32 %v3922_v54, %v3923_v14 }
 0x271   : > { %v3879_v27 = vmax.f32 %v3877_v52, %v3878_v26  ;;  %v3885_v32 = vrot.slane %v3884_v50, 1  ;;  %v3892_v3 = vrot.slane %v3891_v23, 1  ;;  %v3898_v47 = vmax.f32 %v3896_v51, %v3897_v43 }
 0x272   : > { %v3905_v20 = vmax.f32 %v3903_v15, %v3904_v25  ;;  %v3911_v57 = vrot.slane %v3910_v29, 2  ;;  %v3919_v44 = vmax.f32 %v3917_v55, %v3918_v12  ;;  %v3925_v8 = vrot.slane %v3924_v2, 2 }
 0x273   : > { %v3886_v30 = vmax.f32 %v3884_v50, %v3885_v32  ;;  %v3893_v16 = vmax.f32 %v3891_v23, %v3892_v3  ;;  %v3899_v13 = vrot.slane %v3898_v47, 1  ;;  %v4519_v58 = vpack.c.bf16 %v3879_v27, %v3879_v27 }
 0x274   : > { %v3906_v35 = vrot.slane %v3905_v20, 1  ;;  %v3912_v46 = vmax.f32 %v3910_v29, %v3911_v57  ;;  %v3920_v62 = vrot.slane %v3919_v44, 1  ;;  %v3926_v11 = vmax.f32 %v3924_v2, %v3925_v8 }
 0x275   : > { %v3900_v24 = vmax.f32 %v3898_v47, %v3899_v13  ;;  %v4386_v41 = vsel %vm4385_vm2, %v3886_v30, %v3879_v27  ;;  %v4520_v22 = vpack.c.bf16 %v3886_v30, %v3886_v30  ;;  %v4521_v33 = vpack.c.bf16 %v3893_v16, %v3893_v16 }
 0x276   : > { %v4388_v59 = vsel %vm4387_vm7, %v3893_v16, %v4386_v41  ;;  %v4647_v63 = vunpack.c.l.b16 %v4519_v58  ;;  %v3907_v17 = vmax.f32 %v3905_v20, %v3906_v35  ;;  %v3913_v48 = vrot.slane %v3912_v46, 1 }
 0x277   : > { %v4522_v0 = vpack.c.bf16 %v3900_v24, %v3900_v24  ;;  %v4648_v5 = vunpack.c.l.b16 %v4520_v22  ;;  %v4649_v36 = vunpack.c.l.b16 %v4521_v33  ;;  %v3921_v42 = vmax.f32 %v3919_v44, %v3920_v62 }
 0x278   : > { %v3914_v37 = vmax.f32 %v3912_v46, %v3913_v48  ;;  %v3927_v28 = vrot.slane %v3926_v11, 1  ;;  %v4390_v34 = vsel %vm4389_vm8, %v3900_v24, %v4388_v59  ;;  %v4523_v60 = vpack.c.bf16 %v3907_v17, %v3907_v17 }
 0x279   : > { %v4650_v53 = vunpack.c.l.b16 %v4522_v0  ;;  %v4711_v21 = vsel %vm4385_vm2, %v4648_v5, %v4647_v63  ;;  %v4392_v54 = vsel %vm4391_vm11, %v3907_v17, %v4390_v34  ;;  %v4525_v52 = vpack.c.bf16 %v3921_v42, %v3921_v42 }
 0x27a   : > { %v3297_v45 = vpop.f32.mrb[8].mxu1  ;;  %v4712_v31 = vsel %vm4387_vm7, %v4649_v36, %v4711_v21  ;;  %v3928_v51 = vmax.f32 %v3926_v11, %v3927_v28  ;;  %v4394_v15 = vsel %vm4393_vm12, %v3914_v37, %v4392_v54  ;;  %v4524_v56 = vpack.c.bf16 %v3914_v37, %v3914_v37 }
 0x27b   : > { %v3299_v55 = vpop.f32.mrb[9].mxu1  ;;  %v4396_v14 = vsel %vm4395_vm0, %v3921_v42, %v4394_v15  ;;  %v7624_v26 = vadd.f32 %v10246_v10, %v10241_v38  ;;  %v4651_v43 = vunpack.c.l.b16 %v4523_v60  ;;  %v7627_v25 = vadd.f32 %v10252_v9, %v10248_v49 }
 0x27c   : > { %v3300_v50 = vpop.f32.mrb[10].mxu1  ;;  %v4398_v23 = vsel %vm4397_vm9, %v3928_v51, %v4396_v14  ;;  %v4526_v12 = vpack.c.bf16 %v3928_v51, %v3928_v51  ;;  %v4652_v2 = vunpack.c.l.b16 %v4524_v56  ;;  %v4713_v32 = vsel %vm4389_vm8, %v4650_v53, %v4712_v31 }
 0x27d   : > { %v3302_v29 = vpop.f32.mrb[11].mxu1  ;;  %4456 = vst.msk [vmem:[%s10271_s10] sm:$0xff] %vm2593_vm10, %v4398_v23  ;;  %v3137_v27 = vadd.f32 %v7624_v26, %v10198_v4  ;;  %v4653_v38 = vunpack.c.l.b16 %v4525_v52  ;;  %v3140_v10 = vadd.f32 %v7627_v25, %v10198_v4  ;;  %v4714_v3 = vsel %vm4391_vm11, %v4651_v43, %v4713_v32 }
 0x27e   : > { %v4654_v20 = vunpack.c.l.b16 %v4526_v12  ;;  %v4715_v49 = vsel %vm4393_vm12, %v4652_v2, %v4714_v3 }
 0x27f   : > { %v3298_v47 = vadd.f32 %v3297_v45, %v3137_v27  ;;  %v3301_v9 = vadd.f32 %v3300_v50, %v3140_v10  ;;  %v4716_v57 = vsel %vm4395_vm0, %v4653_v38, %v4715_v49 }
 0x280   : > { %v7628_v44 = vpop.f32.mrb[12].mxu0  ;;  %v4717_v8 = vsel %vm4397_vm9, %v4654_v20, %v4716_v57 }
 0x281   : > { %v7629_v30 = vpop.f32.mrb[13].mxu0  ;;  %v4767_v16 = vpack.c.b16 %v4717_v8, %v4717_v8  ;;  %v3444_v59 = vmul.f32 0.01, %v3298_v47  ;;  %vm3412_vm5 = vcmp.gt.f32.partialorder %v3298_v47, 0.0  ;;  %v3445_v0 = vmul.f32 0.01, %v3301_v9 }
 0x282   : > { %v7630_v13 = vadd.f32 %v7629_v30, %v7628_v44  ;;  %v7631_v58 = vpop.f32.mrb[14].mxu0  ;;  %vm3413_vm3 = vcmp.gt.f32.partialorder %v3301_v9, 0.0 }
 0x283   : > { %v7632_v35 = vpop.f32.mrb[15].mxu0  ;;  %v4776_v46 = vshrl.u32 %v4767_v16, 16  ;;  %v4779_v24 = vshll.u32 %v4767_v16, 16  ;;  %v3476_v21 = vsel %vm3412_vm5, %v3298_v47, %v3444_v59  ;;  %v3477_v55 = vsel %vm3413_vm3, %v3301_v9, %v3445_v0 }
 0x284   : > { %v7633_v62 = vadd.f32 %v7632_v35, %v7631_v58  ;;  %v3145_v41 = vadd.f32 %v7630_v13, %v10198_v4 }
 0x285   : > { %v4778_v11 = vrot.slane %v4776_v46, 7 }
 0x286   : > { %v3148_v48 = vadd.f32 %v7633_v62, %v10198_v4 }
 0x287   : > { %v3305_v22 = vpop.f32.mrb[12].mxu1  ;;  %v4781_v33 = vor.u32 %v4779_v24, %v4778_v11 }
 0x288   : > { %v3306_v63 = vadd.f32 %v3305_v22, %v3145_v41  ;;  %v3307_v17 = vpop.f32.mrb[13].mxu1 }
 0x289   : > { %v3308_v5 = vpop.f32.mrb[14].mxu1  ;;  %v4839_v36 = vsel %vm8416_vm4, 0, %v4781_v33 }
 0x28a   : > { %vm3414_vm15 = vcmp.gt.f32.partialorder %v3306_v63, 0.0  ;;  %v3446_v42 = vmul.f32 0.01, %v3306_v63  ;;  %v3309_v37 = vadd.f32 %v3308_v5, %v3148_v48  ;;  %v3310_v28 = vpop.f32.mrb[15].mxu1  ;;  %v10288_v34 = vsel %vm10134_vm6, %v4839_v36, 0 }
 0x28b   : > { %4964 = vrot.lane.b32.xlu1 %v10288_v34, %s11806_s17  ;;  %v4940_v60 = vrot.slane %v10288_v34, 1  ;;  %v4869_v53 = vshll.u32 %v10288_v34, 16  ;;  %v4867_v15 = vshrl.u32 %v10288_v34, 16 }
 0x28c   : > { %v3478_v54 = vsel %vm3414_vm15, %v3306_v63, %v3446_v42  ;;  %vm3415_vm14 = vcmp.gt.f32.partialorder %v3309_v37, 0.0  ;;  %v3447_v52 = vmul.f32 0.01, %v3309_v37 }
 0x28d   : > { %v7634_v45 = vpop.f32.mrb[16].mxu0  ;;  %v3506_v31 = vmax.f32 %v3476_v21, %v3478_v54  ;;  %4949 = vrot.lane.b32.xlu0 %v4940_v60, %s11794_s20  ;;  %v4871_v56 = vrot.slane %v4869_v53, 1 }
 0x28e   : > { %v7635_v51 = vpop.f32.mrb[17].mxu0  ;;  %v3479_v14 = vsel %vm3415_vm14, %v3309_v37, %v3447_v52 }
 0x28f   : > { %v7636_v26 = vadd.f32 %v7635_v51, %v7634_v45  ;;  %v7637_v50 = vpop.f32.mrb[18].mxu0  ;;  %v3570_v23 = vcombine.high %v3506_v31, %v3506_v31  ;;  %v3577_v43 = vrot.slane %v3506_v31, %v10231_v18  ;;  %v3507_v25 = vmax.f32 %v3477_v55, %v3479_v14  ;;  %5004 = vrot.lane.b32.xlu1 %v4940_v60, %s11804_s11 }
 0x290   : > { %v7638_v29 = vpop.f32.mrb[19].mxu0  ;;  %v4872_v12 = vor.u32 %v4871_v56, %v4867_v15 }
 0x291   : > { %v7639_v2 = vadd.f32 %v7638_v29, %v7637_v50  ;;  %v3584_v27 = vrot.slane %v3570_v23, %v10231_v18  ;;  %v3585_v32 = vcombine.high %v3577_v43, %v3577_v43  ;;  %v3929_v38 = vsel %vm3872_vm1, %v3577_v43, -inf }
 0x292   : > { %v3587_v10 = vcombine.high %v3507_v25, %v3507_v25  ;;  %4917 = vrot.lane.b32.xlu0 %v4872_v12, %s11802_s19  ;;  %v3930_v3 = vrot.slane %v3929_v38, 4  ;;  %v3594_v47 = vrot.slane %v3507_v25, %v10231_v18  ;;  %v10303_v20 = vadd.f32 %v7636_v26, %v10198_v4 }
 0x293   : > { %v10306_v49 = vadd.f32 %v7639_v2, %v10198_v4  ;;  %v3586_v9 = vcombine.high %v3584_v27, %v3584_v27  ;;  %v3936_v57 = vsel %vm3872_vm1, %v3585_v32, -inf  ;;  %v3943_v44 = vsel %vm3872_vm1, %v3584_v27, -inf  ;;  %4987 = vrot.lane.b32.xlu1 %v4872_v12, %s11792_s29 }
 0x294   : > { %v3601_v8 = vrot.slane %v3587_v10, %v10231_v18  ;;  %v10311_v30 = vpop.f32.mrb[16].mxu1  ;;  %v3931_v16 = vmax.f32 %v3929_v38, %v3930_v3  ;;  %v3937_v13 = vrot.slane %v3936_v57, 4  ;;  %v3944_v58 = vrot.slane %v3943_v44, 4 }
 0x295   : > { %v3602_v35 = vcombine.high %v3594_v47, %v3594_v47  ;;  %v3315_v46 = vpop.f32.mrb[17].mxu1  ;;  %v3950_v62 = vsel %vm3872_vm1, %v3586_v9, -inf  ;;  %v3957_v24 = vsel %vm3872_vm1, %v3594_v47, -inf }
 0x296   : > { %v3603_v11 = vcombine.high %v3601_v8, %v3601_v8  ;;  %v3971_v41 = vsel %vm3872_vm1, %v3601_v8, -inf  ;;  %v10317_v22 = vpop.f32.mrb[18].mxu1  ;;  %v3932_v33 = vrot.slane %v3931_v16, 2  ;;  %v3938_v59 = vmax.f32 %v3936_v57, %v3937_v13 }
 0x297   : > { %v3945_v63 = vmax.f32 %v3943_v44, %v3944_v58  ;;  %v3951_v17 = vrot.slane %v3950_v62, 4  ;;  %v3318_v48 = vpop.f32.mrb[19].mxu1  ;;  %v3958_v0 = vrot.slane %v3957_v24, 4  ;;  %v3964_v5 = vsel %vm3872_vm1, %v3602_v35, -inf }
 0x298   : > { %v3972_v36 = vrot.slane %v3971_v41, 4  ;;  %v3978_v42 = vsel %vm3872_vm1, %v3603_v11, -inf  ;;  %v3933_v37 = vmax.f32 %v3931_v16, %v3932_v33  ;;  %v3939_v28 = vrot.slane %v3938_v59, 2 }
 0x299   : > { %v3946_v60 = vrot.slane %v3945_v63, 2  ;;  %v3952_v53 = vmax.f32 %v3950_v62, %v3951_v17  ;;  %v3959_v21 = vmax.f32 %v3957_v24, %v3958_v0  ;;  %v3965_v54 = vrot.slane %v3964_v5, 4 }
 0x29a   : > { %v3973_v52 = vmax.f32 %v3971_v41, %v3972_v36  ;;  %v3979_v45 = vrot.slane %v3978_v42, 4  ;;  %v3934_v31 = vrot.slane %v3933_v37, 1  ;;  %v3940_v51 = vmax.f32 %v3938_v59, %v3939_v28 }
 0x29b   : > { %v3947_v15 = vmax.f32 %v3945_v63, %v3946_v60  ;;  %v3953_v56 = vrot.slane %v3952_v53, 2  ;;  %v3960_v55 = vrot.slane %v3959_v21, 2  ;;  %v3966_v14 = vmax.f32 %v3964_v5, %v3965_v54 }
 0x29c   : > { %v3974_v26 = vrot.slane %v3973_v52, 2  ;;  %v3980_v50 = vmax.f32 %v3978_v42, %v3979_v45  ;;  %v3935_v23 = vmax.f32 %v3933_v37, %v3934_v31  ;;  %v3941_v43 = vrot.slane %v3940_v51, 1  ;;  %v7640_v12 = vpop.f32.mrb[20].mxu0 }
 0x29d   : > { %v3948_v25 = vrot.slane %v3947_v15, 1  ;;  %v3954_v29 = vmax.f32 %v3952_v53, %v3953_v56  ;;  %v3961_v2 = vmax.f32 %v3959_v21, %v3960_v55  ;;  %v3967_v27 = vrot.slane %v3966_v14, 2  ;;  %v7641_v10 = vpop.f32.mrb[21].mxu0 }
 0x29e   : > { %v3975_v32 = vmax.f32 %v3973_v52, %v3974_v26  ;;  %v3981_v38 = vrot.slane %v3980_v50, 2  ;;  %v3942_v3 = vmax.f32 %v3940_v51, %v3941_v43  ;;  %v4527_v57 = vpack.c.bf16 %v3935_v23, %v3935_v23  ;;  %v7643_v44 = vpop.f32.mrb[22].mxu0 }
 0x29f   : > { %v3949_v47 = vmax.f32 %v3947_v15, %v3948_v25  ;;  %v3955_v9 = vrot.slane %v3954_v29, 1  ;;  %v3962_v8 = vrot.slane %v3961_v2, 1  ;;  %v3968_v16 = vmax.f32 %v3966_v14, %v3967_v27  ;;  %v7644_v35 = vpop.f32.mrb[23].mxu0 }
 0x2a0   : > { %v3976_v13 = vrot.slane %v3975_v32, 1  ;;  %v3982_v58 = vmax.f32 %v3980_v50, %v3981_v38  ;;  %v4399_v62 = vsel %vm4385_vm2, %v3942_v3, %v3935_v23  ;;  %v4528_v11 = vpack.c.bf16 %v3942_v3, %v3942_v3 }
 0x2a1   : > { %v3956_v46 = vmax.f32 %v3954_v29, %v3955_v9  ;;  %v4529_v24 = vpack.c.bf16 %v3949_v47, %v3949_v47  ;;  %v4400_v41 = vsel %vm4387_vm7, %v3949_v47, %v4399_v62  ;;  %v4655_v33 = vunpack.c.l.b16 %v4527_v57 }
 0x2a2   : > { %v3963_v59 = vmax.f32 %v3961_v2, %v3962_v8  ;;  %v3969_v63 = vrot.slane %v3968_v16, 1  ;;  %v4656_v48 = vunpack.c.l.b16 %v4528_v11  ;;  %v3977_v5 = vmax.f32 %v3975_v32, %v3976_v13 }
 0x2a3   : > { %v4530_v17 = vpack.c.bf16 %v3956_v46, %v3956_v46  ;;  %v4657_v0 = vunpack.c.l.b16 %v4529_v24  ;;  %v3983_v42 = vrot.slane %v3982_v58, 1  ;;  %v4401_v37 = vsel %vm4389_vm8, %v3956_v46, %v4400_v41  ;;  %v3321_v60 = vpop.f32.mrb[20].mxu1 }
 0x2a4   : > { %v3970_v36 = vmax.f32 %v3968_v16, %v3969_v63  ;;  %v4531_v28 = vpack.c.bf16 %v3963_v59, %v3963_v59  ;;  %v4718_v21 = vsel %vm4385_vm2, %v4656_v48, %v4655_v33  ;;  %v4402_v54 = vsel %vm4391_vm11, %v3963_v59, %v4401_v37  ;;  %v3323_v45 = vpop.f32.mrb[21].mxu1 }
 0x2a5   : > { %v4658_v53 = vunpack.c.l.b16 %v4530_v17  ;;  %v4533_v52 = vpack.c.bf16 %v3977_v5, %v3977_v5  ;;  %v4719_v31 = vsel %vm4387_vm7, %v4657_v0, %v4718_v21  ;;  %v3984_v51 = vmax.f32 %v3982_v58, %v3983_v42  ;;  %v3324_v55 = vpop.f32.mrb[22].mxu1 }
 0x2a6   : > { %v4403_v15 = vsel %vm4393_vm12, %v3970_v36, %v4402_v54  ;;  %v4532_v56 = vpack.c.bf16 %v3970_v36, %v3970_v36  ;;  %v4659_v26 = vunpack.c.l.b16 %v4531_v28  ;;  %v3326_v23 = vpop.f32.mrb[23].mxu1  ;;  %v3314_v29 = vadd.f32 %v10311_v30, %v10303_v20 }
 0x2a7   : > { %v4404_v14 = vsel %vm4395_vm0, %v3977_v5, %v4403_v15  ;;  %v4720_v50 = vsel %vm4389_vm8, %v4658_v53, %v4719_v31  ;;  %v3317_v2 = vadd.f32 %v10317_v22, %v10306_v49  ;;  %v7642_v32 = vadd.f32 %v7641_v10, %v7640_v12 }
 0x2a8   : > { %v4405_v43 = vsel %vm4397_vm9, %v3984_v51, %v4404_v14  ;;  %v4660_v25 = vunpack.c.l.b16 %v4532_v56  ;;  %v4721_v27 = vsel %vm4391_vm11, %v4659_v26, %v4720_v50  ;;  %v7645_v38 = vadd.f32 %v7644_v35, %v7643_v44 }
 0x2a9   : > { %4457 = vst.msk [vmem:[%s10271_s10 + $0x8] sm:$0xff] %vm2593_vm10, %v4405_v43  ;;  %v7646_v3 = vpop.f32.mrb[24].mxu0  ;;  %v4534_v47 = vpack.c.bf16 %v3984_v51, %v3984_v51  ;;  %v4661_v9 = vunpack.c.l.b16 %v4533_v52  ;;  %v3161_v57 = vadd.f32 %v7642_v32, %v10198_v4  ;;  %vm3416_vm14 = vcmp.gt.f32.partialorder %v3314_v29, 0.0 }
 0x2aa   : > { %v3164_v8 = vadd.f32 %v7645_v38, %v10198_v4  ;;  %v7647_v16 = vpop.f32.mrb[25].mxu0  ;;  %v4722_v20 = vsel %vm4393_vm12, %v4660_v25, %v4721_v27  ;;  %v3448_v30 = vmul.f32 0.01, %v3314_v29  ;;  %v3449_v46 = vmul.f32 0.01, %v3317_v2 }
 0x2ab   : > { %v4662_v13 = vunpack.c.l.b16 %v4534_v47  ;;  %v7648_v49 = vadd.f32 %v7647_v16, %v7646_v3  ;;  %v7649_v22 = vpop.f32.mrb[26].mxu0  ;;  %v4723_v58 = vsel %vm4395_vm0, %v4661_v9, %v4722_v20  ;;  %v3322_v12 = vadd.f32 %v3321_v60, %v3161_v57 }
 0x2ac   : > { %v3325_v10 = vadd.f32 %v3324_v55, %v3164_v8  ;;  %v7650_v44 = vpop.f32.mrb[27].mxu0  ;;  %vm3417_vm15 = vcmp.gt.f32.partialorder %v3317_v2, 0.0  ;;  %v3480_v59 = vsel %vm3416_vm14, %v3314_v29, %v3448_v30 }
 0x2ad   : > { %v4724_v35 = vsel %vm4397_vm9, %v4662_v13, %v4723_v58  ;;  %v7651_v62 = vadd.f32 %v7650_v44, %v7649_v22  ;;  %v3169_v11 = vadd.f32 %v7648_v49, %v10198_v4  ;;  %vm3418_vm3 = vcmp.gt.f32.partialorder %v3322_v12, 0.0 }
 0x2ae   : > { %v4768_v24 = vpack.c.b16 %v4724_v35, %v4724_v35  ;;  %v3450_v41 = vmul.f32 0.01, %v3322_v12  ;;  %vm3419_vm5 = vcmp.gt.f32.partialorder %v3325_v10, 0.0  ;;  %v3451_v33 = vmul.f32 0.01, %v3325_v10 }
 0x2af   : > { %v3172_v17 = vadd.f32 %v7651_v62, %v10198_v4  ;;  %v3481_v0 = vsel %vm3417_vm15, %v3317_v2, %v3449_v46 }
 0x2b0   : > { %v3329_v63 = vpop.f32.mrb[24].mxu1  ;;  %v4783_v48 = vshrl.u32 %v4768_v24, 16  ;;  %v3482_v5 = vsel %vm3418_vm3, %v3322_v12, %v3450_v41  ;;  %v3483_v36 = vsel %vm3419_vm5, %v3325_v10, %v3451_v33  ;;  %v4786_v55 = vshll.u32 %v4768_v24, 16 }
 0x2b1   : > { %v10346_v42 = vadd.f32 %v3329_v63, %v3169_v11  ;;  %v3331_v37 = vpop.f32.mrb[25].mxu1  ;;  %v3508_v28 = vmax.f32 %v3480_v59, %v3482_v5  ;;  %v3509_v60 = vmax.f32 %v3481_v0, %v3483_v36 }
 0x2b2   : > { %v3332_v53 = vpop.f32.mrb[26].mxu1  ;;  %v4785_v52 = vrot.slane %v4783_v48, 7 }
 0x2b3   : > { %v10348_v21 = vadd.f32 %v3332_v53, %v3172_v17  ;;  %v3334_v54 = vpop.f32.mrb[27].mxu1  ;;  %v3604_v45 = vcombine.high %v3508_v28, %v3508_v28  ;;  %v3611_v31 = vrot.slane %v3508_v28, %v10231_v18  ;;  %v3621_v51 = vcombine.high %v3509_v60, %v3509_v60 }
 0x2b4   : > { %v3628_v15 = vrot.slane %v3509_v60, %v10231_v18  ;;  %v10353_v56 = vmul.f32 0.01, %v10346_v42  ;;  %v10359_v2 = vor.u32 %v4786_v55, %v4785_v52  ;;  %vm3420_vm14 = vcmp.gt.f32.partialorder %v10346_v42, 0.0 }
 0x2b5   : > { %v3618_v14 = vrot.slane %v3604_v45, %v10231_v18  ;;  %v3619_v26 = vcombine.high %v3611_v31, %v3611_v31  ;;  %v3985_v50 = vsel %vm3872_vm1, %v3611_v31, -inf  ;;  %v3635_v23 = vrot.slane %v3621_v51, %v10231_v18 }
 0x2b6   : > { %v3986_v43 = vrot.slane %v3985_v50, 4  ;;  %v3636_v25 = vcombine.high %v3628_v15, %v3628_v15  ;;  %v4013_v29 = vsel %vm3872_vm1, %v3628_v15, -inf  ;;  %vm3421_vm15 = vcmp.gt.f32.partialorder %v10348_v21, 0.0 }
 0x2b7   : > { %v3620_v27 = vcombine.high %v3618_v14, %v3618_v14  ;;  %v3992_v32 = vsel %vm3872_vm1, %v3619_v26, -inf  ;;  %v3999_v38 = vsel %vm3872_vm1, %v3618_v14, -inf  ;;  %v3637_v3 = vcombine.high %v3635_v23, %v3635_v23 }
 0x2b8   : > { %v3987_v47 = vmax.f32 %v3985_v50, %v3986_v43  ;;  %v3993_v9 = vrot.slane %v3992_v32, 4  ;;  %v4000_v57 = vrot.slane %v3999_v38, 4  ;;  %v4014_v8 = vrot.slane %v4013_v29, 4  ;;  %v10363_v16 = vpop.f32.mrb[28].mxu0 }
 0x2b9   : > { %v4006_v13 = vsel %vm3872_vm1, %v3620_v27, -inf  ;;  %v4020_v20 = vsel %vm3872_vm1, %v3636_v25, -inf  ;;  %v4027_v30 = vsel %vm3872_vm1, %v3635_v23, -inf  ;;  %v4034_v49 = vsel %vm3872_vm1, %v3637_v3, -inf  ;;  %v10369_v22 = vpop.f32.mrb[29].mxu0 }
 0x2ba   : > { %v3988_v58 = vrot.slane %v3987_v47, 2  ;;  %v3994_v46 = vmax.f32 %v3992_v32, %v3993_v9  ;;  %v4001_v12 = vmax.f32 %v3999_v38, %v4000_v57  ;;  %v4007_v10 = vrot.slane %v4006_v13, 4  ;;  %v10371_v44 = vpop.f32.mrb[30].mxu0 }
 0x2bb   : > { %v4015_v35 = vmax.f32 %v4013_v29, %v4014_v8  ;;  %v4021_v62 = vrot.slane %v4020_v20, 4  ;;  %v4028_v11 = vrot.slane %v4027_v30, 4  ;;  %v4035_v24 = vrot.slane %v4034_v49, 4  ;;  %v10373_v41 = vpop.f32.mrb[31].mxu0 }
 0x2bc   : > { %v3989_v33 = vmax.f32 %v3987_v47, %v3988_v58  ;;  %v3995_v59 = vrot.slane %v3994_v46, 2  ;;  %v4002_v63 = vrot.slane %v4001_v12, 2  ;;  %v4008_v17 = vmax.f32 %v4006_v13, %v4007_v10 }
 0x2bd   : > { %v4016_v48 = vrot.slane %v4015_v35, 2  ;;  %v4022_v0 = vmax.f32 %v4020_v20, %v4021_v62  ;;  %v4029_v5 = vmax.f32 %v4027_v30, %v4028_v11  ;;  %v4036_v36 = vmax.f32 %v4034_v49, %v4035_v24 }
 0x2be   : > { %v3990_v37 = vrot.slane %v3989_v33, 1  ;;  %v3996_v28 = vmax.f32 %v3994_v46, %v3995_v59  ;;  %v4003_v60 = vmax.f32 %v4001_v12, %v4002_v63  ;;  %v4009_v53 = vrot.slane %v4008_v17, 2 }
 0x2bf   : > { %v4017_v54 = vmax.f32 %v4015_v35, %v4016_v48  ;;  %v4023_v52 = vrot.slane %v4022_v0, 2  ;;  %v4030_v45 = vrot.slane %v4029_v5, 2  ;;  %v4037_v31 = vrot.slane %v4036_v36, 2  ;;  %v10375_v51 = vpop.f32.mrb[28].mxu1 }
 0x2c0   : > { %v3991_v15 = vmax.f32 %v3989_v33, %v3990_v37  ;;  %v3997_v55 = vrot.slane %v3996_v28, 1  ;;  %v4004_v14 = vrot.slane %v4003_v60, 1  ;;  %v4010_v26 = vmax.f32 %v4008_v17, %v4009_v53  ;;  %v3339_v50 = vpop.f32.mrb[29].mxu1 }
 0x2c1   : > { %v4018_v23 = vrot.slane %v4017_v54, 1  ;;  %v4024_v43 = vmax.f32 %v4022_v0, %v4023_v52  ;;  %v4031_v25 = vmax.f32 %v4029_v5, %v4030_v45  ;;  %v4038_v29 = vmax.f32 %v4036_v36, %v4037_v31  ;;  %v10377_v27 = vpop.f32.mrb[30].mxu1 }
 0x2c2   : > { %v3998_v32 = vmax.f32 %v3996_v28, %v3997_v55  ;;  %v4005_v38 = vmax.f32 %v4003_v60, %v4004_v14  ;;  %v4011_v3 = vrot.slane %v4010_v26, 1  ;;  %v4535_v47 = vpack.c.bf16 %v3991_v15, %v3991_v15  ;;  %v3342_v9 = vpop.f32.mrb[31].mxu1 }
 0x2c3   : > { %v4019_v57 = vmax.f32 %v4017_v54, %v4018_v23  ;;  %v4025_v8 = vrot.slane %v4024_v43, 1  ;;  %v4032_v13 = vrot.slane %v4031_v25, 1  ;;  %v4039_v20 = vrot.slane %v4038_v29, 1 }
 0x2c4   : > { %v4012_v30 = vmax.f32 %v4010_v26, %v4011_v3  ;;  %v4406_v49 = vsel %vm4385_vm2, %v3998_v32, %v3991_v15  ;;  %v4536_v58 = vpack.c.bf16 %v3998_v32, %v3998_v32  ;;  %v4537_v46 = vpack.c.bf16 %v4005_v38, %v4005_v38  ;;  %v7893_v3 = vld [vmem:[%s11749_s2 + $0xd8] sm:$0xff]  }
 0x2c5   : > { %v7658_v12 = vpop.f32.mrb[32].mxu0  ;;  %v4407_v10 = vsel %vm4387_vm7, %v4005_v38, %v4406_v49  ;;  %v4663_v35 = vunpack.c.l.b16 %v4535_v47  ;;  %v4026_v62 = vmax.f32 %v4024_v43, %v4025_v8  ;;  %v4033_v11 = vmax.f32 %v4031_v25, %v4032_v13 }
 0x2c6   : > { %v7659_v24 = vpop.f32.mrb[33].mxu0  ;;  %v4538_v33 = vpack.c.bf16 %v4012_v30, %v4012_v30  ;;  %v4664_v59 = vunpack.c.l.b16 %v4536_v58  ;;  %v4665_v63 = vunpack.c.l.b16 %v4537_v46  ;;  %v4040_v17 = vmax.f32 %v4038_v29, %v4039_v20 }
 0x2c7   : > { %v7661_v48 = vpop.f32.mrb[34].mxu0  ;;  %v4408_v0 = vsel %vm4389_vm8, %v4012_v30, %v4407_v10  ;;  %v4539_v5 = vpack.c.bf16 %v4019_v57, %v4019_v57  ;;  %v4540_v36 = vpack.c.bf16 %v4026_v62, %v4026_v62  ;;  %v4541_v37 = vpack.c.bf16 %v4033_v11, %v4033_v11 }
 0x2c8   : > { %v7662_v28 = vpop.f32.mrb[35].mxu0  ;;  %v4666_v60 = vunpack.c.l.b16 %v4538_v33  ;;  %v4725_v53 = vsel %vm4385_vm2, %v4664_v59, %v4663_v35  ;;  %v4409_v54 = vsel %vm4391_vm11, %v4019_v57, %v4408_v0  ;;  %v4840_v52 = vsel %vm8416_vm4, 0, %v10359_v2  ;;  %v7892_v2 = vld [vmem:[%s11749_s2 + $0x118] sm:$0xff]  }
 0x2c9   : > { %v4726_v45 = vsel %vm4387_vm7, %v4665_v63, %v4725_v53  ;;  %v4410_v31 = vsel %vm4393_vm12, %v4026_v62, %v4409_v54  ;;  %v4667_v15 = vunpack.c.l.b16 %v4539_v5  ;;  %v4668_v55 = vunpack.c.l.b16 %v4540_v36  ;;  %7706 = vmatprep.subr.bf16.mxu0 %v7892_v2  ;;  %v7897_v53 = vld [vmem:[%s11749_s2 + $0xe8] sm:$0xff]  }
 0x2ca   : > { %v4411_v14 = vsel %vm4395_vm0, %v4033_v11, %v4410_v31  ;;  %v4669_v26 = vunpack.c.l.b16 %v4541_v37  ;;  %v4727_v50 = vsel %vm4389_vm8, %v4666_v60, %v4726_v45  ;;  %v10394_v23 = vsel %vm10134_vm6, %v4840_v52, 0  ;;  %7707 = vmatpush3.bf16.msra.mxu0 %v7893_v3  ;;  %v7896_v60 = vld [vmem:[%s11749_s2 + $0x128] sm:$0xff]   ;;  %v7898_v45 = vld [vmem:[%s11749_s2 + $0x130] sm:$0xff]   ;;  %v7900_v31 = vld [vmem:[%s11749_s2 + $0x158] sm:$0xff]  }
 0x2cb   : > { %v4412_v43 = vsel %vm4397_vm9, %v4040_v17, %v4411_v14  ;;  %v4728_v25 = vsel %vm4391_vm11, %v4667_v15, %v4727_v50  ;;  %5020 = vrot.lane.b32.xlu1 %v10394_v23, %s11808_s26  ;;  %4966 = vrot.lane.b32.xlu0 %v10394_v23, %s11806_s17  ;;  %v10406_v29 = vrot.slane %v10394_v23, 1  ;;  %v7654_v32 = vadd.f32 %v10369_v22, %v10363_v16 }
 0x2cc   : > { %v3345_v38 = vpop.f32.mrb[32].mxu1  ;;  %4458 = vst.msk [vmem:[%s10271_s10 + $0x10] sm:$0xff] %vm2593_vm10, %v4412_v43  ;;  %v7657_v47 = vadd.f32 %v10373_v41, %v10371_v44  ;;  %v4874_v9 = vshrl.u32 %v10394_v23, 16  ;;  %v4876_v57 = vshll.u32 %v10394_v23, 16  ;;  %v7660_v8 = vadd.f32 %v7659_v24, %v7658_v12  ;;  %v7894_v12 = vld [vmem:[%s11749_s2 + $0x120] sm:$0xff]   ;;  %v7899_v43 = vld [vmem:[%s11749_s2 + $0xf0] sm:$0xff]   ;;  %5492 = vmatpush1.bf16.msra.mxu1 %v7900_v31 }
 0x2cd   : > { %v3347_v13 = vpop.f32.mrb[33].mxu1  ;;  %v3177_v20 = vadd.f32 %v7654_v32, %v10198_v4  ;;  %v7663_v16 = vadd.f32 %v7662_v28, %v7661_v48  ;;  %v4542_v30 = vpack.c.bf16 %v4040_v17, %v4040_v17  ;;  %v4729_v49 = vsel %vm4393_vm12, %v4668_v55, %v4728_v25  ;;  %v7895_v24 = vld [vmem:[%s11749_s2 + $0xe0] sm:$0xff]   ;;  %7708 = vmatprep.subr.bf16.mxu0 %v7894_v12 }
 0x2ce   : > { %v3348_v22 = vpop.f32.mrb[34].mxu1  ;;  %v4878_v58 = vrot.slane %v4876_v57, 1  ;;  %v3180_v46 = vadd.f32 %v7657_v47, %v10198_v4  ;;  %v3185_v44 = vadd.f32 %v7660_v8, %v10198_v4  ;;  %v4730_v10 = vsel %vm4395_vm0, %v4669_v26, %v4729_v49  ;;  %7709 = vmatpush3.bf16.msra.mxu0 %v7895_v24 }
 0x2cf   : > { %v3350_v41 = vpop.f32.mrb[35].mxu1  ;;  %4951 = vrot.lane.b32.xlu1 %v10406_v29, %s11794_s20  ;;  %5006 = vrot.lane.b32.xlu0 %v10406_v29, %s11804_s11  ;;  %v3338_v35 = vadd.f32 %v10375_v51, %v3177_v20  ;;  %v3188_v62 = vadd.f32 %v7663_v16, %v10198_v4  ;;  %v4670_v11 = vunpack.c.l.b16 %v4542_v30  ;;  %v3453_v33 = vmul.f32 0.01, %v10348_v21  ;;  %s11932_s20 = smov 48  }
 0x2d0   : > { %v4879_v59 = vor.u32 %v4878_v58, %v4874_v9  ;;  %v3341_v63 = vadd.f32 %v10377_v27, %v3180_v46  ;;  %v3346_v17 = vadd.f32 %v3345_v38, %v3185_v44  ;;  %v3484_v36 = vsel %vm3420_vm14, %v10346_v42, %v10353_v56  ;;  %7710 = vmatprep.subr.bf16.mxu0 %v7896_v60  ;;  %v7901_v9 = vld [vmem:[%s11749_s2 + $0x138] sm:$0xff]   ;;  %v7903_v46 = vld [vmem:[%s11749_s2 + $0x160] sm:$0xff]  }
 0x2d1   : > { %vm3422_vm3 = vcmp.gt.f32.partialorder %v3338_v35, 0.0  ;;  %v3454_v48 = vmul.f32 0.01, %v3338_v35  ;;  %v10439_v0 = vadd.f32 %v3348_v22, %v3188_v62  ;;  %v4731_v51 = vsel %vm4397_vm9, %v4670_v11, %v4730_v10 }
 0x2d2   : > { %vm3423_vm5 = vcmp.gt.f32.partialorder %v3341_v63, 0.0  ;;  %v3455_v5 = vmul.f32 0.01, %v3341_v63  ;;  %v3456_v37 = vmul.f32 0.01, %v3346_v17  ;;  %v10448_v28 = vpack.c.b16 %v4731_v51, %v4731_v51  ;;  %7711 = vmatpush3.bf16.msra.mxu0 %v7897_v53 }
 0x2d3   : > { %4989 = vrot.lane.b32.xlu0 %v4879_v59, %s11792_s29  ;;  %5036 = vrot.lane.b32.xlu1 %v4879_v59, %s11790_s28  ;;  %v3486_v27 = vsel %vm3422_vm3, %v3338_v35, %v3454_v48  ;;  %v3485_v42 = vsel %vm3421_vm15, %v10348_v21, %v3453_v33  ;;  %vm3424_vm14 = vcmp.gt.f32.partialorder %v3346_v17, 0.0  ;;  %v10467_v21 = vmul.f32 0.01, %v10439_v0  ;;  %v7902_v35 = vld [vmem:[%s11749_s2 + $0xf8] sm:$0xff]   ;;  %s11875_s29 = smov 64  }
 0x2d4   : > { %v3510_v56 = vmax.f32 %v3484_v36, %v3486_v27  ;;  %v3487_v54 = vsel %vm3423_vm5, %v3341_v63, %v3455_v5  ;;  %v7664_v52 = vpop.f32.mrb[36].mxu0  ;;  %v10477_v38 = vsel %vm3424_vm14, %v3346_v17, %v3456_v37  ;;  %v4790_v3 = vshrl.u32 %v10448_v28, 16  ;;  %7712 = vmatprep.subr.bf16.mxu0 %v7898_v45  ;;  %v7904_v63 = vld [vmem:[%s11749_s2 + $0x140] sm:$0xff]  }
 0x2d5   : > { %v3511_v15 = vmax.f32 %v3485_v42, %v3487_v54  ;;  %v7665_v55 = vpop.f32.mrb[37].mxu0  ;;  %v11873_v16 = vmov 0   ;;  %vm3425_vm15 = vcmp.gt.f32.partialorder %v10439_v0, 0.0 }
 0x2d6   : > { %v3638_v14 = vcombine.high %v3510_v56, %v3510_v56  ;;  %v3645_v26 = vrot.slane %v3510_v56, %v10231_v18  ;;  %v10469_v50 = vadd.f32 %v7665_v55, %v7664_v52  ;;  %v7667_v2 = vpop.f32.mrb[38].mxu0  ;;  %5493 = vmatprep.subr.bf16.mxu1 %v11873_v16  ;;  %7713 = vmatpush3.bf16.msra.mxu0 %v7899_v43 }
 0x2d7   : > { %4919 = vrot.lane.b32.xlu1 %v4879_v59, %s11802_s19  ;;  %v3655_v25 = vcombine.high %v3511_v15, %v3511_v15  ;;  %v3662_v32 = vrot.slane %v3511_v15, %v10231_v18  ;;  %v7668_v47 = vpop.f32.mrb[39].mxu0  ;;  %7714 = vmatprep.subr.bf16.mxu0 %v7901_v9  ;;  %v7905_v15 = vld [vmem:[%s11749_s2 + $0x100] sm:$0xff]  }
 0x2d8   : > { %v3652_v57 = vrot.slane %v3638_v14, %v10231_v18  ;;  %v3653_v8 = vcombine.high %v3645_v26, %v3645_v26  ;;  %v4041_v13 = vsel %vm3872_vm1, %v3645_v26, -inf  ;;  %v10485_v20 = vadd.f32 %v7668_v47, %v7667_v2  ;;  %5494 = vmatpush1.bf16.msra.mxu1 %v7903_v46 }
 0x2d9   : > { %v4042_v22 = vrot.slane %v4041_v13, 4  ;;  %v3669_v30 = vrot.slane %v3655_v25, %v10231_v18  ;;  %v3670_v49 = vcombine.high %v3662_v32, %v3662_v32  ;;  %v4069_v58 = vsel %vm3872_vm1, %v3662_v32, -inf  ;;  %5495 = vmatprep.subr.bf16.mxu1 %v11873_v16 }
 0x2da   : > { %v3654_v44 = vcombine.high %v3652_v57, %v3652_v57  ;;  %v4048_v41 = vsel %vm3872_vm1, %v3653_v8, -inf  ;;  %v4055_v10 = vsel %vm3872_vm1, %v3652_v57, -inf  ;;  %v4070_v12 = vrot.slane %v4069_v58, 4  ;;  %7715 = vmatpush3.bf16.msra.mxu0 %v7902_v35 }
 0x2db   : > { %v4043_v62 = vmax.f32 %v4041_v13, %v4042_v22  ;;  %v4049_v11 = vrot.slane %v4048_v41, 4  ;;  %v4056_v24 = vrot.slane %v4055_v10, 4  ;;  %v3671_v33 = vcombine.high %v3669_v30, %v3669_v30  ;;  %v10498_v59 = vpop.f32.mrb[36].mxu1  ;;  %7716 = vmatprep.subr.bf16.mxu0 %v7904_v63  ;;  %v7908_v63 = vld [vmem:[%s11749_s2 + $0x108] sm:$0xff]  }
 0x2dc   : > { %v4062_v17 = vsel %vm3872_vm1, %v3654_v44, -inf  ;;  %v4071_v48 = vmax.f32 %v4069_v58, %v4070_v12  ;;  %v4076_v51 = vsel %vm3872_vm1, %v3670_v49, -inf  ;;  %v4083_v5 = vsel %vm3872_vm1, %v3669_v30, -inf  ;;  %v3355_v36 = vpop.f32.mrb[37].mxu1  ;;  %v7906_v49 = vld [vmem:[%s11749_s2 + $0x168] sm:$0xff]  }
 0x2dd   : > { %v4044_v27 = vrot.slane %v4043_v62, 2  ;;  %v4050_v37 = vmax.f32 %v4048_v41, %v4049_v11  ;;  %v4057_v60 = vmax.f32 %v4055_v10, %v4056_v24  ;;  %v4063_v53 = vrot.slane %v4062_v17, 4  ;;  %v10507_v42 = vpop.f32.mrb[38].mxu1  ;;  %v7907_v12 = vld [vmem:[%s11749_s2 + $0x148] sm:$0xff]   ;;  %5496 = vmatpush1.bf16.msra.mxu1 %v7906_v49 }
 0x2de   : > { %v4072_v56 = vrot.slane %v4071_v48, 2  ;;  %v4077_v54 = vrot.slane %v4076_v51, 4  ;;  %v4084_v52 = vrot.slane %v4083_v5, 4  ;;  %v4090_v45 = vsel %vm3872_vm1, %v3671_v33, -inf  ;;  %v3358_v31 = vpop.f32.mrb[39].mxu1  ;;  %7717 = vmatpush3.bf16.msra.mxu0 %v7905_v15  ;;  %5497 = vmatprep.subr.bf16.mxu1 %v11873_v16 }
 0x2df   : > { %v4045_v55 = vmax.f32 %v4043_v62, %v4044_v27  ;;  %v4051_v14 = vrot.slane %v4050_v37, 2  ;;  %v4058_v26 = vrot.slane %v4057_v60, 2  ;;  %v4064_v2 = vmax.f32 %v4062_v17, %v4063_v53  ;;  %7718 = vmatprep.subr.bf16.mxu0 %v7907_v12  ;;  %v7909_v53 = vld [vmem:[%s11749_s2 + $0x170] sm:$0xff]  }
 0x2e0   : > { %v4073_v43 = vmax.f32 %v4071_v48, %v4072_v56  ;;  %v4078_v25 = vmax.f32 %v4076_v51, %v4077_v54  ;;  %v4085_v32 = vmax.f32 %v4083_v5, %v4084_v52  ;;  %v4091_v47 = vrot.slane %v4090_v45, 4  ;;  %v7910_v31 = vld [vmem:[%s11749_s2 + $0x150] sm:$0xff]  }
 0x2e1   : > { %v10513_v9 = vpop.f32.mrb[40].mxu0  ;;  %v4046_v57 = vrot.slane %v4045_v55, 1  ;;  %v4052_v8 = vmax.f32 %v4050_v37, %v4051_v14  ;;  %v4059_v13 = vmax.f32 %v4057_v60, %v4058_v26  ;;  %v4065_v22 = vrot.slane %v4064_v2, 2  ;;  %5498 = vmatpush1.bf16.msra.mxu1 %v7909_v53 }
 0x2e2   : > { %v10515_v30 = vpop.f32.mrb[41].mxu0  ;;  %v4074_v58 = vrot.slane %v4073_v43, 1  ;;  %v4079_v46 = vrot.slane %v4078_v25, 2  ;;  %v4086_v44 = vrot.slane %v4085_v32, 2  ;;  %v4092_v41 = vmax.f32 %v4090_v45, %v4091_v47  ;;  %7719 = vmatpush3.bf16.msra.mxu0 %v7908_v63  ;;  %5499 = vmatprep.subr.bf16.mxu1 %v11873_v16 }
 0x2e3   : > { %v10520_v10 = vpop.f32.mrb[42].mxu0  ;;  %v4047_v35 = vmax.f32 %v4045_v55, %v4046_v57  ;;  %v4053_v62 = vrot.slane %v4052_v8, 1  ;;  %v4060_v11 = vrot.slane %v4059_v13, 1  ;;  %v4066_v24 = vmax.f32 %v4064_v2, %v4065_v22  ;;  %7720 = vmatprep.subr.bf16.mxu0 %v7910_v31 }
 0x2e4   : > { %v10525_v33 = vpop.f32.mrb[43].mxu0  ;;  %v4075_v17 = vmax.f32 %v4073_v43, %v4074_v58  ;;  %v4080_v48 = vmax.f32 %v4078_v25, %v4079_v46  ;;  %v4087_v51 = vmax.f32 %v4085_v32, %v4086_v44  ;;  %v4093_v5 = vrot.slane %v4092_v41, 2  ;;  %v7911_v43 = vld [vmem:[%s11749_s2 + $0x110] sm:$0xff]   ;;  %v7912_v44 = vld [vmem:[%s11749_s2 + $0x178] sm:$0xff]  }
 0x2e5   : > { %v4054_v36 = vmax.f32 %v4052_v8, %v4053_v62  ;;  %v4061_v27 = vmax.f32 %v4059_v13, %v4060_v11  ;;  %v4067_v37 = vrot.slane %v4066_v24, 1  ;;  %v4543_v60 = vpack.c.bf16 %v4047_v35, %v4047_v35  ;;  %5500 = vmatpush1.bf16.msra.mxu1 %v7912_v44 }
 0x2e6   : > { %v4081_v56 = vrot.slane %v4080_v48, 1  ;;  %v4088_v54 = vrot.slane %v4087_v51, 1  ;;  %v4094_v52 = vmax.f32 %v4092_v41, %v4093_v5  ;;  %v4547_v45 = vpack.c.bf16 %v4075_v17, %v4075_v17  ;;  %7721 = vmatpush3.bf16.msra.mxu0 %v7911_v43  ;;  %5501 = vmatprep.subr.bf16.mxu1 %v11873_v16  ;;  %v7914_v43 = vld [vmem:[%s11749_s2 + $0x188] sm:$0xff]  }
 0x2e7   : > { %v4068_v15 = vmax.f32 %v4066_v24, %v4067_v37  ;;  %v4413_v55 = vsel %vm4385_vm2, %v4054_v36, %v4047_v35  ;;  %v4544_v14 = vpack.c.bf16 %v4054_v36, %v4054_v36  ;;  %v4545_v26 = vpack.c.bf16 %v4061_v27, %v4061_v27 }
 0x2e8   : > { %v10538_v2 = vpop.f32.mrb[40].mxu1  ;;  %v4414_v25 = vsel %vm4387_vm7, %v4061_v27, %v4413_v55  ;;  %v4671_v32 = vunpack.c.l.b16 %v4543_v60  ;;  %v4082_v47 = vmax.f32 %v4080_v48, %v4081_v56  ;;  %v4792_v57 = vrot.slane %v4790_v3, 7 }
 0x2e9   : > { %v3363_v8 = vpop.f32.mrb[41].mxu1  ;;  %v4546_v13 = vpack.c.bf16 %v4068_v15, %v4068_v15  ;;  %v4672_v22 = vunpack.c.l.b16 %v4544_v14  ;;  %v4673_v49 = vunpack.c.l.b16 %v4545_v26  ;;  %v4095_v58 = vrot.slane %v4094_v52, 1 }
 0x2ea   : > { %v10548_v46 = vpop.f32.mrb[42].mxu1  ;;  %v4089_v41 = vmax.f32 %v4087_v51, %v4088_v54  ;;  %v4415_v12 = vsel %vm4389_vm8, %v4068_v15, %v4414_v25  ;;  %v4548_v35 = vpack.c.bf16 %v4082_v47, %v4082_v47  ;;  %v4793_v3 = vshll.u32 %v10448_v28, 16 }
 0x2eb   : > { %v3366_v62 = vpop.f32.mrb[43].mxu1  ;;  %v4674_v11 = vunpack.c.l.b16 %v4546_v13  ;;  %v4732_v24 = vsel %vm4385_vm2, %v4672_v22, %v4671_v32  ;;  %v4416_v63 = vsel %vm4391_vm11, %v4075_v17, %v4415_v12  ;;  %v4675_v48 = vunpack.c.l.b16 %v4547_v45  ;;  %v7913_v17 = vld [vmem:[%s11749_s2 + $0x180] sm:$0xff]  }
 0x2ec   : > { %v4733_v5 = vsel %vm4387_vm7, %v4673_v49, %v4732_v24  ;;  %v4096_v36 = vmax.f32 %v4094_v52, %v4095_v58  ;;  %v4417_v51 = vsel %vm4393_vm12, %v4082_v47, %v4416_v63  ;;  %v4676_v27 = vunpack.c.l.b16 %v4548_v35  ;;  %5502 = vmatpush1.bf16.msra.mxu1 %v7913_v17  ;;  %v7915_v35 = vld [vmem:[%s11749_s2 + $0x190] sm:$0xff]  }
 0x2ed   : > { %v4418_v28 = vsel %vm4395_vm0, %v4089_v41, %v4417_v51  ;;  %v4734_v37 = vsel %vm4389_vm8, %v4674_v11, %v4733_v5  ;;  %v4795_v60 = vor.u32 %v4793_v3, %v4792_v57  ;;  %v3193_v53 = vadd.f32 %v10469_v50, %v10198_v4  ;;  %5503 = vmatprep.subr.bf16.mxu1 %v11873_v16 }
 0x2ee   : > { %v4419_v56 = vsel %vm4397_vm9, %v4096_v36, %v4418_v28  ;;  %v4735_v54 = vsel %vm4391_vm11, %v4675_v48, %v4734_v37  ;;  %v3196_v52 = vadd.f32 %v10485_v20, %v10198_v4  ;;  %v7672_v45 = vadd.f32 %v10515_v30, %v10513_v9  ;;  %v7916_v28 = vld [vmem:[%s11749_s2 + $0x198] sm:$0xff]  }
 0x2ef   : > { %4459 = vst.msk [vmem:[%s10271_s10 + $0x18] sm:$0xff] %vm2593_vm10, %v4419_v56  ;;  %v4549_v31 = vpack.c.bf16 %v4089_v41, %v4089_v41  ;;  %v4841_v50 = vsel %vm8416_vm4, 0, %v4795_v60  ;;  %v3354_v15 = vadd.f32 %v10498_v59, %v3193_v53  ;;  %v7675_v55 = vadd.f32 %v10525_v33, %v10520_v10 }
 0x2f0   : > { %v10582_v14 = vsel %vm10134_vm6, %v4841_v50, 0  ;;  %v3357_v20 = vadd.f32 %v10507_v42, %v3196_v52  ;;  %v3201_v9 = vadd.f32 %v7672_v45, %v10198_v4  ;;  %v4736_v30 = vsel %vm4393_vm12, %v4676_v27, %v4735_v54  ;;  %v7676_v26 = vpop.f32.mrb[44].mxu0  ;;  %5504 = vmatpush1.bf16.msra.mxu1 %v7914_v43 }
 0x2f1   : > { %4968 = vrot.lane.b32.xlu1 %v10582_v14, %s11806_s17  ;;  %5022 = vrot.lane.b32.xlu0 %v10582_v14, %s11808_s26  ;;  %v4942_v59 = vrot.slane %v10582_v14, 1  ;;  %v4883_v10 = vshll.u32 %v10582_v14, 16  ;;  %vm3426_vm3 = vcmp.gt.f32.partialorder %v3354_v15, 0.0  ;;  %v4550_v33 = vpack.c.bf16 %v4096_v36, %v4096_v36  ;;  %v7677_v42 = vpop.f32.mrb[45].mxu0 }
 0x2f2   : > { %v3458_v25 = vmul.f32 0.01, %v3354_v15  ;;  %vm3427_vm5 = vcmp.gt.f32.partialorder %v3357_v20, 0.0  ;;  %v3459_v32 = vmul.f32 0.01, %v3357_v20  ;;  %v10598_v47 = vadd.f32 %v10538_v2, %v3201_v9  ;;  %v7679_v57 = vpop.f32.mrb[46].mxu0  ;;  %5505 = vmatprep.subr.bf16.mxu1 %v11873_v16 }
 0x2f3   : > { %v3489_v8 = vsel %vm3425_vm15, %v10439_v0, %v10467_v21  ;;  %v7370_v13 = vcombine.low %v10406_v29, %v4942_v59  ;;  %v4885_v22 = vrot.slane %v4883_v10, 1  ;;  %v3204_v49 = vadd.f32 %v7675_v55, %v10198_v4  ;;  %v7680_v58 = vpop.f32.mrb[47].mxu0  ;;  %v7917_v9 = vld [vmem:[%s11749_s2 + $0x1a0] sm:$0xff]  }
 0x2f4   : > { %v4677_v44 = vunpack.c.l.b16 %v4549_v31  ;;  %v4881_v41 = vshrl.u32 %v10582_v14, 16  ;;  %v3490_v12 = vsel %vm3426_vm3, %v3354_v15, %v3458_v25  ;;  %v3491_v2 = vsel %vm3427_vm5, %v3357_v20, %v3459_v32  ;;  %5506 = vmatpush1.bf16.msra.mxu1 %v7915_v35 }
 0x2f5   : > { %5008 = vrot.lane.b32.xlu1 %v4942_v59, %s11804_s11  ;;  %4953 = vrot.lane.b32.xlu0 %v4942_v59, %s11874_s13  ;;  %v3512_v0 = vmax.f32 %v10477_v38, %v3490_v12  ;;  %v3513_v29 = vmax.f32 %v3489_v8, %v3491_v2  ;;  %v4678_v21 = vunpack.c.l.b16 %v4550_v33  ;;  %v10617_v62 = vadd.f32 %v10548_v46, %v3204_v49 }
 0x2f6   : > { %7410 = vmatprep.mubr.msk.bf16.mxu1 %vm2593_vm10, %v7370_v13  ;;  %v4886_v3 = vor.u32 %v4885_v22, %v4881_v41  ;;  %v4737_v11 = vsel %vm4395_vm0, %v4677_v44, %v4736_v30  ;;  %v10620_v24 = vadd.f32 %v7677_v42, %v7676_v26  ;;  %v10629_v27 = vadd.f32 %v7680_v58, %v7679_v57 }
 0x2f7   : > { %v3672_v63 = vcombine.high %v3512_v0, %v3512_v0  ;;  %v3679_v48 = vrot.slane %v3512_v0, %v10231_v18  ;;  %v3689_v38 = vcombine.high %v3513_v29, %v3513_v29  ;;  %v3696_v5 = vrot.slane %v3513_v29, %v10231_v18  ;;  %v10624_v36 = vpop.f32.mrb[44].mxu1  ;;  %5507 = vmatprep.subr.bf16.mxu1 %v11873_v16  ;;  %v7918_v29 = vld [vmem:[%s11749_s2 + $0x1a8] sm:$0xff]  }
 0x2f8   : > { %v10627_v51 = vsel %vm4397_vm9, %v4678_v21, %v4737_v11  ;;  %v3371_v46 = vpop.f32.mrb[45].mxu1  ;;  %5508 = vmatpush1.bf16.msra.mxu1 %v7916_v28  ;;  %vm3428_vm14 = vcmp.gt.f32.partialorder %v10598_v47, 0.0  ;;  %vm3429_vm15 = vcmp.gt.f32.partialorder %v10617_v62, 0.0 }
 0x2f9   : > { %4991 = vrot.lane.b32.xlu1 %v4886_v3, %s11875_s29  ;;  %5038 = vrot.lane.b32.xlu0 %v4886_v3, %s11876_s18  ;;  %v3686_v37 = vrot.slane %v3672_v63, %v10231_v18  ;;  %v3687_v60 = vcombine.high %v3679_v48, %v3679_v48  ;;  %v4097_v53 = vsel %vm3872_vm1, %v3679_v48, -inf  ;;  %v3703_v17 = vrot.slane %v3689_v38, %v10231_v18  ;;  %v10640_v56 = vpop.f32.mrb[46].mxu1 }
 0x2fa   : > { %v4098_v54 = vrot.slane %v4097_v53, 4  ;;  %v3704_v52 = vcombine.high %v3696_v5, %v3696_v5  ;;  %v4125_v45 = vsel %vm3872_vm1, %v3696_v5, -inf  ;;  %v3374_v31 = vpop.f32.mrb[47].mxu1  ;;  %5509 = vmatprep.subr.bf16.mxu1 %v11873_v16 }
 0x2fb   : > { %v3688_v50 = vcombine.high %v3686_v37, %v3686_v37  ;;  %v4104_v15 = vsel %vm3872_vm1, %v3687_v60, -inf  ;;  %v4111_v55 = vsel %vm3872_vm1, %v3686_v37, -inf  ;;  %v3705_v20 = vcombine.high %v3703_v17, %v3703_v17 }
 0x2fc   : > { %v4099_v30 = vmax.f32 %v4097_v53, %v4098_v54  ;;  %v4105_v26 = vrot.slane %v4104_v15, 4  ;;  %v4112_v59 = vrot.slane %v4111_v55, 4  ;;  %v4126_v10 = vrot.slane %v4125_v45, 4  ;;  %5510 = vmatpush1.bf16.msra.mxu1 %v7917_v9  ;;  %v10666_v53 = vpop.permute.xlu1 %4947 }
 0x2fd   : > { %v10648_v33 = vpop.f32.mrb[48].mxu0  ;;  %v4118_v42 = vsel %vm3872_vm1, %v3688_v50, -inf  ;;  %4921 = vrot.lane.b32.xlu0 %v4886_v3, %s11802_s19  ;;  %v4132_v43 = vsel %vm3872_vm1, %v3704_v52, -inf  ;;  %v4139_v25 = vsel %vm3872_vm1, %v3703_v17, -inf  ;;  %v4146_v32 = vsel %vm3872_vm1, %v3705_v20, -inf  ;;  %5511 = vmatprep.subr.bf16.mxu1 %v11873_v16 }
 0x2fe   : > { %v10656_v57 = vpop.f32.mrb[49].mxu0  ;;  %v4100_v8 = vrot.slane %v4099_v30, 2  ;;  %v4106_v13 = vmax.f32 %v4104_v15, %v4105_v26  ;;  %v4113_v22 = vmax.f32 %v4111_v55, %v4112_v59  ;;  %v4119_v49 = vrot.slane %v4118_v42, 4 }
 0x2ff   : > { %v10658_v58 = vpop.f32.mrb[50].mxu0  ;;  %v4127_v44 = vmax.f32 %v4125_v45, %v4126_v10  ;;  %v4133_v41 = vrot.slane %v4132_v43, 4  ;;  %v4140_v12 = vrot.slane %v4139_v25, 4  ;;  %v4147_v2 = vrot.slane %v4146_v32, 4 }
 0x300   : > { %v10660_v0 = vpop.f32.mrb[51].mxu0  ;;  %v4101_v21 = vmax.f32 %v4099_v30, %v4100_v8  ;;  %v4107_v35 = vrot.slane %v4106_v13, 2  ;;  %v4114_v3 = vrot.slane %v4113_v22, 2  ;;  %v4120_v11 = vmax.f32 %v4118_v42, %v4119_v49  ;;  %5512 = vmatpush1.bf16.msra.mxu1 %v7918_v29 }
 0x301   : > { %v4128_v63 = vrot.slane %v4127_v44, 2  ;;  %v4134_v48 = vmax.f32 %v4132_v43, %v4133_v41  ;;  %v4141_v38 = vmax.f32 %v4139_v25, %v4140_v12  ;;  %v4148_v5 = vmax.f32 %v4146_v32, %v4147_v2  ;;  %6470 = vmatprep.subr.bf16.mxu1 %v11873_v16 }
 0x302   : > { %v4102_v46 = vrot.slane %v4101_v21, 1  ;;  %v4108_v28 = vmax.f32 %v4106_v13, %v4107_v35  ;;  %v4115_v37 = vmax.f32 %v4113_v22, %v4114_v3  ;;  %v4121_v60 = vrot.slane %v4120_v11, 2 }
 0x303   : > { %v4129_v17 = vmax.f32 %v4127_v44, %v4128_v63  ;;  %v4135_v54 = vrot.slane %v4134_v48, 2  ;;  %v4142_v52 = vrot.slane %v4141_v38, 2  ;;  %v4149_v45 = vrot.slane %v4148_v5, 2 }
 0x304   : > { %v10668_v31 = vpop.f32.mrb[48].mxu1  ;;  %v4103_v50 = vmax.f32 %v4101_v21, %v4102_v46  ;;  %v4109_v15 = vrot.slane %v4108_v28, 1  ;;  %v4116_v55 = vrot.slane %v4115_v37, 1  ;;  %v4122_v20 = vmax.f32 %v4120_v11, %v4121_v60  ;;  %v4916_v21 = vpop.permute.xlu1 %4915 }
 0x305   : > { %v3379_v9 = vpop.f32.mrb[49].mxu1  ;;  %v4130_v30 = vrot.slane %v4129_v17, 1  ;;  %v4136_v26 = vmax.f32 %v4134_v48, %v4135_v54  ;;  %v4143_v59 = vmax.f32 %v4141_v38, %v4142_v52  ;;  %v4150_v10 = vmax.f32 %v4148_v5, %v4149_v45 }
 0x306   : > { %v10671_v42 = vpop.f32.mrb[50].mxu1  ;;  %v4110_v43 = vmax.f32 %v4108_v28, %v4109_v15  ;;  %v4117_v25 = vmax.f32 %v4115_v37, %v4116_v55  ;;  %v4123_v32 = vrot.slane %v4122_v20, 1  ;;  %v4551_v8 = vpack.c.bf16 %v4103_v50, %v4103_v50 }
 0x307   : > { %v3382_v13 = vpop.f32.mrb[51].mxu1  ;;  %v4131_v22 = vmax.f32 %v4129_v17, %v4130_v30  ;;  %v4137_v49 = vrot.slane %v4136_v26, 1  ;;  %v4144_v44 = vrot.slane %v4143_v59, 1  ;;  %v4151_v3 = vrot.slane %v4150_v10, 1 }
 0x308   : > { %v4124_v41 = vmax.f32 %v4122_v20, %v4123_v32  ;;  %v4420_v12 = vsel %vm4385_vm2, %v4110_v43, %v4103_v50  ;;  %v4552_v2 = vpack.c.bf16 %v4110_v43, %v4110_v43  ;;  %v4553_v29 = vpack.c.bf16 %v4117_v25, %v4117_v25 }
 0x309   : > { %v4421_v35 = vsel %vm4387_vm7, %v4117_v25, %v4420_v12  ;;  %v10677_v11 = vsel %vm2593_vm10, %v10142_v6, %v4916_v21  ;;  %v4679_v48 = vunpack.c.l.b16 %v4551_v8  ;;  %v4138_v46 = vmax.f32 %v4136_v26, %v4137_v49 }
 0x30a   : > { %v4554_v63 = vpack.c.bf16 %v4124_v41, %v4124_v41  ;;  %v4680_v38 = vunpack.c.l.b16 %v4552_v2  ;;  %v4681_v5 = vunpack.c.l.b16 %v4553_v29  ;;  %v4145_v28 = vmax.f32 %v4143_v59, %v4144_v44 }
 0x30b   : > { %v4422_v37 = vsel %vm4389_vm8, %v4124_v41, %v4421_v35  ;;  %v4555_v60 = vpack.c.bf16 %v4131_v22, %v4131_v22  ;;  %v4770_v45 = vpack.c.b16 %v10627_v51, %v10627_v51  ;;  %v10687_v55 = vmax.f32 %v4150_v10, %v4151_v3 }
 0x30c   : > { %v4682_v17 = vunpack.c.l.b16 %v4554_v63  ;;  %v4739_v54 = vsel %vm4385_vm2, %v4680_v38, %v4679_v48  ;;  %v4423_v52 = vsel %vm4391_vm11, %v4131_v22, %v4422_v37  ;;  %v10684_v50 = vpop.f32.mrb[52].mxu0  ;;  %v3209_v8 = vadd.f32 %v10620_v24, %v10198_v4 }
 0x30d   : > { %v4740_v15 = vsel %vm4387_vm7, %v4681_v5, %v4739_v54  ;;  %v4424_v20 = vsel %vm4393_vm12, %v4138_v46, %v4423_v52  ;;  %v4683_v9 = vunpack.c.l.b16 %v4555_v60  ;;  %v10690_v30 = vpop.f32.mrb[53].mxu0  ;;  %v4797_v43 = vshrl.u32 %v4770_v45, 16  ;;  %v4965_v60 = vpop.permute.xlu1 %4964 }
 0x30e   : > { %v4425_v26 = vsel %vm4395_vm0, %v4145_v28, %v4424_v20  ;;  %v4741_v59 = vsel %vm4389_vm8, %v4682_v17, %v4740_v15  ;;  %v10695_v51 = vpop.f32.mrb[54].mxu0  ;;  %v4800_v32 = vshll.u32 %v4770_v45, 16  ;;  %v3212_v49 = vadd.f32 %v10629_v27, %v10198_v4 }
 0x30f   : > { %v4426_v25 = vsel %vm4397_vm9, %v10687_v55, %v4425_v26  ;;  %v10700_v10 = vsel %vm4391_vm11, %v4683_v9, %v4741_v59  ;;  %v10704_v13 = vpop.f32.mrb[55].mxu0  ;;  %v4799_v22 = vrot.slane %v4797_v43, 7  ;;  %v7684_v44 = vadd.f32 %v10656_v57, %v10648_v33 }
 0x310   : > { %4460 = vst.msk [vmem:[%s10271_s10 + $0x20] sm:$0xff] %vm2593_vm10, %v4426_v25  ;;  %v7687_v41 = vadd.f32 %v10660_v0, %v10658_v58  ;;  %v3460_v12 = vmul.f32 0.01, %v10598_v47  ;;  %v3461_v24 = vmul.f32 0.01, %v10617_v62  ;;  %v3370_v2 = vadd.f32 %v10624_v36, %v3209_v8 }
 0x311   : > { %v4802_v29 = vor.u32 %v4800_v32, %v4799_v22  ;;  %v3373_v21 = vadd.f32 %v10640_v56, %v3212_v49  ;;  %v3217_v35 = vadd.f32 %v7684_v44, %v10198_v4  ;;  %v4556_v3 = vpack.c.bf16 %v4138_v46, %v4138_v46 }
 0x312   : > { %v3220_v27 = vadd.f32 %v7687_v41, %v10198_v4  ;;  %v4557_v33 = vpack.c.bf16 %v4145_v28, %v4145_v28  ;;  %vm3430_vm3 = vcmp.gt.f32.partialorder %v3370_v2, 0.0  ;;  %v3462_v57 = vmul.f32 0.01, %v3370_v2 }
 0x313   : > { %v10721_v58 = vpop.f32.mrb[52].mxu1  ;;  %v4842_v0 = vsel %vm8416_vm4, 0, %v4802_v29  ;;  %vm3431_vm5 = vcmp.gt.f32.partialorder %v3373_v21, 0.0  ;;  %v3463_v63 = vmul.f32 0.01, %v3373_v21  ;;  %v10726_v36 = vadd.f32 %v10668_v31, %v3217_v35 }
 0x314   : > { %v3387_v48 = vpop.f32.mrb[53].mxu1  ;;  %v3492_v56 = vsel %vm3428_vm14, %v10598_v47, %v3460_v12  ;;  %v10733_v38 = vsel %vm10134_vm6, %v4842_v0, 0  ;;  %v3494_v5 = vsel %vm3430_vm3, %v3370_v2, %v3462_v57  ;;  %v10736_v46 = vadd.f32 %v10671_v42, %v3220_v27 }
 0x315   : > { %11877 = vst [vmem:[#allocation11_spill] sm:$0xff] %v10733_v38  ;;  %v10738_v28 = vpop.f32.mrb[54].mxu1  ;;  %v3493_v31 = vsel %vm3429_vm15, %v10617_v62, %v3461_v24  ;;  %5024 = vrot.lane.b32.xlu1 %v10733_v38, %s11808_s26  ;;  %4970 = vrot.lane.b32.xlu0 %v10733_v38, %s11806_s17  ;;  %v4890_v47 = vshll.u32 %v10733_v38, 16  ;;  %v3514_v37 = vmax.f32 %v3492_v56, %v3494_v5  ;;  %v4684_v54 = vunpack.c.l.b16 %v4556_v3 }
 0x316   : > { %v4558_v42 = vpack.c.bf16 %v10687_v55, %v10687_v55  ;;  %v3390_v17 = vpop.f32.mrb[55].mxu1  ;;  %v4685_v52 = vunpack.c.l.b16 %v4557_v33  ;;  %v10751_v45 = vrot.slane %v10733_v38, 1  ;;  %v3495_v62 = vsel %vm3431_vm5, %v3373_v21, %v3463_v63 }
 0x317   : > { %v4892_v15 = vrot.slane %v4890_v47, 1  ;;  %v3706_v20 = vcombine.high %v3514_v37, %v3514_v37  ;;  %v3713_v9 = vrot.slane %v3514_v37, %v10231_v18  ;;  %v3515_v26 = vmax.f32 %v3493_v31, %v3495_v62 }
 0x318   : > { %v4888_v43 = vshrl.u32 %v10733_v38, 16  ;;  %v10760_v55 = vsel %vm11801_vm13, %v10666_v53, %v4965_v60  ;;  %v10763_v25 = vmul.f32 0.01, %v10726_v36  ;;  %v10766_v32 = vmul.f32 0.01, %v10736_v46 }
 0x319   : > { %v10755_v59 = vpop.f32.mrb[56].mxu0  ;;  %4955 = vrot.lane.b32.xlu1 %v10751_v45, %s11874_s13  ;;  %5010 = vrot.lane.b32.xlu0 %v10751_v45, %s11804_s11  ;;  %v3720_v22 = vrot.slane %v3706_v20, %v10231_v18  ;;  %v3721_v49 = vcombine.high %v3713_v9, %v3713_v9  ;;  %v4153_v44 = vsel %vm3872_vm1, %v3713_v9, -inf  ;;  %v10776_v41 = vunpack.c.l.b16 %v4558_v42 }
 0x31a   : > { %v10768_v8 = vpop.f32.mrb[57].mxu0  ;;  %v4893_v24 = vor.u32 %v4892_v15, %v4888_v43  ;;  %v4154_v2 = vrot.slane %v4153_v44, 4  ;;  %v3723_v29 = vcombine.high %v3515_v26, %v3515_v26  ;;  %v3730_v21 = vrot.slane %v3515_v26, %v10231_v18 }
 0x31b   : > { %v10778_v12 = vpop.f32.mrb[58].mxu0  ;;  %v3722_v27 = vcombine.high %v3720_v22, %v3720_v22  ;;  %v4160_v3 = vsel %vm3872_vm1, %v3721_v49, -inf  ;;  %v4167_v33 = vsel %vm3872_vm1, %v3720_v22, -inf  ;;  %v4743_v57 = vsel %vm4393_vm12, %v4684_v54, %v10700_v10 }
 0x31c   : > { %v10781_v35 = vpop.f32.mrb[59].mxu0  ;;  %v4155_v0 = vmax.f32 %v4153_v44, %v4154_v2  ;;  %v4161_v63 = vrot.slane %v4160_v3, 4  ;;  %v4168_v48 = vrot.slane %v4167_v33, 4  ;;  %v3737_v56 = vrot.slane %v3723_v29, %v10231_v18 }
 0x31d   : > { %5040 = vrot.lane.b32.xlu1 %v4893_v24, %s11876_s18  ;;  %4993 = vrot.lane.b32.xlu0 %v4893_v24, %s11875_s29  ;;  %v4174_v5 = vsel %vm3872_vm1, %v3722_v27, -inf  ;;  %v3738_v31 = vcombine.high %v3730_v21, %v3730_v21  ;;  %v4181_v47 = vsel %vm3872_vm1, %v3730_v21, -inf  ;;  %v10793_v37 = vsel %vm4395_vm0, %v4685_v52, %v4743_v57 }
 0x31e   : > { %v4156_v60 = vrot.slane %v4155_v0, 2  ;;  %v4162_v42 = vmax.f32 %v4160_v3, %v4161_v63  ;;  %v4169_v10 = vmax.f32 %v4167_v33, %v4168_v48  ;;  %v4175_v17 = vrot.slane %v4174_v5, 4 }
 0x31f   : > { %v3739_v62 = vcombine.high %v3737_v56, %v3737_v56  ;;  %v4182_v15 = vrot.slane %v4181_v47, 4  ;;  %v4188_v20 = vsel %vm3872_vm1, %v3738_v31, -inf  ;;  %v4195_v9 = vsel %vm3872_vm1, %v3737_v56, -inf }
 0x320   : > { %v10795_v54 = vpop.f32.mrb[56].mxu1  ;;  %v4157_v43 = vmax.f32 %v4155_v0, %v4156_v60  ;;  %v4163_v22 = vrot.slane %v4162_v42, 2  ;;  %v4170_v49 = vrot.slane %v4169_v10, 2  ;;  %v4176_v44 = vmax.f32 %v4174_v5, %v4175_v17 }
 0x321   : > { %v3395_v26 = vpop.f32.mrb[57].mxu1  ;;  %4923 = vrot.lane.b32.xlu1 %v4893_v24, %s11802_s19  ;;  %v4183_v52 = vmax.f32 %v4181_v47, %v4182_v15  ;;  %v4189_v29 = vrot.slane %v4188_v20, 4  ;;  %v4196_v21 = vrot.slane %v4195_v9, 4  ;;  %v4202_v27 = vsel %vm3872_vm1, %v3739_v62, -inf }
 0x322   : > { %v10799_v2 = vpop.f32.mrb[58].mxu1  ;;  %v4158_v33 = vrot.slane %v4157_v43, 1  ;;  %v4164_v57 = vmax.f32 %v4162_v42, %v4163_v22  ;;  %v4171_v63 = vmax.f32 %v4169_v10, %v4170_v49  ;;  %v4177_v48 = vrot.slane %v4176_v44, 2 }
 0x323   : > { %v3398_v3 = vpop.f32.mrb[59].mxu1  ;;  %v4184_v56 = vrot.slane %v4183_v52, 2  ;;  %v4190_v31 = vmax.f32 %v4188_v20, %v4189_v29  ;;  %v4197_v0 = vmax.f32 %v4195_v9, %v4196_v21  ;;  %v4203_v60 = vrot.slane %v4202_v27, 4 }
 0x324   : > { %v4159_v26 = vmax.f32 %v4157_v43, %v4158_v33  ;;  %v4165_v5 = vrot.slane %v4164_v57, 1  ;;  %v4172_v17 = vrot.slane %v4171_v63, 1  ;;  %v4178_v1 = vmax.f32 %v4176_v44, %v4177_v48 }
 0x325   : > { %v4185_v16 = vmax.f32 %v4183_v52, %v4184_v56  ;;  %v4191_v24 = vrot.slane %v4190_v31, 2  ;;  %v4198_v47 = vrot.slane %v4197_v0, 2  ;;  %v4204_v15 = vmax.f32 %v4202_v27, %v4203_v60 }
 0x326   : > { %v4166_v40 = vmax.f32 %v4164_v57, %v4165_v5  ;;  %v4173_v19 = vmax.f32 %v4171_v63, %v4172_v17  ;;  %v4179_v62 = vrot.slane %v4178_v1, 1  ;;  %v4559_v3 = vpack.c.bf16 %v4159_v26, %v4159_v26 }
 0x327   : > { %v4186_v38 = vrot.slane %v4185_v16, 1  ;;  %v4192_v42 = vmax.f32 %v4190_v31, %v4191_v24  ;;  %v4199_v10 = vmax.f32 %v4197_v0, %v4198_v47  ;;  %v4205_v22 = vrot.slane %v4204_v15, 2 }
 0x328   : > { %v10803_v49 = vpop.f32.mrb[60].mxu0  ;;  %v4180_v20 = vmax.f32 %v4178_v1, %v4179_v62  ;;  %v4427_v9 = vsel %vm4385_vm2, %v4166_v40, %v4159_v26  ;;  %v4560_v43 = vpack.c.bf16 %v4166_v40, %v4166_v40  ;;  %v4561_v29 = vpack.c.bf16 %v4173_v19, %v4173_v19 }
 0x329   : > { %v10806_v44 = vpop.f32.mrb[61].mxu0  ;;  %v4428_v52 = vsel %vm4387_vm7, %v4173_v19, %v4427_v9  ;;  %v4687_v21 = vunpack.c.l.b16 %v4559_v3  ;;  %v4187_v27 = vmax.f32 %v4185_v16, %v4186_v38  ;;  %v4193_v33 = vrot.slane %v4192_v42, 1 }
 0x32a   : > { %v10809_v57 = vpop.f32.mrb[62].mxu0  ;;  %v4562_v63 = vpack.c.bf16 %v4180_v20, %v4180_v20  ;;  %v4688_v48 = vunpack.c.l.b16 %v4560_v43  ;;  %v4689_v56 = vunpack.c.l.b16 %v4561_v29  ;;  %v4200_v31 = vrot.slane %v4199_v10, 1  ;;  %v10826_v29 = vpop.permute.xlu0 %4949 }
 0x32b   : > { %v10811_v0 = vpop.f32.mrb[63].mxu0  ;;  %v10813_v1 = vpop.f32.mrb[60].mxu1  ;;  %v4194_v60 = vmax.f32 %v4192_v42, %v4193_v33  ;;  %v4206_v40 = vmax.f32 %v4204_v15, %v4205_v22  ;;  %v4429_v26 = vsel %vm4389_vm8, %v4180_v20, %v4428_v52  ;;  %v4563_v5 = vpack.c.bf16 %v4187_v27, %v4187_v27 }
 0x32c   : > { %v3403_v17 = vpop.f32.mrb[61].mxu1  ;;  %v4690_v19 = vunpack.c.l.b16 %v4562_v63  ;;  %v4746_v16 = vsel %vm4385_vm2, %v4688_v48, %v4687_v21  ;;  %v4201_v38 = vmax.f32 %v4199_v10, %v4200_v31  ;;  %v4430_v24 = vsel %vm4391_vm11, %v4187_v27, %v4429_v26  ;;  %v10828_v52 = vpop.permute.xlu1 %5004 }
 0x32d   : > { %vm3432_vm14 = vcmp.gt.f32.partialorder %v10726_v36, 0.0  ;;  %v10819_v47 = vpop.f32.mrb[62].mxu1  ;;  %v4747_v62 = vsel %vm4387_vm7, %v4689_v56, %v4746_v16  ;;  %v4207_v3 = vrot.slane %v4206_v40, 1  ;;  %v4431_v42 = vsel %vm4393_vm12, %v4194_v60, %v4430_v24 }
 0x32e   : > { %v4564_v15 = vpack.c.bf16 %v4194_v60, %v4194_v60  ;;  %vm3433_vm15 = vcmp.gt.f32.partialorder %v10736_v46, 0.0  ;;  %v3406_v22 = vpop.f32.mrb[63].mxu1  ;;  %v4432_v20 = vsel %vm4395_vm0, %v4201_v38, %v4431_v42  ;;  %v4565_v9 = vpack.c.bf16 %v4201_v38, %v4201_v38  ;;  %v4918_v38 = vpop.permute.xlu0 %4917 }
 0x32f   : > { %v4691_v43 = vunpack.c.l.b16 %v4563_v5  ;;  %v4748_v10 = vsel %vm4389_vm8, %v4690_v19, %v4747_v62  ;;  %v4208_v21 = vmax.f32 %v4206_v40, %v4207_v3  ;;  %v4745_v33 = vsel %vm4397_vm9, %v10776_v41, %v10793_v37 }
 0x330   : > { %v4692_v27 = vunpack.c.l.b16 %v4564_v15  ;;  %v7690_v63 = vadd.f32 %v10690_v30, %v10684_v50  ;;  %v4693_v48 = vunpack.c.l.b16 %v4565_v9  ;;  %v4771_v31 = vpack.c.b16 %v4745_v33, %v4745_v33 }
 0x331   : > { %v4749_v56 = vsel %vm4391_vm11, %v4691_v43, %v4748_v10  ;;  %v7693_v60 = vadd.f32 %v10704_v13, %v10695_v51  ;;  %v4433_v26 = vsel %vm4397_vm9, %v4208_v21, %v4432_v20  ;;  %v7696_v40 = vadd.f32 %v10768_v8, %v10755_v59  ;;  %v4988_v59 = vpop.permute.xlu1 %4987 }
 0x332   : > { %v3225_v5 = vadd.f32 %v7690_v63, %v10198_v4  ;;  %v7699_v41 = vadd.f32 %v10781_v35, %v10778_v12  ;;  %4461 = vst.msk [vmem:[%s10271_s10 + $0x28] sm:$0xff] %vm2593_vm10, %v4433_v26  ;;  %v4804_v50 = vshrl.u32 %v4771_v31, 16  ;;  %v4807_v30 = vshll.u32 %v4771_v31, 16 }
 0x333   : > { %v3228_v37 = vadd.f32 %v7693_v60, %v10198_v4  ;;  %v4566_v17 = vpack.c.bf16 %v4208_v21, %v4208_v21  ;;  %v3233_v51 = vadd.f32 %v7696_v40, %v10198_v4  ;;  %v4750_v16 = vsel %vm4393_vm12, %v4692_v27, %v4749_v56 }
 0x334   : > { %v3386_v19 = vadd.f32 %v10721_v58, %v3225_v5  ;;  %v3236_v13 = vadd.f32 %v7699_v41, %v10198_v4  ;;  %v4806_v8 = vrot.slane %v4804_v50, 7  ;;  %v4751_v24 = vsel %vm4395_vm0, %v4693_v48, %v4750_v16 }
 0x335   : > { %v3389_v12 = vadd.f32 %v10738_v28, %v3228_v37  ;;  %v4694_v35 = vunpack.c.l.b16 %v4566_v17  ;;  %v10854_v3 = vadd.f32 %v10795_v54, %v3233_v51  ;;  %v3496_v28 = vsel %vm3432_vm14, %v10726_v36, %v10763_v25 }
 0x336   : > { %vm3434_vm3 = vcmp.gt.f32.partialorder %v3386_v19, 0.0  ;;  %v3466_v62 = vmul.f32 0.01, %v3386_v19  ;;  %v10857_v58 = vadd.f32 %v10799_v2, %v3236_v13  ;;  %v4809_v42 = vor.u32 %v4807_v30, %v4806_v8 }
 0x337   : > { %vm3435_vm5 = vcmp.gt.f32.partialorder %v3389_v12, 0.0  ;;  %v3467_v15 = vmul.f32 0.01, %v3389_v12  ;;  %v4752_v22 = vsel %vm4397_vm9, %v4694_v35, %v4751_v24  ;;  %v5055_v20 = vsel %vm2593_vm10, %v10288_v34, %v4918_v38 }
 0x338   : > { %vm11878_vm13 = vcmask 523264   ;;  %v3498_v9 = vsel %vm3434_vm3, %v3386_v19, %v3466_v62  ;;  %v3497_v2 = vsel %vm3433_vm15, %v10736_v46, %v10766_v32  ;;  %v4843_v43 = vsel %vm8416_vm4, 0, %v4809_v42 }
 0x339   : > { %v5101_v54 = vsel %vm11878_vm13, %v10760_v55, %v4988_v59  ;;  %v3516_v10 = vmax.f32 %v3496_v28, %v3498_v9  ;;  %v3499_v21 = vsel %vm3435_vm5, %v3389_v12, %v3467_v15  ;;  %vm11879_vm14 = vcmask 785408  }
 0x33a   : > { %v10877_v36 = vsel %vm11879_vm14, %v10677_v11, %v10666_v53  ;;  %v10881_v34 = vsel %vm10134_vm6, %v4843_v43, 0  ;;  %v3517_v55 = vmax.f32 %v3497_v2, %v3499_v21  ;;  %v10883_v25 = vpack.c.b16 %v4752_v22, %v4752_v22  ;;  %vm11880_vm13 = vmmov %vm11879_vm14 }
 0x33b   : > { %v10887_v46 = vsel %vm11880_vm13, %v5055_v20, %v10826_v29  ;;  %vm11881_vm15 = vcmask 916480   ;;  %4972 = vrot.lane.b32.xlu1 %v10881_v34, %s11806_s17  ;;  %5026 = vrot.lane.b32.xlu0 %v10881_v34, %s11808_s26  ;;  %v4897_v53 = vshll.u32 %v10881_v34, 16  ;;  %v3740_v11 = vcombine.high %v3516_v10, %v3516_v10 }
 0x33c   : > { %v10891_v32 = vsel %vm11881_vm15, %v5101_v54, %v10828_v52  ;;  %v10899_v27 = vrot.slane %v10881_v34, 1  ;;  %v3747_v33 = vrot.slane %v3516_v10, %v10231_v18  ;;  %v3757_v63 = vcombine.high %v3517_v55, %v3517_v55 }
 0x33d   : > { %v3764_v48 = vrot.slane %v3517_v55, %v10231_v18  ;;  %v4895_v56 = vshrl.u32 %v10881_v34, 16  ;;  %v4899_v31 = vrot.slane %v4897_v53, 1  ;;  %v3754_v60 = vrot.slane %v3740_v11, %v10231_v18 }
 0x33e   : > { %v4811_v26 = vshrl.u32 %v10883_v25, 16  ;;  %v3755_v5 = vcombine.high %v3747_v33, %v3747_v33  ;;  %v4209_v40 = vsel %vm3872_vm1, %v3747_v33, -inf  ;;  %v3771_v41 = vrot.slane %v3757_v63, %v10231_v18 }
 0x33f   : > { %v3772_v50 = vcombine.high %v3764_v48, %v3764_v48  ;;  %5012 = vrot.lane.b32.xlu1 %v10899_v27, %s11804_s11  ;;  %4957 = vrot.lane.b32.xlu0 %v10899_v27, %s11874_s13  ;;  %v4900_v30 = vor.u32 %v4899_v31, %v4895_v56  ;;  %v3756_v37 = vcombine.high %v3754_v60, %v3754_v60  ;;  %v4210_v17 = vrot.slane %v4209_v40, 4  ;;  %v4967_v31 = vpop.permute.xlu0 %4966 }
 0x340   : > { %v4223_v19 = vsel %vm3872_vm1, %v3754_v60, -inf  ;;  %v4216_v51 = vsel %vm3872_vm1, %v3755_v5, -inf  ;;  %v3773_v16 = vcombine.high %v3771_v41, %v3771_v41  ;;  %v4237_v38 = vsel %vm3872_vm1, %v3764_v48, -inf }
 0x341   : > { %v4224_v13 = vrot.slane %v4223_v19, 4  ;;  %v4211_v59 = vmax.f32 %v4209_v40, %v4210_v17  ;;  %v4217_v8 = vrot.slane %v4216_v51, 4  ;;  %v4230_v12 = vsel %vm3872_vm1, %v3756_v37, -inf }
 0x342   : > { %v4238_v35 = vrot.slane %v4237_v38, 4  ;;  %v4231_v62 = vrot.slane %v4230_v12, 4  ;;  %v4244_v42 = vsel %vm3872_vm1, %v3772_v50, -inf  ;;  %v4251_v15 = vsel %vm3872_vm1, %v3771_v41, -inf }
 0x343   : > { %v4225_v24 = vmax.f32 %v4223_v19, %v4224_v13  ;;  %4995 = vrot.lane.b32.xlu1 %v4900_v30, %s11875_s29  ;;  %5042 = vrot.lane.b32.xlu0 %v4900_v30, %s11876_s18  ;;  %v4212_v22 = vrot.slane %v4211_v59, 2  ;;  %v4218_v28 = vmax.f32 %v4216_v51, %v4217_v8  ;;  %v4245_v54 = vrot.slane %v4244_v42, 4 }
 0x344   : > { %v4239_v20 = vmax.f32 %v4237_v38, %v4238_v35  ;;  %v4232_v2 = vmax.f32 %v4230_v12, %v4231_v62  ;;  %v4252_v43 = vrot.slane %v4251_v15, 4  ;;  %v4258_v10 = vsel %vm3872_vm1, %v3773_v16, -inf }
 0x345   : > { %v4226_v9 = vrot.slane %v4225_v24, 2  ;;  %v4213_v21 = vmax.f32 %v4211_v59, %v4212_v22  ;;  %v4219_v55 = vrot.slane %v4218_v28, 2  ;;  %v4246_v11 = vmax.f32 %v4244_v42, %v4245_v54  ;;  %v10922_v54 = vpop.permute.xlu0 %5006 }
 0x346   : > { %v4240_v53 = vrot.slane %v4239_v20, 2  ;;  %v4233_v63 = vrot.slane %v4232_v2, 2  ;;  %v4253_v48 = vmax.f32 %v4251_v15, %v4252_v43  ;;  %v4259_v56 = vrot.slane %v4258_v10, 4 }
 0x347   : > { %v4227_v33 = vmax.f32 %v4225_v24, %v4226_v9  ;;  %v4214_v60 = vrot.slane %v4213_v21, 1  ;;  %v4220_v5 = vmax.f32 %v4218_v28, %v4219_v55  ;;  %4925 = vrot.lane.b32.xlu0 %v4900_v30, %s11802_s19  ;;  %v4247_v41 = vrot.slane %v4246_v11, 2 }
 0x348   : > { %v4241_v40 = vmax.f32 %v4239_v20, %v4240_v53  ;;  %v4234_v37 = vmax.f32 %v4232_v2, %v4233_v63  ;;  %v4254_v17 = vrot.slane %v4253_v48, 2  ;;  %v4260_v19 = vmax.f32 %v4258_v10, %v4259_v56 }
 0x349   : > { %v4228_v50 = vrot.slane %v4227_v33, 1  ;;  %v4215_v51 = vmax.f32 %v4213_v21, %v4214_v60  ;;  %v4221_v13 = vrot.slane %v4220_v5, 1  ;;  %v4248_v38 = vmax.f32 %v4246_v11, %v4247_v41 }
 0x34a   : > { %v4242_v16 = vrot.slane %v4241_v40, 1  ;;  %v4235_v8 = vrot.slane %v4234_v37, 1  ;;  %v4255_v12 = vmax.f32 %v4253_v48, %v4254_v17  ;;  %v4261_v35 = vrot.slane %v4260_v19, 2 }
 0x34b   : > { %v4229_v59 = vmax.f32 %v4227_v33, %v4228_v50  ;;  %v4222_v24 = vmax.f32 %v4220_v5, %v4221_v13  ;;  %v4567_v62 = vpack.c.bf16 %v4215_v51, %v4215_v51  ;;  %v4249_v15 = vrot.slane %v4248_v38, 1 }
 0x34c   : > { %v4243_v42 = vmax.f32 %v4241_v40, %v4242_v16  ;;  %v4236_v22 = vmax.f32 %v4234_v37, %v4235_v8  ;;  %v4256_v28 = vrot.slane %v4255_v12, 1  ;;  %v4262_v20 = vmax.f32 %v4260_v19, %v4261_v35 }
 0x34d   : > { %v4569_v30 = vpack.c.bf16 %v4229_v59, %v4229_v59  ;;  %v4434_v9 = vsel %vm4385_vm2, %v4222_v24, %v4215_v51  ;;  %v4568_v2 = vpack.c.bf16 %v4222_v24, %v4222_v24  ;;  %v4695_v43 = vunpack.c.l.b16 %v4567_v62 }
 0x34e   : > { %v4250_v10 = vmax.f32 %v4248_v38, %v4249_v15  ;;  %v4435_v21 = vsel %vm4387_vm7, %v4229_v59, %v4434_v9  ;;  %v4570_v55 = vpack.c.bf16 %v4236_v22, %v4236_v22  ;;  %v4257_v11 = vmax.f32 %v4255_v12, %v4256_v28  ;;  %v4990_v38 = vpop.permute.xlu0 %4989 }
 0x34f   : > { %v4697_v53 = vunpack.c.l.b16 %v4569_v30  ;;  %vm3436_vm3 = vcmp.gt.f32.partialorder %v10854_v3, 0.0  ;;  %v4696_v33 = vunpack.c.l.b16 %v4568_v2  ;;  %v4263_v63 = vrot.slane %v4262_v20, 1 }
 0x350   : > { %v4436_v48 = vsel %vm4389_vm8, %v4236_v22, %v4435_v21  ;;  %v4571_v56 = vpack.c.bf16 %v4243_v42, %v4243_v42  ;;  %v4698_v60 = vunpack.c.l.b16 %v4570_v55  ;;  %v3468_v40 = vmul.f32 0.01, %v10854_v3 }
 0x351   : > { %v4437_v5 = vsel %vm4391_vm11, %v4243_v42, %v4436_v48  ;;  %vm3437_vm5 = vcmp.gt.f32.partialorder %v10857_v58, 0.0  ;;  %v4753_v41 = vsel %vm4385_vm2, %v4696_v33, %v4695_v43  ;;  %v4264_v50 = vmax.f32 %v4262_v20, %v4263_v63 }
 0x352   : > { %v4438_v37 = vsel %vm4393_vm12, %v4250_v10, %v4437_v5  ;;  %v4572_v17 = vpack.c.bf16 %v4250_v10, %v4250_v10  ;;  %v4754_v19 = vsel %vm4387_vm7, %v4697_v53, %v4753_v41  ;;  %v4573_v13 = vpack.c.bf16 %v4257_v11, %v4257_v11 }
 0x353   : > { %v4439_v51 = vsel %vm4395_vm0, %v4257_v11, %v4438_v37  ;;  %v4699_v16 = vunpack.c.l.b16 %v4571_v56  ;;  %v4755_v8 = vsel %vm4389_vm8, %v4698_v60, %v4754_v19  ;;  %v4813_v12 = vrot.slane %v4811_v26, 7 }
 0x354   : > { %v4440_v59 = vsel %vm4397_vm9, %v4264_v50, %v4439_v51  ;;  %v4814_v35 = vshll.u32 %v10883_v25, 16  ;;  %vm11882_vm14 = vcmask 130048   ;;  %v7702_v42 = vadd.f32 %v10806_v44, %v10803_v49 }
 0x355   : > { %4462 = vst.msk [vmem:[%s10271_s10 + $0x30] sm:$0xff] %vm2593_vm10, %v4440_v59  ;;  %v4756_v24 = vsel %vm4391_vm11, %v4699_v16, %v4755_v8  ;;  %v5087_v62 = vsel %vm11882_vm14, %v10826_v29, %v4967_v31  ;;  %v7705_v15 = vadd.f32 %v10811_v0, %v10809_v57  ;;  %v4700_v22 = vunpack.c.l.b16 %v4572_v17 }
 0x356   : > { %v3469_v30 = vmul.f32 0.01, %v10857_v58  ;;  %v4816_v28 = vor.u32 %v4814_v35, %v4813_v12  ;;  %vm11883_vm13 = vcmask 523264   ;;  %v4701_v25 = vunpack.c.l.b16 %v4573_v13 }
 0x357   : > { %v5103_v26 = vsel %vm11883_vm13, %v5087_v62, %v4990_v38  ;;  %v3241_v20 = vadd.f32 %v7702_v42, %v10198_v4  ;;  %v3244_v9 = vadd.f32 %v7705_v15, %v10198_v4  ;;  %v4574_v57 = vpack.c.bf16 %v4264_v50, %v4264_v50 }
 0x358   : > { %v5119_v29 = vsel %vm11881_vm15, %v5103_v26, %v10922_v54  ;;  %v4844_v49 = vsel %vm8416_vm4, 0, %v4816_v28  ;;  %v4757_v0 = vsel %vm4393_vm12, %v4700_v22, %v4756_v24  ;;  %v7367_v10 = vcombine.low %v10877_v36, %v10887_v46 }
 0x359   : > { %v7368_v44 = vcombine.low %v10891_v32, %v5119_v29  ;;  %v10961_v31 = vsel %vm10134_vm6, %v4844_v49, 0  ;;  %v3402_v2 = vadd.f32 %v10813_v1, %v3241_v20  ;;  %v3405_v43 = vadd.f32 %v10819_v47, %v3244_v9 }
 0x35a   : > { %v4758_v4 = vsel %vm4395_vm0, %v4701_v25, %v4757_v0  ;;  %v3500_v32 = vsel %vm3436_vm3, %v10854_v3, %v3468_v40  ;;  %5028 = vrot.lane.b32.xlu1 %v10961_v31, %s11808_s26  ;;  %4974 = vrot.lane.b32.xlu0 %v10961_v31, %s11806_s17  ;;  %v4904_v21 = vshll.u32 %v10961_v31, 16  ;;  %v4702_v1 = vunpack.c.l.b16 %v4574_v57 }
 0x35b   : > { %vm3438_vm14 = vcmp.gt.f32.partialorder %v3402_v2, 0.0  ;;  %v3470_v47 = vmul.f32 0.01, %v3402_v2  ;;  %vm3439_vm13 = vcmp.gt.f32.partialorder %v3405_v43, 0.0  ;;  %v3471_v55 = vmul.f32 0.01, %v3405_v43  ;;  %5458 = vmatprep.mubr.bf16.mxu0 %v7368_v44 }
 0x35c   : > { %v3501_v36 = vsel %vm3437_vm5, %v10857_v58, %v3469_v30  ;;  %v10980_v3 = vrot.slane %v10961_v31, 1  ;;  %v4906_v46 = vrot.slane %v4904_v21, 1  ;;  %5459 = vmatmul.mubr.bf16.vlgmr.msra.gmra.mrb[64].mxu0 %v7367_v10  ;;  %v4759_v53 = vsel %vm4397_vm9, %v4702_v1, %v4758_v4 }
 0x35d   : > { %v3502_v11 = vsel %vm3438_vm14, %v3402_v2, %v3470_v47  ;;  %v4902_v33 = vshrl.u32 %v10961_v31, 16  ;;  %v3503_v63 = vsel %vm3439_vm13, %v3405_v43, %v3471_v55  ;;  %v10984_v48 = vpack.c.b16 %v4759_v53, %v4759_v53  ;;  %v5021_v47 = vpop.permute.xlu1 %5020 }
 0x35e   : > { %4959 = vrot.lane.b32.xlu1 %v10980_v3, %s11874_s13  ;;  %5014 = vrot.lane.b32.xlu0 %v10980_v3, %s11804_s11  ;;  %v3518_v58 = vmax.f32 %v3500_v32, %v3502_v11  ;;  %v3519_v56 = vmax.f32 %v3501_v36, %v3503_v63  ;;  %vm11884_vm3 = vcmask 261120   ;;  %vm11886_vm15 = vcmask 654336  }
 0x35f   : > { %v4907_v60 = vor.u32 %v4906_v46, %v4902_v33  ;;  %v4818_v5 = vshrl.u32 %v10984_v48, 16  ;;  %v4821_v17 = vshll.u32 %v10984_v48, 16  ;;  %vm11885_vm5 = vmmov %vm11884_vm3  ;;  %vm11893_vm13 = vcmask 916480  }
 0x360   : > { %v3774_v40 = vcombine.high %v3518_v58, %v3518_v58  ;;  %v3781_v41 = vrot.slane %v3518_v58, %v10231_v18  ;;  %v3791_v50 = vcombine.high %v3519_v56, %v3519_v56  ;;  %v3798_v37 = vrot.slane %v3519_v56, %v10231_v18  ;;  %vm11887_vm14 = vmmov %vm11886_vm15 }
 0x361   : > { %v4820_v12 = vrot.slane %v4818_v5, 7 }
 0x362   : > { %v3788_v19 = vrot.slane %v3774_v40, %v10231_v18  ;;  %v3789_v51 = vcombine.high %v3781_v41, %v3781_v41  ;;  %v4265_v13 = vsel %vm3872_vm1, %v3781_v41, -inf  ;;  %5044 = vrot.lane.b32.xlu1 %v4907_v60, %s11876_s18  ;;  %4997 = vrot.lane.b32.xlu0 %v4907_v60, %s11875_s29  ;;  %v3805_v16 = vrot.slane %v3791_v50, %v10231_v18 }
 0x363   : > { %v4266_v38 = vrot.slane %v4265_v13, 4  ;;  %v3806_v59 = vcombine.high %v3798_v37, %v3798_v37  ;;  %v4293_v8 = vsel %vm3872_vm1, %v3798_v37, -inf  ;;  %v5023_v11 = vpop.permute.xlu0 %5022 }
 0x364   : > { %v3790_v35 = vcombine.high %v3788_v19, %v3788_v19  ;;  %v4272_v24 = vsel %vm3872_vm1, %v3789_v51, -inf  ;;  %v4279_v62 = vsel %vm3872_vm1, %v3788_v19, -inf  ;;  %v3807_v42 = vcombine.high %v3805_v16, %v3805_v16 }
 0x365   : > { %v4267_v15 = vmax.f32 %v4265_v13, %v4266_v38  ;;  %v4273_v22 = vrot.slane %v4272_v24, 4  ;;  %v4280_v30 = vrot.slane %v4279_v62, 4  ;;  %v4294_v28 = vrot.slane %v4293_v8, 4 }
 0x366   : > { %v4286_v26 = vsel %vm3872_vm1, %v3790_v35, -inf  ;;  %v4300_v25 = vsel %vm3872_vm1, %v3806_v59, -inf  ;;  %v4307_v20 = vsel %vm3872_vm1, %v3805_v16, -inf  ;;  %v4314_v9 = vsel %vm3872_vm1, %v3807_v42, -inf  ;;  %4927 = vrot.lane.b32.xlu1 %v4907_v60, %s11802_s19  ;;  %v11007_v42 = vpop.permute.xlu1 %4951 }
 0x367   : > { %v4268_v29 = vrot.slane %v4267_v15, 2  ;;  %v4274_v49 = vmax.f32 %v4272_v24, %v4273_v22  ;;  %v4281_v44 = vmax.f32 %v4279_v62, %v4280_v30  ;;  %v4287_v57 = vrot.slane %v4286_v26, 4 }
 0x368   : > { %v4295_v0 = vmax.f32 %v4293_v8, %v4294_v28  ;;  %v4301_v2 = vrot.slane %v4300_v25, 4  ;;  %v4308_v43 = vrot.slane %v4307_v20, 4  ;;  %v4315_v4 = vrot.slane %v4314_v9, 4  ;;  %v11011_v28 = vpop.permute.xlu0 %4953 }
 0x369   : > { %v4269_v10 = vmax.f32 %v4267_v15, %v4268_v29  ;;  %v4275_v32 = vrot.slane %v4274_v49, 2  ;;  %v4282_v21 = vrot.slane %v4281_v44, 2  ;;  %v4288_v1 = vmax.f32 %v4286_v26, %v4287_v57 }
 0x36a   : > { %v4296_v55 = vrot.slane %v4295_v0, 2  ;;  %v4302_v36 = vmax.f32 %v4300_v25, %v4301_v2  ;;  %v4309_v46 = vmax.f32 %v4307_v20, %v4308_v43  ;;  %v4316_v53 = vmax.f32 %v4314_v9, %v4315_v4 }
 0x36b   : > { %v4270_v33 = vrot.slane %v4269_v10, 1  ;;  %v4276_v63 = vmax.f32 %v4274_v49, %v4275_v32  ;;  %v4283_v58 = vmax.f32 %v4281_v44, %v4282_v21  ;;  %v4289_v56 = vrot.slane %v4288_v1, 2 }
 0x36c   : > { %v4297_v60 = vmax.f32 %v4295_v0, %v4296_v55  ;;  %v4303_v5 = vrot.slane %v4302_v36, 2  ;;  %v4310_v40 = vrot.slane %v4309_v46, 2  ;;  %v4317_v41 = vrot.slane %v4316_v53, 2 }
 0x36d   : > { %v4271_v50 = vmax.f32 %v4269_v10, %v4270_v33  ;;  %v4277_v37 = vrot.slane %v4276_v63, 1  ;;  %v4284_v19 = vrot.slane %v4283_v58, 1  ;;  %v4290_v51 = vmax.f32 %v4288_v1, %v4289_v56  ;;  %v5039_v33 = vpop.permute.xlu0 %5038 }
 0x36e   : > { %v4298_v13 = vrot.slane %v4297_v60, 1  ;;  %v4304_v16 = vmax.f32 %v4302_v36, %v4303_v5  ;;  %v4311_v38 = vmax.f32 %v4309_v46, %v4310_v40  ;;  %v4318_v59 = vmax.f32 %v4316_v53, %v4317_v41  ;;  %v5037_v53 = vpop.permute.xlu1 %5036 }
 0x36f   : > { %v4278_v8 = vmax.f32 %v4276_v63, %v4277_v37  ;;  %v4285_v35 = vmax.f32 %v4283_v58, %v4284_v19  ;;  %v4291_v24 = vrot.slane %v4290_v51, 1  ;;  %v4575_v62 = vpack.c.bf16 %v4271_v50, %v4271_v50 }
 0x370   : > { %v4305_v15 = vrot.slane %v4304_v16, 1  ;;  %v4312_v22 = vrot.slane %v4311_v38, 1  ;;  %v4823_v30 = vor.u32 %v4821_v17, %v4820_v12  ;;  %v4299_v49 = vmax.f32 %v4297_v60, %v4298_v13 }
 0x371   : > { %v4292_v26 = vmax.f32 %v4290_v51, %v4291_v24  ;;  %v4441_v25 = vsel %vm4385_vm2, %v4278_v8, %v4271_v50  ;;  %v4576_v20 = vpack.c.bf16 %v4278_v8, %v4278_v8  ;;  %v4577_v9 = vpack.c.bf16 %v4285_v35, %v4285_v35 }
 0x372   : > { %v4442_v29 = vsel %vm4387_vm7, %v4285_v35, %v4441_v25  ;;  %v4306_v44 = vmax.f32 %v4304_v16, %v4305_v15  ;;  %v4319_v57 = vrot.slane %v4318_v59, 1  ;;  %v4703_v2 = vunpack.c.l.b16 %v4575_v62  ;;  %v4920_v24 = vpop.permute.xlu1 %4919 }
 0x373   : > { %v4578_v0 = vpack.c.bf16 %v4292_v26, %v4292_v26  ;;  %v4704_v43 = vunpack.c.l.b16 %v4576_v20  ;;  %v4313_v4 = vmax.f32 %v4311_v38, %v4312_v22  ;;  %v4705_v10 = vunpack.c.l.b16 %v4577_v9 }
 0x374   : > { %v4443_v48 = vsel %vm4389_vm8, %v4292_v26, %v4442_v29  ;;  %v5133_v17 = vsel %vm11884_vm3, %v10828_v52, %v5021_v47  ;;  %v4845_v21 = vsel %vm8416_vm4, 0, %v4823_v30  ;;  %v4320_v1 = vmax.f32 %v4318_v59, %v4319_v57  ;;  %v4922_v29 = vpop.permute.xlu0 %4921  ;;  %vm11894_vm3 = vmmov %vm11893_vm13 }
 0x375   : > { %v4760_v12 = vsel %vm4385_vm2, %v4704_v43, %v4703_v2  ;;  %v4444_v32 = vsel %vm4391_vm11, %v4299_v49, %v4443_v48  ;;  %v4579_v36 = vpack.c.bf16 %v4299_v49, %v4299_v49  ;;  %v4580_v46 = vpack.c.bf16 %v4306_v44, %v4306_v44 }
 0x376   : > { %v4445_v55 = vsel %vm4393_vm12, %v4306_v44, %v4444_v32  ;;  %v4706_v63 = vunpack.c.l.b16 %v4578_v0  ;;  %v4581_v56 = vpack.c.bf16 %v4313_v4, %v4313_v4  ;;  %v11026_v52 = vsel %vm10134_vm6, %v4845_v21, 0 }
 0x377   : > { %v4446_v58 = vsel %vm4395_vm0, %v4313_v4, %v4445_v55  ;;  %v4761_v47 = vsel %vm4387_vm7, %v4705_v10, %v4760_v12  ;;  %4976 = vrot.lane.b32.xlu1 %v11026_v52, %s11806_s17  ;;  %5030 = vrot.lane.b32.xlu0 %v11026_v52, %s11808_s26  ;;  %v5135_v5 = vsel %vm11885_vm5, %v10922_v54, %v5023_v11  ;;  %v4911_v41 = vshll.u32 %v11026_v52, 16 }
 0x378   : > { %v4447_v60 = vsel %vm4397_vm9, %v4320_v1, %v4446_v58  ;;  %v5149_v40 = vsel %vm11886_vm15, %v5133_v17, %v5037_v53  ;;  %v5151_v50 = vsel %vm11887_vm14, %v5135_v5, %v5039_v33  ;;  %v4707_v37 = vunpack.c.l.b16 %v4579_v36 }
 0x379   : > { %4463 = vst.msk [vmem:[%s10271_s10 + $0x38] sm:$0xff] %vm2593_vm10, %v4447_v60  ;;  %v11042_v19 = vrot.slane %v11026_v52, 1  ;;  %v7369_v51 = vcombine.low %v5149_v40, %v5151_v50  ;;  %v4582_v13 = vpack.c.bf16 %v4320_v1, %v4320_v1  ;;  %v4708_v16 = vunpack.c.l.b16 %v4580_v46 }
 0x37a   : > { %v4913_v38 = vrot.slane %v4911_v41, 1  ;;  %v4762_v59 = vsel %vm4389_vm8, %v4706_v63, %v4761_v47  ;;  %v4709_v8 = vunpack.c.l.b16 %v4581_v56  ;;  %v4909_v54 = vshrl.u32 %v11026_v52, 16 }
 0x37b   : > { %5016 = vrot.lane.b32.xlu1 %v11042_v19, %s11804_s11  ;;  %4961 = vrot.lane.b32.xlu0 %v11042_v19, %s11874_s13  ;;  %v7374_v11 = vcombine.low %v10751_v45, %v10899_v27  ;;  %v4763_v35 = vsel %vm4391_vm11, %v4707_v37, %v4762_v59  ;;  %v4710_v62 = vunpack.c.l.b16 %v4582_v13  ;;  %v4969_v45 = vpop.permute.xlu1 %4968  ;;  %v5059_v32 = vsel %vm2593_vm10, %v10582_v14, %v4922_v29 }
 0x37c   : > { %5524 = vmatmul.mubr.bf16.vlgmr.msra.gmra.mrb[64].mxu1 %v7369_v51  ;;  %v4764_v15 = vsel %vm4393_vm12, %v4708_v16, %v4763_v35  ;;  %v4914_v22 = vor.u32 %v4913_v38, %v4909_v54  ;;  %v5057_v55 = vsel %vm2593_vm10, %v10394_v23, %v4920_v24  ;;  %vm11891_vm12 = vcmask 785408  }
 0x37d   : > { %7411 = vmatprep.mubr.msk.bf16.mxu1 %vm2593_vm10, %v7374_v11  ;;  %v4765_v30 = vsel %vm4395_vm0, %v4709_v8, %v4764_v15  ;;  %v5075_v53 = vsel %vm11891_vm12, %v5059_v32, %v11011_v28  ;;  %vm11895_vm5 = vmmov %vm11891_vm12  ;;  %vm11896_vm15 = vcmask 261120   ;;  %v7378_v16 = vcombine.low %v10980_v3, %v11042_v19 }
 0x37e   : > { %v4766_v26 = vsel %vm4397_vm9, %v4710_v62, %v4765_v30  ;;  %vm11888_vm9 = vcmask 130048   ;;  %v5073_v23 = vsel %vm11895_vm5, %v5057_v55, %v11007_v42  ;;  %vm11897_vm14 = vmmov %vm11896_vm15 }
 0x37f   : > { %4999 = vrot.lane.b32.xlu1 %v4914_v22, %s11875_s29  ;;  %5046 = vrot.lane.b32.xlu0 %v4914_v22, %s11876_s18  ;;  %v4774_v25 = vpack.c.b16 %v4766_v26, %v4766_v26  ;;  %v5009_v44 = vpop.permute.xlu1 %5008  ;;  %v5089_v7 = vsel %vm11888_vm9, %v11007_v42, %v4969_v45  ;;  %vm11890_vm11 = vmmov %vm11888_vm9  ;;  %v7371_v56 = vcombine.low %v5073_v23, %v5075_v53  ;;  %vm11898_vm9 = vcmask 654336  }
 0x381   : > { %v4825_v27 = vshrl.u32 %v4774_v25, 16  ;;  %v4828_v9 = vshll.u32 %v4774_v25, 16 }
 0x383   : > { %4929 = vrot.lane.b32.xlu0 %v4914_v22, %s11802_s19  ;;  %v4827_v20 = vrot.slane %v4825_v27, 7  ;;  %v4992_v10 = vpop.permute.xlu1 %4991  ;;  %v11901_v22 = vld [vmem:[#allocation11_spill] sm:$0xff] }
 0x385   : > { %v4830_v49 = vor.u32 %v4828_v9, %v4827_v20 }
 0x387   : > { %v4846_v57 = vsel %vm8416_vm4, 0, %v4830_v49  ;;  %v4971_v2 = vpop.permute.xlu0 %4970 }
 0x388   : > { %v11064_v0 = vsel %vm10134_vm6, %v4846_v57, 0  ;;  %vm11889_vm6 = vcmask 523264   ;;  %v5091_v36 = vsel %vm11890_vm11, %v11011_v28, %v4971_v2  ;;  %v5025_v28 = vpop.permute.xlu1 %5024 }
 0x389   : > { %5032 = vrot.lane.b32.xlu1 %v11064_v0, %s11808_s26  ;;  %4978 = vrot.lane.b32.xlu0 %v11064_v0, %s11806_s17  ;;  %v4983_v43 = vshll.u32 %v11064_v0, 16  ;;  %v5003_v4 = vrot.slane %v11064_v0, 1  ;;  %v4981_v48 = vshrl.u32 %v11064_v0, 16  ;;  %v5105_v1 = vsel %vm11889_vm6, %v5089_v7, %v4992_v10  ;;  %vm11892_vm0 = vmmov %vm11889_vm6 }
 0x38a   : > { %v5121_v14 = vsel %vm11893_vm13, %v5105_v1, %v5009_v44  ;;  %v5137_v41 = vsel %vm11896_vm15, %v5009_v44, %v5025_v28  ;;  %vm11899_vm6 = vmmov %vm11898_vm9 }
 0x38b   : > { %v4985_v17 = vrot.slane %v4983_v43, 1  ;;  %v5011_v12 = vpop.permute.xlu0 %5010  ;;  %vm11900_vm12 = vmmov %vm11892_vm0 }
 0x38c   : > { %v4956_v47 = vpop.permute.xlu1 %4955  ;;  %vm11903_vm13 = vmmov %vm11895_vm5  ;;  %vm11905_vm5 = vcmask 916480  }
 0x38d   : > { %5018 = vrot.lane.b32.xlu0 %v5003_v4, %s11804_s11  ;;  %v4986_v21 = vor.u32 %v4985_v17, %v4981_v48  ;;  %vm11906_vm15 = vmmov %vm11905_vm5  ;;  %v11910_v48 = vld [vmem:[#allocation14_spill] sm:$0xff] }
 0x38f   : > { %5048 = vrot.lane.b32.xlu1 %v4986_v21, %s11876_s18  ;;  %v4994_v46 = vpop.permute.xlu0 %4993 }
 0x390   : > { %v5107_v33 = vsel %vm11892_vm0, %v5091_v36, %v4994_v46  ;;  %v5041_v40 = vpop.permute.xlu1 %5040  ;;  %vm11902_vm0 = vmmov %vm11890_vm11 }
 0x391   : > { %5001 = vrot.lane.b32.xlu0 %v4986_v21, %s11875_s29  ;;  %v5123_v63 = vsel %vm11894_vm3, %v5107_v33, %v5011_v12  ;;  %v5153_v37 = vsel %vm11898_vm9, %v5137_v41, %v5041_v40  ;;  %vm11904_vm3 = vmmov %vm11900_vm12  ;;  %vm5976_vm9 = vcmask 1042432  }
 0x392   : > { %v7372_v58 = vcombine.low %v5121_v14, %v5123_v63  ;;  %v11915_v63 = vrot.slane %v10142_v6, 1 }
 0x394   : > { %5466 = vmatprep.mubr.bf16.mxu0 %v7372_v58  ;;  %v7382_v23 = vcombine.low %v5003_v4, %v11915_v63 }
 0x395   : > { %5034 = vrot.lane.b32.xlu0 %v10142_v6, %s11808_s26  ;;  %5467 = vmatmul.mubr.bf16.gmra.mrb[68].mxu0 %v7371_v56 }
 0x399   : > { %5050 = vrot.lane.b32.xlu0 %v10179_v39, %s11876_s18  ;;  %v4924_v39 = vpop.permute.xlu1 %4923 }
 0x39a   : > { %v5061_v3 = vsel %vm2593_vm10, %v11901_v22, %v4924_v39 }
 0x3ad   : > { %v5027_v60 = vpop.permute.xlu0 %5026  ;;  %v4973_v38 = vpop.permute.xlu1 %4972 }
 0x3ae   : > { %v5139_v50 = vsel %vm11897_vm14, %v5011_v12, %v5027_v60  ;;  %v5093_v24 = vsel %vm11890_vm11, %v4956_v47, %v4973_v38  ;;  %vm11907_vm14 = vmmov %vm11903_vm13 }
 0x3af   : > { %v5077_v20 = vsel %vm11907_vm14, %v5061_v3, %v4956_v47 }
 0x3b1   : > { %v4958_v5 = vpop.permute.xlu0 %4957  ;;  %v5013_v8 = vpop.permute.xlu1 %5012 }
 0x3b5   : > { %v5043_v42 = vpop.permute.xlu0 %5042  ;;  %v4996_v11 = vpop.permute.xlu1 %4995 }
 0x3b6   : > { %v5155_v51 = vsel %vm11899_vm6, %v5139_v50, %v5043_v42  ;;  %v5109_v15 = vsel %vm11900_vm12, %v5093_v24, %v4996_v11  ;;  %vm5977_vm6 = vsmask.f32 2304  ;;  %vm11911_vm12 = vcmask 261120  }
 0x3b7   : > { %v7373_v13 = vcombine.low %v5153_v37, %v5155_v51  ;;  %v5125_v45 = vsel %vm11905_vm5, %v5109_v15, %v5013_v8  ;;  %vm11117_vm11 = vmand %vm5976_vm9, %vm5977_vm6  ;;  %vm11916_vm5 = vcmask 130048   ;;  %vm11919_vm9 = vcmask 785408  }
 0x3b8   : > { %v11124_v17 = vsel %vm11117_vm11, %v11910_v48, 0  ;;  %vm11918_vm14 = vmmov %vm11916_vm5 }
 0x3b9   : > { %5532 = vmatmul.mubr.bf16.gmra.mrb[68].mxu1 %v7373_v13  ;;  %v4926_v59 = vpop.permute.xlu0 %4925  ;;  %v6024_v12 = vrot.slane %v11124_v17, 1  ;;  %v5985_v7 = vshrl.u32 %v11124_v17, 16  ;;  %v5987_v32 = vshll.u32 %v11124_v17, 16  ;;  %6075 = vrot.lane.b32.xlu0 %v11124_v17, %s11808_s26 }
 0x3ba   : > { %7412 = vmatprep.mubr.msk.bf16.mxu1 %vm2593_vm10, %v7378_v16  ;;  %v5063_v62 = vsel %vm2593_vm10, %v10881_v34, %v4926_v59 }
 0x3bb   : > { %v5079_v26 = vsel %vm11903_vm13, %v5063_v62, %v4958_v5  ;;  %vm11913_vm13 = vcmask 654336   ;;  %6028 = vrot.lane.b32.xlu1 %v6024_v12, %s11874_s13  ;;  %v5989_v53 = vrot.slane %v5987_v32, 1 }
 0x3bc   : > { %v7375_v34 = vcombine.low %v5077_v20, %v5079_v26 }
 0x3bd   : > { %v11142_v58 = vor.u32 %v5989_v53, %v5985_v7 }
 0x3bf   : > { %6012 = vrot.lane.b32.xlu1 %v11142_v58, %s11802_s19 }
 0x3cc   : > { %v4975_v54 = vpop.permute.xlu0 %4974  ;;  %v5029_v29 = vpop.permute.xlu1 %5028 }
 0x3cd   : > { %v5095_v19 = vsel %vm11902_vm0, %v4958_v5, %v4975_v54  ;;  %v5141_v21 = vsel %vm11911_vm12, %v5013_v8, %v5029_v29  ;;  %vm11912_vm0 = vmmov %vm11911_vm12  ;;  %vm11921_vm12 = vcmask 916480  }
 0x3d0   : > { %v5015_v35 = vpop.permute.xlu0 %5014  ;;  %v4960_v49 = vpop.permute.xlu1 %4959 }
 0x3d4   : > { %v4998_v30 = vpop.permute.xlu0 %4997  ;;  %v5045_v44 = vpop.permute.xlu1 %5044 }
 0x3d5   : > { %v5111_v25 = vsel %vm11904_vm3, %v5095_v19, %v4998_v30  ;;  %v5157_v36 = vsel %vm11913_vm13, %v5141_v21, %v5045_v44  ;;  %vm11914_vm3 = vmmov %vm11913_vm13 }
 0x3d6   : > { %v5127_v27 = vsel %vm11906_vm15, %v5111_v25, %v5015_v35  ;;  %vm11917_vm15 = vcmask 523264   ;;  %vm11923_vm13 = vmmov %vm11919_vm9  ;;  %v7976_v25 = vld [vmem:[%s11750_s3] sm:$0x1f] }
 0x3d7   : > { %v7376_v9 = vcombine.low %v5125_v45, %v5127_v27  ;;  %vm11920_vm6 = vmmov %vm11917_vm15  ;;  %v11928_v45 = vld [vmem:[#allocation10_spill] sm:$0xff] }
 0x3d8   : > { %v4928_v10 = vpop.permute.xlu1 %4927  ;;  %v11929_v27 = vsub.s32 2, %v11928_v45 }
 0x3d9   : > { %5474 = vmatprep.mubr.bf16.mxu0 %v7376_v9  ;;  %v5065_v4 = vsel %vm2593_vm10, %v10961_v31, %v4928_v10 }
 0x3da   : > { %5475 = vmatmul.mubr.bf16.gmra.mrb[72].mxu0 %v7375_v34  ;;  %v5081_v39 = vsel %vm11923_vm13, %v5065_v4, %v4960_v49  ;;  %v11168_v20 = vrot.slane %v7976_v25, %v11929_v27 }
 0x3e9   : > { %v5031_v57 = vpop.permute.xlu0 %5030  ;;  %v4977_v33 = vpop.permute.xlu1 %4976 }
 0x3ea   : > { %v5143_v1 = vsel %vm11912_vm0, %v5015_v35, %v5031_v57  ;;  %v5097_v40 = vsel %vm11916_vm5, %v4960_v49, %v4977_v33  ;;  %vm11922_vm0 = vmmov %vm11921_vm12 }
 0x3ed   : > { %v4962_v2 = vpop.permute.xlu0 %4961  ;;  %v5017_v28 = vpop.permute.xlu1 %5016 }
 0x3f1   : > { %v5047_v55 = vpop.permute.xlu0 %5046  ;;  %v5000_v60 = vpop.permute.xlu1 %4999 }
 0x3f2   : > { %v5159_v46 = vsel %vm11914_vm3, %v5143_v1, %v5047_v55  ;;  %v5113_v0 = vsel %vm11917_vm15, %v5097_v40, %v5000_v60  ;;  %vm11924_vm3 = vcmask 261120   ;;  %vm11926_vm15 = vcmask 654336  }
 0x3f3   : > { %v7377_v14 = vcombine.low %v5157_v36, %v5159_v46  ;;  %v5129_v51 = vsel %vm11921_vm12, %v5113_v0, %v5017_v28  ;;  %vm11925_vm5 = vmmov %vm11924_vm3  ;;  %vm5816_vm12 = vcmask 388096  }
 0x3f5   : > { %5540 = vmatmul.mubr.bf16.gmra.mrb[72].mxu1 %v7377_v14  ;;  %v4930_v56 = vpop.permute.xlu0 %4929 }
 0x3f6   : > { %7413 = vmatprep.mubr.msk.bf16.mxu1 %vm2593_vm10, %v7382_v23  ;;  %v5067_v6 = vsel %vm2593_vm10, %v11026_v52, %v4930_v56 }
 0x3f7   : > { %v5083_v42 = vsel %vm11919_vm9, %v5067_v6, %v4962_v2 }
 0x3f8   : > { %v7379_v59 = vcombine.low %v5081_v39, %v5083_v42 }
 0x3fb   : > { %v4979_v47 = vpop.permute.xlu0 %4978  ;;  %v5033_v13 = vpop.permute.xlu1 %5032 }
 0x3fc   : > { %v5099_v41 = vsel %vm11918_vm14, %v4962_v2, %v4979_v47  ;;  %v5145_v31 = vsel %vm11924_vm3, %v5017_v28, %v5033_v13  ;;  %vm11927_vm14 = vmmov %vm11926_vm15 }
 0x3ff   : > { %v5019_v5 = vpop.permute.xlu0 %5018 }
 0x401   : > { %v5049_v8 = vpop.permute.xlu1 %5048 }
 0x402   : > { %v5161_v35 = vsel %vm11926_vm15, %v5145_v31, %v5049_v8 }
 0x403   : > { %v5002_v50 = vpop.permute.xlu0 %5001 }
 0x404   : > { %v5115_v37 = vsel %vm11920_vm6, %v5099_v41, %v5002_v50 }
 0x405   : > { %v5131_v16 = vsel %vm11922_vm0, %v5115_v37, %v5019_v5 }
 0x406   : > { %v7380_v52 = vcombine.low %v5129_v51, %v5131_v16 }
 0x407   : > { %v5035_v38 = vpop.permute.xlu0 %5034 }
 0x408   : > { %5482 = vmatprep.mubr.bf16.mxu0 %v7380_v52  ;;  %v5147_v54 = vsel %vm11925_vm5, %v5019_v5, %v5035_v38 }
 0x409   : > { %5483 = vmatmul.mubr.bf16.gmra.mrb[76].mxu0 %v7379_v59 }
 0x40b   : > { %v5051_v11 = vpop.permute.xlu0 %5050 }
 0x40c   : > { %v5163_v24 = vsel %vm11927_vm14, %v5147_v54, %v5051_v11 }
 0x40d   : > { %v7381_v62 = vcombine.low %v5161_v35, %v5163_v24 }
 0x40f   : > { %5548 = vmatmul.mubr.bf16.gmra.mrb[76].mxu1 %v7381_v62 }
 0x42f   : > { %v7722_v15 = vpop.f32.mrb[64].mxu0 }
 0x430   : > { %v7723_v22 = vpop.f32.mrb[65].mxu0 }
 0x431   : > { %v7724_v3 = vadd.f32 %v7723_v22, %v7722_v15  ;;  %v7725_v19 = vpop.f32.mrb[66].mxu0 }
 0x432   : > { %v7726_v30 = vpop.f32.mrb[67].mxu0 }
 0x433   : > { %v7727_v26 = vadd.f32 %v7726_v30, %v7725_v19  ;;  %v5461_v9 = vadd.f32 %v7724_v3, %v11168_v20 }
 0x435   : > { %v5464_v44 = vadd.f32 %v7727_v26, %v11168_v20 }
 0x44f   : > { %v5525_v34 = vpop.f32.mrb[64].mxu1 }
 0x450   : > { %v5526_v29 = vadd.f32 %v5525_v34, %v5461_v9  ;;  %v5527_v49 = vpop.f32.mrb[65].mxu1 }
 0x451   : > { %v5528_v57 = vpop.f32.mrb[66].mxu1 }
 0x452   : > { %v5564_v2 = vmul.f32 0.01, %v5526_v29  ;;  %v5529_v10 = vadd.f32 %v5528_v57, %v5464_v44  ;;  %v5530_v7 = vpop.f32.mrb[67].mxu1  ;;  %vm5556_vm9 = vcmp.gt.f32.partialorder %v5526_v29, 0.0 }
 0x454   : > { %vm5557_vm6 = vcmp.gt.f32.partialorder %v5529_v10, 0.0  ;;  %v5565_v32 = vmul.f32 0.01, %v5529_v10  ;;  %v5572_v21 = vsel %vm5556_vm9, %v5526_v29, %v5564_v2 }
 0x456   : > { %v5573_v1 = vsel %vm5557_vm6, %v5529_v10, %v5565_v32  ;;  %vm11939_vm6 = vcmask 916480  }
 0x457   : > { %v5580_v55 = vmax.f32 %v5572_v21, %v5573_v1 }
 0x459   : > { %v5588_v36 = vcombine.high %v5580_v55, %v5580_v55  ;;  %v5595_v46 = vrot.slane %v5580_v55, %v10231_v18 }
 0x45b   : > { %v5602_v53 = vrot.slane %v5588_v36, %v10231_v18  ;;  %v5603_v33 = vcombine.high %v5595_v46, %v5595_v46  ;;  %v5672_v14 = vsel %vm3872_vm1, %v5595_v46, -inf }
 0x45c   : > { %v5673_v63 = vrot.slane %v5672_v14, 4 }
 0x45d   : > { %v5604_v23 = vcombine.high %v5602_v53, %v5602_v53  ;;  %v5679_v56 = vsel %vm3872_vm1, %v5603_v33, -inf  ;;  %v5686_v28 = vsel %vm3872_vm1, %v5602_v53, -inf }
 0x45e   : > { %v5674_v47 = vmax.f32 %v5672_v14, %v5673_v63  ;;  %v5680_v60 = vrot.slane %v5679_v56, 4  ;;  %v5687_v5 = vrot.slane %v5686_v28, 4 }
 0x45f   : > { %v5693_v40 = vsel %vm3872_vm1, %v5604_v23, -inf }
 0x460   : > { %v5675_v6 = vrot.slane %v5674_v47, 2  ;;  %v5681_v0 = vmax.f32 %v5679_v56, %v5680_v60  ;;  %v5688_v4 = vmax.f32 %v5686_v28, %v5687_v5  ;;  %v5694_v41 = vrot.slane %v5693_v40, 4 }
 0x462   : > { %v5676_v50 = vmax.f32 %v5674_v47, %v5675_v6  ;;  %v5682_v42 = vrot.slane %v5681_v0, 2  ;;  %v5689_v37 = vrot.slane %v5688_v4, 2  ;;  %v5695_v51 = vmax.f32 %v5693_v40, %v5694_v41 }
 0x464   : > { %v5677_v13 = vrot.slane %v5676_v50, 1  ;;  %v5683_v16 = vmax.f32 %v5681_v0, %v5682_v42  ;;  %v5690_v39 = vmax.f32 %v5688_v4, %v5689_v37  ;;  %v5696_v52 = vrot.slane %v5695_v51, 2 }
 0x466   : > { %v5678_v38 = vmax.f32 %v5676_v50, %v5677_v13  ;;  %v5684_v59 = vrot.slane %v5683_v16, 1  ;;  %v5691_v8 = vrot.slane %v5690_v39, 1  ;;  %v5697_v31 = vmax.f32 %v5695_v51, %v5696_v52 }
 0x468   : > { %v5685_v54 = vmax.f32 %v5683_v16, %v5684_v59  ;;  %v5692_v11 = vmax.f32 %v5690_v39, %v5691_v8  ;;  %v5698_v35 = vrot.slane %v5697_v31, 1  ;;  %v5876_v24 = vpack.c.bf16 %v5678_v38, %v5678_v38  ;;  %v7728_v62 = vpop.f32.mrb[68].mxu0 }
 0x469   : > { %v7729_v30 = vpop.f32.mrb[69].mxu0 }
 0x46a   : > { %v5699_v15 = vmax.f32 %v5697_v31, %v5698_v35  ;;  %v5800_v22 = vsel %vm4385_vm2, %v5685_v54, %v5678_v38  ;;  %v5877_v3 = vpack.c.bf16 %v5685_v54, %v5685_v54  ;;  %v5878_v19 = vpack.c.bf16 %v5692_v11, %v5692_v11  ;;  %v7731_v9 = vpop.f32.mrb[70].mxu0 }
 0x46b   : > { %v5801_v26 = vsel %vm4387_vm7, %v5692_v11, %v5800_v22  ;;  %v5908_v25 = vunpack.c.l.b16 %v5876_v24  ;;  %v7730_v27 = vadd.f32 %v7729_v30, %v7728_v62  ;;  %v7732_v49 = vpop.f32.mrb[71].mxu0 }
 0x46c   : > { %v5909_v34 = vunpack.c.l.b16 %v5877_v3  ;;  %v5910_v29 = vunpack.c.l.b16 %v5878_v19  ;;  %v5879_v44 = vpack.c.bf16 %v5699_v15, %v5699_v15  ;;  %v5802_v57 = vsel %vm4389_vm8, %v5699_v15, %v5801_v26 }
 0x46d   : > { %v7733_v2 = vadd.f32 %v7732_v49, %v7731_v9  ;;  %5817 = vst.msk [vmem:[%s11182_s15] sm:$0xf] %vm5816_vm12, %v5802_v57  ;;  %v5469_v60 = vadd.f32 %v7730_v27, %v11168_v20 }
 0x46e   : > { %v5911_v10 = vunpack.c.l.b16 %v5879_v44  ;;  %v5924_v7 = vsel %vm4385_vm2, %v5909_v34, %v5908_v25 }
 0x46f   : > { %v5925_v32 = vsel %vm4387_vm7, %v5910_v29, %v5924_v7  ;;  %v5472_v0 = vadd.f32 %v7733_v2, %v11168_v20 }
 0x470   : > { %v5926_v21 = vsel %vm4389_vm8, %v5911_v10, %v5925_v32 }
 0x471   : > { %v5936_v1 = vpack.c.b16 %v5926_v21, %v5926_v21 }
 0x473   : > { %v5941_v55 = vshrl.u32 %v5936_v1, 16  ;;  %v5944_v46 = vshll.u32 %v5936_v1, 16 }
 0x475   : > { %v5943_v36 = vrot.slane %v5941_v55, 7 }
 0x477   : > { %v5946_v53 = vor.u32 %v5944_v46, %v5943_v36 }
 0x479   : > { %v5972_v33 = vsel %vm8416_vm4, 0, %v5946_v53 }
 0x47a   : > { %v11193_v14 = vsel %vm11117_vm11, %v5972_v33, 0 }
 0x47b   : > { %6037 = vrot.lane.b32.xlu1 %v11193_v14, %s11806_s17  ;;  %v6025_v63 = vrot.slane %v11193_v14, 1  ;;  %v5994_v23 = vshll.u32 %v11193_v14, 16  ;;  %v5992_v56 = vshrl.u32 %v11193_v14, 16 }
 0x47d   : > { %6030 = vrot.lane.b32.xlu0 %v6025_v63, %s11874_s13  ;;  %v5996_v28 = vrot.slane %v5994_v23, 1 }
 0x47f   : > { %6061 = vrot.lane.b32.xlu1 %v6025_v63, %s11804_s11  ;;  %v5997_v47 = vor.u32 %v5996_v28, %v5992_v56 }
 0x481   : > { %6014 = vrot.lane.b32.xlu0 %v5997_v47, %s11802_s19 }
 0x483   : > { %6052 = vrot.lane.b32.xlu1 %v5997_v47, %s11875_s29 }
 0x48c   : > { %v5533_v5 = vpop.f32.mrb[68].mxu1 }
 0x48d   : > { %v5534_v40 = vadd.f32 %v5533_v5, %v5469_v60  ;;  %v5535_v6 = vpop.f32.mrb[69].mxu1 }
 0x48e   : > { %v5536_v4 = vpop.f32.mrb[70].mxu1 }
 0x48f   : > { %v5566_v41 = vmul.f32 0.01, %v5534_v40  ;;  %v5537_v50 = vadd.f32 %v5536_v4, %v5472_v0  ;;  %v5538_v42 = vpop.f32.mrb[71].mxu1  ;;  %vm5558_vm0 = vcmp.gt.f32.partialorder %v5534_v40, 0.0 }
 0x491   : > { %vm5559_vm13 = vcmp.gt.f32.partialorder %v5537_v50, 0.0  ;;  %v5567_v37 = vmul.f32 0.01, %v5537_v50  ;;  %v5574_v51 = vsel %vm5558_vm0, %v5534_v40, %v5566_v41  ;;  %vm11941_vm0 = vcmask 785408  }
 0x493   : > { %v5575_v13 = vsel %vm5559_vm13, %v5537_v50, %v5567_v37  ;;  %vm11942_vm13 = vmmov %vm11941_vm0 }
 0x494   : > { %v5581_v16 = vmax.f32 %v5574_v51, %v5575_v13 }
 0x496   : > { %v5605_v39 = vcombine.high %v5581_v16, %v5581_v16  ;;  %v5612_v52 = vrot.slane %v5581_v16, %v10231_v18 }
 0x498   : > { %v5619_v38 = vrot.slane %v5605_v39, %v10231_v18  ;;  %v5620_v59 = vcombine.high %v5612_v52, %v5612_v52  ;;  %v5700_v8 = vsel %vm3872_vm1, %v5612_v52, -inf }
 0x499   : > { %v5701_v31 = vrot.slane %v5700_v8, 4 }
 0x49a   : > { %v5621_v54 = vcombine.high %v5619_v38, %v5619_v38  ;;  %v5707_v11 = vsel %vm3872_vm1, %v5620_v59, -inf  ;;  %v5714_v35 = vsel %vm3872_vm1, %v5619_v38, -inf }
 0x49b   : > { %v5702_v24 = vmax.f32 %v5700_v8, %v5701_v31  ;;  %v5708_v62 = vrot.slane %v5707_v11, 4  ;;  %v5715_v15 = vrot.slane %v5714_v35, 4 }
 0x49c   : > { %v5721_v22 = vsel %vm3872_vm1, %v5621_v54, -inf }
 0x49d   : > { %v5703_v3 = vrot.slane %v5702_v24, 2  ;;  %v5709_v19 = vmax.f32 %v5707_v11, %v5708_v62  ;;  %v5716_v30 = vmax.f32 %v5714_v35, %v5715_v15  ;;  %v5722_v26 = vrot.slane %v5721_v22, 4 }
 0x49f   : > { %v5704_v25 = vmax.f32 %v5702_v24, %v5703_v3  ;;  %v5710_v27 = vrot.slane %v5709_v19, 2  ;;  %v5717_v9 = vrot.slane %v5716_v30, 2  ;;  %v5723_v34 = vmax.f32 %v5721_v22, %v5722_v26 }
 0x4a1   : > { %v5705_v29 = vrot.slane %v5704_v25, 1  ;;  %v5711_v49 = vmax.f32 %v5709_v19, %v5710_v27  ;;  %v5718_v44 = vmax.f32 %v5716_v30, %v5717_v9  ;;  %v5724_v57 = vrot.slane %v5723_v34, 2 }
 0x4a3   : > { %v5706_v2 = vmax.f32 %v5704_v25, %v5705_v29  ;;  %v5712_v10 = vrot.slane %v5711_v49, 1  ;;  %v5719_v7 = vrot.slane %v5718_v44, 1  ;;  %v5725_v32 = vmax.f32 %v5723_v34, %v5724_v57 }
 0x4a5   : > { %v5713_v21 = vmax.f32 %v5711_v49, %v5712_v10  ;;  %v5720_v1 = vmax.f32 %v5718_v44, %v5719_v7  ;;  %v5726_v55 = vrot.slane %v5725_v32, 1  ;;  %v5880_v36 = vpack.c.bf16 %v5706_v2, %v5706_v2 }
 0x4a7   : > { %v5727_v46 = vmax.f32 %v5725_v32, %v5726_v55  ;;  %v5803_v53 = vsel %vm4385_vm2, %v5713_v21, %v5706_v2  ;;  %v5881_v33 = vpack.c.bf16 %v5713_v21, %v5713_v21  ;;  %v5882_v63 = vpack.c.bf16 %v5720_v1, %v5720_v1 }
 0x4a8   : > { %v5804_v23 = vsel %vm4387_vm7, %v5720_v1, %v5803_v53  ;;  %v5912_v56 = vunpack.c.l.b16 %v5880_v36 }
 0x4a9   : > { %v5913_v28 = vunpack.c.l.b16 %v5881_v33  ;;  %v5914_v47 = vunpack.c.l.b16 %v5882_v63  ;;  %v5883_v60 = vpack.c.bf16 %v5727_v46, %v5727_v46  ;;  %v5805_v5 = vsel %vm4389_vm8, %v5727_v46, %v5804_v23 }
 0x4aa   : > { %5818 = vst.msk [vmem:[%s11182_s15 + $0x4] sm:$0xf] %vm5816_vm12, %v5805_v5 }
 0x4ab   : > { %v5915_v40 = vunpack.c.l.b16 %v5883_v60  ;;  %v5927_v6 = vsel %vm4385_vm2, %v5913_v28, %v5912_v56 }
 0x4ac   : > { %v5928_v4 = vsel %vm4387_vm7, %v5914_v47, %v5927_v6 }
 0x4ad   : > { %v7734_v0 = vpop.f32.mrb[72].mxu0  ;;  %v5929_v50 = vsel %vm4389_vm8, %v5915_v40, %v5928_v4 }
 0x4ae   : > { %v7735_v41 = vpop.f32.mrb[73].mxu0  ;;  %v5937_v51 = vpack.c.b16 %v5929_v50, %v5929_v50 }
 0x4af   : > { %v7736_v42 = vadd.f32 %v7735_v41, %v7734_v0  ;;  %v7737_v37 = vpop.f32.mrb[74].mxu0 }
 0x4b0   : > { %v7738_v13 = vpop.f32.mrb[75].mxu0  ;;  %v5948_v39 = vshrl.u32 %v5937_v51, 16  ;;  %v5951_v38 = vshll.u32 %v5937_v51, 16 }
 0x4b1   : > { %v7739_v16 = vadd.f32 %v7738_v13, %v7737_v37  ;;  %v5477_v15 = vadd.f32 %v7736_v42, %v11168_v20 }
 0x4b2   : > { %v5950_v52 = vrot.slane %v5948_v39, 7 }
 0x4b3   : > { %v5480_v30 = vadd.f32 %v7739_v16, %v11168_v20 }
 0x4b4   : > { %v5953_v59 = vor.u32 %v5951_v38, %v5950_v52 }
 0x4b6   : > { %v5973_v8 = vsel %vm8416_vm4, 0, %v5953_v59 }
 0x4b7   : > { %v11224_v31 = vsel %vm11117_vm11, %v5973_v8, 0 }
 0x4b8   : > { %6069 = vrot.lane.b32.xlu1 %v11224_v31, %s11808_s26  ;;  %6039 = vrot.lane.b32.xlu0 %v11224_v31, %s11806_s17  ;;  %v6001_v54 = vshll.u32 %v11224_v31, 16  ;;  %v11232_v11 = vrot.slane %v11224_v31, 1  ;;  %v5999_v24 = vshrl.u32 %v11224_v31, 16 }
 0x4ba   : > { %v6003_v35 = vrot.slane %v6001_v54, 1 }
 0x4bc   : > { %6063 = vrot.lane.b32.xlu0 %v11232_v11, %s11804_s11  ;;  %6032 = vrot.lane.b32.xlu1 %v11232_v11, %s11874_s13  ;;  %v6004_v62 = vor.u32 %v6003_v35, %v5999_v24  ;;  %s8085_s11 = smov [#allocation2]  }
 0x4c0   : > { %6054 = vrot.lane.b32.xlu0 %v6004_v62, %s11875_s29  ;;  %6016 = vrot.lane.b32.xlu1 %v6004_v62, %s11802_s19 }
 0x4c4   : > { %6077 = vrot.lane.b32.xlu1 %v6004_v62, %s11876_s18 }
 0x4c8   : > { %v5541_v22 = vpop.f32.mrb[72].mxu1 }
 0x4c9   : > { %v5542_v3 = vadd.f32 %v5541_v22, %v5477_v15  ;;  %v5543_v19 = vpop.f32.mrb[73].mxu1 }
 0x4ca   : > { %v5544_v26 = vpop.f32.mrb[74].mxu1 }
 0x4cb   : > { %v5568_v25 = vmul.f32 0.01, %v5542_v3  ;;  %v5545_v27 = vadd.f32 %v5544_v26, %v5480_v30  ;;  %v5546_v9 = vpop.f32.mrb[75].mxu1  ;;  %vm5560_vm3 = vcmp.gt.f32.partialorder %v5542_v3, 0.0 }
 0x4cd   : > { %vm5561_vm5 = vcmp.gt.f32.partialorder %v5545_v27, 0.0  ;;  %v5569_v34 = vmul.f32 0.01, %v5545_v27  ;;  %v5576_v29 = vsel %vm5560_vm3, %v5542_v3, %v5568_v25  ;;  %vm11943_vm3 = vmmov %vm11939_vm6 }
 0x4cf   : > { %v5577_v49 = vsel %vm5561_vm5, %v5545_v27, %v5569_v34 }
 0x4d0   : > { %v5582_v44 = vmax.f32 %v5576_v29, %v5577_v49 }
 0x4d2   : > { %v5622_v57 = vcombine.high %v5582_v44, %v5582_v44  ;;  %v5629_v2 = vrot.slane %v5582_v44, %v10231_v18 }
 0x4d4   : > { %v5636_v10 = vrot.slane %v5622_v57, %v10231_v18  ;;  %v5637_v7 = vcombine.high %v5629_v2, %v5629_v2  ;;  %v5728_v32 = vsel %vm3872_vm1, %v5629_v2, -inf }
 0x4d5   : > { %v5729_v21 = vrot.slane %v5728_v32, 4 }
 0x4d6   : > { %v5638_v1 = vcombine.high %v5636_v10, %v5636_v10  ;;  %v5735_v55 = vsel %vm3872_vm1, %v5637_v7, -inf  ;;  %v5742_v36 = vsel %vm3872_vm1, %v5636_v10, -inf }
 0x4d7   : > { %v5730_v46 = vmax.f32 %v5728_v32, %v5729_v21  ;;  %v5736_v53 = vrot.slane %v5735_v55, 4  ;;  %v5743_v33 = vrot.slane %v5742_v36, 4 }
 0x4d8   : > { %v5749_v63 = vsel %vm3872_vm1, %v5638_v1, -inf }
 0x4d9   : > { %v5731_v23 = vrot.slane %v5730_v46, 2  ;;  %v5737_v56 = vmax.f32 %v5735_v55, %v5736_v53  ;;  %v5744_v28 = vmax.f32 %v5742_v36, %v5743_v33  ;;  %v5750_v47 = vrot.slane %v5749_v63, 4 }
 0x4db   : > { %v5732_v60 = vmax.f32 %v5730_v46, %v5731_v23  ;;  %v5738_v5 = vrot.slane %v5737_v56, 2  ;;  %v5745_v40 = vrot.slane %v5744_v28, 2  ;;  %v5751_v6 = vmax.f32 %v5749_v63, %v5750_v47 }
 0x4dc   : > { %v7740_v0 = vpop.f32.mrb[76].mxu0 }
 0x4dd   : > { %v5733_v4 = vrot.slane %v5732_v60, 1  ;;  %v5739_v41 = vmax.f32 %v5737_v56, %v5738_v5  ;;  %v5746_v50 = vmax.f32 %v5744_v28, %v5745_v40  ;;  %v5752_v42 = vrot.slane %v5751_v6, 2  ;;  %v7741_v37 = vpop.f32.mrb[77].mxu0 }
 0x4de   : > { %v7742_v51 = vadd.f32 %v7741_v37, %v7740_v0  ;;  %v7743_v13 = vpop.f32.mrb[78].mxu0 }
 0x4df   : > { %v5734_v16 = vmax.f32 %v5732_v60, %v5733_v4  ;;  %v5740_v39 = vrot.slane %v5739_v41, 1  ;;  %v5747_v52 = vrot.slane %v5746_v50, 1  ;;  %v5753_v38 = vmax.f32 %v5751_v6, %v5752_v42  ;;  %v7744_v59 = vpop.f32.mrb[79].mxu0 }
 0x4e0   : > { %v7745_v8 = vadd.f32 %v7744_v59, %v7743_v13  ;;  %v5485_v54 = vadd.f32 %v7742_v51, %v11168_v20 }
 0x4e1   : > { %v5741_v35 = vmax.f32 %v5739_v41, %v5740_v39  ;;  %v5748_v24 = vmax.f32 %v5746_v50, %v5747_v52  ;;  %v5754_v62 = vrot.slane %v5753_v38, 1  ;;  %v5884_v15 = vpack.c.bf16 %v5734_v16, %v5734_v16 }
 0x4e2   : > { %v5549_v22 = vpop.f32.mrb[76].mxu1  ;;  %v5488_v3 = vadd.f32 %v7745_v8, %v11168_v20 }
 0x4e3   : > { %v5755_v19 = vmax.f32 %v5753_v38, %v5754_v62  ;;  %v5806_v30 = vsel %vm4385_vm2, %v5741_v35, %v5734_v16  ;;  %v5885_v26 = vpack.c.bf16 %v5741_v35, %v5741_v35  ;;  %v5886_v25 = vpack.c.bf16 %v5748_v24, %v5748_v24  ;;  %v5551_v27 = vpop.f32.mrb[77].mxu1  ;;  %v7920_v62 = vld [vmem:[%s11749_s2 + $0x1f0] sm:$0xff]  }
 0x4e4   : > { %v5807_v9 = vsel %vm4387_vm7, %v5748_v24, %v5806_v30  ;;  %v5916_v34 = vunpack.c.l.b16 %v5884_v15  ;;  %v5550_v29 = vadd.f32 %v5549_v22, %v5485_v54  ;;  %v5552_v49 = vpop.f32.mrb[78].mxu1  ;;  %v7919_v24 = vld [vmem:[%s11749_s2 + $0x230] sm:$0xff]   ;;  %7746 = vmatprep.subr.bf16.mxu0 %v7920_v62 }
 0x4e5   : > { %v5917_v44 = vunpack.c.l.b16 %v5885_v26  ;;  %v5918_v57 = vunpack.c.l.b16 %v5886_v25  ;;  %v5553_v2 = vadd.f32 %v5552_v49, %v5488_v3  ;;  %v5554_v10 = vpop.f32.mrb[79].mxu1  ;;  %v5887_v7 = vpack.c.bf16 %v5755_v19, %v5755_v19  ;;  %v7922_v30 = vld [vmem:[%s11749_s2 + $0x1b0] sm:$0xff]   ;;  %v7923_v26 = vld [vmem:[%s11749_s2 + $0x1f8] sm:$0xff]   ;;  %6471 = vmatpush1.bf16.msra.mxu1 %v7919_v24 }
 0x4e6   : > { %vm5562_vm15 = vcmp.gt.f32.partialorder %v5550_v29, 0.0  ;;  %v5570_v32 = vmul.f32 0.01, %v5550_v29  ;;  %v5808_v20 = vsel %vm4389_vm8, %v5755_v19, %v5807_v9  ;;  %v7921_v9 = vld [vmem:[%s11749_s2 + $0x238] sm:$0xff]   ;;  %7747 = vmatpush3.bf16.msra.mxu0 %v7922_v30 }
 0x4e7   : > { %vm5563_vm14 = vcmp.gt.f32.partialorder %v5553_v2, 0.0  ;;  %v5571_v21 = vmul.f32 0.01, %v5553_v2  ;;  %v5919_v1 = vunpack.c.l.b16 %v5887_v7  ;;  %v5930_v55 = vsel %vm4385_vm2, %v5917_v44, %v5916_v34  ;;  %5819 = vst.msk [vmem:[%s11182_s15 + $0x8] sm:$0xf] %vm5816_vm12, %v5808_v20  ;;  %7748 = vmatprep.subr.bf16.mxu0 %v7923_v26  ;;  %v7933_v24 = vld [vmem:[%s11749_s2 + $0x258] sm:$0xff]  }
 0x4e8   : > { %v5931_v36 = vsel %vm4387_vm7, %v5918_v57, %v5930_v55  ;;  %v5578_v46 = vsel %vm5562_vm15, %v5550_v29, %v5570_v32  ;;  %v11930_v57 = vmov 0   ;;  %v7926_v32 = vld [vmem:[%s11749_s2 + $0x200] sm:$0xff]   ;;  %v7935_v26 = vld [vmem:[%s11749_s2 + $0x218] sm:$0xff]   ;;  %vm11945_vm15 = vmmov %vm11943_vm3 }
 0x4e9   : > { %v5579_v53 = vsel %vm5563_vm14, %v5553_v2, %v5571_v21  ;;  %v5932_v33 = vsel %vm4389_vm8, %v5919_v1, %v5931_v36  ;;  %6472 = vmatprep.subr.bf16.mxu1 %v11930_v57  ;;  %v7925_v2 = vld [vmem:[%s11749_s2 + $0x1b8] sm:$0xff]   ;;  %vm11946_vm14 = vmmov %vm11941_vm0 }
 0x4ea   : > { %v5583_v63 = vmax.f32 %v5578_v46, %v5579_v53  ;;  %v5938_v23 = vpack.c.b16 %v5932_v33, %v5932_v33  ;;  %6473 = vmatpush1.bf16.msra.mxu1 %v7921_v9  ;;  %v7924_v46 = vld [vmem:[%s11749_s2 + $0x240] sm:$0xff]   ;;  %7749 = vmatpush3.bf16.msra.mxu0 %v7925_v2  ;;  %v7937_v9 = vld [vmem:[%s11749_s2 + $0x1d8] sm:$0xff]  }
 0x4eb   : > { %6474 = vmatprep.subr.bf16.mxu1 %v11930_v57  ;;  %7750 = vmatprep.subr.bf16.mxu0 %v7926_v32  ;;  %v7938_v2 = vld [vmem:[%s11749_s2 + $0x220] sm:$0xff]   ;;  %v7941_v32 = vld [vmem:[%s11749_s2 + $0x228] sm:$0xff]  }
 0x4ec   : > { %v5639_v56 = vcombine.high %v5583_v63, %v5583_v63  ;;  %v5646_v28 = vrot.slane %v5583_v63, %v10231_v18  ;;  %v5955_v47 = vshrl.u32 %v5938_v23, 16  ;;  %v5958_v60 = vshll.u32 %v5938_v23, 16 }
 0x4ee   : > { %v5653_v5 = vrot.slane %v5639_v56, %v10231_v18  ;;  %v5654_v40 = vcombine.high %v5646_v28, %v5646_v28  ;;  %v5756_v6 = vsel %vm3872_vm1, %v5646_v28, -inf  ;;  %v5957_v0 = vrot.slane %v5955_v47, 7  ;;  %v7928_v56 = vld [vmem:[%s11749_s2 + $0x1c0] sm:$0xff]   ;;  %6475 = vmatpush1.bf16.msra.mxu1 %v7924_v46 }
 0x4ef   : > { %v5757_v4 = vrot.slane %v5756_v6, 4  ;;  %6476 = vmatprep.subr.bf16.mxu1 %v11930_v57  ;;  %7751 = vmatpush3.bf16.msra.mxu0 %v7928_v56 }
 0x4f0   : > { %v5655_v41 = vcombine.high %v5653_v5, %v5653_v5  ;;  %v5763_v50 = vsel %vm3872_vm1, %v5654_v40, -inf  ;;  %v5770_v42 = vsel %vm3872_vm1, %v5653_v5, -inf  ;;  %v5960_v37 = vor.u32 %v5958_v60, %v5957_v0  ;;  %v7927_v0 = vld [vmem:[%s11749_s2 + $0x248] sm:$0xff]  }
 0x4f1   : > { %v5758_v51 = vmax.f32 %v5756_v6, %v5757_v4  ;;  %v5764_v13 = vrot.slane %v5763_v50, 4  ;;  %v5771_v16 = vrot.slane %v5770_v42, 4 }
 0x4f2   : > { %v5777_v39 = vsel %vm3872_vm1, %v5655_v41, -inf  ;;  %v5974_v52 = vsel %vm8416_vm4, 0, %v5960_v37  ;;  %6477 = vmatpush1.bf16.msra.mxu1 %v7927_v0 }
 0x4f3   : > { %v5759_v38 = vrot.slane %v5758_v51, 2  ;;  %v5765_v59 = vmax.f32 %v5763_v50, %v5764_v13  ;;  %v5772_v8 = vmax.f32 %v5770_v42, %v5771_v16  ;;  %v5778_v54 = vrot.slane %v5777_v39, 4  ;;  %v7929_v13 = vld [vmem:[%s11749_s2 + $0x208] sm:$0xff]   ;;  %6478 = vmatprep.subr.bf16.mxu1 %v11930_v57 }
 0x4f4   : > { %v11270_v35 = vsel %vm11117_vm11, %v5974_v52, 0  ;;  %v7931_v16 = vld [vmem:[%s11749_s2 + $0x1c8] sm:$0xff]   ;;  %v7930_v52 = vld [vmem:[%s11749_s2 + $0x250] sm:$0xff]   ;;  %7752 = vmatprep.subr.bf16.mxu0 %v7929_v13 }
 0x4f5   : > { %v5760_v15 = vmax.f32 %v5758_v51, %v5759_v38  ;;  %v5766_v22 = vrot.slane %v5765_v59, 2  ;;  %v5773_v3 = vrot.slane %v5772_v8, 2  ;;  %v5779_v19 = vmax.f32 %v5777_v39, %v5778_v54  ;;  %6071 = vrot.lane.b32.xlu0 %v11270_v35, %s11808_s26  ;;  %6041 = vrot.lane.b32.xlu1 %v11270_v35, %s11806_s17  ;;  %s7103_s26 = scalar_lea.sflag [#allocation3], %s10255_s16 }
 0x4f6   : > { %v11289_v25 = vrot.slane %v11270_v35, 1  ;;  %v6008_v27 = vshll.u32 %v11270_v35, 16  ;;  %v6006_v10 = vshrl.u32 %v11270_v35, 16  ;;  %7753 = vmatpush3.bf16.msra.mxu0 %v7931_v16  ;;  %6479 = vmatpush1.bf16.msra.mxu1 %v7930_v52 }
 0x4f7   : > { %v5761_v34 = vrot.slane %v5760_v15, 1  ;;  %v5767_v29 = vmax.f32 %v5765_v59, %v5766_v22  ;;  %v5774_v49 = vmax.f32 %v5772_v8, %v5773_v3  ;;  %v5780_v44 = vrot.slane %v5779_v19, 2  ;;  %v7932_v8 = vld [vmem:[%s11749_s2 + $0x210] sm:$0xff]   ;;  %6480 = vmatprep.subr.bf16.mxu1 %v11930_v57 }
 0x4f8   : > { %v6010_v7 = vrot.slane %v6008_v27, 1  ;;  %7754 = vmatprep.subr.bf16.mxu0 %v7932_v8  ;;  %v7934_v3 = vld [vmem:[%s11749_s2 + $0x1d0] sm:$0xff]   ;;  %v7936_v27 = vld [vmem:[%s11749_s2 + $0x260] sm:$0xff]  }
 0x4f9   : > { %v5762_v20 = vmax.f32 %v5760_v15, %v5761_v34  ;;  %v5768_v21 = vrot.slane %v5767_v29, 1  ;;  %v5775_v1 = vrot.slane %v5774_v49, 1  ;;  %v5781_v55 = vmax.f32 %v5779_v19, %v5780_v44  ;;  %6065 = vrot.lane.b32.xlu1 %v11289_v25, %s11931_s12  ;;  %6034 = vrot.lane.b32.xlu0 %v11289_v25, %s11874_s13 }
 0x4fa   : > { %v11307_v36 = vor.u32 %v6010_v7, %v6006_v10  ;;  %6481 = vmatpush1.bf16.msra.mxu1 %v7933_v24  ;;  %7755 = vmatpush3.bf16.msra.mxu0 %v7934_v3  ;;  %v7939_v10 = vld [vmem:[%s11749_s2 + $0x268] sm:$0xff]   ;;  %v7940_v7 = vld [vmem:[%s11749_s2 + $0x1e0] sm:$0xff]  }
 0x4fb   : > { %v5769_v53 = vmax.f32 %v5767_v29, %v5768_v21  ;;  %v5776_v33 = vmax.f32 %v5774_v49, %v5775_v1  ;;  %v5782_v63 = vrot.slane %v5781_v55, 1  ;;  %v5888_v23 = vpack.c.bf16 %v5762_v20, %v5762_v20  ;;  %6482 = vmatprep.subr.bf16.mxu1 %v11930_v57  ;;  %7756 = vmatprep.subr.bf16.mxu0 %v7935_v26  ;;  %v7943_v21 = vld [vmem:[%s11749_s2 + $0x1e8] sm:$0xff]   ;;  %v7944_v1 = vld [vmem:[%s11749_s2 + $0x278] sm:$0xff]  }
 0x4fd   : > { %v5783_v28 = vmax.f32 %v5781_v55, %v5782_v63  ;;  %v5809_v47 = vsel %vm4385_vm2, %v5769_v53, %v5762_v20  ;;  %v5889_v60 = vpack.c.bf16 %v5769_v53, %v5769_v53  ;;  %v5890_v5 = vpack.c.bf16 %v5776_v33, %v5776_v33  ;;  %6056 = vrot.lane.b32.xlu1 %v11307_v36, %s11875_s29  ;;  %v7942_v20 = vld [vmem:[%s11749_s2 + $0x270] sm:$0xff]   ;;  %v7945_v55 = vld [vmem:[%s11749_s2 + $0x280] sm:$0xff]  }
 0x4fe   : > { %v5810_v40 = vsel %vm4387_vm7, %v5776_v33, %v5809_v47  ;;  %v5920_v6 = vunpack.c.l.b16 %v5888_v23  ;;  %6018 = vrot.lane.b32.xlu0 %v11307_v36, %s11932_s20  ;;  %6483 = vmatpush1.bf16.msra.mxu1 %v7936_v27  ;;  %v11413_v33 = vpop.permute.xlu0 %6075 }
 0x4ff   : > { %v5921_v4 = vunpack.c.l.b16 %v5889_v60  ;;  %v5922_v41 = vunpack.c.l.b16 %v5890_v5  ;;  %v5891_v50 = vpack.c.bf16 %v5783_v28, %v5783_v28  ;;  %v5811_v42 = vsel %vm4389_vm8, %v5783_v28, %v5810_v40  ;;  %7757 = vmatpush3.bf16.msra.mxu0 %v7937_v9  ;;  %6484 = vmatprep.subr.bf16.mxu1 %v11930_v57 }
 0x500   : > { %5820 = vst.msk [vmem:[%s11182_s15 + $0xc] sm:$0xf] %vm5816_vm12, %v5811_v42  ;;  %7758 = vmatprep.subr.bf16.mxu0 %v7938_v2 }
 0x501   : > { %v5923_v37 = vunpack.c.l.b16 %v5891_v50  ;;  %v5933_v51 = vsel %vm4385_vm2, %v5921_v4, %v5920_v6 }
 0x502   : > { %v5934_v39 = vsel %vm4387_vm7, %v5922_v41, %v5933_v51  ;;  %6485 = vmatpush1.bf16.msra.mxu1 %v7939_v10  ;;  %v6031_v23 = vpop.permute.xlu0 %6030  ;;  %vm11935_vm7 = vcmask 130048  }
 0x503   : > { %v5935_v38 = vsel %vm4389_vm8, %v5923_v37, %v5934_v39  ;;  %7759 = vmatpush3.bf16.msra.mxu0 %v7940_v7  ;;  %6486 = vmatprep.subr.bf16.mxu1 %v11930_v57  ;;  %vm11936_vm8 = vcmask 523264   ;;  %vm11940_vm12 = vmmov %vm11935_vm7 }
 0x504   : > { %v5939_v59 = vpack.c.b16 %v5935_v38, %v5935_v38  ;;  %7760 = vmatprep.subr.bf16.mxu0 %v7941_v32  ;;  %vm11938_vm9 = vmmov %vm11936_vm8 }
 0x505   : > { %vm11944_vm5 = vmmov %vm11936_vm8 }
 0x506   : > { %v5962_v54 = vshrl.u32 %v5939_v59, 16  ;;  %v5965_v15 = vshll.u32 %v5939_v59, 16  ;;  %6487 = vmatpush1.bf16.msra.mxu1 %v7942_v20  ;;  %v6015_v28 = vpop.permute.xlu0 %6014 }
 0x507   : > { %7761 = vmatpush3.bf16.msra.mxu0 %v7943_v21  ;;  %6488 = vmatprep.subr.bf16.mxu1 %v11930_v57  ;;  %v6088_v52 = vsel %vm2593_vm10, %v11193_v14, %v6015_v28 }
 0x508   : > { %v5964_v62 = vrot.slane %v5962_v54, 7 }
 0x50a   : > { %v5967_v22 = vor.u32 %v5965_v15, %v5964_v62  ;;  %6489 = vmatpush1.bf16.msra.mxu1 %v7944_v1  ;;  %v6096_v15 = vsel %vm11942_vm13, %v6088_v52, %v6031_v23 }
 0x50b   : > { %6490 = vmatprep.subr.bf16.mxu1 %v11930_v57 }
 0x50c   : > { %v5975_v19 = vsel %vm8416_vm4, 0, %v5967_v22 }
 0x50d   : > { %v11357_v30 = vsel %vm11117_vm11, %v5975_v19, 0  ;;  %vm11937_vm11 = vmmov %vm11935_vm7 }
 0x50e   : > { %6073 = vrot.lane.b32.xlu1 %v11357_v30, %s11933_s0  ;;  %6043 = vrot.lane.b32.xlu0 %v11357_v30, %s11934_s1  ;;  %v6048_v43 = vshll.u32 %v11357_v30, 16  ;;  %v6060_v34 = vrot.slane %v11357_v30, 1  ;;  %v6046_v29 = vshrl.u32 %v11357_v30, 16 }
 0x50f   : > { %6491 = vmatpush1.bf16.msra.mxu1 %v7945_v55 }
 0x510   : > { %v6050_v49 = vrot.slane %v6048_v43, 1  ;;  %7044 = vmatprep.subr.bf16.mxu1 %v11930_v57 }
 0x512   : > { %6067 = vrot.lane.b32.xlu0 %v6060_v34, %s11931_s12  ;;  %v6051_v44 = vor.u32 %v6050_v49, %v6046_v29 }
 0x514   : > { %6081 = vrot.lane.b32.xlu1 %v6051_v44, %s11876_s18 }
 0x516   : > { %6058 = vrot.lane.b32.xlu0 %v6051_v44, %s11875_s29 }
 0x51a   : > { %6079 = vrot.lane.b32.xlu0 %v11307_v36, %s11876_s18  ;;  %v6029_v36 = vpop.permute.xlu1 %6028 }
 0x51e   : > { %6083 = vrot.lane.b32.xlu0 %v11142_v58, %s11876_s18  ;;  %v6013_v46 = vpop.permute.xlu1 %6012 }
 0x51f   : > { %v6086_v39 = vsel %vm2593_vm10, %v11124_v17, %v6013_v46 }
 0x520   : > { %v6094_v62 = vsel %vm11941_vm0, %v6086_v39, %v6029_v36 }
 0x522   : > { %v6038_v53 = vpop.permute.xlu1 %6037 }
 0x523   : > { %v6102_v16 = vsel %vm11937_vm11, %v6029_v36, %v6038_v53  ;;  %vm11948_vm11 = vcmask 261120  }
 0x526   : > { %v6062_v63 = vpop.permute.xlu1 %6061 }
 0x52a   : > { %v6053_v56 = vpop.permute.xlu1 %6052  ;;  %v6040_v47 = vpop.permute.xlu0 %6039 }
 0x52b   : > { %v6104_v51 = vsel %vm11935_vm7, %v6031_v23, %v6040_v47  ;;  %v6110_v38 = vsel %vm11938_vm9, %v6102_v16, %v6053_v56  ;;  %vm11949_vm9 = vmmov %vm11941_vm0 }
 0x52c   : > { %v6118_v22 = vsel %vm11943_vm3, %v6110_v38, %v6062_v63  ;;  %vm11952_vm0 = vmmov %vm11948_vm11 }
 0x52d   : > { %v6153_v27 = vcombine.low %v6094_v62, %v6118_v22  ;;  %vm11953_vm13 = vmmov %vm11952_vm0 }
 0x52e   : > { %v6070_v58 = vpop.permute.xlu1 %6069  ;;  %v6064_v5 = vpop.permute.xlu0 %6063 }
 0x52f   : > { %v6161_v20 = vrot.slane %v6153_v27, %v10231_v18  ;;  %v11960_v27 = vsub.s32 3, %v11928_v45 }
 0x532   : > { %v6033_v60 = vpop.permute.xlu1 %6032  ;;  %v6055_v6 = vpop.permute.xlu0 %6054 }
 0x533   : > { %v6112_v13 = vsel %vm11936_vm8, %v6104_v51, %v6055_v6  ;;  %vm11947_vm8 = vmmov %vm11944_vm5 }
 0x534   : > { %v6120_v54 = vsel %vm11939_vm6, %v6112_v13, %v6064_v5  ;;  %vm11950_vm6 = vmmov %vm11943_vm3 }
 0x535   : > { %v6170_v19 = vcombine.low %v6096_v15, %v6120_v54 }
 0x536   : > { %v6017_v40 = vpop.permute.xlu1 %6016 }
 0x537   : > { %v6090_v14 = vsel %vm2593_vm10, %v11224_v31, %v6017_v40  ;;  %v6178_v49 = vrot.slane %v6170_v19, %v10231_v18  ;;  %v6126_v31 = vsel %vm11948_vm11, %v6062_v63, %v6070_v58 }
 0x538   : > { %v6098_v44 = vsel %vm11946_vm14, %v6090_v14, %v6033_v60  ;;  %v11495_v14 = vld [vmem:[%s11750_s3] sm:$0x1f] }
 0x539   : > { %v7468_v56 = vcombine.low %v6161_v20, %v6178_v49 }
 0x53a   : > { %v6078_v0 = vpop.permute.xlu1 %6077 }
 0x567   : > { %v6072_v4 = vpop.permute.xlu0 %6071  ;;  %v6042_v41 = vpop.permute.xlu1 %6041 }
 0x568   : > { %v6106_v24 = vsel %vm11940_vm12, %v6033_v60, %v6042_v41  ;;  %vm11951_vm12 = vcmask 654336   ;;  %v6128_v46 = vsel %vm11952_vm0, %v6064_v5, %v6072_v4 }
 0x569   : > { %vm11954_vm3 = vmmov %vm11951_vm12 }
 0x56a   : > { %vm11957_vm14 = vmmov %vm11954_vm3 }
 0x56b   : > { %v6035_v50 = vpop.permute.xlu0 %6034  ;;  %v6066_v42 = vpop.permute.xlu1 %6065 }
 0x56f   : > { %v6057_v59 = vpop.permute.xlu1 %6056 }
 0x570   : > { %v6019_v37 = vpop.permute.xlu0 %6018  ;;  %v6114_v3 = vsel %vm11944_vm5, %v6106_v24, %v6057_v59  ;;  %vm11955_vm5 = vmmov %vm11954_vm3 }
 0x571   : > { %v6122_v9 = vsel %vm11945_vm15, %v6114_v3, %v6066_v42  ;;  %v6092_v29 = vsel %vm2593_vm10, %v11270_v35, %v6019_v37  ;;  %v6134_v35 = vsel %vm11951_vm12, %v6126_v31, %v6078_v0  ;;  %vm11956_vm15 = vmmov %vm11952_vm0 }
 0x572   : > { %v6187_v7 = vcombine.low %v6098_v44, %v6122_v9  ;;  %v6100_v21 = vsel %vm11949_vm9, %v6092_v29, %v6035_v50  ;;  %v6154_v60 = vcombine.low %v6134_v35, %v11232_v11  ;;  %v6224_v9 = vrot.slane %v11495_v14, %v11960_v27  ;;  %vm11963_vm12 = vmmov %vm11952_vm0 }
 0x573   : > { %vm11964_vm0 = vcmask 916480  }
 0x574   : > { %v6195_v28 = vrot.slane %v6187_v7, %v10231_v18  ;;  %v6168_v11 = vrot.slane %v6154_v60, %v10231_v18 }
 0x580   : > { %v6044_v8 = vpop.permute.xlu0 %6043  ;;  %v6074_v43 = vpop.permute.xlu1 %6073 }
 0x581   : > { %v6108_v2 = vsel %vm11935_vm7, %v6035_v50, %v6044_v8  ;;  %v6130_v53 = vsel %vm11953_vm13, %v6066_v42, %v6074_v43  ;;  %v6235_v42 = vrot.slane %v7468_v56, %v10231_v18  ;;  %vm6664_vm7 = vcmask 1041408   ;;  %vm11965_vm13 = vmmov %vm11954_vm3 }
 0x584   : > { %v6068_v26 = vpop.permute.xlu0 %6067 }
 0x585   : > { %v6132_v5 = vsel %vm11956_vm15, %v6068_v26, %v11413_v33 }
 0x586   : > { %v6082_v1 = vpop.permute.xlu1 %6081 }
 0x587   : > { %v6138_v47 = vsel %vm11954_vm3, %v6130_v53, %v6082_v1 }
 0x588   : > { %v6059_v10 = vpop.permute.xlu0 %6058  ;;  %v6188_v0 = vcombine.low %v6138_v47, %v6060_v34 }
 0x589   : > { %v6116_v32 = vsel %vm11947_vm8, %v6108_v2, %v6059_v10  ;;  %vm6665_vm8 = vsmask.f32 1280 }
 0x58a   : > { %v6124_v55 = vsel %vm11950_vm6, %v6116_v32, %v6068_v26  ;;  %v6202_v33 = vrot.slane %v6188_v0, %v10231_v18  ;;  %vm11467_vm11 = vmand %vm6664_vm7, %vm6665_vm8 }
 0x58b   : > { %v6204_v36 = vcombine.low %v6100_v21, %v6124_v55  ;;  %vm11971_vm8 = vmmov %vm11963_vm12 }
 0x58c   : > { %v6080_v23 = vpop.permute.xlu0 %6079 }
 0x58d   : > { %v6212_v63 = vrot.slane %v6204_v36, %v10231_v18  ;;  %v6136_v58 = vsel %vm11955_vm5, %v6128_v46, %v6080_v23  ;;  %vm11967_vm5 = vcmask 785408  }
 0x58e   : > { %v6171_v40 = vcombine.low %v6136_v58, %v11289_v25  ;;  %vm11970_vm7 = vmmov %vm11967_vm5 }
 0x58f   : > { %v7470_v6 = vcombine.low %v6195_v28, %v6212_v63 }
 0x590   : > { %v6185_v4 = vrot.slane %v6171_v40, %v10231_v18  ;;  %v6084_v41 = vpop.permute.xlu0 %6083 }
 0x591   : > { %v6140_v50 = vsel %vm11957_vm14, %v6132_v5, %v6084_v41  ;;  %v6249_v37 = vrot.slane %v7470_v6, %v10231_v18  ;;  %vm11969_vm14 = vmmov %vm11964_vm0 }
 0x592   : > { %v6205_v25 = vcombine.low %v6140_v50, %v6024_v12  ;;  %v7469_v30 = vcombine.low %v6168_v11, %v6185_v4  ;;  %v11474_v12 = vsel %vm11467_vm11, %v11910_v48, 0  ;;  %v7946_v48 = vld [vmem:[%s11749_s2 + $0x308] sm:$0xff]  }
 0x593   : > { %v6257_v51 = vcombine.low %v6235_v42, %v6249_v37  ;;  %v6258_v13 = vcombine.high %v6235_v42, %v6249_v37  ;;  %v6690_v8 = vrot.slane %v11474_v12, 1  ;;  %v6671_v54 = vshrl.u32 %v11474_v12, 16  ;;  %6719 = vrot.lane.b32.xlu0 %v11474_v12, %s11933_s0 }
 0x594   : > { %v6219_v34 = vrot.slane %v6205_v25, %v10231_v18  ;;  %v6242_v39 = vrot.slane %v7469_v30, %v10231_v18  ;;  %v6673_v24 = vshll.u32 %v11474_v12, 16 }
 0x595   : > { %6461 = vmatprep.mubr.bf16.mxu0 %v6258_v13  ;;  %6692 = vrot.lane.b32.xlu1 %v6690_v8, %s11874_s13 }
 0x596   : > { %v7471_v16 = vcombine.low %v6202_v33, %v6219_v34  ;;  %6462 = vmatmul.mubr.bf16.vlgmr.msra.gmra.mrb[80].mxu0 %v6257_v51  ;;  %v6675_v62 = vrot.slane %v6673_v24, 1 }
 0x598   : > { %v6256_v52 = vrot.slane %v7471_v16, %v10231_v18  ;;  %v11484_v15 = vor.u32 %v6675_v62, %v6671_v54 }
 0x59a   : > { %v6259_v38 = vcombine.low %v6242_v39, %v6256_v52  ;;  %v6260_v59 = vcombine.high %v6242_v39, %v6256_v52  ;;  %6684 = vrot.lane.b32.xlu1 %v11484_v15, %s11932_s20 }
 0x59c   : > { %7499 = vmatprep.mubr.msk.bf16.mxu1 %vm2593_vm10, %v6260_v59 }
 0x59d   : > { %6503 = vmatmul.mubr.bf16.vlgmr.msra.gmra.mrb[80].mxu1 %v6259_v38 }
 0x59e   : > { %7045 = vmatpush1.bf16.msra.mxu1 %v7946_v48 }
 0x59f   : > { %7046 = vmatprep.subr.bf16.mxu1 %v11930_v57 }
 0x669   : > { %v7762_v22 = vpop.f32.mrb[80].mxu0 }
 0x66a   : > { %v7763_v3 = vpop.f32.mrb[81].mxu0 }
 0x66b   : > { %v7764_v19 = vadd.f32 %v7763_v3, %v7762_v22  ;;  %v7765_v26 = vpop.f32.mrb[82].mxu0 }
 0x66c   : > { %v7766_v43 = vpop.f32.mrb[83].mxu0 }
 0x66d   : > { %v7767_v29 = vadd.f32 %v7766_v43, %v7765_v26  ;;  %v6464_v49 = vadd.f32 %v7764_v19, %v6224_v9 }
 0x66f   : > { %v6467_v7 = vadd.f32 %v7767_v29, %v6224_v9  ;;  %v7947_v29 = vld [vmem:[%s11749_s2 + $0x310] sm:$0xff]  }
 0x670   : > { %v6504_v44 = vpop.f32.mrb[80].mxu1  ;;  %7047 = vmatpush1.bf16.msra.mxu1 %v7947_v29 }
 0x671   : > { %v6505_v2 = vadd.f32 %v6504_v44, %v6464_v49  ;;  %v6506_v10 = vpop.f32.mrb[81].mxu1  ;;  %7048 = vmatprep.subr.bf16.mxu1 %v11930_v57 }
 0x672   : > { %v6507_v32 = vpop.f32.mrb[82].mxu1 }
 0x673   : > { %vm6511_vm9 = vcmp.gt.f32.partialorder %v6505_v2, 0.0  ;;  %v6513_v20 = vmul.f32 0.01, %v6505_v2  ;;  %v6508_v31 = vadd.f32 %v6507_v32, %v6467_v7  ;;  %v6509_v21 = vpop.f32.mrb[83].mxu1 }
 0x675   : > { %v6515_v1 = vsel %vm6511_vm9, %v6505_v2, %v6513_v20  ;;  %vm6512_vm6 = vcmp.gt.f32.partialorder %v6508_v31, 0.0  ;;  %v6514_v55 = vmul.f32 0.01, %v6508_v31 }
 0x676   : > { %v6519_v35 = vcombine.high %v6515_v1, %v6515_v1 }
 0x677   : > { %v6516_v36 = vsel %vm6512_vm6, %v6508_v31, %v6514_v55  ;;  %v7948_v31 = vld [vmem:[%s11749_s2 + $0x318] sm:$0xff]  }
 0x678   : > { %v6523_v46 = vmax.f32 %v6515_v1, %v6519_v35  ;;  %v6520_v53 = vcombine.high %v6516_v36, %v6516_v36  ;;  %7049 = vmatpush1.bf16.msra.mxu1 %v7948_v31  ;;  %v7949_v35 = vld [vmem:[%s11749_s2 + $0x2c8] sm:$0xff]  }
 0x679   : > { %7050 = vmatprep.subr.bf16.mxu1 %v11930_v57  ;;  %7768 = vmatprep.subr.bf16.mxu0 %v7949_v35 }
 0x67a   : > { %v6533_v23 = vrot.slane %v6523_v46, %v10231_v18  ;;  %v6524_v56 = vmax.f32 %v6516_v36, %v6520_v53  ;;  %v7950_v36 = vld [vmem:[%s11749_s2 + $0x288] sm:$0xff]  }
 0x67b   : > { %7769 = vmatpush3.bf16.msra.mxu0 %v7950_v36 }
 0x67c   : > { %v6534_v28 = vcombine.high %v6533_v23, %v6533_v23  ;;  %v6547_v47 = vsel %vm3872_vm1, %v6533_v23, -inf  ;;  %v6541_v63 = vrot.slane %v6524_v56, %v10231_v18  ;;  %v7951_v56 = vld [vmem:[%s11749_s2 + $0x320] sm:$0xff]  }
 0x67d   : > { %v6548_v58 = vrot.slane %v6547_v47, 4  ;;  %7051 = vmatpush1.bf16.msra.mxu1 %v7951_v56 }
 0x67e   : > { %v6554_v60 = vsel %vm3872_vm1, %v6534_v28, -inf  ;;  %v6542_v40 = vcombine.high %v6541_v63, %v6541_v63  ;;  %v6561_v6 = vsel %vm3872_vm1, %v6541_v63, -inf  ;;  %7052 = vmatprep.subr.bf16.mxu1 %v11930_v57 }
 0x67f   : > { %v6549_v5 = vmax.f32 %v6547_v47, %v6548_v58  ;;  %v6555_v0 = vrot.slane %v6554_v60, 4  ;;  %v6562_v4 = vrot.slane %v6561_v6, 4 }
 0x680   : > { %v6568_v41 = vsel %vm3872_vm1, %v6542_v40, -inf }
 0x681   : > { %v6550_v50 = vrot.slane %v6549_v5, 2  ;;  %v6556_v42 = vmax.f32 %v6554_v60, %v6555_v0  ;;  %v6563_v37 = vmax.f32 %v6561_v6, %v6562_v4  ;;  %v6569_v11 = vrot.slane %v6568_v41, 4  ;;  %v7953_v0 = vld [vmem:[%s11749_s2 + $0x290] sm:$0xff]   ;;  %7053 = vmatpush1.bf16.msra.mxu1 %v7954_v61 }
 0x682   : > { %7054 = vmatprep.subr.bf16.mxu1 %v11930_v57 }
 0x683   : > { %v6551_v25 = vmax.f32 %v6549_v5, %v6550_v50  ;;  %v6557_v51 = vrot.slane %v6556_v42, 2  ;;  %v6564_v13 = vrot.slane %v6563_v37, 2  ;;  %v6570_v33 = vmax.f32 %v6568_v41, %v6569_v11  ;;  %v7952_v5 = vld [vmem:[%s11749_s2 + $0x2d0] sm:$0xff]   ;;  %v7955_v11 = vld [vmem:[%s11749_s2 + $0x2d8] sm:$0xff]  }
 0x684   : > { %7770 = vmatprep.subr.bf16.mxu0 %v7952_v5 }
 0x685   : > { %v6552_v30 = vrot.slane %v6551_v25, 1  ;;  %v6558_v34 = vmax.f32 %v6556_v42, %v6557_v51  ;;  %v6565_v16 = vmax.f32 %v6563_v37, %v6564_v13  ;;  %v6571_v39 = vrot.slane %v6570_v33, 2  ;;  %7771 = vmatpush3.bf16.msra.mxu0 %v7953_v0  ;;  %v7957_v51 = vld [vmem:[%s11749_s2 + $0x330] sm:$0xff]   ;;  %v7958_v13 = vld [vmem:[%s11749_s2 + $0x2e0] sm:$0xff]  }
 0x686   : > { %7772 = vmatprep.subr.bf16.mxu0 %v7955_v11  ;;  %7055 = vmatpush1.bf16.msra.mxu1 %v7957_v51 }
 0x687   : > { %v6553_v52 = vmax.f32 %v6551_v25, %v6552_v30  ;;  %v6559_v38 = vrot.slane %v6558_v34, 1  ;;  %v6566_v59 = vrot.slane %v6565_v16, 1  ;;  %v6572_v54 = vmax.f32 %v6570_v33, %v6571_v39  ;;  %v7956_v25 = vld [vmem:[%s11749_s2 + $0x298] sm:$0xff]   ;;  %v7959_v30 = vld [vmem:[%s11749_s2 + $0x2a0] sm:$0xff]   ;;  %7056 = vmatprep.subr.bf16.mxu1 %v11930_v57  ;;  %v7961_v39 = vld [vmem:[%s11749_s2 + $0x2e8] sm:$0xff]  }
 0x689   : > { %v6560_v24 = vmax.f32 %v6558_v34, %v6559_v38  ;;  %v6630_v62 = vpack.c.bf16 %v6553_v52, %v6553_v52  ;;  %v6567_v48 = vmax.f32 %v6565_v16, %v6566_v59  ;;  %v6573_v22 = vrot.slane %v6572_v54, 1  ;;  %7773 = vmatpush3.bf16.msra.mxu0 %v7956_v25  ;;  %v7960_v16 = vld [vmem:[%s11749_s2 + $0x338] sm:$0xff]   ;;  %v7962_v52 = vld [vmem:[%s11749_s2 + $0x2a8] sm:$0xff]   ;;  %v7963_v38 = vld [vmem:[%s11749_s2 + $0x340] sm:$0xff]  }
 0x68a   : > { %7774 = vmatprep.subr.bf16.mxu0 %v7958_v13  ;;  %7057 = vmatpush1.bf16.msra.mxu1 %v7960_v16  ;;  %v7964_v59 = vld [vmem:[%s11749_s2 + $0x2f0] sm:$0xff]  }
 0x68b   : > { %v6631_v3 = vpack.c.bf16 %v6560_v24, %v6560_v24  ;;  %v6574_v19 = vmax.f32 %v6572_v54, %v6573_v22  ;;  %v6632_v26 = vpack.c.bf16 %v6567_v48, %v6567_v48  ;;  %v6638_v27 = vunpack.c.l.b16 %v6630_v62  ;;  %7058 = vmatprep.subr.bf16.mxu1 %v11930_v57  ;;  %v7965_v54 = vld [vmem:[%s11749_s2 + $0x2b0] sm:$0xff]   ;;  %v7966_v24 = vld [vmem:[%s11749_s2 + $0x348] sm:$0xff]   ;;  %v7967_v62 = vld [vmem:[%s11749_s2 + $0x2f8] sm:$0xff]  }
 0x68c   : > { %v7968_v48 = vld [vmem:[%s11749_s2 + $0x2b8] sm:$0xff]   ;;  %v7970_v22 = vld [vmem:[%s11749_s2 + $0x300] sm:$0xff]  }
 0x68d   : > { %v6633_v9 = vpack.c.bf16 %v6574_v19, %v6574_v19  ;;  %v6639_v43 = vunpack.c.l.b16 %v6631_v3  ;;  %v6640_v49 = vunpack.c.l.b16 %v6632_v26  ;;  %7775 = vmatpush3.bf16.msra.mxu0 %v7959_v30  ;;  %v7971_v3 = vld [vmem:[%s11749_s2 + $0x2c0] sm:$0xff]   ;;  %v7972_v19 = vld [vmem:[%s11749_s2 + $0x358] sm:$0xff]   ;;  %v6693_v26 = vpop.permute.xlu1 %6692 }
 0x68e   : > { %7776 = vmatprep.subr.bf16.mxu0 %v7961_v39  ;;  %7059 = vmatpush1.bf16.msra.mxu1 %v7963_v38 }
 0x68f   : > { %v6642_v44 = vsel %vm4385_vm2, %v6639_v43, %v6638_v27  ;;  %v6641_v2 = vunpack.c.l.b16 %v6633_v9  ;;  %7060 = vmatprep.subr.bf16.mxu1 %v11930_v57  ;;  %v6720_v9 = vpop.permute.xlu0 %6719 }
 0x690   : > { %v6644_v10 = vpack.c.b16 %v6642_v44, %v6642_v44 }
 0x691   : > { %v6643_v7 = vsel %vm4385_vm2, %v6641_v2, %v6640_v49  ;;  %7777 = vmatpush3.bf16.msra.mxu0 %v7962_v52  ;;  %v6685_v27 = vpop.permute.xlu1 %6684  ;;  %vm11962_vm2 = vcmask 523264  }
 0x692   : > { %v6647_v32 = vshrl.u32 %v6644_v10, 16  ;;  %v6645_v20 = vpack.c.b16 %v6643_v7, %v6643_v7  ;;  %v6650_v1 = vshll.u32 %v6644_v10, 16  ;;  %7778 = vmatprep.subr.bf16.mxu0 %v7964_v59  ;;  %7061 = vmatpush1.bf16.msra.mxu1 %v7966_v24  ;;  %v8084_v7 = vmov 1966171168   ;;  %vm11968_vm15 = vmmov %vm11962_vm2 }
 0x693   : > { %7062 = vmatprep.subr.bf16.mxu1 %v11930_v57 }
 0x694   : > { %v6649_v21 = vrot.slane %v6647_v32, 7  ;;  %v6654_v55 = vshrl.u32 %v6645_v20, 16  ;;  %v6657_v23 = vshll.u32 %v6645_v20, 16  ;;  %v6762_v32 = vunpack.c.l.s4 %v8084_v7 }
 0x695   : > { %7779 = vmatpush3.bf16.msra.mxu0 %v7965_v54 }
 0x696   : > { %v6652_v46 = vor.u32 %v6650_v1, %v6649_v21  ;;  %v6656_v53 = vrot.slane %v6654_v55, 7  ;;  %7780 = vmatprep.subr.bf16.mxu0 %v7967_v62  ;;  %v6763_v35 = vunpack.c.0.s8 %v6762_v32 }
 0x698   : > { %v6662_v28 = vsel %vm8416_vm4, 0, %v6652_v46  ;;  %v6659_v47 = vor.u32 %v6657_v23, %v6656_v53 }
 0x699   : > { %v11529_v63 = vsel %vm11467_vm11, %v6662_v28, 0  ;;  %7781 = vmatpush3.bf16.msra.mxu0 %v7968_v48 }
 0x69a   : > { %6697 = vrot.lane.b32.xlu1 %v11529_v63, %s11934_s1  ;;  %v6691_v58 = vrot.slane %v11529_v63, 1  ;;  %v6663_v60 = vsel %vm8416_vm4, 0, %v6659_v47  ;;  %v6680_v40 = vshll.u32 %v11529_v63, 16  ;;  %v6678_v50 = vshrl.u32 %v11529_v63, 16  ;;  %7782 = vmatprep.subr.bf16.mxu0 %v7970_v22 }
 0x69b   : > { %v11541_v6 = vsel %vm11467_vm11, %v6663_v60, 0  ;;  %vm11961_vm4 = vcmask 130048   ;;  %vm11972_vm11 = vmmov %vm11965_vm13 }
 0x69c   : > { %6694 = vrot.lane.b32.xlu0 %v6691_v58, %s11874_s13  ;;  %v6682_v17 = vrot.slane %v6680_v40, 1  ;;  %v6704_v4 = vshll.u32 %v11541_v6, 16  ;;  %v6712_v41 = vrot.slane %v11541_v6, 1  ;;  %v6702_v33 = vshrl.u32 %v11541_v6, 16  ;;  %vm11966_vm3 = vmmov %vm11961_vm4  ;;  %s7124_s13 = sshll.u32 %s10271_s10, 4  ;;  %s11659_s13 = int_to_ptr.vmem [resolvable:$true] %s7124_s13 }
 0x69d   : > { %7783 = vmatpush3.bf16.msra.mxu0 %v7971_v3  ;;  %v6766_v40 = vsub.s32 %v6763_v35, %v11928_v45 }
 0x69e   : > { %6713 = vrot.lane.b32.xlu1 %v6691_v58, %s11931_s12  ;;  %v6683_v42 = vor.u32 %v6682_v17, %v6678_v50  ;;  %v6706_v37 = vrot.slane %v6704_v4, 1 }
 0x6a0   : > { %6699 = vrot.lane.b32.xlu0 %v11541_v6, %s11934_s1  ;;  %v6707_v34 = vor.u32 %v6706_v37, %v6702_v33  ;;  %s11656_s1 = scalar_lea.hbm %s11752_s5, %s7592_s30 }
 0x6a2   : > { %6717 = vrot.lane.b32.xlu1 %v11541_v6, %s11933_s0 }
 0x6a4   : > { %6715 = vrot.lane.b32.xlu0 %v6712_v41, %s11931_s12 }
 0x6a6   : > { %6708 = vrot.lane.b32.xlu1 %v6683_v42, %s11875_s29 }
 0x6a8   : > { %6686 = vrot.lane.b32.xlu0 %v6683_v42, %s11932_s20  ;;  %s7982_s20 = sshll.u32 %s8085_s11, 4  ;;  %s7983_s20 = int_to_ptr.vmem [resolvable:$false] %s7982_s20 }
 0x6a9   : > { %s7984_s19 = scalar_lea.vmem %s7983_s20, 2048  ;;  %p7985_p0 = scmp.lt.s32.totalorder %s11659_s13, %s7983_s20 }
 0x6aa   : > { %6721 = vrot.lane.b32.xlu1 %v6707_v34, %s11876_s18 }
 0x6ac   : > { %6710 = vrot.lane.b32.xlu0 %v6707_v34, %s11875_s29 }
 0x6b0   : > { %6723 = vrot.lane.b32.xlu0 %v11484_v15, %s11876_s18  ;;  %v7969_v15 = vld [vmem:[%s11749_s2 + $0x350] sm:$0xff]   ;;  %s7978_s18 = scalar_lea.vmem %s11659_s13, 1024 }
 0x6b1   : > { %7063 = vmatpush1.bf16.msra.mxu1 %v7969_v15  ;;  %p7979_p11 = scmp.ne.s32.totalorder %s11659_s13, %s7978_s18  ;;  %p7986_p1 = scmp.lt.s32.totalorder %s7984_s19, %s7978_s18 }
 0x6b2   : > { %7064 = vmatprep.subr.bf16.mxu1 %v11930_v57  ;;  %v6726_v57 = vsel %vm2593_vm10, %v11474_v12, %v6685_v27 }
 0x6b3   : > { %v6730_v58 = vsel %vm11967_vm5, %v6726_v57, %v6693_v26  ;;  %p7980_p12 = pnand %p7979_p11, %p8163_p5  ;;  %p7987_p2 = por %p7986_p1, %p7985_p0 }
 0x6b5   : > { %7065 = vmatpush1.bf16.msra.mxu1 %v7972_v19  ;;  %p7981_p13 = pneg %p7980_p12 }
 0x6b7   : > { %p7988_p3 = pnand %p7987_p2, %p7981_p13 }
 0x70c   : > { %v6698_v43 = vpop.permute.xlu1 %6697 }
 0x70d   : > { %v6734_v31 = vsel %vm11961_vm4, %v6693_v26, %v6698_v43 }
 0x70e   : > { %v6695_v29 = vpop.permute.xlu0 %6694 }
 0x710   : > { %v6714_v49 = vpop.permute.xlu1 %6713 }
 0x712   : > { %v6700_v44 = vpop.permute.xlu0 %6699 }
 0x713   : > { %v6736_v23 = vsel %vm11966_vm3, %v6695_v29, %v6700_v44 }
 0x714   : > { %v6718_v2 = vpop.permute.xlu1 %6717 }
 0x715   : > { %v6746_v55 = vsel %vm11963_vm12, %v6714_v49, %v6718_v2 }
 0x716   : > { %v6716_v10 = vpop.permute.xlu0 %6715 }
 0x717   : > { %v6748_v17 = vsel %vm11971_vm8, %v6716_v10, %v6720_v9 }
 0x718   : > { %v6709_v20 = vpop.permute.xlu1 %6708 }
 0x719   : > { %v6738_v21 = vsel %vm11962_vm2, %v6734_v31, %v6709_v20 }
 0x71a   : > { %v6687_v1 = vpop.permute.xlu0 %6686  ;;  %v6742_v46 = vsel %vm11964_vm0, %v6738_v21, %v6714_v49 }
 0x71b   : > { %v6728_v56 = vsel %vm2593_vm10, %v11529_v63, %v6687_v1  ;;  %v6759_v5 = vcombine.low %v6730_v58, %v6742_v46 }
 0x71c   : > { %v6722_v36 = vpop.permute.xlu1 %6721  ;;  %v6732_v61 = vsel %vm11970_vm7, %v6728_v56, %v6695_v29 }
 0x71d   : > { %v6750_v53 = vsel %vm11965_vm13, %v6746_v55, %v6722_v36 }
 0x71e   : > { %v6760_v28 = vcombine.low %v6750_v53, %v6712_v41  ;;  %v6711_v47 = vpop.permute.xlu0 %6710  ;;  %v6767_v41 = vrot.slane %v6759_v5, %v6766_v40 }
 0x71f   : > { %v6740_v60 = vsel %vm11968_vm15, %v6736_v23, %v6711_v47 }
 0x720   : > { %v6744_v0 = vsel %vm11969_vm14, %v6740_v60, %v6716_v10  ;;  %v6774_v4 = vrot.slane %v6760_v28, %v6766_v40 }
 0x721   : > { %v6783_v50 = vcombine.low %v6732_v61, %v6744_v0 }
 0x722   : > { %v6724_v63 = vpop.permute.xlu0 %6723  ;;  %v6775_v37 = vcombine.low %v6767_v41, %v6774_v4 }
 0x723   : > { %v6752_v6 = vsel %vm11972_vm11, %v6748_v17, %v6724_v63  ;;  %v6791_v11 = vrot.slane %v6783_v50, %v6766_v40 }
 0x724   : > { %v6784_v42 = vcombine.low %v6752_v6, %v6690_v8  ;;  %v6782_v13 = vrot.slane %v6775_v37, %v6766_v40 }
 0x726   : > { %v6798_v25 = vrot.slane %v6784_v42, %v6766_v40 }
 0x728   : > { %v6799_v51 = vcombine.low %v6791_v11, %v6798_v25 }
 0x72a   : > { %v6806_v33 = vrot.slane %v6799_v51, %v6766_v40 }
 0x72c   : > { %v6811_v30 = vcombine.low %v6782_v13, %v6806_v33 }
 0x72e   : > { %v6818_v34 = vrot.slane %v6811_v30, %v6766_v40 }
 0x730   : > { %v6819_v16 = vcombine.high %v6818_v34, %v6818_v34  ;;  %v6826_v39 = vrot.slane %v6818_v34, %v6766_v40 }
 0x732   : > { %v6833_v52 = vrot.slane %v6819_v16, %v6766_v40  ;;  %v6834_v12 = vcombine.high %v6826_v39, %v6826_v39 }
 0x734   : > { %v6835_v38 = vcombine.high %v6833_v52, %v6833_v52  ;;  %7036 = vmatprep.mubr.bf16.mxu0 %v6833_v52 }
 0x735   : > { %7037 = vmatmul.mubr.bf16.vlgmr.msra.gmra.mrb[84].mxu0 %v6826_v39 }
 0x736   : > { %7581 = vmatprep.mubr.msk.bf16.mxu1 %vm2593_vm10, %v6835_v38 }
 0x737   : > { %7077 = vmatmul.mubr.bf16.vlgmr.msra.gmra.mrb[84].mxu1 %v6834_v12 }
 0x738   : > { %7991 = shalt.err (!%p7988_p3)
}
 0x739   : > { %s7992_s10 = scalar_lea.hbm %s11656_s1, 1024  ;;  %s7996_s23 = scalar_lea.hbm %s11752_s5, 2048 }
 0x73a   : > { %p7993_p4 = scmp.ne.s32.totalorder %s11656_s1, %s7992_s10  ;;  %p7997_p9 = scmp.lt.u32.totalorder %s11656_s1, %s11752_s5 }
 0x73b   : > { %p7998_p10 = scmp.lt.u32.totalorder %s7996_s23, %s7992_s10  ;;  %p8000_p12 = scmp.lt.u32.totalorder %s7992_s10, %s11656_s1 }
 0x73c   : > { %p7994_p7 = pnand %p7993_p4, %p8163_p5 }
 0x73d   : > { %p7999_p11 = por %p7998_p10, %p7997_p9 }
 0x73e   : > { %p7995_p8 = pneg %p7994_p7 }
 0x73f   : > { %p8001_p13 = por %p8000_p12, %p7999_p11 }
 0x741   : > { %p8002_p0 = pnand %p8001_p13, %p7995_p8 }
 0x743   : > { %8005 = shalt.err (!%p8002_p0)
}
 0x744   : > { %s8086_s17 = smov 128   ;;  %s8087_s14 = smov 8  }
 0x745   : > { %7790 = dma.vmem_to_hbm [thread:$0]  (%p8163_p5), %s11659_s13, 1024, %s11656_s1, %s7103_s26, %s8086_s17, %s8086_s17, %s8087_s14  }
 0x746   : > { %s7593_s18 = sshll.u32 %s8146_s25, 8  ;;  %s7140_s11 = sshll.u32 %s11182_s15, 4  ;;  %s11692_s11 = int_to_ptr.vmem [resolvable:$true] %s7140_s11 }
 0x747   : > { %s11690_s10 = scalar_lea.hbm %s11753_s6, %s7593_s18  ;;  %s7108_s0 = scalar_lea.sflag [#allocation5], %s10255_s16 }
 0x748   : > { %s8006_s28 = scalar_lea.vmem %s11692_s11, 256  ;;  %s8088_s23 = smov [#allocation4]  }
 0x749   : > { %p8007_p1 = scmp.ne.s32.totalorder %s11692_s11, %s8006_s28  ;;  %s8010_s1 = sshll.u32 %s8088_s23, 4  ;;  %s8011_s1 = int_to_ptr.vmem [resolvable:$false] %s8010_s1 }
 0x74a   : > { %s8012_s25 = scalar_lea.vmem %s8011_s1, 512  ;;  %p8013_p4 = scmp.lt.s32.totalorder %s11692_s11, %s8011_s1 }
 0x74b   : > { %p8008_p2 = pnand %p8007_p1, %p8163_p5  ;;  %p8014_p7 = scmp.lt.s32.totalorder %s8012_s25, %s8006_s28 }
 0x74d   : > { %p8009_p3 = pneg %p8008_p2  ;;  %p8015_p8 = por %p8014_p7, %p8013_p4 }
 0x74f   : > { %p8016_p9 = pnand %p8015_p8, %p8009_p3 }
 0x751   : > { %8019 = shalt.err (!%p8016_p9)
}
 0x752   : > { %s8020_s15 = scalar_lea.hbm %s11690_s10, 256  ;;  %s8024_s12 = scalar_lea.hbm %s11753_s6, 512 }
 0x753   : > { %p8021_p10 = scmp.ne.s32.totalorder %s11690_s10, %s8020_s15  ;;  %p8025_p13 = scmp.lt.u32.totalorder %s11690_s10, %s11753_s6 }
 0x754   : > { %p8026_p0 = scmp.lt.u32.totalorder %s8024_s12, %s8020_s15  ;;  %p8028_p2 = scmp.lt.u32.totalorder %s8020_s15, %s11690_s10 }
 0x755   : > { %p8022_p11 = pnand %p8021_p10, %p8163_p5 }
 0x756   : > { %p8027_p1 = por %p8026_p0, %p8025_p13 }
 0x757   : > { %p8023_p12 = pneg %p8022_p11 }
 0x758   : > { %p8029_p3 = por %p8028_p2, %p8027_p1 }
 0x75a   : > { %p8030_p4 = pnand %p8029_p3, %p8023_p12 }
 0x75c   : > { %8033 = shalt.err (!%p8030_p4)
}
 0x75d   : > { %s8089_s14 = smov 4   ;;  %v11973_v59 = vsub.s32 4, %v11928_v45  ;;  %s7591_s7 = sshll.u32 %s8177_s9, 2 }
 0x75e   : > { %7791 = dma.vmem_to_hbm [thread:$0]  (%p8163_p5), %s11692_s11, 256, %s11690_s10, %s7108_s0, %s11875_s29, %s11875_s29, %s8089_s14  }
 0x75f   : > { %v6810_v54 = vrot.slane %v11495_v14, %v11973_v59  ;;  %s272_s29 = scalar_lea.vmem %s11751_s4, %s7591_s7 }
 0x808   : > { %v7784_v8 = vpop.f32.mrb[84].mxu0 }
 0x809   : > { %v7785_v24 = vpop.f32.mrb[85].mxu0 }
 0x80a   : > { %v7786_v62 = vadd.f32 %v7785_v24, %v7784_v8  ;;  %v7787_v48 = vpop.f32.mrb[86].mxu0  ;;  %v7078_v15 = vpop.f32.mrb[84].mxu1 }
 0x80b   : > { %v7788_v22 = vpop.f32.mrb[87].mxu0  ;;  %v7080_v3 = vpop.f32.mrb[85].mxu1 }
 0x80c   : > { %v7039_v19 = vadd.f32 %v7786_v62, %v6810_v54  ;;  %v7081_v26 = vpop.f32.mrb[86].mxu1 }
 0x80d   : > { %v7082_v27 = vpop.f32.mrb[87].mxu1 }
 0x80e   : > { %v7079_v9 = vadd.f32 %v7078_v15, %v7039_v19 }
 0x810   : > { %v7091_v43 = vrot.slane %v7079_v9, %v10231_v18 }
 0x812   : > { %v7092_v45 = vcombine.high %v7091_v43, %v7091_v43  ;;  %7095 = vst.msk [vmem:[%s272_s29] sm:$0x3] %vm3872_vm1, %v7091_v43 }
 0x814   : > { %7096 = vst.msk [vmem:[%s272_s29 + $0x2] sm:$0x3] %vm3872_vm1, %v7092_v45 }
 0x815 PF: > { %p7801_p5 = scmp.ge.s32.totalorder %s8072_s24, 2  ;;  %s7163_s9 = sand.u32 1, %s8060_s21  }
 0x816   : > { %s7164_s11 = scalar_lea.sflag [#allocation3], %s7163_s9 }
 0x817   : > { %p7795_p7 = pnand %p7801_p5, %p8167_p6 }
 0x819   : > { %8051 = dma.done.wait (!%p7795_p7), %s7164_s11, 1024  }
 0x81a   : > { %8053 = vsyncadd (!%p7795_p7), %s7164_s11, 4294966272  ;;  %s7173_s20 = scalar_lea.sflag [#allocation5], %s7163_s9 }
 0x81b   : > { %8055 = dma.done.wait (!%p7795_p7), %s7173_s20, 256  }
 0x81c   : > { %8057 = vsyncadd (!%p7795_p7), %s7173_s20, 4294967040  ;;  %s11974_s19 = sld [smem:[#allocation8_spill]]  ;;  %s11975_s23 = sld [smem:[#allocation9_spill]] }
 0x81d   : > { %p20_p8 = scmp.ge.s32.totalorder %s8150_s27, 4   ;;  %s11976_s21 = smov %s8064_s22 }
 0x81e   : > { %s11978_s24 = smov %s8150_s27 }
 0x81f   :  { %22 = sbr.rel (!%p20_p8) target bundleno = 8 (0x8), region = 103 }
 0x822   : > { %s11977_s22 = smov %s11974_s19 }
 0x826   :  { %7178 = vsyncpa [#allocation3], 1 }
 0x827   :  { %7180 = vsyncpa [#allocation3 + $0x1], 1 }
 0x828   :  { %7181 = vsyncpa [#allocation5], 1 }
 0x829   :  { %7183 = vsyncpa [#allocation5 + $0x1], 1 }

</bundles_post_ra>
